<compile_context>
chip_gen: v7x
topology: tpu7x:2x2x1
jax: 0.10.0
libtpu: 0.0.40
codegen_flags: <defaults>
</compile_context>

<pallas_src>
import jax
import jax.numpy as jnp
from jax import lax
from jax.experimental import pallas as pl
from jax.experimental.pallas import tpu as pltpu

INPUT_DIM = 14                      # [t, 12 price features, V_t]
HIDDEN_DIMS = (512, 512, 256, 128)  # module defaults
N_HEADS = 11                        # len(env_max) - 1 with 12 actions
N_ACTIONS = 12
OUT_ROWS = 16                       # 12 action rows padded to a sublane multiple
V_MIN, V_MAX, I_MAX, W_MAX = 0.0, 1.0, 0.4, 0.4
LN_EPS = 1e-5                       # torch.nn.LayerNorm default
LEAKY_SLOPE = 0.01                  # F.leaky_relu default


def _leaky_relu(x):
    return jnp.where(x > 0, x, LEAKY_SLOPE * x)


def _layer_norm_1pass(y, g, b):
    # One-pass statistics (saves a full VPU/vld sweep over the [TB, 512] tile).
    mu = jnp.mean(y, axis=-1, keepdims=True)
    ms = jnp.mean(y * y, axis=-1, keepdims=True)
    var = jnp.maximum(ms - mu * mu, 0.0)
    return (y - mu) * lax.rsqrt(var + LN_EPS) * g + b


def _mm(a_f32, w_bf16):
    # bf16 MXU inputs, f32 accumulation.
    return jnp.dot(a_f32.astype(jnp.bfloat16), w_bf16,
                   preferred_element_type=jnp.float32)


def fcdp_kernel(state_ref, tv_ref,
                w0_ref, b0_ref,
                w1_ref, b1_ref, g1_ref, be1_ref,
                w2_ref, b2_ref, g2_ref, be2_ref,
                w3_ref, b3_ref, g3_ref, be3_ref,
                whxt_ref, head_ref, out_ref):
    s = state_ref[...]                                     # [TB, 14] f32

    # ---- _format / _normalize (per-column denominators, no concat) ----
    col = lax.broadcasted_iota(jnp.int32, s.shape, 1)      # [TB, 14]
    is_mid = (col >= 1) & (col <= 12)                      # columns 1:13
    mid_max = jnp.max(jnp.where(is_mid, s, -1e30), axis=1, keepdims=True)
    mid_den = jnp.maximum(mid_max, 1e-6)                   # clamp(min=1e-6)
    den = jnp.where(col == 0, 11.0, jnp.where(is_mid, mid_den, V_MAX))
    sn = s / den                                           # normalized state

    # ---- MLP trunk: Linear -> leaky, then 3x (Linear -> LN -> leaky) ----
    x = _leaky_relu(_mm(sn, w0_ref[...]) + b0_ref[...])
    x = _leaky_relu(_layer_norm_1pass(_mm(x, w1_ref[...]) + b1_ref[...],
                                      g1_ref[...], be1_ref[...]))
    x = _leaky_relu(_layer_norm_1pass(_mm(x, w2_ref[...]) + b2_ref[...],
                                      g2_ref[...], be2_ref[...]))
    x = _leaky_relu(_layer_norm_1pass(_mm(x, w3_ref[...]) + b3_ref[...],
                                      g3_ref[...], be3_ref[...]))   # [TB, 128]

    # ---- autoregressive heads in transposed (batch-on-lanes) layout ----
    xT = jnp.transpose(x)                                  # [128, TB] f32 (tile-aligned XLU)
    hxT = jnp.dot(whxt_ref[...], xT.astype(jnp.bfloat16),
                  preferred_element_type=jnp.float32)      # [11, TB]

    # t / V_t from the pre-transposed (t, V) rows; the f32 /11 * 11 round trip
    # before truncation matches the PyTorch `state[:,0]/=11; t=(state[:,0]*11).long()`.
    t = (tv_ref[0:1, :] / 11.0 * 11.0).astype(jnp.int32)   # [1, TB]
    V_t = (tv_ref[1:2, :] / V_MAX) * V_MAX                 # [1, TB]

    out_ref[...] = jnp.zeros_like(out_ref)                 # covers the 4 pad rows
    cum_V = V_t
    for j in range(N_HEADS):
        cap = min((12 - j - 1) * I_MAX, V_MAX)             # python constant
        fmax = jnp.minimum(cap - cum_V, I_MAX)
        fmin = jnp.maximum(V_MIN - cum_V, -W_MAX)
        raw = hxT[j:j + 1, :] + cum_V * head_ref[0, j] + head_ref[1, j]
        mask = (t <= (j + 1)).astype(jnp.float32)
        bounded = ((jnp.tanh(raw) + 1.0) * 0.5 * (fmax - fmin) + fmin) * mask
        out_ref[j:j + 1, :] = bounded
        cum_V = cum_V + bounded

    # x12 = clip(-V_t - sum(actions), ...) == clip(-cum_V, ...)
    out_ref[N_HEADS:N_HEADS + 1, :] = jnp.clip(-cum_V, -W_MAX, I_MAX)


def _pick_tb(batch):
    # Target TB=512 (amortize grid-step overhead, M multiple of 256 for the
    # v6e/v7x 256-wide MXU); shrink only to keep >= 2 grid steps (v7x megacore).
    tb = 512
    while tb > 128 and batch <= tb:
        tb //= 2
    return tb


def fcdp_forward(state, params, *, tb=None):
    B = state.shape[0]
    if tb is None:
        tb = _pick_tb(B)
    assert tb % 128 == 0
    B_pad = ((B + tb - 1) // tb) * tb
    if B_pad != B:
        state = jnp.pad(state, ((0, B_pad - B), (0, 0)))
    grid = (B_pad // tb,)

    # (t, V) columns pre-transposed so the head loop sees batch on the lane axis.
    tv = jnp.stack([state[:, 0], state[:, 13]], axis=0)              # (2, B_pad)
    # Per-head scalars (row 0: whv_j on cum_V, row 1: bias) read from SMEM.
    head_scal = jnp.stack([params["whv"], params["bh"]], axis=0)     # (2, 11) f32

    weights = (params["w0"], params["b0"],
               params["w1"], params["b1"], params["g1"], params["be1"],
               params["w2"], params["b2"], params["g2"], params["be2"],
               params["w3"], params["b3"], params["g3"], params["be3"],
               params["whxt"])

    in_specs = [pl.BlockSpec((tb, INPUT_DIM), lambda i: (i, 0)),
                pl.BlockSpec((2, tb), lambda i: (0, i))]
    # Constant index_map: weights are not re-fetched across batch tiles.
    in_specs += [pl.BlockSpec(w.shape, lambda i: (0, 0)) for w in weights]
    in_specs += [pl.BlockSpec(memory_space=pltpu.MemorySpace.SMEM)]  # head scalars

    flops = 2 * B_pad * (INPUT_DIM * 512 + 512 * 512 + 512 * 256
                         + 256 * 128 + 128 * N_HEADS)
    bytes_accessed = (sum(int(w.size) * w.dtype.itemsize for w in weights)
                      + B_pad * (INPUT_DIM + 2) * 4 + OUT_ROWS * B_pad * 4)
    cost = pl.CostEstimate(flops=int(flops),
                           transcendentals=int((N_HEADS + 3) * B_pad),
                           bytes_accessed=int(bytes_accessed))

    out = pl.pallas_call(
        fcdp_kernel,
        out_shape=jax.ShapeDtypeStruct((OUT_ROWS, B_pad), jnp.float32),
        grid=grid,
        in_specs=in_specs,
        out_specs=pl.BlockSpec((OUT_ROWS, tb), lambda i: (0, i)),
        compiler_params=pltpu.CompilerParams(
            dimension_semantics=("parallel",),          # batch tiles -> v7x's 2 TCs
            vmem_limit_bytes=32 * 1024 * 1024),
        cost_estimate=cost,
    )(state, tv, *weights, head_scal)
    return out[:N_ACTIONS, :B].T                        # back to [B, 12]


# ---------------- deterministic parameter init (PyTorch-style Linear init) ---
def _linear_init(key, fan_in, fan_out):
    kw, kb = jax.random.split(key)
    bound = float(fan_in) ** -0.5
    w = jax.random.uniform(kw, (fan_in, fan_out), minval=-bound, maxval=bound,
                           dtype=jnp.float32)
    b = jax.random.uniform(kb, (1, fan_out), minval=-bound, maxval=bound,
                           dtype=jnp.float32)
    return w, b


def init_params(key):
    keys = jax.random.split(key, 9)
    w0, b0 = _linear_init(keys[0], INPUT_DIM, HIDDEN_DIMS[0])
    w1, b1 = _linear_init(keys[1], HIDDEN_DIMS[0], HIDDEN_DIMS[1])
    w2, b2 = _linear_init(keys[2], HIDDEN_DIMS[1], HIDDEN_DIMS[2])
    w3, b3 = _linear_init(keys[3], HIDDEN_DIMS[2], HIDDEN_DIMS[3])

    def ln_params(k, n):
        kg, kb_ = jax.random.split(k)
        g = 1.0 + 0.1 * jax.random.normal(kg, (1, n), dtype=jnp.float32)
        be = 0.1 * jax.random.normal(kb_, (1, n), dtype=jnp.float32)
        return g, be

    g1, be1 = ln_params(keys[4], HIDDEN_DIMS[1])
    g2, be2 = ln_params(keys[5], HIDDEN_DIMS[2])
    g3, be3 = ln_params(keys[6], HIDDEN_DIMS[3])

    # 11 heads: Linear(hidden_dims[-1] + 1, 1) each; packed as wh [129, 11].
    bound = float(HIDDEN_DIMS[3] + 1) ** -0.5
    wh = jax.random.uniform(keys[7], (HIDDEN_DIMS[3] + 1, N_HEADS),
                            minval=-bound, maxval=bound, dtype=jnp.float32)
    bh = jax.random.uniform(keys[8], (N_HEADS,),
                            minval=-bound, maxval=bound, dtype=jnp.float32)

    bf16 = jnp.bfloat16
    # TODO(synk): bf16 weight storage is validated against a bf16 JAX reference;
    # fidelity vs. the original f32 PyTorch module is ~1e-2-scale on the trunk.
    return dict(w0=w0.astype(bf16), b0=b0,
                w1=w1.astype(bf16), b1=b1, g1=g1, be1=be1,
                w2=w2.astype(bf16), b2=b2, g2=g2, be2=be2,
                w3=w3.astype(bf16), b3=b3, g3=g3, be3=be3,
                whxt=jnp.transpose(wh[:HIDDEN_DIMS[3], :]).astype(bf16),  # [11,128]
                whv=wh[HIDDEN_DIMS[3], :],                                # (11,)
                bh=bh)                                                    # (11,)


# ---------------- pure-JAX reference (mirrors the PyTorch forward) -----------
def fcdp_reference(state, p):
    def mm(a, w):                                   # same bf16-in/f32-acc matmul
        return jnp.dot(a.astype(jnp.bfloat16), w,
                       preferred_element_type=jnp.float32)

    s = state
    col0 = s[:, 0:1] / 11.0
    mid = s[:, 1:13]
    mid = mid / jnp.maximum(jnp.max(mid, axis=1, keepdims=True), 1e-6)
    last = s[:, 13:14] / V_MAX
    sn = jnp.concatenate([col0, mid, last], axis=1)
    t = (sn[:, 0:1] * 11.0).astype(jnp.int32)
    V_t = sn[:, 13:14] * V_MAX

    def ln(y, g, b):                                # two-pass LN, like PyTorch
        mu = jnp.mean(y, axis=-1, keepdims=True)
        var = jnp.mean((y - mu) ** 2, axis=-1, keepdims=True)
        return (y - mu) / jnp.sqrt(var + LN_EPS) * g + b

    x = _leaky_relu(mm(sn, p["w0"]) + p["b0"])
    x = _leaky_relu(ln(mm(x, p["w1"]) + p["b1"], p["g1"], p["be1"]))
    x = _leaky_relu(ln(mm(x, p["w2"]) + p["b2"], p["g2"], p["be2"]))
    x = _leaky_relu(ln(mm(x, p["w3"]) + p["b3"], p["g3"], p["be3"]))

    hx = mm(x, jnp.transpose(p["whxt"]))            # [B, 11]
    cum_V = V_t
    acts = []
    for j in range(N_HEADS):
        mask = (t <= (j + 1)).astype(jnp.float32)
        upper = min((12 - j - 1) * I_MAX, V_MAX) - cum_V
        lower = V_MIN - cum_V
        fmin = jnp.maximum(lower, -W_MAX)
        fmax = jnp.minimum(upper, I_MAX)
        raw = hx[:, j:j + 1] + cum_V * p["whv"][j] + p["bh"][j]
        bounded = ((jnp.tanh(raw) + 1.0) / 2.0 * (fmax - fmin) + fmin) * mask
        acts.append(bounded)
        cum_V = cum_V + bounded
    act_sum = jnp.sum(jnp.concatenate(acts, axis=1), axis=1, keepdims=True)
    x12 = jnp.clip(-V_t - act_sum, -W_MAX, I_MAX)
    return jnp.concatenate(acts + [x12], axis=1)


if __name__ == "__main__":
    key = jax.random.PRNGKey(0)
    k_state, k_params = jax.random.split(key)

    # B=512 -> TB=256 (multiple of 256 for the v6e/v7x MXU), grid=(2,) so both
    # v7x TensorCores get a tile via the "parallel" dimension semantics.
    B = 512
    kt, kp, kv = jax.random.split(k_state, 3)
    t_col = jax.random.randint(kt, (B, 1), 0, 12).astype(jnp.float32)   # step 0..11
    prices = jax.random.uniform(kp, (B, 12), minval=0.1, maxval=2.0)    # 12 prices
    vol = jax.random.uniform(kv, (B, 1), minval=0.0, maxval=0.5)        # volume
    state = jnp.concatenate([t_col, prices, vol], axis=1).astype(jnp.float32)

    params = init_params(k_params)

    out = jax.block_until_ready(fcdp_forward(state, params))

    assert out.shape == (B, N_ACTIONS)
    assert bool(jnp.all(jnp.isfinite(out)))

    ref = fcdp_reference(state, params)
    max_diff = float(jnp.max(jnp.abs(out - ref)))
    assert max_diff < 5e-3, f"kernel mismatch vs reference: {max_diff}"

    print("KERNEL_OK")
</pallas_src>

<mosaic_0001>
module attributes {stable_mosaic.version = 11 : i64} {
  func.func @fcdp_kernel(%arg0: i32, %arg1: memref<256x14xf32, #tpu.memory_space<vmem>>, %arg2: memref<2x256xf32, #tpu.memory_space<vmem>>, %arg3: memref<14x512xbf16, #tpu.memory_space<vmem>>, %arg4: memref<1x512xf32, #tpu.memory_space<vmem>>, %arg5: memref<512x512xbf16, #tpu.memory_space<vmem>>, %arg6: memref<1x512xf32, #tpu.memory_space<vmem>>, %arg7: memref<1x512xf32, #tpu.memory_space<vmem>>, %arg8: memref<1x512xf32, #tpu.memory_space<vmem>>, %arg9: memref<512x256xbf16, #tpu.memory_space<vmem>>, %arg10: memref<1x256xf32, #tpu.memory_space<vmem>>, %arg11: memref<1x256xf32, #tpu.memory_space<vmem>>, %arg12: memref<1x256xf32, #tpu.memory_space<vmem>>, %arg13: memref<256x128xbf16, #tpu.memory_space<vmem>>, %arg14: memref<1x128xf32, #tpu.memory_space<vmem>>, %arg15: memref<1x128xf32, #tpu.memory_space<vmem>>, %arg16: memref<1x128xf32, #tpu.memory_space<vmem>>, %arg17: memref<11x128xbf16, #tpu.memory_space<vmem>>, %arg18: memref<2x11xf32, #tpu.memory_space<smem>>, %arg19: memref<16x256xf32, #tpu.memory_space<vmem>>) attributes {dimension_semantics = [#tpu.dimension_semantics<parallel>], iteration_bounds = array<i64: 2>, scalar_prefetch = 0 : i64, scratch_operands = 0 : i64, tpu.core_type = #tpu.core_type<tc>, window_params = [{transform_indices = @transform_0, window_bounds = array<i64: 256, 14>}, {transform_indices = @transform_1, window_bounds = array<i64: 2, 256>}, {pipeline_mode = #tpu.pipeline_mode<synchronous>, transform_indices = @transform_2, window_bounds = array<i64: 14, 512>}, {pipeline_mode = #tpu.pipeline_mode<synchronous>, transform_indices = @transform_3, window_bounds = array<i64: 1, 512>}, {pipeline_mode = #tpu.pipeline_mode<synchronous>, transform_indices = @transform_4, window_bounds = array<i64: 512, 512>}, {pipeline_mode = #tpu.pipeline_mode<synchronous>, transform_indices = @transform_5, window_bounds = array<i64: 1, 512>}, {pipeline_mode = #tpu.pipeline_mode<synchronous>, transform_indices = @transform_6, window_bounds = array<i64: 1, 512>}, {pipeline_mode = #tpu.pipeline_mode<synchronous>, transform_indices = @transform_7, window_bounds = array<i64: 1, 512>}, {pipeline_mode = #tpu.pipeline_mode<synchronous>, transform_indices = @transform_8, window_bounds = array<i64: 512, 256>}, {pipeline_mode = #tpu.pipeline_mode<synchronous>, transform_indices = @transform_9, window_bounds = array<i64: 1, 256>}, {pipeline_mode = #tpu.pipeline_mode<synchronous>, transform_indices = @transform_10, window_bounds = array<i64: 1, 256>}, {pipeline_mode = #tpu.pipeline_mode<synchronous>, transform_indices = @transform_11, window_bounds = array<i64: 1, 256>}, {pipeline_mode = #tpu.pipeline_mode<synchronous>, transform_indices = @transform_12, window_bounds = array<i64: 256, 128>}, {pipeline_mode = #tpu.pipeline_mode<synchronous>, transform_indices = @transform_13, window_bounds = array<i64: 1, 128>}, {pipeline_mode = #tpu.pipeline_mode<synchronous>, transform_indices = @transform_14, window_bounds = array<i64: 1, 128>}, {pipeline_mode = #tpu.pipeline_mode<synchronous>, transform_indices = @transform_15, window_bounds = array<i64: 1, 128>}, {pipeline_mode = #tpu.pipeline_mode<synchronous>, transform_indices = @transform_16, window_bounds = array<i64: 11, 128>}, {transform_indices = @transform_17, window_bounds = array<i64: 2, 11>}, {transform_indices = @transform_18, window_bounds = array<i64: 16, 256>}]} {
    %c0 = arith.constant 0 : index
    %c0_0 = arith.constant 0 : index
    %0 = vector.load %arg1[%c0, %c0_0] : memref<256x14xf32, #tpu.memory_space<vmem>>, vector<256x14xf32>
    %1 = tpu.iota {dimensions = array<i32: 1>} : vector<256x14xi32>
    %c1_i32 = arith.constant 1 : i32
    %2 = vector.broadcast %c1_i32 : i32 to vector<256x14xi32>
    %3 = arith.cmpi sge, %1, %2 : vector<256x14xi32>
    %c12_i32 = arith.constant 12 : i32
    %4 = vector.broadcast %c12_i32 : i32 to vector<256x14xi32>
    %5 = arith.cmpi sle, %1, %4 : vector<256x14xi32>
    %6 = arith.andi %3, %5 : vector<256x14xi1>
    %cst = arith.constant -1.000000e+30 : f32
    %7 = vector.broadcast %cst : f32 to vector<256x14xf32>
    %8 = arith.select %6, %0, %7 : vector<256x14xi1>, vector<256x14xf32>
    %cst_1 = arith.constant dense<0xFF800000> : vector<256xf32>
    %9 = vector.multi_reduction <maximumf>, %8, %cst_1 [1] : vector<256x14xf32> to vector<256xf32>
    %10 = vector.shape_cast %9 : vector<256xf32> to vector<256x1xf32>
    %cst_2 = arith.constant 9.99999997E-7 : f32
    %11 = vector.broadcast %cst_2 : f32 to vector<256x1xf32>
    %12 = arith.maximumf %10, %11 : vector<256x1xf32>
    %c0_i32 = arith.constant 0 : i32
    %13 = vector.broadcast %c0_i32 : i32 to vector<256x14xi32>
    %14 = arith.cmpi eq, %1, %13 : vector<256x14xi32>
    %cst_3 = arith.constant 1.000000e+00 : f32
    %15 = vector.shape_cast %12 : vector<256x1xf32> to vector<256x1xf32>
    %16 = vector.broadcast %15 : vector<256x1xf32> to vector<256x14xf32>
    %17 = vector.broadcast %cst_3 : f32 to vector<256x14xf32>
    %18 = arith.select %6, %16, %17 : vector<256x14xi1>, vector<256x14xf32>
    %cst_4 = arith.constant 1.100000e+01 : f32
    %19 = vector.broadcast %cst_4 : f32 to vector<256x14xf32>
    %20 = arith.select %14, %19, %18 : vector<256x14xi1>, vector<256x14xf32>
    %21 = arith.divf %0, %20 : vector<256x14xf32>
    %c0_5 = arith.constant 0 : index
    %c0_6 = arith.constant 0 : index
    %22 = vector.load %arg3[%c0_5, %c0_6] : memref<14x512xbf16, #tpu.memory_space<vmem>>, vector<14x512xbf16>
    %23 = arith.truncf %21 : vector<256x14xf32> to vector<256x14xbf16>
    %cst_7 = arith.constant dense<0.000000e+00> : vector<256x512xf32>
    %24 = tpu.matmul %23, %22, %cst_7 {dimension_numbers = #tpu.dot_dimension_numbers<[1], [0], [0], [1], [0, 0, 1, 1], [], []>} : vector<256x14xbf16>, vector<14x512xbf16>, vector<256x512xf32> -> vector<256x512xf32>
    %c0_8 = arith.constant 0 : index
    %c0_9 = arith.constant 0 : index
    %25 = vector.load %arg4[%c0_8, %c0_9] : memref<1x512xf32, #tpu.memory_space<vmem>>, vector<1x512xf32>
    %26 = vector.broadcast %25 : vector<1x512xf32> to vector<256x512xf32>
    %27 = arith.addf %24, %26 : vector<256x512xf32>
    %cst_10 = arith.constant 0.000000e+00 : f32
    %28 = vector.broadcast %cst_10 : f32 to vector<256x512xf32>
    %29 = arith.cmpf ogt, %27, %28 : vector<256x512xf32>
    %cst_11 = arith.constant 0.00999999977 : f32
    %30 = vector.broadcast %cst_11 : f32 to vector<256x512xf32>
    %31 = arith.mulf %30, %27 : vector<256x512xf32>
    %32 = arith.select %29, %27, %31 : vector<256x512xi1>, vector<256x512xf32>
    %c0_12 = arith.constant 0 : index
    %c0_13 = arith.constant 0 : index
    %33 = vector.load %arg5[%c0_12, %c0_13] : memref<512x512xbf16, #tpu.memory_space<vmem>>, vector<512x512xbf16>
    %34 = arith.truncf %32 : vector<256x512xf32> to vector<256x512xbf16>
    %cst_14 = arith.constant dense<0.000000e+00> : vector<256x512xf32>
    %35 = tpu.matmul %34, %33, %cst_14 {dimension_numbers = #tpu.dot_dimension_numbers<[1], [0], [0], [1], [0, 0, 1, 1], [], []>} : vector<256x512xbf16>, vector<512x512xbf16>, vector<256x512xf32> -> vector<256x512xf32>
    %c0_15 = arith.constant 0 : index
    %c0_16 = arith.constant 0 : index
    %36 = vector.load %arg6[%c0_15, %c0_16] : memref<1x512xf32, #tpu.memory_space<vmem>>, vector<1x512xf32>
    %37 = vector.broadcast %36 : vector<1x512xf32> to vector<256x512xf32>
    %38 = arith.addf %35, %37 : vector<256x512xf32>
    %c0_17 = arith.constant 0 : index
    %c0_18 = arith.constant 0 : index
    %39 = vector.load %arg7[%c0_17, %c0_18] : memref<1x512xf32, #tpu.memory_space<vmem>>, vector<1x512xf32>
    %c0_19 = arith.constant 0 : index
    %c0_20 = arith.constant 0 : index
    %40 = vector.load %arg8[%c0_19, %c0_20] : memref<1x512xf32, #tpu.memory_space<vmem>>, vector<1x512xf32>
    %cst_21 = arith.constant dense<0.000000e+00> : vector<256xf32>
    %41 = vector.multi_reduction <add>, %38, %cst_21 [1] : vector<256x512xf32> to vector<256xf32>
    %42 = vector.shape_cast %41 : vector<256xf32> to vector<256x1xf32>
    %cst_22 = arith.constant 5.120000e+02 : f32
    %43 = vector.broadcast %cst_22 : f32 to vector<256x1xf32>
    %44 = arith.divf %42, %43 : vector<256x1xf32>
    %45 = arith.mulf %38, %38 : vector<256x512xf32>
    %cst_23 = arith.constant dense<0.000000e+00> : vector<256xf32>
    %46 = vector.multi_reduction <add>, %45, %cst_23 [1] : vector<256x512xf32> to vector<256xf32>
    %47 = vector.shape_cast %46 : vector<256xf32> to vector<256x1xf32>
    %cst_24 = arith.constant 5.120000e+02 : f32
    %48 = vector.broadcast %cst_24 : f32 to vector<256x1xf32>
    %49 = arith.divf %47, %48 : vector<256x1xf32>
    %50 = arith.mulf %44, %44 : vector<256x1xf32>
    %51 = arith.subf %49, %50 : vector<256x1xf32>
    %cst_25 = arith.constant 0.000000e+00 : f32
    %52 = vector.broadcast %cst_25 : f32 to vector<256x1xf32>
    %53 = arith.maximumf %51, %52 : vector<256x1xf32>
    %54 = vector.broadcast %44 : vector<256x1xf32> to vector<256x512xf32>
    %55 = arith.subf %38, %54 : vector<256x512xf32>
    %cst_26 = arith.constant 9.99999974E-6 : f32
    %56 = vector.broadcast %cst_26 : f32 to vector<256x1xf32>
    %57 = arith.addf %53, %56 : vector<256x1xf32>
    %58 = math.rsqrt %57 : vector<256x1xf32>
    %59 = vector.broadcast %58 : vector<256x1xf32> to vector<256x512xf32>
    %60 = arith.mulf %55, %59 : vector<256x512xf32>
    %61 = vector.broadcast %39 : vector<1x512xf32> to vector<256x512xf32>
    %62 = arith.mulf %60, %61 : vector<256x512xf32>
    %63 = vector.broadcast %40 : vector<1x512xf32> to vector<256x512xf32>
    %64 = arith.addf %62, %63 : vector<256x512xf32>
    %cst_27 = arith.constant 0.000000e+00 : f32
    %65 = vector.broadcast %cst_27 : f32 to vector<256x512xf32>
    %66 = arith.cmpf ogt, %64, %65 : vector<256x512xf32>
    %cst_28 = arith.constant 0.00999999977 : f32
    %67 = vector.broadcast %cst_28 : f32 to vector<256x512xf32>
    %68 = arith.mulf %67, %64 : vector<256x512xf32>
    %69 = arith.select %66, %64, %68 : vector<256x512xi1>, vector<256x512xf32>
    %c0_29 = arith.constant 0 : index
    %c0_30 = arith.constant 0 : index
    %70 = vector.load %arg9[%c0_29, %c0_30] : memref<512x256xbf16, #tpu.memory_space<vmem>>, vector<512x256xbf16>
    %71 = arith.truncf %69 : vector<256x512xf32> to vector<256x512xbf16>
    %cst_31 = arith.constant dense<0.000000e+00> : vector<256x256xf32>
    %72 = tpu.matmul %71, %70, %cst_31 {dimension_numbers = #tpu.dot_dimension_numbers<[1], [0], [0], [1], [0, 0, 1, 1], [], []>} : vector<256x512xbf16>, vector<512x256xbf16>, vector<256x256xf32> -> vector<256x256xf32>
    %c0_32 = arith.constant 0 : index
    %c0_33 = arith.constant 0 : index
    %73 = vector.load %arg10[%c0_32, %c0_33] : memref<1x256xf32, #tpu.memory_space<vmem>>, vector<1x256xf32>
    %74 = vector.broadcast %73 : vector<1x256xf32> to vector<256x256xf32>
    %75 = arith.addf %72, %74 : vector<256x256xf32>
    %c0_34 = arith.constant 0 : index
    %c0_35 = arith.constant 0 : index
    %76 = vector.load %arg11[%c0_34, %c0_35] : memref<1x256xf32, #tpu.memory_space<vmem>>, vector<1x256xf32>
    %c0_36 = arith.constant 0 : index
    %c0_37 = arith.constant 0 : index
    %77 = vector.load %arg12[%c0_36, %c0_37] : memref<1x256xf32, #tpu.memory_space<vmem>>, vector<1x256xf32>
    %cst_38 = arith.constant dense<0.000000e+00> : vector<256xf32>
    %78 = vector.multi_reduction <add>, %75, %cst_38 [1] : vector<256x256xf32> to vector<256xf32>
    %79 = vector.shape_cast %78 : vector<256xf32> to vector<256x1xf32>
    %cst_39 = arith.constant 2.560000e+02 : f32
    %80 = vector.broadcast %cst_39 : f32 to vector<256x1xf32>
    %81 = arith.divf %79, %80 : vector<256x1xf32>
    %82 = arith.mulf %75, %75 : vector<256x256xf32>
    %cst_40 = arith.constant dense<0.000000e+00> : vector<256xf32>
    %83 = vector.multi_reduction <add>, %82, %cst_40 [1] : vector<256x256xf32> to vector<256xf32>
    %84 = vector.shape_cast %83 : vector<256xf32> to vector<256x1xf32>
    %cst_41 = arith.constant 2.560000e+02 : f32
    %85 = vector.broadcast %cst_41 : f32 to vector<256x1xf32>
    %86 = arith.divf %84, %85 : vector<256x1xf32>
    %87 = arith.mulf %81, %81 : vector<256x1xf32>
    %88 = arith.subf %86, %87 : vector<256x1xf32>
    %cst_42 = arith.constant 0.000000e+00 : f32
    %89 = vector.broadcast %cst_42 : f32 to vector<256x1xf32>
    %90 = arith.maximumf %88, %89 : vector<256x1xf32>
    %91 = vector.broadcast %81 : vector<256x1xf32> to vector<256x256xf32>
    %92 = arith.subf %75, %91 : vector<256x256xf32>
    %cst_43 = arith.constant 9.99999974E-6 : f32
    %93 = vector.broadcast %cst_43 : f32 to vector<256x1xf32>
    %94 = arith.addf %90, %93 : vector<256x1xf32>
    %95 = math.rsqrt %94 : vector<256x1xf32>
    %96 = vector.broadcast %95 : vector<256x1xf32> to vector<256x256xf32>
    %97 = arith.mulf %92, %96 : vector<256x256xf32>
    %98 = vector.broadcast %76 : vector<1x256xf32> to vector<256x256xf32>
    %99 = arith.mulf %97, %98 : vector<256x256xf32>
    %100 = vector.broadcast %77 : vector<1x256xf32> to vector<256x256xf32>
    %101 = arith.addf %99, %100 : vector<256x256xf32>
    %cst_44 = arith.constant 0.000000e+00 : f32
    %102 = vector.broadcast %cst_44 : f32 to vector<256x256xf32>
    %103 = arith.cmpf ogt, %101, %102 : vector<256x256xf32>
    %cst_45 = arith.constant 0.00999999977 : f32
    %104 = vector.broadcast %cst_45 : f32 to vector<256x256xf32>
    %105 = arith.mulf %104, %101 : vector<256x256xf32>
    %106 = arith.select %103, %101, %105 : vector<256x256xi1>, vector<256x256xf32>
    %c0_46 = arith.constant 0 : index
    %c0_47 = arith.constant 0 : index
    %107 = vector.load %arg13[%c0_46, %c0_47] : memref<256x128xbf16, #tpu.memory_space<vmem>>, vector<256x128xbf16>
    %108 = arith.truncf %106 : vector<256x256xf32> to vector<256x256xbf16>
    %cst_48 = arith.constant dense<0.000000e+00> : vector<256x128xf32>
    %109 = tpu.matmul %108, %107, %cst_48 {dimension_numbers = #tpu.dot_dimension_numbers<[1], [0], [0], [1], [0, 0, 1, 1], [], []>} : vector<256x256xbf16>, vector<256x128xbf16>, vector<256x128xf32> -> vector<256x128xf32>
    %c0_49 = arith.constant 0 : index
    %c0_50 = arith.constant 0 : index
    %110 = vector.load %arg14[%c0_49, %c0_50] : memref<1x128xf32, #tpu.memory_space<vmem>>, vector<1x128xf32>
    %111 = vector.broadcast %110 : vector<1x128xf32> to vector<256x128xf32>
    %112 = arith.addf %109, %111 : vector<256x128xf32>
    %c0_51 = arith.constant 0 : index
    %c0_52 = arith.constant 0 : index
    %113 = vector.load %arg15[%c0_51, %c0_52] : memref<1x128xf32, #tpu.memory_space<vmem>>, vector<1x128xf32>
    %c0_53 = arith.constant 0 : index
    %c0_54 = arith.constant 0 : index
    %114 = vector.load %arg16[%c0_53, %c0_54] : memref<1x128xf32, #tpu.memory_space<vmem>>, vector<1x128xf32>
    %cst_55 = arith.constant dense<0.000000e+00> : vector<256xf32>
    %115 = vector.multi_reduction <add>, %112, %cst_55 [1] : vector<256x128xf32> to vector<256xf32>
    %116 = vector.shape_cast %115 : vector<256xf32> to vector<256x1xf32>
    %cst_56 = arith.constant 1.280000e+02 : f32
    %117 = vector.broadcast %cst_56 : f32 to vector<256x1xf32>
    %118 = arith.divf %116, %117 : vector<256x1xf32>
    %119 = arith.mulf %112, %112 : vector<256x128xf32>
    %cst_57 = arith.constant dense<0.000000e+00> : vector<256xf32>
    %120 = vector.multi_reduction <add>, %119, %cst_57 [1] : vector<256x128xf32> to vector<256xf32>
    %121 = vector.shape_cast %120 : vector<256xf32> to vector<256x1xf32>
    %cst_58 = arith.constant 1.280000e+02 : f32
    %122 = vector.broadcast %cst_58 : f32 to vector<256x1xf32>
    %123 = arith.divf %121, %122 : vector<256x1xf32>
    %124 = arith.mulf %118, %118 : vector<256x1xf32>
    %125 = arith.subf %123, %124 : vector<256x1xf32>
    %cst_59 = arith.constant 0.000000e+00 : f32
    %126 = vector.broadcast %cst_59 : f32 to vector<256x1xf32>
    %127 = arith.maximumf %125, %126 : vector<256x1xf32>
    %128 = vector.broadcast %118 : vector<256x1xf32> to vector<256x128xf32>
    %129 = arith.subf %112, %128 : vector<256x128xf32>
    %cst_60 = arith.constant 9.99999974E-6 : f32
    %130 = vector.broadcast %cst_60 : f32 to vector<256x1xf32>
    %131 = arith.addf %127, %130 : vector<256x1xf32>
    %132 = math.rsqrt %131 : vector<256x1xf32>
    %133 = vector.broadcast %132 : vector<256x1xf32> to vector<256x128xf32>
    %134 = arith.mulf %129, %133 : vector<256x128xf32>
    %135 = vector.broadcast %113 : vector<1x128xf32> to vector<256x128xf32>
    %136 = arith.mulf %134, %135 : vector<256x128xf32>
    %137 = vector.broadcast %114 : vector<1x128xf32> to vector<256x128xf32>
    %138 = arith.addf %136, %137 : vector<256x128xf32>
    %cst_61 = arith.constant 0.000000e+00 : f32
    %139 = vector.broadcast %cst_61 : f32 to vector<256x128xf32>
    %140 = arith.cmpf ogt, %138, %139 : vector<256x128xf32>
    %cst_62 = arith.constant 0.00999999977 : f32
    %141 = vector.broadcast %cst_62 : f32 to vector<256x128xf32>
    %142 = arith.mulf %141, %138 : vector<256x128xf32>
    %143 = arith.select %140, %138, %142 : vector<256x128xi1>, vector<256x128xf32>
    %144 = tpu.transpose %143, [1, 0] : vector<256x128xf32> -> vector<128x256xf32>
    %c0_63 = arith.constant 0 : index
    %c0_64 = arith.constant 0 : index
    %145 = vector.load %arg17[%c0_63, %c0_64] : memref<11x128xbf16, #tpu.memory_space<vmem>>, vector<11x128xbf16>
    %146 = arith.truncf %144 : vector<128x256xf32> to vector<128x256xbf16>
    %cst_65 = arith.constant dense<0.000000e+00> : vector<11x256xf32>
    %147 = tpu.matmul %145, %146, %cst_65 {dimension_numbers = #tpu.dot_dimension_numbers<[1], [0], [0], [1], [0, 0, 1, 1], [], []>} : vector<11x128xbf16>, vector<128x256xbf16>, vector<11x256xf32> -> vector<11x256xf32>
    %c0_66 = arith.constant 0 : index
    %c0_67 = arith.constant 0 : index
    %148 = vector.load %arg2[%c0_66, %c0_67] : memref<2x256xf32, #tpu.memory_space<vmem>>, vector<1x256xf32>
    %cst_68 = arith.constant 1.100000e+01 : f32
    %149 = vector.broadcast %cst_68 : f32 to vector<1x256xf32>
    %150 = arith.divf %148, %149 : vector<1x256xf32>
    %cst_69 = arith.constant 1.100000e+01 : f32
    %151 = vector.broadcast %cst_69 : f32 to vector<1x256xf32>
    %152 = arith.mulf %150, %151 : vector<1x256xf32>
    %153 = arith.fptosi %152 : vector<1x256xf32> to vector<1x256xi32>
    %c1 = arith.constant 1 : index
    %c0_70 = arith.constant 0 : index
    %154 = vector.load %arg2[%c1, %c0_70] : memref<2x256xf32, #tpu.memory_space<vmem>>, vector<1x256xf32>
    %cst_71 = arith.constant 1.000000e+00 : f32
    %155 = vector.broadcast %cst_71 : f32 to vector<1x256xf32>
    %156 = arith.divf %154, %155 : vector<1x256xf32>
    %cst_72 = arith.constant 1.000000e+00 : f32
    %157 = vector.broadcast %cst_72 : f32 to vector<1x256xf32>
    %158 = arith.mulf %156, %157 : vector<1x256xf32>
    %cst_73 = arith.constant 0.000000e+00 : f32
    %159 = vector.broadcast %cst_73 : f32 to vector<16x256xf32>
    %c0_74 = arith.constant 0 : index
    %c0_75 = arith.constant 0 : index
    %160 = vector.load %arg19[%c0_74, %c0_75] : memref<16x256xf32, #tpu.memory_space<vmem>>, vector<16x256xf32>
    tpu.vector_store %arg19[%c0_74, %c0_75], %159 {strides = array<i32>} : memref<16x256xf32, #tpu.memory_space<vmem>>, vector<16x256xf32>,
    %cst_76 = arith.constant 1.000000e+00 : f32
    %161 = vector.broadcast %cst_76 : f32 to vector<1x256xf32>
    %162 = arith.subf %161, %158 : vector<1x256xf32>
    %cst_77 = arith.constant 4.000000e-01 : f32
    %163 = vector.broadcast %cst_77 : f32 to vector<1x256xf32>
    %164 = arith.minimumf %162, %163 : vector<1x256xf32>
    %cst_78 = arith.constant 0.000000e+00 : f32
    %165 = vector.broadcast %cst_78 : f32 to vector<1x256xf32>
    %166 = arith.subf %165, %158 : vector<1x256xf32>
    %cst_79 = arith.constant -4.000000e-01 : f32
    %167 = vector.broadcast %cst_79 : f32 to vector<1x256xf32>
    %168 = arith.maximumf %166, %167 : vector<1x256xf32>
    %169 = vector.extract_strided_slice %147 {offsets = [0, 0], sizes = [1, 256], strides = [1, 1]} : vector<11x256xf32> to vector<1x256xf32>
    %c0_80 = arith.constant 0 : index
    %c0_81 = arith.constant 0 : index
    %170 = memref.load %arg18[%c0_80, %c0_81] : memref<2x11xf32, #tpu.memory_space<smem>>
    %171 = vector.broadcast %170 : f32 to vector<1x256xf32>
    %172 = arith.mulf %158, %171 : vector<1x256xf32>
    %173 = arith.addf %169, %172 : vector<1x256xf32>
    %c1_82 = arith.constant 1 : index
    %c0_83 = arith.constant 0 : index
    %174 = memref.load %arg18[%c1_82, %c0_83] : memref<2x11xf32, #tpu.memory_space<smem>>
    %175 = vector.broadcast %174 : f32 to vector<1x256xf32>
    %176 = arith.addf %173, %175 : vector<1x256xf32>
    %c1_i32_84 = arith.constant 1 : i32
    %177 = vector.broadcast %c1_i32_84 : i32 to vector<1x256xi32>
    %178 = arith.cmpi sle, %153, %177 : vector<1x256xi32>
    %179 = arith.extui %178 : vector<1x256xi1> to vector<1x256xi32>
    %180 = arith.sitofp %179 : vector<1x256xi32> to vector<1x256xf32>
    %181 = math.tanh %176 : vector<1x256xf32>
    %cst_85 = arith.constant 1.000000e+00 : f32
    %182 = vector.broadcast %cst_85 : f32 to vector<1x256xf32>
    %183 = arith.addf %181, %182 : vector<1x256xf32>
    %cst_86 = arith.constant 5.000000e-01 : f32
    %184 = vector.broadcast %cst_86 : f32 to vector<1x256xf32>
    %185 = arith.mulf %183, %184 : vector<1x256xf32>
    %186 = arith.subf %164, %168 : vector<1x256xf32>
    %187 = arith.mulf %185, %186 : vector<1x256xf32>
    %188 = arith.addf %187, %168 : vector<1x256xf32>
    %189 = arith.mulf %188, %180 : vector<1x256xf32>
    %c0_87 = arith.constant 0 : index
    %c0_88 = arith.constant 0 : index
    %190 = vector.load %arg19[%c0_87, %c0_88] : memref<16x256xf32, #tpu.memory_space<vmem>>, vector<1x256xf32>
    tpu.vector_store %arg19[%c0_87, %c0_88], %189 {strides = array<i32>} : memref<16x256xf32, #tpu.memory_space<vmem>>, vector<1x256xf32>,
    %191 = arith.addf %158, %189 : vector<1x256xf32>
    %cst_89 = arith.constant 1.000000e+00 : f32
    %192 = vector.broadcast %cst_89 : f32 to vector<1x256xf32>
    %193 = arith.subf %192, %191 : vector<1x256xf32>
    %cst_90 = arith.constant 4.000000e-01 : f32
    %194 = vector.broadcast %cst_90 : f32 to vector<1x256xf32>
    %195 = arith.minimumf %193, %194 : vector<1x256xf32>
    %cst_91 = arith.constant 0.000000e+00 : f32
    %196 = vector.broadcast %cst_91 : f32 to vector<1x256xf32>
    %197 = arith.subf %196, %191 : vector<1x256xf32>
    %cst_92 = arith.constant -4.000000e-01 : f32
    %198 = vector.broadcast %cst_92 : f32 to vector<1x256xf32>
    %199 = arith.maximumf %197, %198 : vector<1x256xf32>
    %200 = vector.extract_strided_slice %147 {offsets = [1, 0], sizes = [1, 256], strides = [1, 1]} : vector<11x256xf32> to vector<1x256xf32>
    %c0_93 = arith.constant 0 : index
    %c1_94 = arith.constant 1 : index
    %201 = memref.load %arg18[%c0_93, %c1_94] : memref<2x11xf32, #tpu.memory_space<smem>>
    %202 = vector.broadcast %201 : f32 to vector<1x256xf32>
    %203 = arith.mulf %191, %202 : vector<1x256xf32>
    %204 = arith.addf %200, %203 : vector<1x256xf32>
    %c1_95 = arith.constant 1 : index
    %c1_96 = arith.constant 1 : index
    %205 = memref.load %arg18[%c1_95, %c1_96] : memref<2x11xf32, #tpu.memory_space<smem>>
    %206 = vector.broadcast %205 : f32 to vector<1x256xf32>
    %207 = arith.addf %204, %206 : vector<1x256xf32>
    %c2_i32 = arith.constant 2 : i32
    %208 = vector.broadcast %c2_i32 : i32 to vector<1x256xi32>
    %209 = arith.cmpi sle, %153, %208 : vector<1x256xi32>
    %210 = arith.extui %209 : vector<1x256xi1> to vector<1x256xi32>
    %211 = arith.sitofp %210 : vector<1x256xi32> to vector<1x256xf32>
    %212 = math.tanh %207 : vector<1x256xf32>
    %cst_97 = arith.constant 1.000000e+00 : f32
    %213 = vector.broadcast %cst_97 : f32 to vector<1x256xf32>
    %214 = arith.addf %212, %213 : vector<1x256xf32>
    %cst_98 = arith.constant 5.000000e-01 : f32
    %215 = vector.broadcast %cst_98 : f32 to vector<1x256xf32>
    %216 = arith.mulf %214, %215 : vector<1x256xf32>
    %217 = arith.subf %195, %199 : vector<1x256xf32>
    %218 = arith.mulf %216, %217 : vector<1x256xf32>
    %219 = arith.addf %218, %199 : vector<1x256xf32>
    %220 = arith.mulf %219, %211 : vector<1x256xf32>
    %c1_99 = arith.constant 1 : index
    %c0_100 = arith.constant 0 : index
    %221 = vector.load %arg19[%c1_99, %c0_100] : memref<16x256xf32, #tpu.memory_space<vmem>>, vector<1x256xf32>
    tpu.vector_store %arg19[%c1_99, %c0_100], %220 {strides = array<i32>} : memref<16x256xf32, #tpu.memory_space<vmem>>, vector<1x256xf32>,
    %222 = arith.addf %191, %220 : vector<1x256xf32>
    %cst_101 = arith.constant 1.000000e+00 : f32
    %223 = vector.broadcast %cst_101 : f32 to vector<1x256xf32>
    %224 = arith.subf %223, %222 : vector<1x256xf32>
    %cst_102 = arith.constant 4.000000e-01 : f32
    %225 = vector.broadcast %cst_102 : f32 to vector<1x256xf32>
    %226 = arith.minimumf %224, %225 : vector<1x256xf32>
    %cst_103 = arith.constant 0.000000e+00 : f32
    %227 = vector.broadcast %cst_103 : f32 to vector<1x256xf32>
    %228 = arith.subf %227, %222 : vector<1x256xf32>
    %cst_104 = arith.constant -4.000000e-01 : f32
    %229 = vector.broadcast %cst_104 : f32 to vector<1x256xf32>
    %230 = arith.maximumf %228, %229 : vector<1x256xf32>
    %231 = vector.extract_strided_slice %147 {offsets = [2, 0], sizes = [1, 256], strides = [1, 1]} : vector<11x256xf32> to vector<1x256xf32>
    %c0_105 = arith.constant 0 : index
    %c2 = arith.constant 2 : index
    %232 = memref.load %arg18[%c0_105, %c2] : memref<2x11xf32, #tpu.memory_space<smem>>
    %233 = vector.broadcast %232 : f32 to vector<1x256xf32>
    %234 = arith.mulf %222, %233 : vector<1x256xf32>
    %235 = arith.addf %231, %234 : vector<1x256xf32>
    %c1_106 = arith.constant 1 : index
    %c2_107 = arith.constant 2 : index
    %236 = memref.load %arg18[%c1_106, %c2_107] : memref<2x11xf32, #tpu.memory_space<smem>>
    %237 = vector.broadcast %236 : f32 to vector<1x256xf32>
    %238 = arith.addf %235, %237 : vector<1x256xf32>
    %c3_i32 = arith.constant 3 : i32
    %239 = vector.broadcast %c3_i32 : i32 to vector<1x256xi32>
    %240 = arith.cmpi sle, %153, %239 : vector<1x256xi32>
    %241 = arith.extui %240 : vector<1x256xi1> to vector<1x256xi32>
    %242 = arith.sitofp %241 : vector<1x256xi32> to vector<1x256xf32>
    %243 = math.tanh %238 : vector<1x256xf32>
    %cst_108 = arith.constant 1.000000e+00 : f32
    %244 = vector.broadcast %cst_108 : f32 to vector<1x256xf32>
    %245 = arith.addf %243, %244 : vector<1x256xf32>
    %cst_109 = arith.constant 5.000000e-01 : f32
    %246 = vector.broadcast %cst_109 : f32 to vector<1x256xf32>
    %247 = arith.mulf %245, %246 : vector<1x256xf32>
    %248 = arith.subf %226, %230 : vector<1x256xf32>
    %249 = arith.mulf %247, %248 : vector<1x256xf32>
    %250 = arith.addf %249, %230 : vector<1x256xf32>
    %251 = arith.mulf %250, %242 : vector<1x256xf32>
    %c2_110 = arith.constant 2 : index
    %c0_111 = arith.constant 0 : index
    %252 = vector.load %arg19[%c2_110, %c0_111] : memref<16x256xf32, #tpu.memory_space<vmem>>, vector<1x256xf32>
    tpu.vector_store %arg19[%c2_110, %c0_111], %251 {strides = array<i32>} : memref<16x256xf32, #tpu.memory_space<vmem>>, vector<1x256xf32>,
    %253 = arith.addf %222, %251 : vector<1x256xf32>
    %cst_112 = arith.constant 1.000000e+00 : f32
    %254 = vector.broadcast %cst_112 : f32 to vector<1x256xf32>
    %255 = arith.subf %254, %253 : vector<1x256xf32>
    %cst_113 = arith.constant 4.000000e-01 : f32
    %256 = vector.broadcast %cst_113 : f32 to vector<1x256xf32>
    %257 = arith.minimumf %255, %256 : vector<1x256xf32>
    %cst_114 = arith.constant 0.000000e+00 : f32
    %258 = vector.broadcast %cst_114 : f32 to vector<1x256xf32>
    %259 = arith.subf %258, %253 : vector<1x256xf32>
    %cst_115 = arith.constant -4.000000e-01 : f32
    %260 = vector.broadcast %cst_115 : f32 to vector<1x256xf32>
    %261 = arith.maximumf %259, %260 : vector<1x256xf32>
    %262 = vector.extract_strided_slice %147 {offsets = [3, 0], sizes = [1, 256], strides = [1, 1]} : vector<11x256xf32> to vector<1x256xf32>
    %c0_116 = arith.constant 0 : index
    %c3 = arith.constant 3 : index
    %263 = memref.load %arg18[%c0_116, %c3] : memref<2x11xf32, #tpu.memory_space<smem>>
    %264 = vector.broadcast %263 : f32 to vector<1x256xf32>
    %265 = arith.mulf %253, %264 : vector<1x256xf32>
    %266 = arith.addf %262, %265 : vector<1x256xf32>
    %c1_117 = arith.constant 1 : index
    %c3_118 = arith.constant 3 : index
    %267 = memref.load %arg18[%c1_117, %c3_118] : memref<2x11xf32, #tpu.memory_space<smem>>
    %268 = vector.broadcast %267 : f32 to vector<1x256xf32>
    %269 = arith.addf %266, %268 : vector<1x256xf32>
    %c4_i32 = arith.constant 4 : i32
    %270 = vector.broadcast %c4_i32 : i32 to vector<1x256xi32>
    %271 = arith.cmpi sle, %153, %270 : vector<1x256xi32>
    %272 = arith.extui %271 : vector<1x256xi1> to vector<1x256xi32>
    %273 = arith.sitofp %272 : vector<1x256xi32> to vector<1x256xf32>
    %274 = math.tanh %269 : vector<1x256xf32>
    %cst_119 = arith.constant 1.000000e+00 : f32
    %275 = vector.broadcast %cst_119 : f32 to vector<1x256xf32>
    %276 = arith.addf %274, %275 : vector<1x256xf32>
    %cst_120 = arith.constant 5.000000e-01 : f32
    %277 = vector.broadcast %cst_120 : f32 to vector<1x256xf32>
    %278 = arith.mulf %276, %277 : vector<1x256xf32>
    %279 = arith.subf %257, %261 : vector<1x256xf32>
    %280 = arith.mulf %278, %279 : vector<1x256xf32>
    %281 = arith.addf %280, %261 : vector<1x256xf32>
    %282 = arith.mulf %281, %273 : vector<1x256xf32>
    %c3_121 = arith.constant 3 : index
    %c0_122 = arith.constant 0 : index
    %283 = vector.load %arg19[%c3_121, %c0_122] : memref<16x256xf32, #tpu.memory_space<vmem>>, vector<1x256xf32>
    tpu.vector_store %arg19[%c3_121, %c0_122], %282 {strides = array<i32>} : memref<16x256xf32, #tpu.memory_space<vmem>>, vector<1x256xf32>,
    %284 = arith.addf %253, %282 : vector<1x256xf32>
    %cst_123 = arith.constant 1.000000e+00 : f32
    %285 = vector.broadcast %cst_123 : f32 to vector<1x256xf32>
    %286 = arith.subf %285, %284 : vector<1x256xf32>
    %cst_124 = arith.constant 4.000000e-01 : f32
    %287 = vector.broadcast %cst_124 : f32 to vector<1x256xf32>
    %288 = arith.minimumf %286, %287 : vector<1x256xf32>
    %cst_125 = arith.constant 0.000000e+00 : f32
    %289 = vector.broadcast %cst_125 : f32 to vector<1x256xf32>
    %290 = arith.subf %289, %284 : vector<1x256xf32>
    %cst_126 = arith.constant -4.000000e-01 : f32
    %291 = vector.broadcast %cst_126 : f32 to vector<1x256xf32>
    %292 = arith.maximumf %290, %291 : vector<1x256xf32>
    %293 = vector.extract_strided_slice %147 {offsets = [4, 0], sizes = [1, 256], strides = [1, 1]} : vector<11x256xf32> to vector<1x256xf32>
    %c0_127 = arith.constant 0 : index
    %c4 = arith.constant 4 : index
    %294 = memref.load %arg18[%c0_127, %c4] : memref<2x11xf32, #tpu.memory_space<smem>>
    %295 = vector.broadcast %294 : f32 to vector<1x256xf32>
    %296 = arith.mulf %284, %295 : vector<1x256xf32>
    %297 = arith.addf %293, %296 : vector<1x256xf32>
    %c1_128 = arith.constant 1 : index
    %c4_129 = arith.constant 4 : index
    %298 = memref.load %arg18[%c1_128, %c4_129] : memref<2x11xf32, #tpu.memory_space<smem>>
    %299 = vector.broadcast %298 : f32 to vector<1x256xf32>
    %300 = arith.addf %297, %299 : vector<1x256xf32>
    %c5_i32 = arith.constant 5 : i32
    %301 = vector.broadcast %c5_i32 : i32 to vector<1x256xi32>
    %302 = arith.cmpi sle, %153, %301 : vector<1x256xi32>
    %303 = arith.extui %302 : vector<1x256xi1> to vector<1x256xi32>
    %304 = arith.sitofp %303 : vector<1x256xi32> to vector<1x256xf32>
    %305 = math.tanh %300 : vector<1x256xf32>
    %cst_130 = arith.constant 1.000000e+00 : f32
    %306 = vector.broadcast %cst_130 : f32 to vector<1x256xf32>
    %307 = arith.addf %305, %306 : vector<1x256xf32>
    %cst_131 = arith.constant 5.000000e-01 : f32
    %308 = vector.broadcast %cst_131 : f32 to vector<1x256xf32>
    %309 = arith.mulf %307, %308 : vector<1x256xf32>
    %310 = arith.subf %288, %292 : vector<1x256xf32>
    %311 = arith.mulf %309, %310 : vector<1x256xf32>
    %312 = arith.addf %311, %292 : vector<1x256xf32>
    %313 = arith.mulf %312, %304 : vector<1x256xf32>
    %c4_132 = arith.constant 4 : index
    %c0_133 = arith.constant 0 : index
    %314 = vector.load %arg19[%c4_132, %c0_133] : memref<16x256xf32, #tpu.memory_space<vmem>>, vector<1x256xf32>
    tpu.vector_store %arg19[%c4_132, %c0_133], %313 {strides = array<i32>} : memref<16x256xf32, #tpu.memory_space<vmem>>, vector<1x256xf32>,
    %315 = arith.addf %284, %313 : vector<1x256xf32>
    %cst_134 = arith.constant 1.000000e+00 : f32
    %316 = vector.broadcast %cst_134 : f32 to vector<1x256xf32>
    %317 = arith.subf %316, %315 : vector<1x256xf32>
    %cst_135 = arith.constant 4.000000e-01 : f32
    %318 = vector.broadcast %cst_135 : f32 to vector<1x256xf32>
    %319 = arith.minimumf %317, %318 : vector<1x256xf32>
    %cst_136 = arith.constant 0.000000e+00 : f32
    %320 = vector.broadcast %cst_136 : f32 to vector<1x256xf32>
    %321 = arith.subf %320, %315 : vector<1x256xf32>
    %cst_137 = arith.constant -4.000000e-01 : f32
    %322 = vector.broadcast %cst_137 : f32 to vector<1x256xf32>
    %323 = arith.maximumf %321, %322 : vector<1x256xf32>
    %324 = vector.extract_strided_slice %147 {offsets = [5, 0], sizes = [1, 256], strides = [1, 1]} : vector<11x256xf32> to vector<1x256xf32>
    %c0_138 = arith.constant 0 : index
    %c5 = arith.constant 5 : index
    %325 = memref.load %arg18[%c0_138, %c5] : memref<2x11xf32, #tpu.memory_space<smem>>
    %326 = vector.broadcast %325 : f32 to vector<1x256xf32>
    %327 = arith.mulf %315, %326 : vector<1x256xf32>
    %328 = arith.addf %324, %327 : vector<1x256xf32>
    %c1_139 = arith.constant 1 : index
    %c5_140 = arith.constant 5 : index
    %329 = memref.load %arg18[%c1_139, %c5_140] : memref<2x11xf32, #tpu.memory_space<smem>>
    %330 = vector.broadcast %329 : f32 to vector<1x256xf32>
    %331 = arith.addf %328, %330 : vector<1x256xf32>
    %c6_i32 = arith.constant 6 : i32
    %332 = vector.broadcast %c6_i32 : i32 to vector<1x256xi32>
    %333 = arith.cmpi sle, %153, %332 : vector<1x256xi32>
    %334 = arith.extui %333 : vector<1x256xi1> to vector<1x256xi32>
    %335 = arith.sitofp %334 : vector<1x256xi32> to vector<1x256xf32>
    %336 = math.tanh %331 : vector<1x256xf32>
    %cst_141 = arith.constant 1.000000e+00 : f32
    %337 = vector.broadcast %cst_141 : f32 to vector<1x256xf32>
    %338 = arith.addf %336, %337 : vector<1x256xf32>
    %cst_142 = arith.constant 5.000000e-01 : f32
    %339 = vector.broadcast %cst_142 : f32 to vector<1x256xf32>
    %340 = arith.mulf %338, %339 : vector<1x256xf32>
    %341 = arith.subf %319, %323 : vector<1x256xf32>
    %342 = arith.mulf %340, %341 : vector<1x256xf32>
    %343 = arith.addf %342, %323 : vector<1x256xf32>
    %344 = arith.mulf %343, %335 : vector<1x256xf32>
    %c5_143 = arith.constant 5 : index
    %c0_144 = arith.constant 0 : index
    %345 = vector.load %arg19[%c5_143, %c0_144] : memref<16x256xf32, #tpu.memory_space<vmem>>, vector<1x256xf32>
    tpu.vector_store %arg19[%c5_143, %c0_144], %344 {strides = array<i32>} : memref<16x256xf32, #tpu.memory_space<vmem>>, vector<1x256xf32>,
    %346 = arith.addf %315, %344 : vector<1x256xf32>
    %cst_145 = arith.constant 1.000000e+00 : f32
    %347 = vector.broadcast %cst_145 : f32 to vector<1x256xf32>
    %348 = arith.subf %347, %346 : vector<1x256xf32>
    %cst_146 = arith.constant 4.000000e-01 : f32
    %349 = vector.broadcast %cst_146 : f32 to vector<1x256xf32>
    %350 = arith.minimumf %348, %349 : vector<1x256xf32>
    %cst_147 = arith.constant 0.000000e+00 : f32
    %351 = vector.broadcast %cst_147 : f32 to vector<1x256xf32>
    %352 = arith.subf %351, %346 : vector<1x256xf32>
    %cst_148 = arith.constant -4.000000e-01 : f32
    %353 = vector.broadcast %cst_148 : f32 to vector<1x256xf32>
    %354 = arith.maximumf %352, %353 : vector<1x256xf32>
    %355 = vector.extract_strided_slice %147 {offsets = [6, 0], sizes = [1, 256], strides = [1, 1]} : vector<11x256xf32> to vector<1x256xf32>
    %c0_149 = arith.constant 0 : index
    %c6 = arith.constant 6 : index
    %356 = memref.load %arg18[%c0_149, %c6] : memref<2x11xf32, #tpu.memory_space<smem>>
    %357 = vector.broadcast %356 : f32 to vector<1x256xf32>
    %358 = arith.mulf %346, %357 : vector<1x256xf32>
    %359 = arith.addf %355, %358 : vector<1x256xf32>
    %c1_150 = arith.constant 1 : index
    %c6_151 = arith.constant 6 : index
    %360 = memref.load %arg18[%c1_150, %c6_151] : memref<2x11xf32, #tpu.memory_space<smem>>
    %361 = vector.broadcast %360 : f32 to vector<1x256xf32>
    %362 = arith.addf %359, %361 : vector<1x256xf32>
    %c7_i32 = arith.constant 7 : i32
    %363 = vector.broadcast %c7_i32 : i32 to vector<1x256xi32>
    %364 = arith.cmpi sle, %153, %363 : vector<1x256xi32>
    %365 = arith.extui %364 : vector<1x256xi1> to vector<1x256xi32>
    %366 = arith.sitofp %365 : vector<1x256xi32> to vector<1x256xf32>
    %367 = math.tanh %362 : vector<1x256xf32>
    %cst_152 = arith.constant 1.000000e+00 : f32
    %368 = vector.broadcast %cst_152 : f32 to vector<1x256xf32>
    %369 = arith.addf %367, %368 : vector<1x256xf32>
    %cst_153 = arith.constant 5.000000e-01 : f32
    %370 = vector.broadcast %cst_153 : f32 to vector<1x256xf32>
    %371 = arith.mulf %369, %370 : vector<1x256xf32>
    %372 = arith.subf %350, %354 : vector<1x256xf32>
    %373 = arith.mulf %371, %372 : vector<1x256xf32>
    %374 = arith.addf %373, %354 : vector<1x256xf32>
    %375 = arith.mulf %374, %366 : vector<1x256xf32>
    %c6_154 = arith.constant 6 : index
    %c0_155 = arith.constant 0 : index
    %376 = vector.load %arg19[%c6_154, %c0_155] : memref<16x256xf32, #tpu.memory_space<vmem>>, vector<1x256xf32>
    tpu.vector_store %arg19[%c6_154, %c0_155], %375 {strides = array<i32>} : memref<16x256xf32, #tpu.memory_space<vmem>>, vector<1x256xf32>,
    %377 = arith.addf %346, %375 : vector<1x256xf32>
    %cst_156 = arith.constant 1.000000e+00 : f32
    %378 = vector.broadcast %cst_156 : f32 to vector<1x256xf32>
    %379 = arith.subf %378, %377 : vector<1x256xf32>
    %cst_157 = arith.constant 4.000000e-01 : f32
    %380 = vector.broadcast %cst_157 : f32 to vector<1x256xf32>
    %381 = arith.minimumf %379, %380 : vector<1x256xf32>
    %cst_158 = arith.constant 0.000000e+00 : f32
    %382 = vector.broadcast %cst_158 : f32 to vector<1x256xf32>
    %383 = arith.subf %382, %377 : vector<1x256xf32>
    %cst_159 = arith.constant -4.000000e-01 : f32
    %384 = vector.broadcast %cst_159 : f32 to vector<1x256xf32>
    %385 = arith.maximumf %383, %384 : vector<1x256xf32>
    %386 = vector.extract_strided_slice %147 {offsets = [7, 0], sizes = [1, 256], strides = [1, 1]} : vector<11x256xf32> to vector<1x256xf32>
    %c0_160 = arith.constant 0 : index
    %c7 = arith.constant 7 : index
    %387 = memref.load %arg18[%c0_160, %c7] : memref<2x11xf32, #tpu.memory_space<smem>>
    %388 = vector.broadcast %387 : f32 to vector<1x256xf32>
    %389 = arith.mulf %377, %388 : vector<1x256xf32>
    %390 = arith.addf %386, %389 : vector<1x256xf32>
    %c1_161 = arith.constant 1 : index
    %c7_162 = arith.constant 7 : index
    %391 = memref.load %arg18[%c1_161, %c7_162] : memref<2x11xf32, #tpu.memory_space<smem>>
    %392 = vector.broadcast %391 : f32 to vector<1x256xf32>
    %393 = arith.addf %390, %392 : vector<1x256xf32>
    %c8_i32 = arith.constant 8 : i32
    %394 = vector.broadcast %c8_i32 : i32 to vector<1x256xi32>
    %395 = arith.cmpi sle, %153, %394 : vector<1x256xi32>
    %396 = arith.extui %395 : vector<1x256xi1> to vector<1x256xi32>
    %397 = arith.sitofp %396 : vector<1x256xi32> to vector<1x256xf32>
    %398 = math.tanh %393 : vector<1x256xf32>
    %cst_163 = arith.constant 1.000000e+00 : f32
    %399 = vector.broadcast %cst_163 : f32 to vector<1x256xf32>
    %400 = arith.addf %398, %399 : vector<1x256xf32>
    %cst_164 = arith.constant 5.000000e-01 : f32
    %401 = vector.broadcast %cst_164 : f32 to vector<1x256xf32>
    %402 = arith.mulf %400, %401 : vector<1x256xf32>
    %403 = arith.subf %381, %385 : vector<1x256xf32>
    %404 = arith.mulf %402, %403 : vector<1x256xf32>
    %405 = arith.addf %404, %385 : vector<1x256xf32>
    %406 = arith.mulf %405, %397 : vector<1x256xf32>
    %c7_165 = arith.constant 7 : index
    %c0_166 = arith.constant 0 : index
    %407 = vector.load %arg19[%c7_165, %c0_166] : memref<16x256xf32, #tpu.memory_space<vmem>>, vector<1x256xf32>
    tpu.vector_store %arg19[%c7_165, %c0_166], %406 {strides = array<i32>} : memref<16x256xf32, #tpu.memory_space<vmem>>, vector<1x256xf32>,
    %408 = arith.addf %377, %406 : vector<1x256xf32>
    %cst_167 = arith.constant 1.000000e+00 : f32
    %409 = vector.broadcast %cst_167 : f32 to vector<1x256xf32>
    %410 = arith.subf %409, %408 : vector<1x256xf32>
    %cst_168 = arith.constant 4.000000e-01 : f32
    %411 = vector.broadcast %cst_168 : f32 to vector<1x256xf32>
    %412 = arith.minimumf %410, %411 : vector<1x256xf32>
    %cst_169 = arith.constant 0.000000e+00 : f32
    %413 = vector.broadcast %cst_169 : f32 to vector<1x256xf32>
    %414 = arith.subf %413, %408 : vector<1x256xf32>
    %cst_170 = arith.constant -4.000000e-01 : f32
    %415 = vector.broadcast %cst_170 : f32 to vector<1x256xf32>
    %416 = arith.maximumf %414, %415 : vector<1x256xf32>
    %417 = vector.extract_strided_slice %147 {offsets = [8, 0], sizes = [1, 256], strides = [1, 1]} : vector<11x256xf32> to vector<1x256xf32>
    %c0_171 = arith.constant 0 : index
    %c8 = arith.constant 8 : index
    %418 = memref.load %arg18[%c0_171, %c8] : memref<2x11xf32, #tpu.memory_space<smem>>
    %419 = vector.broadcast %418 : f32 to vector<1x256xf32>
    %420 = arith.mulf %408, %419 : vector<1x256xf32>
    %421 = arith.addf %417, %420 : vector<1x256xf32>
    %c1_172 = arith.constant 1 : index
    %c8_173 = arith.constant 8 : index
    %422 = memref.load %arg18[%c1_172, %c8_173] : memref<2x11xf32, #tpu.memory_space<smem>>
    %423 = vector.broadcast %422 : f32 to vector<1x256xf32>
    %424 = arith.addf %421, %423 : vector<1x256xf32>
    %c9_i32 = arith.constant 9 : i32
    %425 = vector.broadcast %c9_i32 : i32 to vector<1x256xi32>
    %426 = arith.cmpi sle, %153, %425 : vector<1x256xi32>
    %427 = arith.extui %426 : vector<1x256xi1> to vector<1x256xi32>
    %428 = arith.sitofp %427 : vector<1x256xi32> to vector<1x256xf32>
    %429 = math.tanh %424 : vector<1x256xf32>
    %cst_174 = arith.constant 1.000000e+00 : f32
    %430 = vector.broadcast %cst_174 : f32 to vector<1x256xf32>
    %431 = arith.addf %429, %430 : vector<1x256xf32>
    %cst_175 = arith.constant 5.000000e-01 : f32
    %432 = vector.broadcast %cst_175 : f32 to vector<1x256xf32>
    %433 = arith.mulf %431, %432 : vector<1x256xf32>
    %434 = arith.subf %412, %416 : vector<1x256xf32>
    %435 = arith.mulf %433, %434 : vector<1x256xf32>
    %436 = arith.addf %435, %416 : vector<1x256xf32>
    %437 = arith.mulf %436, %428 : vector<1x256xf32>
    %c8_176 = arith.constant 8 : index
    %c0_177 = arith.constant 0 : index
    %438 = vector.load %arg19[%c8_176, %c0_177] : memref<16x256xf32, #tpu.memory_space<vmem>>, vector<1x256xf32>
    tpu.vector_store %arg19[%c8_176, %c0_177], %437 {strides = array<i32>} : memref<16x256xf32, #tpu.memory_space<vmem>>, vector<1x256xf32>,
    %439 = arith.addf %408, %437 : vector<1x256xf32>
    %cst_178 = arith.constant 8.000000e-01 : f32
    %440 = vector.broadcast %cst_178 : f32 to vector<1x256xf32>
    %441 = arith.subf %440, %439 : vector<1x256xf32>
    %cst_179 = arith.constant 4.000000e-01 : f32
    %442 = vector.broadcast %cst_179 : f32 to vector<1x256xf32>
    %443 = arith.minimumf %441, %442 : vector<1x256xf32>
    %cst_180 = arith.constant 0.000000e+00 : f32
    %444 = vector.broadcast %cst_180 : f32 to vector<1x256xf32>
    %445 = arith.subf %444, %439 : vector<1x256xf32>
    %cst_181 = arith.constant -4.000000e-01 : f32
    %446 = vector.broadcast %cst_181 : f32 to vector<1x256xf32>
    %447 = arith.maximumf %445, %446 : vector<1x256xf32>
    %448 = vector.extract_strided_slice %147 {offsets = [9, 0], sizes = [1, 256], strides = [1, 1]} : vector<11x256xf32> to vector<1x256xf32>
    %c0_182 = arith.constant 0 : index
    %c9 = arith.constant 9 : index
    %449 = memref.load %arg18[%c0_182, %c9] : memref<2x11xf32, #tpu.memory_space<smem>>
    %450 = vector.broadcast %449 : f32 to vector<1x256xf32>
    %451 = arith.mulf %439, %450 : vector<1x256xf32>
    %452 = arith.addf %448, %451 : vector<1x256xf32>
    %c1_183 = arith.constant 1 : index
    %c9_184 = arith.constant 9 : index
    %453 = memref.load %arg18[%c1_183, %c9_184] : memref<2x11xf32, #tpu.memory_space<smem>>
    %454 = vector.broadcast %453 : f32 to vector<1x256xf32>
    %455 = arith.addf %452, %454 : vector<1x256xf32>
    %c10_i32 = arith.constant 10 : i32
    %456 = vector.broadcast %c10_i32 : i32 to vector<1x256xi32>
    %457 = arith.cmpi sle, %153, %456 : vector<1x256xi32>
    %458 = arith.extui %457 : vector<1x256xi1> to vector<1x256xi32>
    %459 = arith.sitofp %458 : vector<1x256xi32> to vector<1x256xf32>
    %460 = math.tanh %455 : vector<1x256xf32>
    %cst_185 = arith.constant 1.000000e+00 : f32
    %461 = vector.broadcast %cst_185 : f32 to vector<1x256xf32>
    %462 = arith.addf %460, %461 : vector<1x256xf32>
    %cst_186 = arith.constant 5.000000e-01 : f32
    %463 = vector.broadcast %cst_186 : f32 to vector<1x256xf32>
    %464 = arith.mulf %462, %463 : vector<1x256xf32>
    %465 = arith.subf %443, %447 : vector<1x256xf32>
    %466 = arith.mulf %464, %465 : vector<1x256xf32>
    %467 = arith.addf %466, %447 : vector<1x256xf32>
    %468 = arith.mulf %467, %459 : vector<1x256xf32>
    %c9_187 = arith.constant 9 : index
    %c0_188 = arith.constant 0 : index
    %469 = vector.load %arg19[%c9_187, %c0_188] : memref<16x256xf32, #tpu.memory_space<vmem>>, vector<1x256xf32>
    tpu.vector_store %arg19[%c9_187, %c0_188], %468 {strides = array<i32>} : memref<16x256xf32, #tpu.memory_space<vmem>>, vector<1x256xf32>,
    %470 = arith.addf %439, %468 : vector<1x256xf32>
    %cst_189 = arith.constant 4.000000e-01 : f32
    %471 = vector.broadcast %cst_189 : f32 to vector<1x256xf32>
    %472 = arith.subf %471, %470 : vector<1x256xf32>
    %cst_190 = arith.constant 4.000000e-01 : f32
    %473 = vector.broadcast %cst_190 : f32 to vector<1x256xf32>
    %474 = arith.minimumf %472, %473 : vector<1x256xf32>
    %cst_191 = arith.constant 0.000000e+00 : f32
    %475 = vector.broadcast %cst_191 : f32 to vector<1x256xf32>
    %476 = arith.subf %475, %470 : vector<1x256xf32>
    %cst_192 = arith.constant -4.000000e-01 : f32
    %477 = vector.broadcast %cst_192 : f32 to vector<1x256xf32>
    %478 = arith.maximumf %476, %477 : vector<1x256xf32>
    %479 = vector.extract_strided_slice %147 {offsets = [10, 0], sizes = [1, 256], strides = [1, 1]} : vector<11x256xf32> to vector<1x256xf32>
    %c0_193 = arith.constant 0 : index
    %c10 = arith.constant 10 : index
    %480 = memref.load %arg18[%c0_193, %c10] : memref<2x11xf32, #tpu.memory_space<smem>>
    %481 = vector.broadcast %480 : f32 to vector<1x256xf32>
    %482 = arith.mulf %470, %481 : vector<1x256xf32>
    %483 = arith.addf %479, %482 : vector<1x256xf32>
    %c1_194 = arith.constant 1 : index
    %c10_195 = arith.constant 10 : index
    %484 = memref.load %arg18[%c1_194, %c10_195] : memref<2x11xf32, #tpu.memory_space<smem>>
    %485 = vector.broadcast %484 : f32 to vector<1x256xf32>
    %486 = arith.addf %483, %485 : vector<1x256xf32>
    %c11_i32 = arith.constant 11 : i32
    %487 = vector.broadcast %c11_i32 : i32 to vector<1x256xi32>
    %488 = arith.cmpi sle, %153, %487 : vector<1x256xi32>
    %489 = arith.extui %488 : vector<1x256xi1> to vector<1x256xi32>
    %490 = arith.sitofp %489 : vector<1x256xi32> to vector<1x256xf32>
    %491 = math.tanh %486 : vector<1x256xf32>
    %cst_196 = arith.constant 1.000000e+00 : f32
    %492 = vector.broadcast %cst_196 : f32 to vector<1x256xf32>
    %493 = arith.addf %491, %492 : vector<1x256xf32>
    %cst_197 = arith.constant 5.000000e-01 : f32
    %494 = vector.broadcast %cst_197 : f32 to vector<1x256xf32>
    %495 = arith.mulf %493, %494 : vector<1x256xf32>
    %496 = arith.subf %474, %478 : vector<1x256xf32>
    %497 = arith.mulf %495, %496 : vector<1x256xf32>
    %498 = arith.addf %497, %478 : vector<1x256xf32>
    %499 = arith.mulf %498, %490 : vector<1x256xf32>
    %c10_198 = arith.constant 10 : index
    %c0_199 = arith.constant 0 : index
    %500 = vector.load %arg19[%c10_198, %c0_199] : memref<16x256xf32, #tpu.memory_space<vmem>>, vector<1x256xf32>
    tpu.vector_store %arg19[%c10_198, %c0_199], %499 {strides = array<i32>} : memref<16x256xf32, #tpu.memory_space<vmem>>, vector<1x256xf32>,
    %501 = arith.addf %470, %499 : vector<1x256xf32>
    %cst_200 = arith.constant 0.000000e+00 : f32
    %502 = vector.broadcast %cst_200 : f32 to vector<1x256xf32>
    %503 = arith.subf %502, %501 : vector<1x256xf32>
    %cst_201 = arith.constant -4.000000e-01 : f32
    %cst_202 = arith.constant 4.000000e-01 : f32
    %504 = vector.broadcast %cst_201 : f32 to vector<1x256xf32>
    %505 = arith.maximumf %504, %503 : vector<1x256xf32>
    %506 = vector.broadcast %cst_202 : f32 to vector<1x256xf32>
    %507 = arith.minimumf %506, %505 : vector<1x256xf32>
    %c11 = arith.constant 11 : index
    %c0_203 = arith.constant 0 : index
    %508 = vector.load %arg19[%c11, %c0_203] : memref<16x256xf32, #tpu.memory_space<vmem>>, vector<1x256xf32>
    tpu.vector_store %arg19[%c11, %c0_203], %507 {strides = array<i32>} : memref<16x256xf32, #tpu.memory_space<vmem>>, vector<1x256xf32>,
    return
  }
  func.func @transform_0(%arg0: i32) -> (i32, i32) {
    %c0_i32 = arith.constant 0 : i32
    %c0_i32_0 = arith.constant 0 : i32
    return %arg0, %c0_i32 : i32, i32
  }
  func.func @transform_1(%arg0: i32) -> (i32, i32) {
    %c0_i32 = arith.constant 0 : i32
    %c0_i32_0 = arith.constant 0 : i32
    return %c0_i32, %arg0 : i32, i32
  }
  func.func @transform_2(%arg0: i32) -> (i32, i32) {
    %c0_i32 = arith.constant 0 : i32
    %c0_i32_0 = arith.constant 0 : i32
    %c0_i32_1 = arith.constant 0 : i32
    return %c0_i32, %c0_i32_0 : i32, i32
  }
  func.func @transform_3(%arg0: i32) -> (i32, i32) {
    %c0_i32 = arith.constant 0 : i32
    %c0_i32_0 = arith.constant 0 : i32
    %c0_i32_1 = arith.constant 0 : i32
    return %c0_i32, %c0_i32_0 : i32, i32
  }
  func.func @transform_4(%arg0: i32) -> (i32, i32) {
    %c0_i32 = arith.constant 0 : i32
    %c0_i32_0 = arith.constant 0 : i32
    %c0_i32_1 = arith.constant 0 : i32
    return %c0_i32, %c0_i32_0 : i32, i32
  }
  func.func @transform_5(%arg0: i32) -> (i32, i32) {
    %c0_i32 = arith.constant 0 : i32
    %c0_i32_0 = arith.constant 0 : i32
    %c0_i32_1 = arith.constant 0 : i32
    return %c0_i32, %c0_i32_0 : i32, i32
  }
  func.func @transform_6(%arg0: i32) -> (i32, i32) {
    %c0_i32 = arith.constant 0 : i32
    %c0_i32_0 = arith.constant 0 : i32
    %c0_i32_1 = arith.constant 0 : i32
    return %c0_i32, %c0_i32_0 : i32, i32
  }
  func.func @transform_7(%arg0: i32) -> (i32, i32) {
    %c0_i32 = arith.constant 0 : i32
    %c0_i32_0 = arith.constant 0 : i32
    %c0_i32_1 = arith.constant 0 : i32
    return %c0_i32, %c0_i32_0 : i32, i32
  }
  func.func @transform_8(%arg0: i32) -> (i32, i32) {
    %c0_i32 = arith.constant 0 : i32
    %c0_i32_0 = arith.constant 0 : i32
    %c0_i32_1 = arith.constant 0 : i32
    return %c0_i32, %c0_i32_0 : i32, i32
  }
  func.func @transform_9(%arg0: i32) -> (i32, i32) {
    %c0_i32 = arith.constant 0 : i32
    %c0_i32_0 = arith.constant 0 : i32
    %c0_i32_1 = arith.constant 0 : i32
    return %c0_i32, %c0_i32_0 : i32, i32
  }
  func.func @transform_10(%arg0: i32) -> (i32, i32) {
    %c0_i32 = arith.constant 0 : i32
    %c0_i32_0 = arith.constant 0 : i32
    %c0_i32_1 = arith.constant 0 : i32
    return %c0_i32, %c0_i32_0 : i32, i32
  }
  func.func @transform_11(%arg0: i32) -> (i32, i32) {
    %c0_i32 = arith.constant 0 : i32
    %c0_i32_0 = arith.constant 0 : i32
    %c0_i32_1 = arith.constant 0 : i32
    return %c0_i32, %c0_i32_0 : i32, i32
  }
  func.func @transform_12(%arg0: i32) -> (i32, i32) {
    %c0_i32 = arith.constant 0 : i32
    %c0_i32_0 = arith.constant 0 : i32
    %c0_i32_1 = arith.constant 0 : i32
    return %c0_i32, %c0_i32_0 : i32, i32
  }
  func.func @transform_13(%arg0: i32) -> (i32, i32) {
    %c0_i32 = arith.constant 0 : i32
    %c0_i32_0 = arith.constant 0 : i32
    %c0_i32_1 = arith.constant 0 : i32
    return %c0_i32, %c0_i32_0 : i32, i32
  }
  func.func @transform_14(%arg0: i32) -> (i32, i32) {
    %c0_i32 = arith.constant 0 : i32
    %c0_i32_0 = arith.constant 0 : i32
    %c0_i32_1 = arith.constant 0 : i32
    return %c0_i32, %c0_i32_0 : i32, i32
  }
  func.func @transform_15(%arg0: i32) -> (i32, i32) {
    %c0_i32 = arith.constant 0 : i32
    %c0_i32_0 = arith.constant 0 : i32
    %c0_i32_1 = arith.constant 0 : i32
    return %c0_i32, %c0_i32_0 : i32, i32
  }
  func.func @transform_16(%arg0: i32) -> (i32, i32) {
    %c0_i32 = arith.constant 0 : i32
    %c0_i32_0 = arith.constant 0 : i32
    %c0_i32_1 = arith.constant 0 : i32
    return %c0_i32, %c0_i32_0 : i32, i32
  }
  func.func @transform_17(%arg0: i32) -> (i32, i32) {
    %c0_i32 = arith.constant 0 : i32
    %c0_i32_0 = arith.constant 0 : i32
    %c0_i32_1 = arith.constant 0 : i32
    return %c0_i32, %c0_i32_0 : i32, i32
  }
  func.func @transform_18(%arg0: i32) -> (i32, i32) {
    %c0_i32 = arith.constant 0 : i32
    %c0_i32_0 = arith.constant 0 : i32
    return %c0_i32, %arg0 : i32, i32
  }
}

</mosaic_0001>

<bundles_post_ra>
// kernel: tpu_custom_call.1
= control target key start
LH: loop header
LB: loop body
LE: loop exit
PB: predicated region body
PF: predicated region fallthrough
CT: control target
= control target key end

     0   :  { %s16600_s0 = inlined_call_operand.vmem [shape: f32[512,14], index: 0, kind: input, shape index: {}]   ;;  %s16601_s1 = inlined_call_operand.vmem [shape: f32[2,512], index: 1, kind: input, shape index: {}]   ;;  %s16602_s2 = inlined_call_operand.vmem [shape: bf16[14,512], index: 2, kind: input, shape index: {}]   ;;  %s16603_s3 = inlined_call_operand.vmem [shape: f32[1,512], index: 3, kind: input, shape index: {}]   ;;  %s16604_s4 = inlined_call_operand.hbm [shape: bf16[512,512], index: 4, kind: input, shape index: {}]   ;;  %s16605_s5 = inlined_call_operand.vmem [shape: f32[1,512], index: 5, kind: input, shape index: {}]   ;;  %s16606_s6 = inlined_call_operand.vmem [shape: f32[1,512], index: 6, kind: input, shape index: {}]   ;;  %s16607_s7 = inlined_call_operand.vmem [shape: f32[1,512], index: 7, kind: input, shape index: {}]   ;;  %s16608_s8 = inlined_call_operand.vmem [shape: bf16[512,256], index: 8, kind: input, shape index: {}]   ;;  %s16609_s9 = inlined_call_operand.vmem [shape: f32[1,256], index: 9, kind: input, shape index: {}]   ;;  %s16610_s10 = inlined_call_operand.vmem [shape: f32[1,256], index: 10, kind: input, shape index: {}]   ;;  %s16611_s11 = inlined_call_operand.vmem [shape: f32[1,256], index: 11, kind: input, shape index: {}]   ;;  %s16612_s12 = inlined_call_operand.hbm [shape: bf16[256,128], index: 12, kind: input, shape index: {}]   ;;  %s16613_s13 = inlined_call_operand.vmem [shape: f32[1,128], index: 13, kind: input, shape index: {}]   ;;  %s16614_s14 = inlined_call_operand.vmem [shape: f32[1,128], index: 14, kind: input, shape index: {}]   ;;  %s16615_s15 = inlined_call_operand.vmem [shape: f32[1,128], index: 15, kind: input, shape index: {}]   ;;  %s16616_s16 = inlined_call_operand.vmem [shape: bf16[11,128], index: 16, kind: input, shape index: {}]   ;;  %s16617_s17 = inlined_call_operand.vmem [shape: f32[2,11], index: 17, kind: input, shape index: {}]   ;;  %s16618_s18 = inlined_call_operand.hbm [shape: f32[16,512], index: 18, kind: output, shape index: {}]  }
   0x1   :  { %16995 = sst [smem:[#allocation152_spill]] %s16600_s0 }
   0x2   :  { %16996 = sst [smem:[#allocation153_spill]] %s16601_s1 }
   0x3   :  { %16997 = sst [smem:[#allocation154_spill]] %s16602_s2 }
   0x4   :  { %16998 = sst [smem:[#allocation155_spill]] %s16616_s16 }
   0x5   :  { %16999 = sst [smem:[#allocation156_spill]] %s16618_s18 }
   0x6   :  { %23 = vsyncpa [#allocation3], 0 }
   0x7   :  { %24 = vsyncpa [#allocation7], 0 }
   0x8   :  { %25 = vsyncpa [#allocation5], 0 }
   0x9   :  { %26 = vsyncpa [#allocation4], 0 }
   0xa   :  { %28 = vsyncpa [#allocation4 + $0x1], 0  ;;  %s11060_s27 = smov 0   ;;  %s11062_s28 = smov 0  }
   0xb   :  { %s11064_s29 = smov 0   ;;  %s11066_s30 = smov 0  }
   0xc LB: > { %17000 = sst [smem:[#allocation14_spill]] %s10937_s27  ;;  %s11081_s0 = sadd.s32 4294967295, %s10949_s30   ;;  %s10949_s30 = sphi %s11066_s30, %s17639_s30   ;;  %s10945_s29 = sphi %s11064_s29, %s17642_s29   ;;  %s10941_s28 = sphi %s11062_s28, %s17641_s28   ;;  %s10937_s27 = sphi %s11060_s27, %s17640_s27  }
   0xd   : > { %17001 = sst [smem:[#allocation15_spill]] %s10941_s28  ;;  %s9177_s19 = sadd.s32 4294967294, %s10949_s30  }
   0xe   : > { %17002 = sst [smem:[#allocation16_spill]] %s10945_s29  ;;  %s11085_s1 = sadd.s32 1, %s10949_s30  }
   0xf   : > { %17003 = sst [smem:[#allocation17_spill]] %s10949_s30  ;;  %s429_s20 = sadd.s32 1, %s10945_s29 }
  0x10   : > { %17004 = sst [smem:[#allocation18_spill]] %s11085_s1  ;;  %s426_s21 = ssub.s32 %s10949_s30, %s11085_s1 }
  0x11   : > { %p439_p0 = scmp.ne.s32.totalorder %s10945_s29, %s10941_s28  ;;  %p427_p1 = scmp.eq.s32.totalorder %s426_s21, 0 }
  0x12   : > { %p440_p2 = scmp.eq.s32.totalorder %s11081_s0, 1  ;;  %p445_p3 = scmp.ne.s32.totalorder %s10941_s28, %s10937_s27 }
  0x13   : > { %p446_p4 = scmp.eq.s32.totalorder %s9177_s19, 1  ;;  %p9178_p7 = scmp.ge.s32.totalorder %s10949_s30, 1 }
  0x14   : > { %s11096_s22 = scalar_select %p427_p1, %s10945_s29, %s429_s20  }
  0x15   : > { %p11098_p5 = por %p440_p2, %p439_p0  ;;  %p11102_p6 = por %p446_p4, %p445_p3 }
  0x16   : > { %17005 = sst [smem:[#allocation19_spill]] %s11096_s22  ;;  %p453_p8 = scmp.lt.s32.totalorder %s10949_s30, 3 }
  0x17   : > { %s17006_s2 = scalar_select %p11098_p5, 1, 0 }
  0x18   : > { %s17008_s23 = scalar_select %p11102_p6, 1, 0 }
  0x19   : > { %17007 = sst [smem:[#allocation20_spill]] %s17006_s2  ;;  %p16626_p9 = scmp.eq.s32.totalorder %s11081_s0, 0 }
  0x1a   : > { %17009 = sst [smem:[#allocation21_spill]] %s17008_s23  ;;  %p11109_p10 = pnand %p9178_p7, %p453_p8 }
  0x1b   : > { %s10951_s25 = smov [#allocation2]   ;;  %s10952_s20 = smov [#allocation6]  }
  0x1c   : > { %s17010_s24 = scalar_select %p11109_p10, 1, 0 }
  0x1d   : > { %s471_s26 = sshll.u32 %s10951_s25, 4  ;;  %p10007_p11 = pneg %p11109_p10  ;;  %s472_s26 = int_to_ptr.vmem [resolvable:$true] %s471_s26 }
  0x1e   : > { %s505_s21 = sshll.u32 %s10952_s20, 4  ;;  %s10804_s1 = scalar_lea.hbm %s16604_s4, 16384  ;;  %s11121_s21 = int_to_ptr.vmem [resolvable:$true] %s505_s21 }
  0x1f   : > { %p11117_p12 = pnand %p16626_p9, %p10007_p11  ;;  %p10805_p13 = scmp.ne.s32.totalorder %s16604_s4, %s10804_s1 }
  0x20   : > { %p10811_p3 = scmp.lt.u32.totalorder %s10804_s1, %s16604_s4 }
  0x21   : > { %p11131_p0 = pneg %p11117_p12 }
  0x23   : > { %p10807_p1 = pnand %p11131_p0, %p10805_p13 }
  0x25   : > { %p10808_p2 = pneg %p10807_p1 }
  0x27   : > { %p10813_p4 = pnand %p10811_p3, %p10808_p2 }
  0x29   : > { %10816 = shalt.err (!%p10813_p4)
}
  0x2a   : > { %s10817_s29 = scalar_lea.vmem %s472_s26, 16384  ;;  %p10825_p9 = scmp.lt.s32.totalorder %s472_s26, %s472_s26 }
  0x2b   : > { %p10818_p7 = scmp.ne.s32.totalorder %s472_s26, %s10817_s29  ;;  %p10826_p6 = scmp.lt.s32.totalorder %s10817_s29, %s10817_s29 }
  0x2d   : > { %p10820_p8 = pnand %p10818_p7, %p11131_p0  ;;  %p10827_p5 = por %p10826_p6, %p10825_p9 }
  0x2f   : > { %p10821_p11 = pneg %p10820_p8 }
  0x31   : > { %p10828_p10 = pnand %p10827_p5, %p10821_p11 }
  0x33   : > { %10831 = shalt.err (!%p10828_p10)
}
  0x34   : > { %s10953_s27 = smov 256   ;;  %s10954_s22 = smov 16  }
  0x35   : > { %10010 = dma.hbm_to_vmem [thread:$0]  (!%p11117_p12), %s16604_s4, 16384, %s472_s26, [#allocation3], %s10953_s27, %s10953_s27, %s10954_s22  }
  0x36   : > { %s10832_s18 = scalar_lea.hbm %s16612_s12, 2048 }
  0x37   : > { %p10833_p13 = scmp.ne.s32.totalorder %s16612_s12, %s10832_s18  ;;  %p10839_p9 = scmp.lt.u32.totalorder %s10832_s18, %s16612_s12 }
  0x39   : > { %p10835_p5 = pnand %p10833_p13, %p11131_p0 }
  0x3b   : > { %p10836_p6 = pneg %p10835_p5 }
  0x3d   : > { %p10841_p10 = pnand %p10839_p9, %p10836_p6 }
  0x3f   : > { %10844 = shalt.err (!%p10841_p10)
}
  0x40   : > { %s10845_s26 = scalar_lea.vmem %s11121_s21, 2048  ;;  %p10853_p4 = scmp.lt.s32.totalorder %s11121_s21, %s11121_s21 }
  0x41   : > { %p10846_p1 = scmp.ne.s32.totalorder %s11121_s21, %s10845_s26  ;;  %p10854_p7 = scmp.lt.s32.totalorder %s10845_s26, %s10845_s26 }
  0x43   : > { %p10848_p2 = pnand %p10846_p1, %p11131_p0  ;;  %p10855_p8 = por %p10854_p7, %p10853_p4 }
  0x45   : > { %p10849_p3 = pneg %p10848_p2 }
  0x47   : > { %p10856_p11 = pnand %p10855_p8, %p10849_p3 }
  0x49   : > { %10859 = shalt.err (!%p10856_p11)
}
  0x4a   : > { %s10955_s16 = smov 64   ;;  %s10956_s18 = smov 4  }
  0x4b   : > { %10013 = dma.hbm_to_vmem [thread:$0]  (!%p11117_p12), %s16612_s12, 2048, %s11121_s21, [#allocation7], %s10955_s16, %s10955_s16, %s10956_s18  }
  0x4c   : > { %s531_s30 = sshll.u32 %s16617_s17, 4  ;;  %s532_s30 = int_to_ptr.vmem [resolvable:$true] %s531_s30 }
  0x4d   : > { %s10860_s1 = scalar_lea.vmem %s532_s30, 32  ;;  %p10868_p9 = scmp.lt.s32.totalorder %s532_s30, %s532_s30 }
  0x4e   : > { %p10861_p13 = scmp.ne.s32.totalorder %s532_s30, %s10860_s1  ;;  %p10869_p10 = scmp.lt.s32.totalorder %s10860_s1, %s10860_s1 }
  0x50   : > { %p10863_p5 = pnand %p10861_p13, %p11131_p0  ;;  %p10870_p1 = por %p10869_p10, %p10868_p9 }
  0x52   : > { %p10864_p6 = pneg %p10863_p5 }
  0x54   : > { %p10871_p2 = pnand %p10870_p1, %p10864_p6 }
  0x56   : > { %10874 = shalt.err (!%p10871_p2)
}
  0x57   : > { %s10957_s23 = smov [#allocation8]   ;;  %p17013_p3 = scmp.ne.s32.totalorder %s17010_s24, 0 }
  0x58   : > { %10016 = dma.vmem_to_smem (!%p11117_p12), %s532_s30, 32, %s10957_s23, [#allocation5]  }
  0x59   : > { %562 = sbr.rel (%p17013_p3) target bundleno = 2985 (0xba9), region = 92 }
  0x60   : > { %p17014_p4 = scmp.eq.s32.totalorder %s11081_s0, 0 }
  0x62   : > { %10920 = dma.done.wait (%p17014_p4), [#allocation3], 16384   ;;  %p17015_p7 = pmov %p17014_p4 }
  0x63   : > { %p17016_p0 = pmov %p17014_p4 }
  0x64   : > { %10922 = vsyncadd (%p17015_p7), [#allocation3], 4294950912 }
  0x65   : > { %10924 = dma.done.wait (%p17016_p0), [#allocation7], 2048   ;;  %p17017_p8 = pmov %p17016_p0 }
  0x66   : > { %p17018_p11 = pmov %p17016_p0 }
  0x67   : > { %10926 = vsyncadd (%p17017_p8), [#allocation7], 4294965248 }
  0x68   : > { %10928 = dma.done.wait (%p17018_p11), [#allocation5], 32   ;;  %p17019_p12 = pmov %p17016_p0 }
  0x6a   : > { %10930 = vsyncadd (%p17019_p12), [#allocation5], 4294967264 }
  0x6b   : > { %576 = sfence }
  0x6c   : > { %s9188_s24 = sshll.u32 %s11081_s0, 5  ;;  %v16634_v0 = vlaneseq  ;;  %s17022_s20 = sld [smem:[#allocation152_spill]]  ;;  %vm713_vm3 = vcmask 113664   ;;  %vm1077_vm4 = vcmask 1046528  }
  0x6d   : > { %p631_p13 = scmp.lt.s32.totalorder %s9188_s24, 63  ;;  %s17023_s18 = sld [smem:[#allocation154_spill]] }
  0x6e   : > { %v11193_v1 = vand.u32 127, %v16634_v0  ;;  %s7995_s16 = sld [smem:[#allocation8]]  ;;  %s17625_s1 = sld [smem:[#allocation153_spill]] }
  0x6f   : > { %s17644_s24 = smov (!%p631_p13, %s9188_s24), 63  ;;  %s9445_s21 = sld [smem:[#allocation8 + $0x1]] }
  0x70   : > { %vm678_vm0 = vcmp.ge.s32.totalorder %v11193_v1, 1  ;;  %vm679_vm1 = vcmp.le.s32.totalorder %v11193_v1, 12  ;;  %s9189_s19 = sshll.u32 %s17644_s24, 3  ;;  %vm842_vm5 = vcmp.eq.s32.totalorder %v11193_v1, 0  ;;  %v10229_v1 = vld [vmem:[#allocation2 + $0xc4] ss:$16 sps:$4 sm:$0xff]  }
  0x71   : > { %vm11197_vm2 = vmand %vm678_vm0, %vm679_vm1  ;;  %s9443_s24 = sld [smem:[#allocation8 + $0x80]]  ;;  %s9446_s25 = sld [smem:[#allocation8 + $0x81]] }
  0x72   : > { %s11204_s29 = scalar_lea.vmem %s17022_s20, %s9189_s19  ;;  %s17623_s19 = sld [smem:[#allocation15_spill]] }
  0x73   : > { %v11207_v3 = vld [vmem:[%s11204_s29 + $0x10] sm:$0xff]  ;;  %v11210_v4 = vld [vmem:[%s11204_s29] sm:$0xff]  ;;  %v11213_v5 = vld [vmem:[%s11204_s29 + $0x18] sm:$0xff]  ;;  %s17624_s20 = sld [smem:[#allocation155_spill]]  ;;  %s9458_s22 = sld [smem:[#allocation8 + $0x84]] }
  0x74   : > { %v683_v6 = vsel %vm11197_vm2, %v11207_v3, -1e+30  ;;  %v681_v7 = vsel %vm11197_vm2, %v11210_v4, -1e+30  ;;  %v684_v8 = vsel %vm11197_vm2, %v11213_v5, -1e+30 }
  0x75   : > { %v720_v9 = vsel %vm713_vm3, %v683_v6, -inf  ;;  %v714_v10 = vsel %vm713_vm3, %v681_v7, -inf  ;;  %v11227_v11 = vld [vmem:[%s11204_s29 + $0x8] sm:$0xff]  ;;  %v11233_v13 = vld [vmem:[%s11204_s29 + $0x20] sm:$0xff]  ;;  %v723_v15 = vsel %vm713_vm3, %v684_v8, -inf  ;;  %v11247_v19 = vld [vmem:[%s11204_s29 + $0x38] sm:$0xff] }
  0x76   : > { %v11230_v12 = vld [vmem:[%s11204_s29 + $0x28] sm:$0xff]  ;;  %721 = vmax.xlane.f32.xlu1 %v720_v9  ;;  %715 = vmax.xlane.f32.xlu0 %v714_v10  ;;  %v682_v14 = vsel %vm11197_vm2, %v11227_v11, -1e+30  ;;  %v685_v18 = vsel %vm11197_vm2, %v11233_v13, -1e+30  ;;  %v11250_v20 = vld [vmem:[%s11204_s29 + $0x30] sm:$0xff] }
  0x77   : > { %v717_v16 = vsel %vm713_vm3, %v682_v14, -inf  ;;  %v686_v17 = vsel %vm11197_vm2, %v11230_v12, -1e+30  ;;  %v726_v22 = vsel %vm713_vm3, %v685_v18, -inf  ;;  %v688_v23 = vsel %vm11197_vm2, %v11247_v19, -1e+30 }
  0x78   : > { %v729_v21 = vsel %vm713_vm3, %v686_v17, -inf  ;;  %v687_v24 = vsel %vm11197_vm2, %v11250_v20, -1e+30  ;;  %v11261_v25 = vld [vmem:[%s11204_s29 + $0x48] sm:$0xff]  ;;  %v11264_v26 = vld [vmem:[%s11204_s29 + $0x40] sm:$0xff]  ;;  %v735_v27 = vsel %vm713_vm3, %v688_v23, -inf }
  0x79   : > { %v732_v28 = vsel %vm713_vm3, %v687_v24, -inf  ;;  %v690_v29 = vsel %vm11197_vm2, %v11261_v25, -1e+30  ;;  %v689_v30 = vsel %vm11197_vm2, %v11264_v26, -1e+30  ;;  %v11275_v31 = vld [vmem:[%s11204_s29 + $0x88] sm:$0xff] }
  0x7a   : > { %724 = vmax.xlane.f32.xlu1 %v723_v15  ;;  %718 = vmax.xlane.f32.xlu0 %v717_v16  ;;  %v11278_v32 = vld [vmem:[%s11204_s29 + $0x80] sm:$0xff]  ;;  %v741_v33 = vsel %vm713_vm3, %v690_v29, -inf  ;;  %v738_v34 = vsel %vm713_vm3, %v689_v30, -inf  ;;  %v698_v35 = vsel %vm11197_vm2, %v11275_v31, -1e+30  ;;  %v655_v37 = vld [vmem:[%s11204_s29 + $0x58] sm:$0xff] }
  0x7b   : > { %v697_v36 = vsel %vm11197_vm2, %v11278_v32, -1e+30  ;;  %v654_v38 = vld [vmem:[%s11204_s29 + $0x50] sm:$0xff]  ;;  %v765_v39 = vsel %vm713_vm3, %v698_v35, -inf  ;;  %v692_v41 = vsel %vm11197_vm2, %v655_v37, -1e+30 }
  0x7c   : > { %v762_v40 = vsel %vm713_vm3, %v697_v36, -inf  ;;  %v11295_v42 = vld [vmem:[%s11204_s29 + $0x98] sm:$0xff]  ;;  %v691_v43 = vsel %vm11197_vm2, %v654_v38, -1e+30  ;;  %v11300_v44 = vld [vmem:[%s11204_s29 + $0x90] sm:$0xff]  ;;  %v657_v46 = vld [vmem:[%s11204_s29 + $0x68] sm:$0xff] }
  0x7d   : > { %v700_v45 = vsel %vm11197_vm2, %v11295_v42, -1e+30  ;;  %v747_v47 = vsel %vm713_vm3, %v692_v41, -inf  ;;  %v744_v48 = vsel %vm713_vm3, %v691_v43, -inf  ;;  %v656_v49 = vld [vmem:[%s11204_s29 + $0x60] sm:$0xff]  ;;  %v11314_v52 = vld [vmem:[%s11204_s29 + $0xa8] sm:$0xff] }
  0x7e   : > { %730 = vmax.xlane.f32.xlu1 %v729_v21  ;;  %727 = vmax.xlane.f32.xlu0 %v726_v22  ;;  %v699_v50 = vsel %vm11197_vm2, %v11300_v44, -1e+30  ;;  %v771_v51 = vsel %vm713_vm3, %v700_v45, -inf  ;;  %v694_v54 = vsel %vm11197_vm2, %v657_v46, -1e+30  ;;  %v11320_v55 = vld [vmem:[%s11204_s29 + $0xa0] sm:$0xff] }
  0x7f   : > { %v768_v53 = vsel %vm713_vm3, %v699_v50, -inf  ;;  %v693_v56 = vsel %vm11197_vm2, %v656_v49, -1e+30  ;;  %v659_v57 = vld [vmem:[%s11204_s29 + $0x78] sm:$0xff]  ;;  %v753_v58 = vsel %vm713_vm3, %v694_v54, -inf  ;;  %v658_v61 = vld [vmem:[%s11204_s29 + $0x70] sm:$0xff] }
  0x80   : > { %v750_v59 = vsel %vm713_vm3, %v693_v56, -inf  ;;  %v702_v60 = vsel %vm11197_vm2, %v11314_v52, -1e+30  ;;  %v701_v62 = vsel %vm11197_vm2, %v11320_v55, -1e+30  ;;  %v11337_v6 = vld [vmem:[%s11204_s29 + $0xb8] sm:$0xff] }
  0x81   : > { %v696_v63 = vsel %vm11197_vm2, %v659_v57, -1e+30  ;;  %v10185_v7 = vld [vmem:[%s17023_s18 + $0x4] ss:$16 sps:$4 sm:$0x7f]   ;;  %v777_v9 = vsel %vm713_vm3, %v702_v60, -inf }
  0x82   : > { %736 = vmax.xlane.f32.xlu1 %v735_v27  ;;  %733 = vmax.xlane.f32.xlu0 %v732_v28  ;;  %v10187_v8 = vld [vmem:[%s17023_s18] ss:$16 sps:$4 sm:$0x7f]   ;;  %v774_v10 = vsel %vm713_vm3, %v701_v62, -inf  ;;  %v695_v15 = vsel %vm11197_vm2, %v658_v61, -1e+30 }
  0x83   : > { %v11348_v14 = vld [vmem:[%s11204_s29 + $0xb0] sm:$0xff]  ;;  %9196 = vmatprep.subr.msk.bf16.mxu0 %vm1077_vm4, %v10185_v7  ;;  %v1079_v16 = vsel %vm1077_vm4, %v10187_v8, 0  ;;  %9605 = vmatprep.subr.msk.bf16.mxu1 %vm1077_vm4, %v10185_v7  ;;  %v759_v17 = vsel %vm713_vm3, %v696_v63, -inf  ;;  %v11357_v18 = vld [vmem:[%s11204_s29 + $0xc8] sm:$0xff]  ;;  %v756_v21 = vsel %vm713_vm3, %v695_v15, -inf  ;;  %v11364_v23 = vld [vmem:[%s11204_s29 + $0xc0] sm:$0xff] }
  0x84   : > { %1091 = vmatpush1.bf16.msra.mxu0 %v1079_v16  ;;  %9606 = vmatpush1.bf16.msra.mxu1 %v1079_v16  ;;  %v704_v22 = vsel %vm11197_vm2, %v11337_v6, -1e+30  ;;  %v16635_v24 = vmov 0   ;;  %v703_v27 = vsel %vm11197_vm2, %v11348_v14, -1e+30  ;;  %v11372_v28 = vld [vmem:[%s11204_s29 + $0xd8] sm:$0xff] }
  0x85   : > { %1122 = vmatprep.mubr.bf16.mxu0 %v16635_v24  ;;  %1202 = vmatprep.mubr.bf16.mxu1 %v16635_v24  ;;  %v783_v29 = vsel %vm713_vm3, %v704_v22, -inf  ;;  %v780_v30 = vsel %vm713_vm3, %v703_v27, -inf  ;;  %v705_v35 = vsel %vm11197_vm2, %v11364_v23, -1e+30  ;;  %v708_v36 = vsel %vm11197_vm2, %v11372_v28, -1e+30 }
  0x86   : > { %742 = vmax.xlane.f32.xlu1 %v741_v33  ;;  %739 = vmax.xlane.f32.xlu0 %v738_v34  ;;  %v706_v33 = vsel %vm11197_vm2, %v11357_v18, -1e+30  ;;  %v11380_v34 = vld [vmem:[%s11204_s29 + $0xd0] sm:$0xff]  ;;  %v11389_v37 = vld [vmem:[%s11204_s29 + $0xe8] sm:$0xff]  ;;  %v795_v43 = vsel %vm713_vm3, %v708_v36, -inf  ;;  %v11401_v45 = vld [vmem:[%s11204_s29 + $0xf8] sm:$0xff] }
  0x87   : > { %v789_v38 = vsel %vm713_vm3, %v706_v33, -inf  ;;  %v707_v41 = vsel %vm11197_vm2, %v11380_v34, -1e+30  ;;  %s627_s26 = sand.u32 1, %s17623_s19   ;;  %s9461_s30 = sld [smem:[#allocation8 + $0x5]] }
  0x88   : > { %v792_v46 = vsel %vm713_vm3, %v707_v41, -inf  ;;  %s9187_s28 = sshll.u32 %s627_s26, 5 }
  0x89   : > { %s16327_s27 = scalar_lea.vmem [#allocation9], %s9187_s28  ;;  %s9454_s28 = sld [smem:[#allocation8 + $0x83]] }
  0x8a   : > { %766 = vmax.xlane.f32.xlu1 %v765_v39  ;;  %763 = vmax.xlane.f32.xlu0 %v762_v40  ;;  %v786_v39 = vsel %vm713_vm3, %v705_v35, -inf  ;;  %v11394_v40 = vld [vmem:[%s11204_s29 + $0xe0] sm:$0xff] }
  0x8b   : > { %v709_v49 = vsel %vm11197_vm2, %v11394_v40, -1e+30 }
  0x8e   : > { %748 = vmax.xlane.f32.xlu1 %v747_v47  ;;  %745 = vmax.xlane.f32.xlu0 %v744_v48  ;;  %v710_v47 = vsel %vm11197_vm2, %v11389_v37, -1e+30  ;;  %v11408_v48 = vld [vmem:[%s11204_s29 + $0xf0] sm:$0xff] }
  0x8f   : > { %v801_v50 = vsel %vm713_vm3, %v710_v47, -inf  ;;  %v711_v54 = vsel %vm11197_vm2, %v11408_v48, -1e+30 }
  0x90   : > { %v804_v57 = vsel %vm713_vm3, %v711_v54, -inf }
  0x92   : > { %772 = vmax.xlane.f32.xlu1 %v771_v51  ;;  %769 = vmax.xlane.f32.xlu0 %v768_v53  ;;  %v798_v51 = vsel %vm713_vm3, %v709_v49, -inf  ;;  %v712_v53 = vsel %vm11197_vm2, %v11401_v45, -1e+30 }
  0x93   : > { %v807_v56 = vsel %vm713_vm3, %v712_v53, -inf }
  0x96   : > { %754 = vmax.xlane.f32.xlu1 %v753_v58  ;;  %751 = vmax.xlane.f32.xlu0 %v750_v59  ;;  %v10188_v58 = vld [vmem:[%s17023_s18 + $0xc] ss:$16 sps:$4 sm:$0x7f]  }
  0x97   : > { %9213 = vmatprep.subr.msk.bf16.mxu1 %vm1077_vm4, %v10188_v58 }
  0x9a   : > { %778 = vmax.xlane.f32.xlu1 %v777_v9  ;;  %775 = vmax.xlane.f32.xlu0 %v774_v10 }
  0x9e   : > { %760 = vmax.xlane.f32.xlu1 %v759_v17  ;;  %757 = vmax.xlane.f32.xlu0 %v756_v21 }
  0xa2   : > { %784 = vmax.xlane.f32.xlu1 %v783_v29  ;;  %781 = vmax.xlane.f32.xlu0 %v780_v30 }
  0xa6   : > { %790 = vmax.xlane.f32.xlu1 %v789_v38  ;;  %787 = vmax.xlane.f32.xlu0 %v786_v39 }
  0xaa   : > { %796 = vmax.xlane.f32.xlu1 %v795_v43  ;;  %793 = vmax.xlane.f32.xlu0 %v792_v46 }
  0xae   : > { %802 = vmax.xlane.f32.xlu1 %v801_v50  ;;  %799 = vmax.xlane.f32.xlu0 %v798_v51 }
  0xb2   : > { %808 = vmax.xlane.f32.xlu1 %v807_v56  ;;  %805 = vmax.xlane.f32.xlu0 %v804_v57 }
 0x103   : > { %v722_v59 = vpop.xlane.xlu1 %721  ;;  %v716_v60 = vpop.xlane.xlu0 %715 }
 0x104   : > { %v810_v61 = vmax.f32 %v716_v60, 1e-06  ;;  %v812_v62 = vmax.f32 %v722_v59, 1e-06 }
 0x106   : > { %v843_v63 = vsel %vm11197_vm2, %v810_v61, 1.0  ;;  %v845_v16 = vsel %vm11197_vm2, %v812_v62, 1.0 }
 0x107   : > { %v725_v7 = vpop.xlane.xlu1 %724  ;;  %v719_v8 = vpop.xlane.xlu0 %718  ;;  %v875_v9 = vsel %vm842_vm5, 11.0, %v843_v63  ;;  %v877_v33 = vsel %vm842_vm5, 11.0, %v845_v16 }
 0x108   : > { %v813_v10 = vmax.f32 %v725_v7, 1e-06  ;;  %v811_v15 = vmax.f32 %v719_v8, 1e-06  ;;  %10496 = vrcp.f32 %v875_v9 }
 0x10a   : > { %v844_v17 = vsel %vm11197_vm2, %v811_v15, 1.0  ;;  %v846_v21 = vsel %vm11197_vm2, %v813_v10, 1.0 }
 0x10b   : > { %v876_v22 = vsel %vm842_vm5, 11.0, %v844_v17  ;;  %v731_v27 = vpop.xlane.xlu1 %730  ;;  %v728_v29 = vpop.xlane.xlu0 %727  ;;  %v878_v36 = vsel %vm842_vm5, 11.0, %v846_v21 }
 0x10c   : > { %v815_v30 = vmax.f32 %v731_v27, 1e-06  ;;  %10498 = vrcp.f32 %v876_v22  ;;  %v814_v35 = vmax.f32 %v728_v29, 1e-06 }
 0x10d   : > { %10500 = vrcp.f32 %v877_v33 }
 0x10e   : > { %v848_v41 = vsel %vm11197_vm2, %v815_v30, 1.0  ;;  %10502 = vrcp.f32 %v878_v36  ;;  %v847_v46 = vsel %vm11197_vm2, %v814_v35, 1.0 }
 0x10f   : > { %v737_v38 = vpop.xlane.xlu1 %736  ;;  %v734_v39 = vpop.xlane.xlu0 %733  ;;  %v880_v47 = vsel %vm842_vm5, 11.0, %v848_v41  ;;  %v879_v53 = vsel %vm842_vm5, 11.0, %v847_v46 }
 0x110   : > { %v817_v43 = vmax.f32 %v737_v38, 1e-06  ;;  %v816_v49 = vmax.f32 %v734_v39, 1e-06  ;;  %10504 = vrcp.f32 %v880_v47 }
 0x111   : > { %10506 = vrcp.f32 %v879_v53 }
 0x112   : > { %v850_v54 = vsel %vm11197_vm2, %v817_v43, 1.0  ;;  %v10497_v56 = vpop.eup %10496  ;;  %v849_v59 = vsel %vm11197_vm2, %v816_v49, 1.0 }
 0x113   : > { %v743_v50 = vpop.xlane.xlu1 %742  ;;  %v740_v51 = vpop.xlane.xlu0 %739  ;;  %v882_v58 = vsel %vm842_vm5, 11.0, %v850_v54  ;;  %v908_v7 = vmul.f32 %v10497_v56, %v11210_v4  ;;  %v881_v21 = vsel %vm842_vm5, 11.0, %v849_v59 }
 0x114   : > { %10508 = vrcp.f32 %v882_v58  ;;  %v819_v29 = vmax.f32 %v743_v50, 1e-06  ;;  %v818_v30 = vmax.f32 %v740_v51, 1e-06 }
 0x116   : > { %v10499_v57 = vpop.eup %10498  ;;  %v852_v41 = vsel %vm11197_vm2, %v819_v29, 1.0  ;;  %v851_v49 = vsel %vm11197_vm2, %v818_v30, 1.0 }
 0x117   : > { %v767_v60 = vpop.xlane.xlu1 %766  ;;  %v764_v61 = vpop.xlane.xlu0 %763  ;;  %v910_v8 = vmul.f32 %v10499_v57, %v11227_v11  ;;  %v883_v58 = vsel %vm842_vm5, 11.0, %v851_v49 }
 0x118   : > { %v827_v62 = vmax.f32 %v767_v60, 1e-06  ;;  %v826_v63 = vmax.f32 %v764_v61, 1e-06  ;;  %v10501_v9 = vpop.eup %10500 }
 0x119   : > { %v11464_v16 = vpack.c.bf16 %v910_v8, %v908_v7  ;;  %v10503_v17 = vpop.eup %10502  ;;  %v912_v33 = vmul.f32 %v10501_v9, %v11207_v3  ;;  %v10190_v61 = vld [vmem:[%s17023_s18 + $0x8] ss:$16 sps:$4 sm:$0x7f]  }
 0x11a   : > { %v860_v10 = vsel %vm11197_vm2, %v827_v62, 1.0  ;;  %v859_v15 = vsel %vm11197_vm2, %v826_v63, 1.0  ;;  %v914_v35 = vmul.f32 %v10503_v17, %v11213_v5  ;;  %v10505_v39 = vpop.eup %10504  ;;  %v884_v5 = vsel %vm842_vm5, 11.0, %v852_v41 }
 0x11b   : > { %v892_v22 = vsel %vm842_vm5, 11.0, %v860_v10  ;;  %v891_v4 = vsel %vm842_vm5, 11.0, %v859_v15  ;;  %v749_v11 = vpop.xlane.xlu1 %748  ;;  %v746_v27 = vpop.xlane.xlu0 %745  ;;  %9197 = vmatmul.mubr.msk.bf16.vlgmr.msra.gmra.mrb[0].mxu0 %vm713_vm3, %v11464_v16  ;;  %v918_v60 = vmul.f32 %v10505_v39, %v11230_v12  ;;  %v1085_v30 = vsel %vm1077_vm4, %v10190_v61, 0 }
 0x11c   : > { %10510 = vrcp.f32 %v892_v22  ;;  %1132 = vmatprep.mubr.bf16.mxu0 %v16635_v24  ;;  %v10507_v47 = vpop.eup %10506  ;;  %v11485_v51 = vpack.c.bf16 %v914_v35, %v912_v33  ;;  %v821_v63 = vmax.f32 %v749_v11, 1e-06  ;;  %v820_v7 = vmax.f32 %v746_v27, 1e-06 }
 0x11d   : > { %10512 = vrcp.f32 %v891_v4  ;;  %v916_v59 = vmul.f32 %v10507_v47, %v11233_v13 }
 0x11e   : > { %10514 = vrcp.f32 %v881_v21  ;;  %v10509_v62 = vpop.eup %10508  ;;  %v854_v11 = vsel %vm11197_vm2, %v821_v63, 1.0  ;;  %v853_v27 = vsel %vm11197_vm2, %v820_v7, 1.0 }
 0x11f   : > { %v773_v36 = vpop.xlane.xlu1 %772  ;;  %v770_v38 = vpop.xlane.xlu0 %769  ;;  %v11504_v22 = vpack.c.bf16 %v918_v60, %v916_v59  ;;  %v886_v47 = vsel %vm842_vm5, 11.0, %v854_v11  ;;  %v10193_v11 = vld [vmem:[#allocation2 + $0x4] ss:$16 sps:$4 sm:$0xff]  }
 0x120   : > { %v829_v43 = vmax.f32 %v773_v36, 1e-06  ;;  %v828_v46 = vmax.f32 %v770_v38, 1e-06  ;;  %v922_v36 = vmul.f32 %v10509_v62, %v11247_v19  ;;  %2714 = vmatprep.subr.bf16.mxu0 %v10193_v11 }
 0x122   : > { %v862_v50 = vsel %vm11197_vm2, %v829_v43, 1.0  ;;  %v861_v3 = vsel %vm11197_vm2, %v828_v46, 1.0 }
 0x123   : > { %v894_v53 = vsel %vm842_vm5, 11.0, %v862_v50  ;;  %v893_v54 = vsel %vm842_vm5, 11.0, %v861_v3  ;;  %v755_v56 = vpop.xlane.xlu1 %754  ;;  %v752_v57 = vpop.xlane.xlu0 %751  ;;  %9198 = vmatmul.mubr.msk.bf16.gmra.mrb[4].mxu0 %vm713_vm3, %v11485_v51 }
 0x124   : > { %10516 = vrcp.f32 %v894_v53  ;;  %1142 = vmatprep.mubr.bf16.mxu0 %v16635_v24  ;;  %v823_v29 = vmax.f32 %v755_v56, 1e-06 }
 0x125   : > { %10518 = vrcp.f32 %v893_v54 }
 0x126   : > { %v10511_v8 = vpop.eup %10510  ;;  %10520 = vrcp.f32 %v884_v5  ;;  %v856_v19 = vsel %vm11197_vm2, %v823_v29, 1.0 }
 0x127   : > { %v10513_v9 = vpop.eup %10512  ;;  %10522 = vrcp.f32 %v883_v58  ;;  %v779_v10 = vpop.xlane.xlu1 %778  ;;  %v942_v13 = vmul.f32 %v10511_v8, %v11275_v31  ;;  %v888_v58 = vsel %vm842_vm5, 11.0, %v856_v19 }
 0x128   : > { %v776_v15 = vpop.xlane.xlu0 %775  ;;  %v10515_v17 = vpop.eup %10514  ;;  %v831_v12 = vmax.f32 %v779_v10, 1e-06  ;;  %v940_v4 = vmul.f32 %v10513_v9, %v11278_v32  ;;  %v822_v32 = vmax.f32 %v752_v57, 1e-06 }
 0x129   : > { %v830_v21 = vmax.f32 %v776_v15, 1e-06  ;;  %v920_v46 = vmul.f32 %v10515_v17, %v11250_v20  ;;  %v885_v20 = vsel %vm842_vm5, 11.0, %v853_v27 }
 0x12a   : > { %v864_v33 = vsel %vm11197_vm2, %v831_v12, 1.0  ;;  %v11516_v35 = vpack.c.bf16 %v942_v13, %v940_v4  ;;  %v855_v3 = vsel %vm11197_vm2, %v822_v32, 1.0  ;;  %v10191_v4 = vld [vmem:[#allocation2] ss:$16 sps:$4 sm:$0xff]  }
 0x12b   : > { %v863_v31 = vsel %vm11197_vm2, %v830_v21, 1.0  ;;  %v896_v38 = vsel %vm842_vm5, 11.0, %v864_v33  ;;  %v11523_v41 = vpop.xlane.xlu1 %760  ;;  %9199 = vmatmul.mubr.msk.bf16.gmra.mrb[8].mxu0 %vm713_vm3, %v11504_v22  ;;  %v11542_v54 = vpack.c.bf16 %v922_v36, %v920_v46 }
 0x12c   : > { %v895_v39 = vsel %vm842_vm5, 11.0, %v863_v31  ;;  %v11525_v43 = vpop.xlane.xlu0 %757  ;;  %10524 = vrcp.f32 %v896_v38  ;;  %9205 = vmatmul.mubr.msk.bf16.vlgmr.msra.gmra.mrb[0].mxu1 %vm713_vm3, %v11516_v35  ;;  %1152 = vmatprep.mubr.bf16.mxu0 %v16635_v24  ;;  %v825_v29 = vmax.f32 %v11523_v41, 1e-06  ;;  %v10196_v31 = vld [vmem:[#allocation2 + $0xc] ss:$16 sps:$4 sm:$0xff]  }
 0x12d   : > { %10526 = vrcp.f32 %v895_v39  ;;  %1212 = vmatprep.mubr.bf16.mxu1 %v16635_v24  ;;  %1284 = vmatpush1.bf16.msra.mxu1 %v1085_v30  ;;  %v824_v32 = vmax.f32 %v11525_v43, 1e-06 }
 0x12e   : > { %v10517_v49 = vpop.eup %10516  ;;  %10528 = vrcp.f32 %v886_v47  ;;  %3100 = vmatprep.subr.bf16.mxu1 %v10196_v31  ;;  %2715 = vmatpush1.bf16.msra.mxu0 %v10191_v4 }
 0x12f   : > { %v10519_v50 = vpop.eup %10518  ;;  %v785_v5 = vpop.xlane.xlu1 %784  ;;  %v946_v56 = vmul.f32 %v10517_v49, %v11295_v42  ;;  %10530 = vrcp.f32 %v885_v20  ;;  %v887_v42 = vsel %vm842_vm5, 11.0, %v855_v3  ;;  %v858_v20 = vsel %vm11197_vm2, %v825_v29, 1.0 }
 0x130   : > { %v782_v53 = vpop.xlane.xlu0 %781  ;;  %v10521_v57 = vpop.eup %10520  ;;  %v833_v59 = vmax.f32 %v785_v5, 1e-06  ;;  %v944_v61 = vmul.f32 %v10519_v50, %v11300_v44  ;;  %10532 = vrcp.f32 %v888_v58  ;;  %v857_v5 = vsel %vm11197_vm2, %v824_v32, 1.0  ;;  %v10203_v32 = vld [vmem:[#allocation2 + $0x40] ss:$16 sps:$4 sm:$0xff]  }
 0x131   : > { %v832_v60 = vmax.f32 %v782_v53, 1e-06  ;;  %v10523_v62 = vpop.eup %10522  ;;  %v926_v21 = vmul.f32 %v10521_v57, %v11261_v25 }
 0x132   : > { %v866_v63 = vsel %vm11197_vm2, %v833_v59, 1.0  ;;  %v11552_v8 = vpack.c.bf16 %v946_v56, %v944_v61  ;;  %v924_v12 = vmul.f32 %v10523_v62, %v11264_v26  ;;  %v890_v62 = vsel %vm842_vm5, 11.0, %v858_v20  ;;  %v10799_v20 = vld [vmem:[%s11204_s29 + $0x68] sm:$0xff] }
 0x133   : > { %v865_v7 = vsel %vm11197_vm2, %v832_v60, 1.0  ;;  %v898_v9 = vsel %vm842_vm5, 11.0, %v866_v63  ;;  %v791_v10 = vpop.xlane.xlu1 %790  ;;  %9200 = vmatmul.mubr.msk.bf16.gmra.mrb[12].mxu0 %vm713_vm3, %v11542_v54  ;;  %v10197_v60 = vld [vmem:[#allocation2 + $0x20] ss:$16 sps:$4 sm:$0xff]  }
 0x134   : > { %v897_v44 = vsel %vm842_vm5, 11.0, %v865_v7  ;;  %v788_v15 = vpop.xlane.xlu0 %787  ;;  %10534 = vrcp.f32 %v898_v9  ;;  %9206 = vmatmul.mubr.msk.bf16.gmra.mrb[4].mxu1 %vm713_vm3, %v11552_v8  ;;  %v835_v13 = vmax.f32 %v791_v10, 1e-06  ;;  %1162 = vmatprep.mubr.bf16.mxu0 %v16635_v24  ;;  %v11580_v43 = vpack.c.bf16 %v926_v21, %v924_v12  ;;  %v10199_v7 = vld [vmem:[#allocation2 + $0x24] ss:$16 sps:$4 sm:$0xff]  }
 0x135   : > { %v834_v17 = vmax.f32 %v788_v15, 1e-06  ;;  %10536 = vrcp.f32 %v897_v44  ;;  %1222 = vmatprep.mubr.bf16.mxu1 %v16635_v24  ;;  %v889_v9 = vsel %vm842_vm5, 11.0, %v857_v5  ;;  %v10796_v44 = vld [vmem:[%s11204_s29 + $0x50] sm:$0xff]  ;;  %v10797_v15 = vld [vmem:[%s11204_s29 + $0x58] sm:$0xff]  ;;  %2716 = vmatprep.subr.bf16.mxu0 %v10199_v7 }
 0x136   : > { %v10525_v27 = vpop.eup %10524  ;;  %10538 = vrcp.f32 %v887_v42  ;;  %v868_v30 = vsel %vm11197_vm2, %v835_v13, 1.0  ;;  %2717 = vmatpush1.bf16.msra.mxu0 %v10197_v60  ;;  %v10223_v7 = vld [vmem:[#allocation2 + $0xa4] ss:$16 sps:$4 sm:$0xff]  }
 0x137   : > { %v867_v33 = vsel %vm11197_vm2, %v834_v17, 1.0  ;;  %v10527_v36 = vpop.eup %10526  ;;  %v900_v26 = vsel %vm842_vm5, 11.0, %v868_v30  ;;  %v950_v38 = vmul.f32 %v10525_v27, %v11314_v52  ;;  %v797_v39 = vpop.xlane.xlu1 %796  ;;  %v10205_v17 = vld [vmem:[#allocation2 + $0x44] ss:$16 sps:$4 sm:$0xff]  }
 0x138   : > { %v899_v25 = vsel %vm842_vm5, 11.0, %v867_v33  ;;  %v794_v41 = vpop.xlane.xlu0 %793  ;;  %10540 = vrcp.f32 %v900_v26  ;;  %v948_v46 = vmul.f32 %v10527_v36, %v11320_v55  ;;  %v837_v47 = vmax.f32 %v797_v39, 1e-06  ;;  %v10529_v49 = vpop.eup %10528  ;;  %2718 = vmatprep.subr.bf16.mxu0 %v10205_v17 }
 0x139   : > { %v836_v19 = vmax.f32 %v794_v41, 1e-06  ;;  %10542 = vrcp.f32 %v899_v25  ;;  %v10531_v55 = vpop.eup %10530  ;;  %v930_v13 = vmul.f32 %v10797_v15, %v10529_v49  ;;  %v10221_v15 = vld [vmem:[#allocation2 + $0xa0] ss:$16 sps:$4 sm:$0xff]  }
 0x13a   : > { %v11584_v50 = vpack.c.bf16 %v950_v38, %v948_v46  ;;  %v870_v52 = vsel %vm11197_vm2, %v837_v47, 1.0  ;;  %v10533_v61 = vpop.eup %10532  ;;  %v928_v10 = vmul.f32 %v10796_v44, %v10531_v55  ;;  %v10211_v46 = vld [vmem:[#allocation2 + $0x64] ss:$16 sps:$4 sm:$0xff]   ;;  %2719 = vmatpush1.bf16.msra.mxu0 %v10203_v32  ;;  %v10801_v44 = vld [vmem:[%s11204_s29 + $0x78] sm:$0xff]  ;;  %v10239_v32 = vld [vmem:[#allocation2 + $0x100] ss:$16 sps:$4 sm:$0xff]  }
 0x13b   : > { %v869_v3 = vsel %vm11197_vm2, %v836_v19, 1.0  ;;  %v902_v53 = vsel %vm842_vm5, 11.0, %v870_v52  ;;  %v803_v56 = vpop.xlane.xlu1 %802  ;;  %9201 = vmatmul.mubr.msk.bf16.gmra.mrb[16].mxu0 %vm713_vm3, %v11580_v43  ;;  %v10798_v19 = vld [vmem:[%s11204_s29 + $0x60] sm:$0xff]  ;;  %v934_v52 = vmul.f32 %v10799_v20, %v10533_v61  ;;  %2720 = vmatprep.subr.bf16.mxu0 %v10211_v46  ;;  %v10194_v46 = vld [vmem:[#allocation2 + $0x8] ss:$16 sps:$4 sm:$0xff]  }
 0x13c   : > { %v800_v57 = vpop.xlane.xlu0 %799  ;;  %9207 = vmatmul.mubr.msk.bf16.gmra.mrb[8].mxu1 %vm713_vm3, %v11584_v50  ;;  %v901_v58 = vsel %vm842_vm5, 11.0, %v869_v3  ;;  %v839_v59 = vmax.f32 %v803_v56, 1e-06  ;;  %1172 = vmatprep.mubr.bf16.mxu0 %v16635_v24  ;;  %10544 = vrcp.f32 %v902_v53  ;;  %v11614_v31 = vpack.c.bf16 %v930_v13, %v928_v10  ;;  %v10209_v3 = vld [vmem:[#allocation2 + $0x60] ss:$16 sps:$4 sm:$0xff]  }
 0x13d   : > { %1232 = vmatprep.mubr.bf16.mxu1 %v16635_v24  ;;  %v838_v63 = vmax.f32 %v800_v57, 1e-06  ;;  %10546 = vrcp.f32 %v901_v58  ;;  %v10217_v55 = vld [vmem:[#allocation2 + $0x84] ss:$16 sps:$4 sm:$0xff]  }
 0x13e   : > { %v10535_v42 = vpop.eup %10534  ;;  %10548 = vrcp.f32 %v890_v62  ;;  %v872_v27 = vsel %vm11197_vm2, %v839_v59, 1.0  ;;  %2721 = vmatpush1.bf16.msra.mxu0 %v10209_v3  ;;  %v10215_v59 = vld [vmem:[#allocation2 + $0x80] ss:$16 sps:$4 sm:$0xff]   ;;  %v10271_v20 = vld [vmem:[#allocation2 + $0x1a4] ss:$16 sps:$4 sm:$0xff]  }
 0x13f   : > { %v10537_v12 = vpop.eup %10536  ;;  %v954_v21 = vmul.f32 %v10535_v42, %v11337_v6  ;;  %10550 = vrcp.f32 %v889_v9  ;;  %v871_v29 = vsel %vm11197_vm2, %v838_v63, 1.0  ;;  %v809_v30 = vpop.xlane.xlu1 %808  ;;  %v904_v26 = vsel %vm842_vm5, 11.0, %v872_v27  ;;  %2722 = vmatprep.subr.bf16.mxu0 %v10217_v55  ;;  %v10800_v42 = vld [vmem:[%s11204_s29 + $0x70] sm:$0xff]  ;;  %v10206_v55 = vld [vmem:[#allocation2 + $0x48] ss:$16 sps:$4 sm:$0xff]   ;;  %s9190_s29 = sshll.u32 %s11081_s0, 1 }
 0x140   : > { %v10539_v4 = vpop.eup %10538  ;;  %v952_v11 = vmul.f32 %v10537_v12, %v11348_v14  ;;  %v806_v6 = vpop.xlane.xlu0 %805  ;;  %v903_v25 = vsel %vm842_vm5, 11.0, %v871_v29  ;;  %v841_v41 = vmax.f32 %v809_v30, 1e-06  ;;  %10552 = vrcp.f32 %v904_v26  ;;  %v10227_v12 = vld [vmem:[#allocation2 + $0xc0] ss:$16 sps:$4 sm:$0xff]   ;;  %p637_p5 = scmp.lt.s32.totalorder %s9190_s29, 3 }
 0x141   : > { %v840_v47 = vmax.f32 %v806_v6, 1e-06  ;;  %v932_v49 = vmul.f32 %v10798_v19, %v10539_v4  ;;  %10554 = vrcp.f32 %v903_v25  ;;  %v10233_v27 = vld [vmem:[#allocation2 + $0xe0] ss:$16 sps:$4 sm:$0xff]   ;;  %v10241_v29 = vld [vmem:[#allocation2 + $0x104] ss:$16 sps:$4 sm:$0xff]  }
 0x142   : > { %v10541_v33 = vpop.eup %10540  ;;  %v11616_v36 = vpack.c.bf16 %v954_v21, %v952_v11  ;;  %2723 = vmatpush1.bf16.msra.mxu0 %v10215_v59  ;;  %v10235_v11 = vld [vmem:[#allocation2 + $0xe4] ss:$16 sps:$4 sm:$0xff]   ;;  %v10245_v26 = vld [vmem:[#allocation2 + $0x120] ss:$16 sps:$4 sm:$0xff]   ;;  %s17646_s29 = smov (!%p637_p5, %s9190_s29), 3 }
 0x143   : > { %v10543_v14 = vpop.eup %10542  ;;  %9202 = vmatmul.mubr.msk.bf16.gmra.mrb[20].mxu0 %vm713_vm3, %v11614_v31  ;;  %v958_v39 = vmul.f32 %v10541_v33, %v11357_v18  ;;  %v874_v18 = vsel %vm11197_vm2, %v841_v41, 1.0  ;;  %v873_v56 = vsel %vm11197_vm2, %v840_v47, 1.0  ;;  %v11638_v58 = vpack.c.bf16 %v934_v52, %v932_v49  ;;  %2724 = vmatprep.subr.bf16.mxu0 %v10223_v7  ;;  %v10253_v25 = vld [vmem:[#allocation2 + $0x144] ss:$16 sps:$4 sm:$0xff]   ;;  %v10202_v47 = vld [vmem:[#allocation2 + $0x2c] ss:$16 sps:$4 sm:$0xff]  }
 0x144   : > { %9208 = vmatmul.mubr.msk.bf16.gmra.mrb[12].mxu1 %vm713_vm3, %v11616_v36  ;;  %v956_v38 = vmul.f32 %v10543_v14, %v11364_v23  ;;  %1182 = vmatprep.mubr.bf16.mxu0 %v16635_v24  ;;  %v906_v61 = vsel %vm842_vm5, 11.0, %v874_v18  ;;  %v905_v2 = vsel %vm842_vm5, 11.0, %v873_v56  ;;  %v10247_v14 = vld [vmem:[#allocation2 + $0x124] ss:$16 sps:$4 sm:$0xff]   ;;  %v10263_v19 = vld [vmem:[#allocation2 + $0x180] ss:$16 sps:$4 sm:$0xff]  }
 0x145   : > { %1242 = vmatprep.mubr.bf16.mxu1 %v16635_v24  ;;  %10556 = vrcp.f32 %v906_v61  ;;  %v10259_v41 = vld [vmem:[#allocation2 + $0x164] ss:$16 sps:$4 sm:$0xff]   ;;  %v10200_v49 = vld [vmem:[#allocation2 + $0x28] ss:$16 sps:$4 sm:$0xff]   ;;  %v10208_v52 = vld [vmem:[#allocation2 + $0x4c] ss:$16 sps:$4 sm:$0xff]  }
 0x146   : > { %v10545_v23 = vpop.eup %10544  ;;  %v11632_v5 = vpack.c.bf16 %v958_v39, %v956_v38  ;;  %10558 = vrcp.f32 %v905_v2  ;;  %2725 = vmatpush1.bf16.msra.mxu0 %v10221_v15  ;;  %v10251_v39 = vld [vmem:[#allocation2 + $0x140] ss:$16 sps:$4 sm:$0xff]   ;;  %v10214_v18 = vld [vmem:[#allocation2 + $0x6c] ss:$16 sps:$4 sm:$0xff]   ;;  %v10283_v56 = vld [vmem:[#allocation2 + $0x1e4] ss:$16 sps:$4 sm:$0xff]  }
 0x147   : > { %v10547_v53 = vpop.eup %10546  ;;  %v962_v63 = vmul.f32 %v10545_v23, %v11372_v28  ;;  %2726 = vmatprep.subr.bf16.mxu0 %v10229_v1  ;;  %v10269_v3 = vld [vmem:[#allocation2 + $0x1a0] ss:$16 sps:$4 sm:$0xff]   ;;  %v10277_v23 = vld [vmem:[#allocation2 + $0x1c4] ss:$16 sps:$4 sm:$0xff]   ;;  %v10226_v61 = vld [vmem:[#allocation2 + $0xac] ss:$16 sps:$4 sm:$0xff]  }
 0x148   : > { %v10549_v57 = vpop.eup %10548  ;;  %v960_v62 = vmul.f32 %v10547_v53, %v11380_v34  ;;  %v10275_v53 = vld [vmem:[#allocation2 + $0x1c0] ss:$16 sps:$4 sm:$0xff]   ;;  %v10232_v2 = vld [vmem:[#allocation2 + $0xcc] ss:$16 sps:$4 sm:$0xff]   ;;  %v10236_v7 = vld [vmem:[#allocation2 + $0xe8] ss:$16 sps:$4 sm:$0xff]  }
 0x149   : > { %v10551_v60 = vpop.eup %10550  ;;  %v938_v10 = vmul.f32 %v10801_v44, %v10549_v57  ;;  %v10220_v57 = vld [vmem:[#allocation2 + $0x8c] ss:$16 sps:$4 sm:$0xff]   ;;  %v10281_v59 = vld [vmem:[#allocation2 + $0x1e0] ss:$16 sps:$4 sm:$0xff]   ;;  %v10248_v44 = vld [vmem:[#allocation2 + $0x128] ss:$16 sps:$4 sm:$0xff]  }
 0x14a   : > { %v936_v9 = vmul.f32 %v10800_v42, %v10551_v60  ;;  %v10553_v13 = vpop.eup %10552  ;;  %v11654_v17 = vpack.c.bf16 %v962_v63, %v960_v62  ;;  %2727 = vmatpush1.bf16.msra.mxu0 %v10227_v12  ;;  %v10218_v60 = vld [vmem:[#allocation2 + $0x88] ss:$16 sps:$4 sm:$0xff]   ;;  %v10238_v63 = vld [vmem:[#allocation2 + $0xec] ss:$16 sps:$4 sm:$0xff]   ;;  %s9191_s2 = sshll.u32 %s17646_s29, 1  ;;  %s9450_s29 = sld [smem:[#allocation8 + $0x82]] }
 0x14b   : > { %9203 = vmatmul.mubr.msk.bf16.gmra.mrb[24].mxu0 %vm713_vm3, %v11638_v58  ;;  %v10555_v34 = vpop.eup %10554  ;;  %v966_v4 = vmul.f32 %v10553_v13, %v11389_v37  ;;  %2728 = vmatprep.subr.bf16.mxu0 %v10235_v11  ;;  %v10230_v62 = vld [vmem:[#allocation2 + $0xc8] ss:$16 sps:$4 sm:$0xff]   ;;  %v10244_v42 = vld [vmem:[#allocation2 + $0x10c] ss:$16 sps:$4 sm:$0xff]   ;;  %s640_s23 = scalar_lea.vmem %s17625_s1, %s9191_s2  ;;  %s9457_s2 = sld [smem:[#allocation8 + $0x4]] }
 0x14c   : > { %9209 = vmatmul.mubr.msk.bf16.gmra.mrb[16].mxu1 %vm713_vm3, %v11632_v5  ;;  %1192 = vmatprep.mubr.bf16.mxu0 %v16635_v24  ;;  %v11656_v28 = vpack.c.bf16 %v938_v10, %v936_v9  ;;  %v964_v21 = vmul.f32 %v10555_v34, %v11394_v40  ;;  %v10250_v9 = vld [vmem:[#allocation2 + $0x12c] ss:$16 sps:$4 sm:$0xff]   ;;  %v10260_v1 = vld [vmem:[#allocation2 + $0x168] ss:$16 sps:$4 sm:$0xff]   ;;  %s9462_s1 = sld [smem:[#allocation8 + $0x85]] }
 0x14d   : > { %1252 = vmatprep.mubr.bf16.mxu1 %v16635_v24  ;;  %v10256_v10 = vld [vmem:[#allocation2 + $0x14c] ss:$16 sps:$4 sm:$0xff]   ;;  %v10272_v12 = vld [vmem:[#allocation2 + $0x1a8] ss:$16 sps:$4 sm:$0xff]  }
 0x14e   : > { %v11665_v33 = vpack.c.bf16 %v966_v4, %v964_v21  ;;  %2729 = vmatpush1.bf16.msra.mxu0 %v10233_v27  ;;  %v10262_v15 = vld [vmem:[#allocation2 + $0x16c] ss:$16 sps:$4 sm:$0xff]   ;;  %v10284_v11 = vld [vmem:[#allocation2 + $0x1e8] ss:$16 sps:$4 sm:$0xff]  }
 0x14f   : > { %v10557_v30 = vpop.eup %10556  ;;  %2730 = vmatprep.subr.bf16.mxu0 %v10241_v29  ;;  %v10268_v13 = vld [vmem:[#allocation2 + $0x18c] ss:$16 sps:$4 sm:$0xff]  }
 0x150   : > { %v10559_v6 = vpop.eup %10558  ;;  %v970_v37 = vmul.f32 %v10557_v30, %v11401_v45  ;;  %v10257_v45 = vld [vmem:[#allocation2 + $0x160] ss:$16 sps:$4 sm:$0xff]   ;;  %v10274_v34 = vld [vmem:[#allocation2 + $0x1ac] ss:$16 sps:$4 sm:$0xff]  }
 0x151   : > { %v968_v40 = vmul.f32 %v10559_v6, %v11408_v48  ;;  %v10265_v48 = vld [vmem:[#allocation2 + $0x184] ss:$16 sps:$4 sm:$0xff]   ;;  %v10280_v21 = vld [vmem:[#allocation2 + $0x1cc] ss:$16 sps:$4 sm:$0xff]  }
 0x152   : > { %2731 = vmatpush1.bf16.msra.mxu0 %v10239_v32  ;;  %v10286_v4 = vld [vmem:[#allocation2 + $0x1ec] ss:$16 sps:$4 sm:$0xff]  }
 0x153   : > { %9204 = vmatmul.mubr.msk.bf16.gmra.mrb[28].mxu0 %vm713_vm3, %v11656_v28  ;;  %2732 = vmatprep.subr.bf16.mxu0 %v10247_v14  ;;  %v11672_v38 = vpack.c.bf16 %v970_v37, %v968_v40 }
 0x154   : > { %9210 = vmatmul.mubr.msk.bf16.gmra.mrb[20].mxu1 %vm713_vm3, %v11654_v17 }
 0x155   : > { %1262 = vmatprep.mubr.bf16.mxu1 %v16635_v24 }
 0x156   : > { %2733 = vmatpush1.bf16.msra.mxu0 %v10245_v26 }
 0x157   : > { %2734 = vmatprep.subr.bf16.mxu0 %v10253_v25 }
 0x15a   : > { %2735 = vmatpush1.bf16.msra.mxu0 %v10251_v39 }
 0x15b   : > { %2736 = vmatprep.subr.bf16.mxu0 %v10259_v41 }
 0x15c   : > { %9211 = vmatmul.mubr.msk.bf16.gmra.mrb[24].mxu1 %vm713_vm3, %v11665_v33 }
 0x15d   : > { %1272 = vmatprep.mubr.bf16.mxu1 %v16635_v24 }
 0x15e   : > { %2737 = vmatpush1.bf16.msra.mxu0 %v10257_v45 }
 0x15f   : > { %2738 = vmatprep.subr.bf16.mxu0 %v10265_v48 }
 0x162   : > { %2739 = vmatpush1.bf16.msra.mxu0 %v10263_v19 }
 0x163   : > { %2740 = vmatprep.subr.bf16.mxu0 %v10271_v20 }
 0x164   : > { %9212 = vmatmul.mubr.msk.bf16.gmra.mrb[28].mxu1 %vm713_vm3, %v11672_v38 }
 0x165   : > { %1315 = vmatprep.mubr.bf16.mxu1 %v16635_v24 }
 0x166   : > { %2741 = vmatpush1.bf16.msra.mxu0 %v10269_v3  ;;  %v10290_v3 = vld [vmem:[#allocation2 + $0x208] ss:$16 sps:$4 sm:$0xff]  }
 0x167   : > { %2742 = vmatprep.subr.bf16.mxu0 %v10277_v23 }
 0x16a   : > { %2743 = vmatpush1.bf16.msra.mxu0 %v10275_v53  ;;  %v10298_v53 = vld [vmem:[#allocation2 + $0x22c] ss:$16 sps:$4 sm:$0xff]  }
 0x16b   : > { %2744 = vmatprep.subr.bf16.mxu0 %v10283_v56 }
 0x16c   : > { %9214 = vmatmul.mubr.msk.bf16.vlgmr.msra.gmra.mrb[32].mxu1 %vm713_vm3, %v11464_v16  ;;  %v10212_v16 = vld [vmem:[#allocation2 + $0x68] ss:$16 sps:$4 sm:$0xff]  }
 0x16d   : > { %1325 = vmatprep.mubr.bf16.mxu1 %v16635_v24  ;;  %3101 = vmatpush1.bf16.msra.mxu1 %v10194_v46 }
 0x16e   : > { %3102 = vmatprep.subr.bf16.mxu1 %v10202_v47  ;;  %2745 = vmatpush1.bf16.msra.mxu0 %v10281_v59  ;;  %v10293_v59 = vld [vmem:[#allocation2 + $0x220] ss:$16 sps:$4 sm:$0xff]  }
 0x171   : > { %3103 = vmatpush1.bf16.msra.mxu1 %v10200_v49 }
 0x172   : > { %3104 = vmatprep.subr.bf16.mxu1 %v10208_v52  ;;  %v10287_v52 = vld [vmem:[#allocation2 + $0x200] ss:$16 sps:$4 sm:$0xff]  }
 0x174   : > { %9215 = vmatmul.mubr.msk.bf16.gmra.mrb[36].mxu1 %vm713_vm3, %v11485_v51  ;;  %v10224_v51 = vld [vmem:[#allocation2 + $0xa8] ss:$16 sps:$4 sm:$0xff]  }
 0x175   : > { %1335 = vmatprep.mubr.bf16.mxu1 %v16635_v24  ;;  %3105 = vmatpush1.bf16.msra.mxu1 %v10206_v55 }
 0x176   : > { %3106 = vmatprep.subr.bf16.mxu1 %v10214_v18  ;;  %v10295_v18 = vld [vmem:[#allocation2 + $0x224] ss:$16 sps:$4 sm:$0xff]  }
 0x179   : > { %3107 = vmatpush1.bf16.msra.mxu1 %v10212_v16 }
 0x17a   : > { %3108 = vmatprep.subr.bf16.mxu1 %v10220_v57 }
 0x17c   : > { %9216 = vmatmul.mubr.msk.bf16.gmra.mrb[40].mxu1 %vm713_vm3, %v11504_v22  ;;  %v10242_v22 = vld [vmem:[#allocation2 + $0x108] ss:$16 sps:$4 sm:$0xff]  }
 0x17d   : > { %1345 = vmatprep.mubr.bf16.mxu1 %v16635_v24  ;;  %3109 = vmatpush1.bf16.msra.mxu1 %v10218_v60 }
 0x17e   : > { %3110 = vmatprep.subr.bf16.mxu1 %v10226_v61 }
 0x181   : > { %3111 = vmatpush1.bf16.msra.mxu1 %v10224_v51  ;;  %v10296_v51 = vld [vmem:[#allocation2 + $0x228] ss:$16 sps:$4 sm:$0xff]  }
 0x182   : > { %3112 = vmatprep.subr.bf16.mxu1 %v10232_v2 }
 0x184   : > { %9217 = vmatmul.mubr.msk.bf16.gmra.mrb[44].mxu1 %vm713_vm3, %v11542_v54  ;;  %v10254_v54 = vld [vmem:[#allocation2 + $0x148] ss:$16 sps:$4 sm:$0xff]  }
 0x185   : > { %1355 = vmatprep.mubr.bf16.mxu1 %v16635_v24  ;;  %3113 = vmatpush1.bf16.msra.mxu1 %v10230_v62  ;;  %v10301_v62 = vld [vmem:[#allocation2 + $0x244] ss:$16 sps:$4 sm:$0xff]  }
 0x186   : > { %3114 = vmatprep.subr.bf16.mxu1 %v10238_v63 }
 0x189   : > { %3115 = vmatpush1.bf16.msra.mxu1 %v10236_v7  ;;  %v10304_v7 = vld [vmem:[#allocation2 + $0x24c] ss:$16 sps:$4 sm:$0xff]  }
 0x18a   : > { %3116 = vmatprep.subr.bf16.mxu1 %v10244_v42 }
 0x18c   : > { %9218 = vmatmul.mubr.msk.bf16.gmra.mrb[48].mxu1 %vm713_vm3, %v11580_v43  ;;  %v10266_v43 = vld [vmem:[#allocation2 + $0x188] ss:$16 sps:$4 sm:$0xff]  }
 0x18d   : > { %1365 = vmatprep.mubr.bf16.mxu1 %v16635_v24  ;;  %3117 = vmatpush1.bf16.msra.mxu1 %v10242_v22 }
 0x18e   : > { %3118 = vmatprep.subr.bf16.mxu1 %v10250_v9 }
 0x191   : > { %3119 = vmatpush1.bf16.msra.mxu1 %v10248_v44 }
 0x192   : > { %3120 = vmatprep.subr.bf16.mxu1 %v10256_v10 }
 0x194   : > { %9219 = vmatmul.mubr.msk.bf16.gmra.mrb[52].mxu1 %vm713_vm3, %v11614_v31  ;;  %v10278_v31 = vld [vmem:[#allocation2 + $0x1c8] ss:$16 sps:$4 sm:$0xff]  }
 0x195   : > { %1375 = vmatprep.mubr.bf16.mxu1 %v16635_v24  ;;  %3121 = vmatpush1.bf16.msra.mxu1 %v10254_v54 }
 0x196   : > { %3122 = vmatprep.subr.bf16.mxu1 %v10262_v15 }
 0x199   : > { %3123 = vmatpush1.bf16.msra.mxu1 %v10260_v1 }
 0x19a   : > { %3124 = vmatprep.subr.bf16.mxu1 %v10268_v13 }
 0x19c   : > { %9220 = vmatmul.mubr.msk.bf16.gmra.mrb[56].mxu1 %vm713_vm3, %v11638_v58  ;;  %v10289_v58 = vld [vmem:[#allocation2 + $0x204] ss:$16 sps:$4 sm:$0xff]  }
 0x19d   : > { %1385 = vmatprep.mubr.bf16.mxu1 %v16635_v24  ;;  %3125 = vmatpush1.bf16.msra.mxu1 %v10266_v43 }
 0x19e   : > { %3126 = vmatprep.subr.bf16.mxu1 %v10274_v34  ;;  %2907 = vmatprep.subr.bf16.mxu0 %v10289_v58  ;;  %v10307_v58 = vld [vmem:[#allocation2 + $0x264] ss:$16 sps:$4 sm:$0xff]  }
 0x1a1   : > { %3127 = vmatpush1.bf16.msra.mxu1 %v10272_v12  ;;  %v10299_v12 = vld [vmem:[#allocation2 + $0x240] ss:$16 sps:$4 sm:$0xff]  }
 0x1a2   : > { %3128 = vmatprep.subr.bf16.mxu1 %v10280_v21  ;;  %v10302_v21 = vld [vmem:[#allocation2 + $0x248] ss:$16 sps:$4 sm:$0xff]  }
 0x1a4   : > { %9221 = vmatmul.mubr.msk.bf16.gmra.mrb[60].mxu1 %vm713_vm3, %v11656_v28  ;;  %v10292_v28 = vld [vmem:[#allocation2 + $0x20c] ss:$16 sps:$4 sm:$0xff]  }
 0x1a5   : > { %1395 = vmatprep.mubr.bf16.mxu1 %v16635_v24  ;;  %3129 = vmatpush1.bf16.msra.mxu1 %v10278_v31 }
 0x1a6   : > { %3130 = vmatprep.subr.bf16.mxu1 %v10286_v4 }
 0x1a9   : > { %3131 = vmatpush1.bf16.msra.mxu1 %v10284_v11 }
 0x1aa   : > { %3293 = vmatprep.subr.bf16.mxu1 %v10292_v28  ;;  %v10310_v28 = vld [vmem:[#allocation2 + $0x26c] ss:$16 sps:$4 sm:$0xff]  }
 0x1ac   : > { %9222 = vmatmul.mubr.msk.bf16.gmra.mrb[64].mxu1 %vm713_vm3, %v11516_v35  ;;  %v11723_v35 = vshrl.u32 %v16634_v0, 7 }
 0x1ad   : > { %1405 = vmatprep.mubr.bf16.mxu1 %v16635_v24 }
 0x1ae   : > { %17024 = vst [vmem:[#allocation22_spill] sm:$0xff] %v11723_v35 }
 0x1b4   : > { %9223 = vmatmul.mubr.msk.bf16.gmra.mrb[68].mxu1 %vm713_vm3, %v11552_v8  ;;  %v11728_v8 = vsub.s32 0, %v11723_v35 }
 0x1b5   : > { %1415 = vmatprep.mubr.bf16.mxu1 %v16635_v24 }
 0x1b6   : > { %17025 = vst [vmem:[#allocation23_spill] sm:$0xff] %v11728_v8 }
 0x1bc   : > { %9224 = vmatmul.mubr.msk.bf16.gmra.mrb[72].mxu1 %vm713_vm3, %v11584_v50  ;;  %v11731_v50 = vsub.s32 1, %v11723_v35 }
 0x1bd   : > { %1425 = vmatprep.mubr.bf16.mxu1 %v16635_v24 }
 0x1be   : > { %17026 = vst [vmem:[#allocation24_spill] sm:$0xff] %v11731_v50 }
 0x1c4   : > { %9225 = vmatmul.mubr.msk.bf16.gmra.mrb[76].mxu1 %vm713_vm3, %v11616_v36  ;;  %v11736_v36 = vld [vmem:[%s16603_s3] sm:$0xf] }
 0x1c5   : > { %1435 = vmatprep.mubr.bf16.mxu1 %v16635_v24 }
 0x1cc   : > { %9226 = vmatmul.mubr.msk.bf16.gmra.mrb[80].mxu1 %vm713_vm3, %v11632_v5  ;;  %v11740_v5 = vrot.slane %v11736_v36, %v11728_v8 }
 0x1cd   : > { %1445 = vmatprep.mubr.bf16.mxu1 %v16635_v24 }
 0x1d4   : > { %9227 = vmatmul.mubr.msk.bf16.gmra.mrb[84].mxu1 %vm713_vm3, %v11654_v17  ;;  %v11744_v17 = vrot.slane %v11736_v36, %v11731_v50 }
 0x1d5   : > { %1455 = vmatprep.mubr.bf16.mxu1 %v16635_v24 }
 0x1dc   : > { %9228 = vmatmul.mubr.msk.bf16.gmra.mrb[88].mxu1 %vm713_vm3, %v11665_v33 }
 0x1dd   : > { %1465 = vmatprep.mubr.bf16.mxu1 %v16635_v24 }
 0x1e4   : > { %9229 = vmatmul.mubr.msk.bf16.gmra.mrb[92].mxu1 %vm713_vm3, %v11672_v38 }
 0x1ee   : > { %v1124_v27 = vpop.f32.mrb[0].mxu0 }
 0x1ef   : > { %v1125_v29 = vadd.f32 %v1124_v27, %v11740_v5  ;;  %v1126_v30 = vpop.f32.mrb[1].mxu0 }
 0x1f0   : > { %v1127_v33 = vadd.f32 %v1126_v30, %v11744_v17  ;;  %v1128_v6 = vpop.f32.mrb[2].mxu0 }
 0x1f1   : > { %v1604_v32 = vmul.f32 0.01, %v1125_v29  ;;  %v1129_v40 = vadd.f32 %v1128_v6, %v11740_v5  ;;  %v1130_v37 = vpop.f32.mrb[3].mxu0  ;;  %vm1476_vm6 = vcmp.gt.f32.partialorder %v1125_v29, 0.0  ;;  %v10305_v6 = vld [vmem:[#allocation2 + $0x260] ss:$16 sps:$4 sm:$0xff]  }
 0x1f2   : > { %v1605_v14 = vmul.f32 0.01, %v1127_v33  ;;  %v1131_v26 = vadd.f32 %v1130_v37, %v11744_v17  ;;  %vm1477_vm7 = vcmp.gt.f32.partialorder %v1127_v33, 0.0  ;;  %v10308_v37 = vld [vmem:[#allocation2 + $0x268] ss:$16 sps:$4 sm:$0xff]  }
 0x1f3   : > { %vm1480_vm8 = vcmp.gt.f32.partialorder %v1129_v40, 0.0  ;;  %v1608_v25 = vmul.f32 0.01, %v1129_v40  ;;  %v1732_v39 = vsel %vm1476_vm6, %v1125_v29, %v1604_v32 }
 0x1f4   : > { %vm1481_vm9 = vcmp.gt.f32.partialorder %v1131_v26, 0.0  ;;  %v1609_v38 = vmul.f32 0.01, %v1131_v26  ;;  %v1733_v46 = vsel %vm1477_vm7, %v1127_v33, %v1605_v14 }
 0x1f5   : > { %v1736_v41 = vsel %vm1480_vm8, %v1129_v40, %v1608_v25 }
 0x1f6   : > { %v1988_v45 = vpack.c.bf16 %v1736_v41, %v1732_v39  ;;  %v1134_v48 = vpop.f32.mrb[4].mxu0  ;;  %v1737_v47 = vsel %vm1481_vm9, %v1131_v26, %v1609_v38  ;;  %v10313_v26 = vld [vmem:[#allocation2 + $0x284] ss:$16 sps:$4 sm:$0xff]   ;;  %v10316_v39 = vld [vmem:[#allocation2 + $0x28c] ss:$16 sps:$4 sm:$0xff]  }
 0x1f7   : > { %v1135_v19 = vadd.f32 %v1134_v48, %v11740_v5  ;;  %v1136_v49 = vpop.f32.mrb[5].mxu0  ;;  %v1989_v20 = vpack.c.bf16 %v1737_v47, %v1733_v46 }
 0x1f8   : > { %v1137_v55 = vadd.f32 %v1136_v49, %v11744_v17  ;;  %v1138_v23 = vpop.f32.mrb[6].mxu0 }
 0x1f9   : > { %v1612_v16 = vmul.f32 0.01, %v1135_v19  ;;  %v1139_v56 = vadd.f32 %v1138_v23, %v11740_v5  ;;  %v1140_v57 = vpop.f32.mrb[7].mxu0  ;;  %2746 = vmatprep.mubr.bf16.mxu0 %v1989_v20  ;;  %3132 = vmatprep.mubr.bf16.mxu1 %v1989_v20  ;;  %vm1484_vm10 = vcmp.gt.f32.partialorder %v1135_v19, 0.0  ;;  %v10311_v20 = vld [vmem:[#allocation2 + $0x280] ss:$16 sps:$4 sm:$0xff]  }
 0x1fa   : > { %v1613_v60 = vmul.f32 0.01, %v1137_v55  ;;  %v1141_v61 = vadd.f32 %v1140_v57, %v11744_v17  ;;  %2747 = vmatmul.mubr.bf16.vlgmr.msra.gmra.mrb[32].mxu0 %v1988_v45  ;;  %3133 = vmatmul.mubr.bf16.vlgmr.msra.gmra.mrb[96].mxu1 %v1988_v45  ;;  %vm1485_vm11 = vcmp.gt.f32.partialorder %v1137_v55, 0.0 }
 0x1fb   : > { %vm1488_vm12 = vcmp.gt.f32.partialorder %v1139_v56, 0.0  ;;  %v1616_v2 = vmul.f32 0.01, %v1139_v56  ;;  %2908 = vmatpush1.bf16.msra.mxu0 %v10287_v52  ;;  %3294 = vmatpush1.bf16.msra.mxu1 %v10290_v3  ;;  %v1740_v42 = vsel %vm1484_vm10, %v1135_v19, %v1612_v16 }
 0x1fc   : > { %vm1489_vm13 = vcmp.gt.f32.partialorder %v1141_v61, 0.0  ;;  %v1617_v63 = vmul.f32 0.01, %v1141_v61  ;;  %2909 = vmatprep.subr.bf16.mxu0 %v10295_v18  ;;  %3295 = vmatprep.subr.bf16.mxu1 %v10298_v53  ;;  %v1741_v44 = vsel %vm1485_vm11, %v1137_v55, %v1613_v60  ;;  %v10314_v18 = vld [vmem:[#allocation2 + $0x288] ss:$16 sps:$4 sm:$0xff]   ;;  %v11778_v60 = vsub.s32 2, %v11723_v35 }
 0x1fd   : > { %v1744_v22 = vsel %vm1488_vm12, %v1139_v56, %v1616_v2  ;;  %v10319_v53 = vld [vmem:[#allocation2 + $0x2a4] ss:$16 sps:$4 sm:$0xff]  }
 0x1fe   : > { %v1144_v9 = vpop.f32.mrb[8].mxu0  ;;  %v1745_v10 = vsel %vm1489_vm13, %v1141_v61, %v1617_v63  ;;  %v1992_v54 = vpack.c.bf16 %v1744_v22, %v1740_v42  ;;  %17027 = vst [vmem:[#allocation25_spill] sm:$0xff] %v11778_v60  ;;  %v10322_v61 = vld [vmem:[#allocation2 + $0x2ac] ss:$16 sps:$4 sm:$0xff]   ;;  %v10317_v42 = vld [vmem:[#allocation2 + $0x2a0] ss:$16 sps:$4 sm:$0xff]  }
 0x1ff   : > { %v1204_v15 = vpop.f32.mrb[0].mxu1  ;;  %v1145_v1 = vadd.f32 %v1144_v9, %v11740_v5  ;;  %v1146_v13 = vpop.f32.mrb[9].mxu0  ;;  %v1993_v43 = vpack.c.bf16 %v1745_v10, %v1741_v44  ;;  %2910 = vmatpush1.bf16.msra.mxu0 %v10293_v59  ;;  %3296 = vmatpush1.bf16.msra.mxu1 %v10296_v51  ;;  %v10320_v22 = vld [vmem:[#allocation2 + $0x2a8] ss:$16 sps:$4 sm:$0xff]  }
 0x200   : > { %v1206_v34 = vpop.f32.mrb[1].mxu1  ;;  %v1147_v31 = vadd.f32 %v1146_v13, %v11744_v17  ;;  %v1148_v4 = vpop.f32.mrb[10].mxu0  ;;  %2911 = vmatprep.subr.bf16.mxu0 %v10301_v62  ;;  %3297 = vmatprep.subr.bf16.mxu1 %v10304_v7  ;;  %v11764_v38 = vadd.f32 %v1204_v15, %v11740_v5  ;;  %v10328_v13 = vld [vmem:[#allocation2 + $0x2cc] ss:$16 sps:$4 sm:$0xff]  }
 0x201   : > { %v11757_v11 = vpop.f32.mrb[2].mxu1  ;;  %v1620_v27 = vmul.f32 0.01, %v1145_v1  ;;  %v1149_v29 = vadd.f32 %v1148_v4, %v11740_v5  ;;  %v1150_v30 = vpop.f32.mrb[11].mxu0  ;;  %2756 = vmatprep.mubr.bf16.mxu0 %v1993_v43  ;;  %3142 = vmatprep.mubr.bf16.mxu1 %v1993_v43  ;;  %vm1492_vm14 = vcmp.gt.f32.partialorder %v1145_v1, 0.0  ;;  %v1207_v57 = vadd.f32 %v1206_v34, %v11744_v17 }
 0x202   : > { %v11760_v33 = vpop.f32.mrb[3].mxu1  ;;  %v1621_v32 = vmul.f32 0.01, %v1147_v31  ;;  %v1151_v40 = vadd.f32 %v1150_v30, %v11744_v17  ;;  %2757 = vmatmul.mubr.bf16.gmra.mrb[36].mxu0 %v1992_v54  ;;  %3143 = vmatmul.mubr.bf16.gmra.mrb[100].mxu1 %v1992_v54  ;;  %vm1493_vm15 = vcmp.gt.f32.partialorder %v1147_v31, 0.0  ;;  %vm1540_vm2 = vcmp.gt.f32.partialorder %v11764_v38, 0.0 }
 0x203   : > { %vm1496_vm0 = vcmp.gt.f32.partialorder %v1149_v29, 0.0  ;;  %v1624_v14 = vmul.f32 0.01, %v1149_v29  ;;  %2912 = vmatpush1.bf16.msra.mxu0 %v10299_v12  ;;  %3298 = vmatpush1.bf16.msra.mxu1 %v10302_v21  ;;  %v1748_v41 = vsel %vm1492_vm14, %v1145_v1, %v1620_v27  ;;  %v1668_v63 = vmul.f32 0.01, %v11764_v38 }
 0x204   : > { %vm1497_vm1 = vcmp.gt.f32.partialorder %v1151_v40, 0.0  ;;  %v1625_v25 = vmul.f32 0.01, %v1151_v40  ;;  %2913 = vmatprep.subr.bf16.mxu0 %v10307_v58  ;;  %3299 = vmatprep.subr.bf16.mxu1 %v10310_v28  ;;  %v1749_v46 = vsel %vm1493_vm15, %v1147_v31, %v1621_v32  ;;  %v11787_v10 = vadd.f32 %v11757_v11, %v11740_v5  ;;  %v10325_v54 = vld [vmem:[#allocation2 + $0x2c4] ss:$16 sps:$4 sm:$0xff]  }
 0x205   : > { %v1752_v45 = vsel %vm1496_vm0, %v1149_v29, %v1624_v14  ;;  %v1211_v1 = vadd.f32 %v11760_v33, %v11744_v17  ;;  %v1669_v34 = vmul.f32 0.01, %v1207_v57  ;;  %v11793_v12 = vrot.slane %v11736_v36, %v11778_v60  ;;  %v10323_v11 = vld [vmem:[#allocation2 + $0x2c0] ss:$16 sps:$4 sm:$0xff]   ;;  %v10331_v32 = vld [vmem:[#allocation2 + $0x2e4] ss:$16 sps:$4 sm:$0xff]  }
 0x206   : > { %v1154_v48 = vpop.f32.mrb[12].mxu0  ;;  %v1753_v47 = vsel %vm1497_vm1, %v1151_v40, %v1625_v25  ;;  %v1996_v19 = vpack.c.bf16 %v1752_v45, %v1748_v41  ;;  %vm1541_vm7 = vcmp.gt.f32.partialorder %v1207_v57, 0.0  ;;  %v11797_v4 = vsub.s32 3, %v11723_v35 }
 0x207   : > { %v11767_v49 = vpop.f32.mrb[4].mxu1  ;;  %v1155_v52 = vadd.f32 %v1154_v48, %v11740_v5  ;;  %v1156_v3 = vpop.f32.mrb[13].mxu0  ;;  %v1997_v55 = vpack.c.bf16 %v1753_v47, %v1749_v46  ;;  %2914 = vmatpush1.bf16.msra.mxu0 %v10305_v6  ;;  %3300 = vmatpush1.bf16.msra.mxu1 %v10308_v37  ;;  %v1796_v33 = vsel %vm1540_vm2, %v11764_v38, %v1668_v63  ;;  %v10326_v6 = vld [vmem:[#allocation2 + $0x2c8] ss:$16 sps:$4 sm:$0xff]   ;;  %v1672_v40 = vmul.f32 0.01, %v11787_v10 }
 0x208   : > { %v11770_v23 = vpop.f32.mrb[5].mxu1  ;;  %v1157_v16 = vadd.f32 %v1156_v3, %v11744_v17  ;;  %v1158_v56 = vpop.f32.mrb[14].mxu0  ;;  %2915 = vmatprep.subr.bf16.mxu0 %v10313_v26  ;;  %3301 = vmatprep.subr.bf16.mxu1 %v10316_v39  ;;  %17028 = vst [vmem:[#allocation26_spill] sm:$0xff] %v11797_v4  ;;  %v1673_v14 = vmul.f32 0.01, %v1211_v1  ;;  %vm1544_vm8 = vcmp.gt.f32.partialorder %v11787_v10, 0.0  ;;  %v1797_v48 = vsel %vm1541_vm7, %v1207_v57, %v1669_v34 }
 0x209   : > { %v11775_v59 = vpop.f32.mrb[6].mxu1  ;;  %v1628_v51 = vmul.f32 0.01, %v1155_v52  ;;  %v1159_v2 = vadd.f32 %v1158_v56, %v11740_v5  ;;  %v1160_v62 = vpop.f32.mrb[15].mxu0  ;;  %2766 = vmatprep.mubr.bf16.mxu0 %v1997_v55  ;;  %3152 = vmatprep.mubr.bf16.mxu1 %v1997_v55  ;;  %vm1500_vm3 = vcmp.gt.f32.partialorder %v1155_v52, 0.0  ;;  %vm1545_vm9 = vcmp.gt.f32.partialorder %v1211_v1, 0.0 }
 0x20a   : > { %v11782_v7 = vpop.f32.mrb[7].mxu1  ;;  %v1629_v9 = vmul.f32 0.01, %v1157_v16  ;;  %v1161_v44 = vadd.f32 %v1160_v62, %v11744_v17  ;;  %2767 = vmatmul.mubr.bf16.gmra.mrb[40].mxu0 %v1996_v19  ;;  %3153 = vmatmul.mubr.bf16.gmra.mrb[104].mxu1 %v1996_v19  ;;  %vm1501_vm4 = vcmp.gt.f32.partialorder %v1157_v16, 0.0  ;;  %v10334_v46 = vld [vmem:[#allocation2 + $0x2ec] ss:$16 sps:$4 sm:$0xff]   ;;  %v11821_v3 = vadd.f32 %v11770_v23, %v11744_v17 }
 0x20b   : > { %vm1504_vm5 = vcmp.gt.f32.partialorder %v1159_v2, 0.0  ;;  %v1632_v15 = vmul.f32 0.01, %v1159_v2  ;;  %2916 = vmatpush1.bf16.msra.mxu0 %v10311_v20  ;;  %3302 = vmatpush1.bf16.msra.mxu1 %v10314_v18  ;;  %v1756_v21 = vsel %vm1500_vm3, %v1155_v52, %v1628_v51  ;;  %v11817_v52 = vadd.f32 %v11767_v49, %v11740_v5  ;;  %v10329_v18 = vld [vmem:[#allocation2 + $0x2e0] ss:$16 sps:$4 sm:$0xff]  }
 0x20c   : > { %vm1505_vm6 = vcmp.gt.f32.partialorder %v1161_v44, 0.0  ;;  %v1633_v43 = vmul.f32 0.01, %v1161_v44  ;;  %2917 = vmatprep.subr.bf16.mxu0 %v10319_v53  ;;  %3303 = vmatprep.subr.bf16.mxu1 %v10322_v61  ;;  %v1757_v28 = vsel %vm1501_vm4, %v1157_v16, %v1629_v9  ;;  %v10332_v56 = vld [vmem:[#allocation2 + $0x2e8] ss:$16 sps:$4 sm:$0xff]   ;;  %v1801_v49 = vsel %vm1545_vm9, %v1211_v1, %v1673_v14 }
 0x20d   : > { %v1760_v31 = vsel %vm1504_vm5, %v1159_v2, %v1632_v15  ;;  %v1800_v23 = vsel %vm1544_vm8, %v11787_v10, %v1672_v40  ;;  %v10337_v61 = vld [vmem:[#allocation2 + $0x304] ss:$16 sps:$4 sm:$0xff]   ;;  %v11832_v2 = vadd.f32 %v11775_v59, %v11740_v5  ;;  %v11836_v62 = vadd.f32 %v11782_v7, %v11744_v17  ;;  %v10340_v63 = vld [vmem:[#allocation2 + $0x30c] ss:$16 sps:$4 sm:$0xff]   ;;  %v10335_v10 = vld [vmem:[#allocation2 + $0x300] ss:$16 sps:$4 sm:$0xff]  }
 0x20e   : > { %v1164_v58 = vpop.f32.mrb[16].mxu0  ;;  %v1761_v27 = vsel %vm1505_vm6, %v1161_v44, %v1633_v43  ;;  %v2000_v29 = vpack.c.bf16 %v1760_v31, %v1756_v21  ;;  %v11843_v44 = vrot.slane %v11736_v36, %v11797_v4  ;;  %v10338_v59 = vld [vmem:[#allocation2 + $0x308] ss:$16 sps:$4 sm:$0xff]   ;;  %v11847_v43 = vpack.c.bf16 %v1800_v23, %v1796_v33  ;;  %v10343_v34 = vld [vmem:[#allocation2 + $0x324] ss:$16 sps:$4 sm:$0xff]  }
 0x20f   : > { %v11800_v30 = vpop.f32.mrb[8].mxu1  ;;  %v1165_v37 = vadd.f32 %v1164_v58, %v11740_v5  ;;  %v1166_v26 = vpop.f32.mrb[17].mxu0  ;;  %v2001_v25 = vpack.c.bf16 %v1761_v27, %v1757_v28  ;;  %2918 = vmatpush1.bf16.msra.mxu0 %v10317_v42  ;;  %3304 = vmatpush1.bf16.msra.mxu1 %v10320_v22  ;;  %v10346_v21 = vld [vmem:[#allocation2 + $0x32c] ss:$16 sps:$4 sm:$0xff]   ;;  %v11850_v31 = vmul.f32 0.01, %v11817_v52 }
 0x210   : > { %v11807_v39 = vpop.f32.mrb[9].mxu1  ;;  %v1167_v41 = vadd.f32 %v1166_v26, %v11744_v17  ;;  %v1168_v45 = vpop.f32.mrb[18].mxu0  ;;  %2919 = vmatprep.subr.bf16.mxu0 %v10325_v54  ;;  %3305 = vmatprep.subr.bf16.mxu1 %v10328_v13  ;;  %v11845_v13 = vpack.c.bf16 %v1801_v49, %v1797_v48  ;;  %vm1549_vm14 = vcmp.gt.f32.partialorder %v11821_v3, 0.0  ;;  %vm1553_vm15 = vcmp.gt.f32.partialorder %v11836_v62, 0.0  ;;  %v10347_v23 = vld [vmem:[#allocation2 + $0x340] ss:$16 sps:$4 sm:$0xff]  }
 0x211   : > { %v11811_v38 = vpop.f32.mrb[10].mxu1  ;;  %v1636_v47 = vmul.f32 0.01, %v1165_v37  ;;  %v1169_v19 = vadd.f32 %v1168_v45, %v11740_v5  ;;  %v1170_v20 = vpop.f32.mrb[19].mxu0  ;;  %2776 = vmatprep.mubr.bf16.mxu0 %v2001_v25  ;;  %3162 = vmatprep.mubr.bf16.mxu1 %v2001_v25  ;;  %vm1508_vm10 = vcmp.gt.f32.partialorder %v1165_v37, 0.0  ;;  %v11865_v26 = vadd.f32 %v11800_v30, %v11740_v5 }
 0x212   : > { %v11823_v55 = vpop.f32.mrb[11].mxu1  ;;  %vm1509_vm11 = vcmp.gt.f32.partialorder %v1167_v41, 0.0  ;;  %v1637_v53 = vmul.f32 0.01, %v1167_v41  ;;  %v1171_v16 = vadd.f32 %v1170_v20, %v11744_v17  ;;  %2777 = vmatmul.mubr.bf16.gmra.mrb[44].mxu0 %v2000_v29  ;;  %3163 = vmatmul.mubr.bf16.gmra.mrb[108].mxu1 %v2000_v29  ;;  %v11858_v29 = vmul.f32 0.01, %v11832_v2 }
 0x213   : > { %vm1512_vm12 = vcmp.gt.f32.partialorder %v1169_v19, 0.0  ;;  %v1640_v57 = vmul.f32 0.01, %v1169_v19  ;;  %2920 = vmatpush1.bf16.msra.mxu0 %v10323_v11  ;;  %3306 = vmatpush1.bf16.msra.mxu1 %v10326_v6  ;;  %v1764_v22 = vsel %vm1508_vm10, %v1165_v37, %v1636_v47  ;;  %v11853_v11 = vmul.f32 0.01, %v11821_v3 }
 0x214   : > { %vm1513_vm13 = vcmp.gt.f32.partialorder %v1171_v16, 0.0  ;;  %v1641_v51 = vmul.f32 0.01, %v1171_v16  ;;  %2921 = vmatprep.subr.bf16.mxu0 %v10331_v32  ;;  %3307 = vmatprep.subr.bf16.mxu1 %v10334_v46  ;;  %v1765_v42 = vsel %vm1509_vm11, %v1167_v41, %v1637_v53  ;;  %v11869_v25 = vadd.f32 %v11807_v39, %v11744_v17  ;;  %v10341_v45 = vld [vmem:[#allocation2 + $0x320] ss:$16 sps:$4 sm:$0xff]  }
 0x215   : > { %v1768_v9 = vsel %vm1512_vm12, %v1169_v19, %v1640_v57  ;;  %v11874_v47 = vadd.f32 %v11811_v38, %v11740_v5  ;;  %v10344_v19 = vld [vmem:[#allocation2 + $0x328] ss:$16 sps:$4 sm:$0xff]   ;;  %v11878_v39 = vadd.f32 %v11823_v55, %v11744_v17  ;;  %v10349_v20 = vld [vmem:[#allocation2 + $0x344] ss:$16 sps:$4 sm:$0xff]   ;;  %v10352_v38 = vld [vmem:[#allocation2 + $0x34c] ss:$16 sps:$4 sm:$0xff]  }
 0x216   : > { %v1174_v54 = vpop.f32.mrb[20].mxu0  ;;  %v1769_v15 = vsel %vm1513_vm13, %v1171_v16, %v1641_v51  ;;  %v2004_v1 = vpack.c.bf16 %v1768_v9, %v1764_v22  ;;  %v11888_v57 = vmul.f32 0.01, %v11865_v26  ;;  %vm1548_vm4 = vcmp.gt.f32.partialorder %v11817_v52, 0.0 }
 0x217   : > { %v1234_v7 = vpop.f32.mrb[12].mxu1  ;;  %v1175_v36 = vadd.f32 %v1174_v54, %v11740_v5  ;;  %v1176_v58 = vpop.f32.mrb[21].mxu0  ;;  %v2005_v28 = vpack.c.bf16 %v1769_v15, %v1765_v42  ;;  %2922 = vmatpush1.bf16.msra.mxu0 %v10329_v18  ;;  %3308 = vmatpush1.bf16.msra.mxu1 %v10332_v56  ;;  %v1681_v56 = vmul.f32 0.01, %v11836_v62  ;;  %v11894_v51 = vmul.f32 0.01, %v11869_v25 }
 0x218   : > { %v1236_v27 = vpop.f32.mrb[13].mxu1  ;;  %v1177_v33 = vadd.f32 %v1176_v58, %v11744_v17  ;;  %v1178_v6 = vpop.f32.mrb[22].mxu0  ;;  %2923 = vmatprep.subr.bf16.mxu0 %v10337_v61  ;;  %3309 = vmatprep.subr.bf16.mxu1 %v10340_v63  ;;  %v11881_v53 = vadd.f32 %v1234_v7, %v11740_v5  ;;  %v10350_v61 = vld [vmem:[#allocation2 + $0x348] ss:$16 sps:$4 sm:$0xff]   ;;  %v10358_v54 = vld [vmem:[#allocation2 + $0x36c] ss:$16 sps:$4 sm:$0xff]  }
 0x219   : > { %v1238_v32 = vpop.f32.mrb[14].mxu1  ;;  %v1644_v40 = vmul.f32 0.01, %v1175_v36  ;;  %v1179_v37 = vadd.f32 %v1178_v6, %v11740_v5  ;;  %v1180_v14 = vpop.f32.mrb[23].mxu0  ;;  %2786 = vmatprep.mubr.bf16.mxu0 %v2005_v28  ;;  %3172 = vmatprep.mubr.bf16.mxu1 %v2005_v28  ;;  %vm1516_vm0 = vcmp.gt.f32.partialorder %v1175_v36, 0.0  ;;  %v11884_v16 = vadd.f32 %v1236_v27, %v11744_v17 }
 0x21a   : > { %v1240_v41 = vpop.f32.mrb[15].mxu1  ;;  %v1645_v48 = vmul.f32 0.01, %v1177_v33  ;;  %v1181_v46 = vadd.f32 %v1180_v14, %v11744_v17  ;;  %2787 = vmatmul.mubr.bf16.gmra.mrb[48].mxu0 %v2004_v1  ;;  %3173 = vmatmul.mubr.bf16.gmra.mrb[112].mxu1 %v2004_v1  ;;  %vm1517_vm1 = vcmp.gt.f32.partialorder %v1177_v33, 0.0  ;;  %v11899_v15 = vmul.f32 0.01, %v11874_v47 }
 0x21b   : > { %vm1520_vm2 = vcmp.gt.f32.partialorder %v1179_v37, 0.0  ;;  %v1648_v30 = vmul.f32 0.01, %v1179_v37  ;;  %2924 = vmatpush1.bf16.msra.mxu0 %v10335_v10  ;;  %3310 = vmatpush1.bf16.msra.mxu1 %v10338_v59  ;;  %v1772_v55 = vsel %vm1516_vm0, %v1175_v36, %v1644_v40  ;;  %v10355_v59 = vld [vmem:[#allocation2 + $0x364] ss:$16 sps:$4 sm:$0xff]   ;;  %v11913_v6 = vadd.f32 %v1238_v32, %v11740_v5 }
 0x21c   : > { %vm1521_vm3 = vcmp.gt.f32.partialorder %v1181_v46, 0.0  ;;  %v1649_v18 = vmul.f32 0.01, %v1181_v46  ;;  %2925 = vmatprep.subr.bf16.mxu0 %v10343_v34  ;;  %3311 = vmatprep.subr.bf16.mxu1 %v10346_v21  ;;  %v1773_v42 = vsel %vm1517_vm1, %v1177_v33, %v1645_v48  ;;  %v11903_v7 = vmul.f32 0.01, %v11878_v39 }
 0x21d   : > { %v1776_v49 = vsel %vm1520_vm2, %v1179_v37, %v1648_v30  ;;  %v11907_v27 = vmul.f32 0.01, %v11881_v53  ;;  %v11910_v33 = vmul.f32 0.01, %v11884_v16  ;;  %v11917_v48 = vadd.f32 %v1240_v41, %v11744_v17  ;;  %v10353_v32 = vld [vmem:[#allocation2 + $0x360] ss:$16 sps:$4 sm:$0xff]  }
 0x21e   : > { %v1184_v63 = vpop.f32.mrb[24].mxu0  ;;  %v1777_v22 = vsel %vm1521_vm3, %v1181_v46, %v1649_v18  ;;  %v2008_v9 = vpack.c.bf16 %v1776_v49, %v1772_v55  ;;  %v10356_v30 = vld [vmem:[#allocation2 + $0x368] ss:$16 sps:$4 sm:$0xff]   ;;  %v10361_v41 = vld [vmem:[#allocation2 + $0x384] ss:$16 sps:$4 sm:$0xff]   ;;  %vm1552_vm6 = vcmp.gt.f32.partialorder %v11832_v2, 0.0 }
 0x21f   : > { %v1244_v10 = vpop.f32.mrb[16].mxu1  ;;  %v1185_v1 = vadd.f32 %v1184_v63, %v11740_v5  ;;  %v1186_v34 = vpop.f32.mrb[25].mxu0  ;;  %v2009_v21 = vpack.c.bf16 %v1777_v22, %v1773_v42  ;;  %2926 = vmatpush1.bf16.msra.mxu0 %v10341_v45  ;;  %3312 = vmatpush1.bf16.msra.mxu1 %v10344_v19  ;;  %v1805_v19 = vsel %vm1549_vm14, %v11821_v3, %v11853_v11  ;;  %v10364_v11 = vld [vmem:[#allocation2 + $0x38c] ss:$16 sps:$4 sm:$0xff]   ;;  %vm1557_vm9 = vcmp.gt.f32.partialorder %v11869_v25, 0.0 }
 0x220   : > { %v1246_v36 = vpop.f32.mrb[17].mxu1  ;;  %v1187_v58 = vadd.f32 %v1186_v34, %v11744_v17  ;;  %v1188_v28 = vpop.f32.mrb[26].mxu0  ;;  %2927 = vmatprep.subr.bf16.mxu0 %v10349_v20  ;;  %3313 = vmatprep.subr.bf16.mxu1 %v10352_v38  ;;  %v1809_v38 = vsel %vm1553_vm15, %v11836_v62, %v1681_v56  ;;  %v11929_v3 = vadd.f32 %v1244_v10, %v11740_v5  ;;  %v11933_v63 = vmul.f32 0.01, %v11913_v6  ;;  %v10359_v22 = vld [vmem:[#allocation2 + $0x380] ss:$16 sps:$4 sm:$0xff]  }
 0x221   : > { %v1248_v40 = vpop.f32.mrb[18].mxu1  ;;  %v1652_v37 = vmul.f32 0.01, %v1185_v1  ;;  %v1189_v14 = vadd.f32 %v1188_v28, %v11740_v5  ;;  %v1190_v45 = vpop.f32.mrb[27].mxu0  ;;  %2796 = vmatprep.mubr.bf16.mxu0 %v2009_v21  ;;  %3182 = vmatprep.mubr.bf16.mxu1 %v2009_v21  ;;  %vm1524_vm5 = vcmp.gt.f32.partialorder %v1185_v1, 0.0  ;;  %v11936_v62 = vadd.f32 %v1246_v36, %v11744_v17 }
 0x222   : > { %v1250_v46 = vpop.f32.mrb[19].mxu1  ;;  %v1653_v20 = vmul.f32 0.01, %v1187_v58  ;;  %v1191_v18 = vadd.f32 %v1190_v45, %v11744_v17  ;;  %2797 = vmatmul.mubr.bf16.gmra.mrb[52].mxu0 %v2008_v9  ;;  %3183 = vmatmul.mubr.bf16.gmra.mrb[116].mxu1 %v2008_v9  ;;  %vm1525_vm7 = vcmp.gt.f32.partialorder %v1187_v58, 0.0  ;;  %v11939_v56 = vmul.f32 0.01, %v11917_v48 }
 0x223   : > { %vm1528_vm8 = vcmp.gt.f32.partialorder %v1189_v14, 0.0  ;;  %v1656_v55 = vmul.f32 0.01, %v1189_v14  ;;  %2928 = vmatpush1.bf16.msra.mxu0 %v10347_v23  ;;  %3314 = vmatpush1.bf16.msra.mxu1 %v10350_v61  ;;  %v1780_v42 = vsel %vm1524_vm5, %v1185_v1, %v1652_v37  ;;  %v11943_v61 = vadd.f32 %v1248_v40, %v11740_v5  ;;  %v10362_v36 = vld [vmem:[#allocation2 + $0x388] ss:$16 sps:$4 sm:$0xff]  }
 0x224   : > { %vm1529_vm10 = vcmp.gt.f32.partialorder %v1191_v18, 0.0  ;;  %v1657_v49 = vmul.f32 0.01, %v1191_v18  ;;  %2929 = vmatprep.subr.bf16.mxu0 %v10355_v59  ;;  %3315 = vmatprep.subr.bf16.mxu1 %v10358_v54  ;;  %vm1556_vm11 = vcmp.gt.f32.partialorder %v11865_v26, 0.0  ;;  %vm1561_vm12 = vcmp.gt.f32.partialorder %v11878_v39, 0.0 }
 0x225   : > { %v1784_v23 = vsel %vm1528_vm8, %v1189_v14, %v1656_v55  ;;  %v1781_v10 = vsel %vm1525_vm7, %v1187_v58, %v1653_v20  ;;  %v11948_v21 = vpack.c.bf16 %v1809_v38, %v1805_v19  ;;  %v10367_v28 = vld [vmem:[#allocation2 + $0x3a4] ss:$16 sps:$4 sm:$0xff]   ;;  %v11952_v14 = vmul.f32 0.01, %v11929_v3  ;;  %v10370_v58 = vld [vmem:[#allocation2 + $0x3ac] ss:$16 sps:$4 sm:$0xff]  }
 0x226   : > { %v1194_v9 = vpop.f32.mrb[28].mxu0  ;;  %v1785_v34 = vsel %vm1529_vm10, %v1191_v18, %v1657_v49  ;;  %v2012_v59 = vpack.c.bf16 %v1784_v23, %v1780_v42  ;;  %v11955_v45 = vadd.f32 %v1250_v46, %v11744_v17  ;;  %v11959_v18 = vmul.f32 0.01, %v11936_v62 }
 0x227   : > { %v1254_v54 = vpop.f32.mrb[20].mxu1  ;;  %v1195_v1 = vadd.f32 %v1194_v9, %v11740_v5  ;;  %v1196_v37 = vpop.f32.mrb[29].mxu0  ;;  %v2013_v40 = vpack.c.bf16 %v1785_v34, %v1781_v10  ;;  %2930 = vmatpush1.bf16.msra.mxu0 %v10353_v32  ;;  %3316 = vmatpush1.bf16.msra.mxu1 %v10356_v30  ;;  %v11962_v38 = vmul.f32 0.01, %v11943_v61  ;;  %vm1560_vm13 = vcmp.gt.f32.partialorder %v11874_v47, 0.0 }
 0x228   : > { %v1256_v55 = vpop.f32.mrb[21].mxu1  ;;  %v1197_v20 = vadd.f32 %v1196_v37, %v11744_v17  ;;  %v1198_v19 = vpop.f32.mrb[30].mxu0  ;;  %v11965_v49 = vadd.f32 %v1254_v54, %v11740_v5  ;;  %2931 = vmatprep.subr.bf16.mxu0 %v10361_v41  ;;  %3317 = vmatprep.subr.bf16.mxu1 %v10364_v11  ;;  %vm1565_vm15 = vcmp.gt.f32.partialorder %v11884_v16, 0.0  ;;  %vm1569_vm1 = vcmp.gt.f32.partialorder %v11917_v48, 0.0  ;;  %v10365_v11 = vld [vmem:[#allocation2 + $0x3a0] ss:$16 sps:$4 sm:$0xff]  }
 0x229   : > { %v1258_v42 = vpop.f32.mrb[22].mxu1  ;;  %vm1532_vm0 = vcmp.gt.f32.partialorder %v1195_v1, 0.0  ;;  %v1660_v46 = vmul.f32 0.01, %v1195_v1  ;;  %v1199_v32 = vadd.f32 %v1198_v19, %v11740_v5  ;;  %v1200_v30 = vpop.f32.mrb[31].mxu0  ;;  %2806 = vmatprep.mubr.bf16.mxu0 %v2013_v40  ;;  %3192 = vmatprep.mubr.bf16.mxu1 %v2013_v40  ;;  %v1804_v41 = vsel %vm1548_vm4, %v11817_v52, %v11850_v31 }
 0x22a   : > { %v1260_v23 = vpop.f32.mrb[23].mxu1  ;;  %v10368_v9 = vld [vmem:[#allocation2 + $0x3a8] ss:$16 sps:$4 sm:$0xff]   ;;  %vm1533_vm2 = vcmp.gt.f32.partialorder %v1197_v20, 0.0  ;;  %v1661_v10 = vmul.f32 0.01, %v1197_v20  ;;  %v1201_v34 = vadd.f32 %v1200_v30, %v11744_v17  ;;  %2807 = vmatmul.mubr.bf16.gmra.mrb[56].mxu0 %v2012_v59  ;;  %3193 = vmatmul.mubr.bf16.gmra.mrb[120].mxu1 %v2012_v59  ;;  %v11978_v54 = vadd.f32 %v1256_v55, %v11744_v17 }
 0x22b   : > { %v10373_v37 = vld [vmem:[#allocation2 + $0x3c4] ss:$16 sps:$4 sm:$0xff]   ;;  %v10376_v19 = vld [vmem:[#allocation2 + $0x3cc] ss:$16 sps:$4 sm:$0xff]   ;;  %vm1568_vm3 = vcmp.gt.f32.partialorder %v11913_v6, 0.0  ;;  %vm1536_vm5 = vcmp.gt.f32.partialorder %v1199_v32, 0.0  ;;  %2932 = vmatpush1.bf16.msra.mxu0 %v10359_v22  ;;  %3318 = vmatpush1.bf16.msra.mxu1 %v10362_v36  ;;  %v1788_v55 = vsel %vm1532_vm0, %v1195_v1, %v1660_v46  ;;  %v11995_v24 = vadd.f32 %v1258_v42, %v11740_v5 }
 0x22c   : > { %v1664_v40 = vmul.f32 0.01, %v1199_v32  ;;  %vm1572_vm7 = vcmp.gt.f32.partialorder %v11929_v3, 0.0  ;;  %vm1573_vm4 = vcmp.gt.f32.partialorder %v11936_v62, 0.0  ;;  %vm1577_vm8 = vcmp.gt.f32.partialorder %v11955_v45, 0.0  ;;  %2933 = vmatprep.subr.bf16.mxu0 %v10367_v28  ;;  %3319 = vmatprep.subr.bf16.mxu1 %v10370_v58 }
 0x22d   : > { %v11985_v52 = vmul.f32 0.01, %v11955_v45  ;;  %vm1537_vm10 = vcmp.gt.f32.partialorder %v1201_v34, 0.0  ;;  %v1665_v31 = vmul.f32 0.01, %v1201_v34  ;;  %v1789_v30 = vsel %vm1533_vm2, %v1197_v20, %v1661_v10 }
 0x22e   : > { %v11989_v59 = vmul.f32 0.01, %v11965_v49  ;;  %v1792_v0 = vsel %vm1536_vm5, %v1199_v32, %v1664_v40  ;;  %v11998_v22 = vadd.f32 %v1260_v23, %v11744_v17  ;;  %vm1581_vm14 = vcmp.gt.f32.partialorder %v11978_v54, 0.0  ;;  %v10371_v1 = vld [vmem:[#allocation2 + $0x3c0] ss:$16 sps:$4 sm:$0xff]  }
 0x22f   : > { %v1793_v36 = vsel %vm1537_vm10, %v1201_v34, %v1665_v31  ;;  %v2016_v35 = vpack.c.bf16 %v1792_v0, %v1788_v55  ;;  %v1264_v4 = vpop.f32.mrb[24].mxu1  ;;  %v1808_v28 = vsel %vm1552_vm6, %v11832_v2, %v11858_v29  ;;  %vm1580_vm0 = vcmp.gt.f32.partialorder %v11965_v49, 0.0  ;;  %2934 = vmatpush1.bf16.msra.mxu0 %v10365_v11  ;;  %3320 = vmatpush1.bf16.msra.mxu1 %v10368_v9  ;;  %v10374_v10 = vld [vmem:[#allocation2 + $0x3c8] ss:$16 sps:$4 sm:$0xff]   ;;  %v10379_v34 = vld [vmem:[#allocation2 + $0x3e4] ss:$16 sps:$4 sm:$0xff]  }
 0x230   : > { %v2017_v58 = vpack.c.bf16 %v1793_v36, %v1789_v30  ;;  %v12007_v20 = vmul.f32 0.01, %v11978_v54  ;;  %v12010_v42 = vmul.f32 0.01, %v11995_v24  ;;  %v1266_v46 = vpop.f32.mrb[25].mxu1  ;;  %v1813_v0 = vsel %vm1557_vm9, %v11869_v25, %v11894_v51  ;;  %2935 = vmatprep.subr.bf16.mxu0 %v10373_v37  ;;  %3321 = vmatprep.subr.bf16.mxu1 %v10376_v19 }
 0x231   : > { %vm1584_vm6 = vcmp.gt.f32.partialorder %v11995_v24, 0.0  ;;  %vm1585_vm2 = vcmp.gt.f32.partialorder %v11998_v22, 0.0  ;;  %v12019_v2 = vadd.f32 %v1264_v4, %v11740_v5  ;;  %v12022_v29 = vadd.f32 %v1266_v46, %v11744_v17  ;;  %v1268_v32 = vpop.f32.mrb[26].mxu1  ;;  %v10382_v9 = vld [vmem:[#allocation2 + $0x3ec] ss:$16 sps:$4 sm:$0xff]  }
 0x232   : > { %v12024_v23 = vpack.c.bf16 %v1808_v28, %v1804_v41  ;;  %2816 = vmatprep.mubr.bf16.mxu0 %v2017_v58  ;;  %3202 = vmatprep.mubr.bf16.mxu1 %v2017_v58  ;;  %v1713_v25 = vmul.f32 0.01, %v11998_v22  ;;  %v12028_v51 = vadd.f32 %v1268_v32, %v11740_v5  ;;  %v1270_v11 = vpop.f32.mrb[27].mxu1  ;;  %v1817_v4 = vsel %vm1561_vm12, %v11878_v39, %v11903_v7  ;;  %v10377_v31 = vld [vmem:[#allocation2 + $0x3e0] ss:$16 sps:$4 sm:$0xff]  }
 0x233   : > { %v1812_v41 = vsel %vm1556_vm11, %v11865_v26, %v11888_v57  ;;  %2817 = vmatmul.mubr.bf16.gmra.mrb[60].mxu0 %v2016_v35  ;;  %3203 = vmatmul.mubr.bf16.gmra.mrb[124].mxu1 %v2016_v35  ;;  %vm1588_vm9 = vcmp.gt.f32.partialorder %v12019_v2, 0.0  ;;  %v12040_v37 = vmul.f32 0.01, %v12019_v2  ;;  %vm1589_vm5 = vcmp.gt.f32.partialorder %v12022_v29, 0.0 }
 0x234   : > { %v1717_v19 = vmul.f32 0.01, %v12022_v29  ;;  %2826 = vmatprep.mubr.bf16.mxu0 %v11845_v13  ;;  %3212 = vmatprep.mubr.bf16.mxu1 %v11845_v13  ;;  %vm1592_vm12 = vcmp.gt.f32.partialorder %v12028_v51, 0.0  ;;  %v1720_v26 = vmul.f32 0.01, %v12028_v51  ;;  %v1271_v39 = vadd.f32 %v1270_v11, %v11744_v17 }
 0x235   : > { %v12049_v35 = vpack.c.bf16 %v1817_v4, %v1813_v0  ;;  %v1816_v57 = vsel %vm1560_vm13, %v11874_v47, %v11899_v15  ;;  %v1821_v7 = vsel %vm1565_vm15, %v11884_v16, %v11910_v33  ;;  %v1825_v13 = vsel %vm1569_vm1, %v11917_v48, %v11939_v56  ;;  %2936 = vmatpush1.bf16.msra.mxu0 %v10371_v1  ;;  %v10380_v16 = vld [vmem:[#allocation2 + $0x3e8] ss:$16 sps:$4 sm:$0xff]  }
 0x236   : > { %vm17029_vm11 = vcmp.gt.f32.partialorder %v11881_v53, 0.0  ;;  %vm1593_vm10 = vcmp.gt.f32.partialorder %v1271_v39, 0.0  ;;  %v1721_v55 = vmul.f32 0.01, %v1271_v39  ;;  %v12067_v47 = vpack.c.bf16 %v1816_v57, %v1812_v41  ;;  %3322 = vmatpush1.bf16.msra.mxu1 %v10374_v10  ;;  %2937 = vmatprep.subr.bf16.mxu0 %v10379_v34 }
 0x237   : > { %v1820_v40 = vsel %vm17029_vm11, %v11881_v53, %v11907_v27  ;;  %v12069_v15 = vpack.c.bf16 %v1825_v13, %v1821_v7  ;;  %v1274_v33 = vpop.f32.mrb[28].mxu1  ;;  %v1824_v48 = vsel %vm1568_vm3, %v11913_v6, %v11933_v63  ;;  %v1829_v53 = vsel %vm1573_vm4, %v11936_v62, %v11959_v18  ;;  %3323 = vmatprep.subr.bf16.mxu1 %v10382_v9 }
 0x238   : > { %v1833_v27 = vsel %vm1577_vm8, %v11955_v45, %v11985_v52  ;;  %v1828_v56 = vsel %vm1572_vm7, %v11929_v3, %v11952_v14  ;;  %v1275_v30 = vadd.f32 %v1274_v33, %v11740_v5  ;;  %v1276_v36 = vpop.f32.mrb[29].mxu1  ;;  %v12088_v6 = vpack.c.bf16 %v1824_v48, %v1820_v40 }
 0x239   : > { %v12090_v63 = vpack.c.bf16 %v1833_v27, %v1829_v53  ;;  %vm17030_vm13 = vcmp.gt.f32.partialorder %v11943_v61, 0.0  ;;  %v1277_v45 = vadd.f32 %v1276_v36, %v11744_v17  ;;  %v1278_v18 = vpop.f32.mrb[30].mxu1  ;;  %v1837_v3 = vsel %vm1581_vm14, %v11978_v54, %v12007_v20  ;;  %2938 = vmatpush1.bf16.msra.mxu0 %v10377_v31 }
 0x23a   : > { %v1832_v62 = vsel %vm17030_vm13, %v11943_v61, %v11962_v38  ;;  %v1841_v14 = vsel %vm1585_vm2, %v11998_v22, %v1713_v25  ;;  %vm1596_vm15 = vcmp.gt.f32.partialorder %v1275_v30, 0.0  ;;  %v1724_v28 = vmul.f32 0.01, %v1275_v30  ;;  %v1280_v61 = vpop.f32.mrb[31].mxu1  ;;  %3324 = vmatpush1.bf16.msra.mxu1 %v10380_v16 }
 0x23b   : > { %v12097_v52 = vpack.c.bf16 %v1832_v62, %v1828_v56  ;;  %v1279_v1 = vadd.f32 %v1278_v18, %v11740_v5  ;;  %v12107_v38 = vpack.c.bf16 %v1841_v14, %v1837_v3  ;;  %2827 = vmatmul.mubr.bf16.gmra.mrb[64].mxu0 %v11847_v43  ;;  %3213 = vmatmul.mubr.bf16.gmra.mrb[128].mxu1 %v11847_v43  ;;  %vm1597_vm1 = vcmp.gt.f32.partialorder %v1277_v45, 0.0 }
 0x23c   : > { %v1725_v58 = vmul.f32 0.01, %v1277_v45  ;;  %v1281_v54 = vadd.f32 %v1280_v61, %v11744_v17  ;;  %v1836_v22 = vsel %vm1580_vm0, %v11965_v49, %v11989_v59  ;;  %2836 = vmatprep.mubr.bf16.mxu0 %v11948_v21  ;;  %3222 = vmatprep.mubr.bf16.mxu1 %v11948_v21  ;;  %v1840_v43 = vsel %vm1584_vm6, %v11995_v24, %v12010_v42 }
 0x23d   : > { %vm1600_vm14 = vcmp.gt.f32.partialorder %v1279_v1, 0.0  ;;  %v1728_v5 = vmul.f32 0.01, %v1279_v1  ;;  %v1845_v17 = vsel %vm1589_vm5, %v12022_v29, %v1717_v19  ;;  %v12125_v46 = vpack.c.bf16 %v1840_v43, %v1836_v22 }
 0x23e   : > { %vm1601_vm3 = vcmp.gt.f32.partialorder %v1281_v54, 0.0  ;;  %v1729_v20 = vmul.f32 0.01, %v1281_v54  ;;  %v1849_v49 = vsel %vm1593_vm10, %v1271_v39, %v1721_v55  ;;  %v1844_v21 = vsel %vm1588_vm9, %v12019_v2, %v12040_v37 }
 0x23f   : > { %v12128_v59 = vpack.c.bf16 %v1849_v49, %v1845_v17  ;;  %v1848_v24 = vsel %vm1592_vm12, %v12028_v51, %v1720_v26  ;;  %v1853_v42 = vsel %vm1597_vm1, %v1277_v45, %v1725_v58  ;;  %v1317_v0 = vpop.f32.mrb[32].mxu1  ;;  %v1852_v10 = vsel %vm1596_vm15, %v1275_v30, %v1724_v28 }
 0x240   : > { %v12138_v29 = vpack.c.bf16 %v1848_v24, %v1844_v21  ;;  %v1857_v32 = vsel %vm1601_vm3, %v1281_v54, %v1729_v20  ;;  %v1856_v34 = vsel %vm1600_vm14, %v1279_v1, %v1728_v5  ;;  %v1318_v25 = vadd.f32 %v1317_v0, %v11793_v12  ;;  %v1319_v11 = vpop.f32.mrb[33].mxu1 }
 0x241   : > { %v12143_v4 = vpack.c.bf16 %v1857_v32, %v1853_v42  ;;  %v12145_v2 = vpack.c.bf16 %v1856_v34, %v1852_v10  ;;  %v1320_v41 = vadd.f32 %v1319_v11, %v11843_v44  ;;  %v1321_v51 = vpop.f32.mrb[34].mxu1 }
 0x242   : > { %v1606_v9 = vmul.f32 0.01, %v1318_v25  ;;  %v1322_v37 = vadd.f32 %v1321_v51, %v11793_v12  ;;  %v1323_v19 = vpop.f32.mrb[35].mxu1  ;;  %vm1478_vm7 = vcmp.gt.f32.partialorder %v1318_v25, 0.0 }
 0x243   : > { %v1607_v26 = vmul.f32 0.01, %v1320_v41  ;;  %v1324_v39 = vadd.f32 %v1323_v19, %v11843_v44  ;;  %2837 = vmatmul.mubr.bf16.gmra.mrb[68].mxu0 %v12024_v23  ;;  %3223 = vmatmul.mubr.bf16.gmra.mrb[132].mxu1 %v12024_v23  ;;  %vm1479_vm4 = vcmp.gt.f32.partialorder %v1320_v41, 0.0 }
 0x244   : > { %vm1482_vm8 = vcmp.gt.f32.partialorder %v1322_v37, 0.0  ;;  %v1610_v57 = vmul.f32 0.01, %v1322_v37  ;;  %2846 = vmatprep.mubr.bf16.mxu0 %v12049_v35  ;;  %3232 = vmatprep.mubr.bf16.mxu1 %v12049_v35  ;;  %v1734_v13 = vsel %vm1478_vm7, %v1318_v25, %v1606_v9 }
 0x245   : > { %vm1483_vm0 = vcmp.gt.f32.partialorder %v1324_v39, 0.0  ;;  %v1611_v7 = vmul.f32 0.01, %v1324_v39  ;;  %v1735_v16 = vsel %vm1479_vm4, %v1320_v41, %v1607_v26 }
 0x246   : > { %v1738_v40 = vsel %vm1482_vm8, %v1322_v37, %v1610_v57 }
 0x247   : > { %v12154_v31 = vpack.c.bf16 %v1738_v40, %v1734_v13  ;;  %v1327_v55 = vpop.f32.mrb[36].mxu1  ;;  %v1739_v33 = vsel %vm1483_vm0, %v1324_v39, %v1611_v7 }
 0x248   : > { %v1328_v48 = vadd.f32 %v1327_v55, %v11793_v12  ;;  %v1329_v53 = vpop.f32.mrb[37].mxu1  ;;  %v12157_v23 = vpack.c.bf16 %v1739_v33, %v1735_v16 }
 0x249   : > { %v1330_v27 = vadd.f32 %v1329_v53, %v11843_v44  ;;  %v1331_v56 = vpop.f32.mrb[38].mxu1 }
 0x24a   : > { %v1614_v30 = vmul.f32 0.01, %v1328_v48  ;;  %v1332_v35 = vadd.f32 %v1331_v56, %v11793_v12  ;;  %v1333_v36 = vpop.f32.mrb[39].mxu1  ;;  %vm1486_vm6 = vcmp.gt.f32.partialorder %v1328_v48, 0.0 }
 0x24b   : > { %v1615_v62 = vmul.f32 0.01, %v1330_v27  ;;  %v1334_v45 = vadd.f32 %v1333_v36, %v11843_v44  ;;  %2847 = vmatmul.mubr.bf16.gmra.mrb[72].mxu0 %v12067_v47  ;;  %3233 = vmatmul.mubr.bf16.gmra.mrb[136].mxu1 %v12067_v47  ;;  %vm1487_vm2 = vcmp.gt.f32.partialorder %v1330_v27, 0.0 }
 0x24c   : > { %vm1490_vm9 = vcmp.gt.f32.partialorder %v1332_v35, 0.0  ;;  %v1618_v18 = vmul.f32 0.01, %v1332_v35  ;;  %2856 = vmatprep.mubr.bf16.mxu0 %v12069_v15  ;;  %3242 = vmatprep.mubr.bf16.mxu1 %v12069_v15  ;;  %v1742_v14 = vsel %vm1486_vm6, %v1328_v48, %v1614_v30 }
 0x24d   : > { %vm1491_vm5 = vcmp.gt.f32.partialorder %v1334_v45, 0.0  ;;  %v1619_v3 = vmul.f32 0.01, %v1334_v45  ;;  %v1743_v61 = vsel %vm1487_vm2, %v1330_v27, %v1615_v62 }
 0x24e   : > { %v1746_v28 = vsel %vm1490_vm9, %v1332_v35, %v1618_v18 }
 0x24f   : > { %v1337_v1 = vpop.f32.mrb[40].mxu1  ;;  %v1747_v58 = vsel %vm1491_vm5, %v1334_v45, %v1619_v3  ;;  %v12166_v54 = vpack.c.bf16 %v1746_v28, %v1742_v14 }
 0x250   : > { %v1338_v22 = vadd.f32 %v1337_v1, %v11793_v12  ;;  %v1339_v5 = vpop.f32.mrb[41].mxu1  ;;  %v12169_v47 = vpack.c.bf16 %v1747_v58, %v1743_v61 }
 0x251   : > { %v1340_v43 = vadd.f32 %v1339_v5, %v11843_v44  ;;  %v1341_v17 = vpop.f32.mrb[42].mxu1 }
 0x252   : > { %v1622_v20 = vmul.f32 0.01, %v1338_v22  ;;  %v1342_v15 = vadd.f32 %v1341_v17, %v11793_v12  ;;  %v1343_v49 = vpop.f32.mrb[43].mxu1  ;;  %vm1494_vm12 = vcmp.gt.f32.partialorder %v1338_v22, 0.0 }
 0x253   : > { %v1623_v21 = vmul.f32 0.01, %v1340_v43  ;;  %v1344_v24 = vadd.f32 %v1343_v49, %v11843_v44  ;;  %2857 = vmatmul.mubr.bf16.gmra.mrb[76].mxu0 %v12088_v6  ;;  %3243 = vmatmul.mubr.bf16.gmra.mrb[140].mxu1 %v12088_v6  ;;  %vm1495_vm11 = vcmp.gt.f32.partialorder %v1340_v43, 0.0 }
 0x254   : > { %vm1498_vm10 = vcmp.gt.f32.partialorder %v1342_v15, 0.0  ;;  %v1626_v42 = vmul.f32 0.01, %v1342_v15  ;;  %2866 = vmatprep.mubr.bf16.mxu0 %v12090_v63  ;;  %3252 = vmatprep.mubr.bf16.mxu1 %v12090_v63  ;;  %v1750_v32 = vsel %vm1494_vm12, %v1338_v22, %v1622_v20 }
 0x255   : > { %vm1499_vm13 = vcmp.gt.f32.partialorder %v1344_v24, 0.0  ;;  %v1627_v0 = vmul.f32 0.01, %v1344_v24  ;;  %v1751_v25 = vsel %vm1495_vm11, %v1340_v43, %v1623_v21 }
 0x256   : > { %v1754_v10 = vsel %vm1498_vm10, %v1342_v15, %v1626_v42 }
 0x257   : > { %v1347_v34 = vpop.f32.mrb[44].mxu1  ;;  %v1755_v11 = vsel %vm1499_vm13, %v1344_v24, %v1627_v0  ;;  %v12178_v41 = vpack.c.bf16 %v1754_v10, %v1750_v32 }
 0x258   : > { %v1348_v51 = vadd.f32 %v1347_v34, %v11793_v12  ;;  %v1349_v9 = vpop.f32.mrb[45].mxu1  ;;  %v12181_v6 = vpack.c.bf16 %v1755_v11, %v1751_v25 }
 0x259   : > { %v1350_v37 = vadd.f32 %v1349_v9, %v11843_v44  ;;  %v1351_v19 = vpop.f32.mrb[46].mxu1 }
 0x25a   : > { %v1630_v26 = vmul.f32 0.01, %v1348_v51  ;;  %v1352_v63 = vadd.f32 %v1351_v19, %v11793_v12  ;;  %v1353_v39 = vpop.f32.mrb[47].mxu1  ;;  %vm1502_vm15 = vcmp.gt.f32.partialorder %v1348_v51, 0.0 }
 0x25b   : > { %v1631_v57 = vmul.f32 0.01, %v1350_v37  ;;  %v1354_v7 = vadd.f32 %v1353_v39, %v11843_v44  ;;  %2867 = vmatmul.mubr.bf16.gmra.mrb[80].mxu0 %v12097_v52  ;;  %3253 = vmatmul.mubr.bf16.gmra.mrb[144].mxu1 %v12097_v52  ;;  %vm1503_vm1 = vcmp.gt.f32.partialorder %v1350_v37, 0.0 }
 0x25c   : > { %vm1506_vm14 = vcmp.gt.f32.partialorder %v1352_v63, 0.0  ;;  %v1634_v13 = vmul.f32 0.01, %v1352_v63  ;;  %2876 = vmatprep.mubr.bf16.mxu0 %v12107_v38  ;;  %3262 = vmatprep.mubr.bf16.mxu1 %v12107_v38  ;;  %v1758_v55 = vsel %vm1502_vm15, %v1348_v51, %v1630_v26 }
 0x25d   : > { %vm1507_vm3 = vcmp.gt.f32.partialorder %v1354_v7, 0.0  ;;  %v1635_v40 = vmul.f32 0.01, %v1354_v7  ;;  %v1759_v48 = vsel %vm1503_vm1, %v1350_v37, %v1631_v57 }
 0x25e   : > { %v1762_v16 = vsel %vm1506_vm14, %v1352_v63, %v1634_v13 }
 0x25f   : > { %v1357_v33 = vpop.f32.mrb[48].mxu1  ;;  %v1763_v53 = vsel %vm1507_vm3, %v1354_v7, %v1635_v40  ;;  %v12190_v27 = vpack.c.bf16 %v1762_v16, %v1758_v55 }
 0x260   : > { %v1358_v56 = vadd.f32 %v1357_v33, %v11793_v12  ;;  %v1359_v30 = vpop.f32.mrb[49].mxu1  ;;  %v12193_v52 = vpack.c.bf16 %v1763_v53, %v1759_v48 }
 0x261   : > { %v1360_v35 = vadd.f32 %v1359_v30, %v11843_v44  ;;  %v1361_v36 = vpop.f32.mrb[50].mxu1 }
 0x262   : > { %v1638_v62 = vmul.f32 0.01, %v1358_v56  ;;  %v1362_v38 = vadd.f32 %v1361_v36, %v11793_v12  ;;  %v1363_v45 = vpop.f32.mrb[51].mxu1  ;;  %vm1510_vm7 = vcmp.gt.f32.partialorder %v1358_v56, 0.0 }
 0x263   : > { %v1639_v18 = vmul.f32 0.01, %v1360_v35  ;;  %v1364_v3 = vadd.f32 %v1363_v45, %v11843_v44  ;;  %2877 = vmatmul.mubr.bf16.gmra.mrb[84].mxu0 %v12125_v46  ;;  %3263 = vmatmul.mubr.bf16.gmra.mrb[148].mxu1 %v12125_v46  ;;  %vm1511_vm4 = vcmp.gt.f32.partialorder %v1360_v35, 0.0 }
 0x264   : > { %vm1514_vm8 = vcmp.gt.f32.partialorder %v1362_v38, 0.0  ;;  %v1642_v14 = vmul.f32 0.01, %v1362_v38  ;;  %2886 = vmatprep.mubr.bf16.mxu0 %v12128_v59  ;;  %3272 = vmatprep.mubr.bf16.mxu1 %v12128_v59  ;;  %v1766_v1 = vsel %vm1510_vm7, %v1358_v56, %v1638_v62 }
 0x265   : > { %vm1515_vm0 = vcmp.gt.f32.partialorder %v1364_v3, 0.0  ;;  %v1643_v28 = vmul.f32 0.01, %v1364_v3  ;;  %v1767_v22 = vsel %vm1511_vm4, %v1360_v35, %v1639_v18 }
 0x266   : > { %v1770_v61 = vsel %vm1514_vm8, %v1362_v38, %v1642_v14 }
 0x267   : > { %v1367_v58 = vpop.f32.mrb[52].mxu1  ;;  %v1771_v5 = vsel %vm1515_vm0, %v1364_v3, %v1643_v28  ;;  %v12202_v43 = vpack.c.bf16 %v1770_v61, %v1766_v1 }
 0x268   : > { %v1368_v17 = vadd.f32 %v1367_v58, %v11793_v12  ;;  %v1369_v20 = vpop.f32.mrb[53].mxu1  ;;  %v12205_v46 = vpack.c.bf16 %v1771_v5, %v1767_v22 }
 0x269   : > { %v1370_v15 = vadd.f32 %v1369_v20, %v11843_v44  ;;  %v1371_v49 = vpop.f32.mrb[54].mxu1 }
 0x26a   : > { %v1646_v21 = vmul.f32 0.01, %v1368_v17  ;;  %v1372_v59 = vadd.f32 %v1371_v49, %v11793_v12  ;;  %v1373_v24 = vpop.f32.mrb[55].mxu1  ;;  %vm1518_vm6 = vcmp.gt.f32.partialorder %v1368_v17, 0.0 }
 0x26b   : > { %v1647_v42 = vmul.f32 0.01, %v1370_v15  ;;  %v1374_v0 = vadd.f32 %v1373_v24, %v11843_v44  ;;  %2887 = vmatmul.mubr.bf16.gmra.mrb[88].mxu0 %v12138_v29  ;;  %3273 = vmatmul.mubr.bf16.gmra.mrb[152].mxu1 %v12138_v29  ;;  %vm1519_vm2 = vcmp.gt.f32.partialorder %v1370_v15, 0.0 }
 0x26c   : > { %vm1522_vm9 = vcmp.gt.f32.partialorder %v1372_v59, 0.0  ;;  %v1650_v32 = vmul.f32 0.01, %v1372_v59  ;;  %2896 = vmatprep.mubr.bf16.mxu0 %v12143_v4  ;;  %3282 = vmatprep.mubr.bf16.mxu1 %v12143_v4  ;;  %v1774_v34 = vsel %vm1518_vm6, %v1368_v17, %v1646_v21 }
 0x26d   : > { %vm1523_vm5 = vcmp.gt.f32.partialorder %v1374_v0, 0.0  ;;  %v1651_v10 = vmul.f32 0.01, %v1374_v0  ;;  %v1775_v51 = vsel %vm1519_vm2, %v1370_v15, %v1647_v42 }
 0x26e   : > { %v1778_v25 = vsel %vm1522_vm9, %v1372_v59, %v1650_v32 }
 0x26f   : > { %v1377_v11 = vpop.f32.mrb[56].mxu1  ;;  %v1779_v9 = vsel %vm1523_vm5, %v1374_v0, %v1651_v10  ;;  %v12214_v37 = vpack.c.bf16 %v1778_v25, %v1774_v34 }
 0x270   : > { %v1378_v19 = vadd.f32 %v1377_v11, %v11793_v12  ;;  %v1379_v26 = vpop.f32.mrb[57].mxu1  ;;  %v12217_v29 = vpack.c.bf16 %v1779_v9, %v1775_v51 }
 0x271   : > { %v1380_v63 = vadd.f32 %v1379_v26, %v11843_v44  ;;  %v1381_v39 = vpop.f32.mrb[58].mxu1 }
 0x272   : > { %v1654_v57 = vmul.f32 0.01, %v1378_v19  ;;  %v1382_v4 = vadd.f32 %v1381_v39, %v11793_v12  ;;  %v1383_v7 = vpop.f32.mrb[59].mxu1  ;;  %vm1526_vm12 = vcmp.gt.f32.partialorder %v1378_v19, 0.0 }
 0x273   : > { %v1655_v13 = vmul.f32 0.01, %v1380_v63  ;;  %v1384_v40 = vadd.f32 %v1383_v7, %v11843_v44  ;;  %2897 = vmatmul.mubr.bf16.gmra.mrb[92].mxu0 %v12145_v2  ;;  %3283 = vmatmul.mubr.bf16.gmra.mrb[156].mxu1 %v12145_v2  ;;  %vm1527_vm11 = vcmp.gt.f32.partialorder %v1380_v63, 0.0 }
 0x274   : > { %vm1530_vm10 = vcmp.gt.f32.partialorder %v1382_v4, 0.0  ;;  %v1658_v55 = vmul.f32 0.01, %v1382_v4  ;;  %2939 = vmatprep.mubr.bf16.mxu0 %v12157_v23  ;;  %3325 = vmatprep.mubr.bf16.mxu1 %v12157_v23  ;;  %v1782_v33 = vsel %vm1526_vm12, %v1378_v19, %v1654_v57 }
 0x275   : > { %vm1531_vm13 = vcmp.gt.f32.partialorder %v1384_v40, 0.0  ;;  %v1659_v16 = vmul.f32 0.01, %v1384_v40  ;;  %v1783_v56 = vsel %vm1527_vm11, %v1380_v63, %v1655_v13 }
 0x276   : > { %v1786_v48 = vsel %vm1530_vm10, %v1382_v4, %v1658_v55 }
 0x277   : > { %v1387_v53 = vpop.f32.mrb[60].mxu1  ;;  %v1787_v30 = vsel %vm1531_vm13, %v1384_v40, %v1659_v16  ;;  %v12226_v35 = vpack.c.bf16 %v1786_v48, %v1782_v33 }
 0x278   : > { %v1388_v36 = vadd.f32 %v1387_v53, %v11793_v12  ;;  %v1389_v62 = vpop.f32.mrb[61].mxu1  ;;  %v12229_v2 = vpack.c.bf16 %v1787_v30, %v1783_v56 }
 0x279   : > { %v1390_v38 = vadd.f32 %v1389_v62, %v11843_v44  ;;  %v1391_v45 = vpop.f32.mrb[62].mxu1 }
 0x27a   : > { %v1662_v18 = vmul.f32 0.01, %v1388_v36  ;;  %v1392_v23 = vadd.f32 %v1391_v45, %v11793_v12  ;;  %v1393_v3 = vpop.f32.mrb[63].mxu1  ;;  %vm1534_vm15 = vcmp.gt.f32.partialorder %v1388_v36, 0.0 }
 0x27b   : > { %v1663_v14 = vmul.f32 0.01, %v1390_v38  ;;  %v1394_v28 = vadd.f32 %v1393_v3, %v11843_v44  ;;  %2940 = vmatmul.mubr.bf16.vlgmr.msra.gmra.mrb[32].mxu0 %v12154_v31  ;;  %3326 = vmatmul.mubr.bf16.vlgmr.msra.gmra.mrb[96].mxu1 %v12154_v31  ;;  %vm1535_vm1 = vcmp.gt.f32.partialorder %v1390_v38, 0.0 }
 0x27c   : > { %vm1538_vm14 = vcmp.gt.f32.partialorder %v1392_v23, 0.0  ;;  %v1666_v1 = vmul.f32 0.01, %v1392_v23  ;;  %2949 = vmatprep.mubr.bf16.mxu0 %v12169_v47  ;;  %3335 = vmatprep.mubr.bf16.mxu1 %v12169_v47  ;;  %v1790_v58 = vsel %vm1534_vm15, %v1388_v36, %v1662_v18 }
 0x27d   : > { %vm1539_vm3 = vcmp.gt.f32.partialorder %v1394_v28, 0.0  ;;  %v1667_v61 = vmul.f32 0.01, %v1394_v28  ;;  %v1791_v17 = vsel %vm1535_vm1, %v1390_v38, %v1663_v14 }
 0x27e   : > { %v1794_v22 = vsel %vm1538_vm14, %v1392_v23, %v1666_v1 }
 0x27f   : > { %v1397_v5 = vpop.f32.mrb[64].mxu1  ;;  %v1795_v20 = vsel %vm1539_vm3, %v1394_v28, %v1667_v61  ;;  %v12238_v15 = vpack.c.bf16 %v1794_v22, %v1790_v58 }
 0x280   : > { %v1398_v49 = vadd.f32 %v1397_v5, %v11793_v12  ;;  %v1399_v21 = vpop.f32.mrb[65].mxu1  ;;  %v12241_v31 = vpack.c.bf16 %v1795_v20, %v1791_v17 }
 0x281   : > { %v1400_v59 = vadd.f32 %v1399_v21, %v11843_v44  ;;  %v1401_v24 = vpop.f32.mrb[66].mxu1 }
 0x282   : > { %v1670_v42 = vmul.f32 0.01, %v1398_v49  ;;  %v1402_v47 = vadd.f32 %v1401_v24, %v11793_v12  ;;  %v1403_v0 = vpop.f32.mrb[67].mxu1  ;;  %vm1542_vm7 = vcmp.gt.f32.partialorder %v1398_v49, 0.0 }
 0x283   : > { %v1671_v32 = vmul.f32 0.01, %v1400_v59  ;;  %v1404_v10 = vadd.f32 %v1403_v0, %v11843_v44  ;;  %2950 = vmatmul.mubr.bf16.gmra.mrb[36].mxu0 %v12166_v54  ;;  %3336 = vmatmul.mubr.bf16.gmra.mrb[100].mxu1 %v12166_v54  ;;  %vm1543_vm4 = vcmp.gt.f32.partialorder %v1400_v59, 0.0 }
 0x284   : > { %vm1546_vm8 = vcmp.gt.f32.partialorder %v1402_v47, 0.0  ;;  %v1674_v34 = vmul.f32 0.01, %v1402_v47  ;;  %2959 = vmatprep.mubr.bf16.mxu0 %v12181_v6  ;;  %3345 = vmatprep.mubr.bf16.mxu1 %v12181_v6  ;;  %v1798_v11 = vsel %vm1542_vm7, %v1398_v49, %v1670_v42 }
 0x285   : > { %vm1547_vm0 = vcmp.gt.f32.partialorder %v1404_v10, 0.0  ;;  %v1675_v25 = vmul.f32 0.01, %v1404_v10  ;;  %v1799_v19 = vsel %vm1543_vm4, %v1400_v59, %v1671_v32 }
 0x286   : > { %v1802_v51 = vsel %vm1546_vm8, %v1402_v47, %v1674_v34 }
 0x287   : > { %v1407_v9 = vpop.f32.mrb[68].mxu1  ;;  %v1803_v26 = vsel %vm1547_vm0, %v1404_v10, %v1675_v25  ;;  %v12250_v63 = vpack.c.bf16 %v1802_v51, %v1798_v11 }
 0x288   : > { %v1408_v39 = vadd.f32 %v1407_v9, %v11793_v12  ;;  %v1409_v57 = vpop.f32.mrb[69].mxu1  ;;  %v12253_v54 = vpack.c.bf16 %v1803_v26, %v1799_v19 }
 0x289   : > { %v1410_v4 = vadd.f32 %v1409_v57, %v11843_v44  ;;  %v1411_v7 = vpop.f32.mrb[70].mxu1 }
 0x28a   : > { %v1678_v13 = vmul.f32 0.01, %v1408_v39  ;;  %v1412_v6 = vadd.f32 %v1411_v7, %v11793_v12  ;;  %v1413_v40 = vpop.f32.mrb[71].mxu1  ;;  %vm1550_vm6 = vcmp.gt.f32.partialorder %v1408_v39, 0.0 }
 0x28b   : > { %v1679_v55 = vmul.f32 0.01, %v1410_v4  ;;  %v1414_v16 = vadd.f32 %v1413_v40, %v11843_v44  ;;  %2960 = vmatmul.mubr.bf16.gmra.mrb[40].mxu0 %v12178_v41  ;;  %3346 = vmatmul.mubr.bf16.gmra.mrb[104].mxu1 %v12178_v41  ;;  %vm1551_vm2 = vcmp.gt.f32.partialorder %v1410_v4, 0.0 }
 0x28c   : > { %vm1554_vm9 = vcmp.gt.f32.partialorder %v1412_v6, 0.0  ;;  %v1682_v33 = vmul.f32 0.01, %v1412_v6  ;;  %2969 = vmatprep.mubr.bf16.mxu0 %v12193_v52  ;;  %3355 = vmatprep.mubr.bf16.mxu1 %v12193_v52  ;;  %v1806_v53 = vsel %vm1550_vm6, %v1408_v39, %v1678_v13 }
 0x28d   : > { %vm1555_vm5 = vcmp.gt.f32.partialorder %v1414_v16, 0.0  ;;  %v1683_v48 = vmul.f32 0.01, %v1414_v16  ;;  %v1807_v36 = vsel %vm1551_vm2, %v1410_v4, %v1679_v55 }
 0x28e   : > { %v1810_v56 = vsel %vm1554_vm9, %v1412_v6, %v1682_v33 }
 0x28f   : > { %v1417_v30 = vpop.f32.mrb[72].mxu1  ;;  %v1811_v62 = vsel %vm1555_vm5, %v1414_v16, %v1683_v48  ;;  %v12262_v38 = vpack.c.bf16 %v1810_v56, %v1806_v53 }
 0x290   : > { %v1418_v45 = vadd.f32 %v1417_v30, %v11793_v12  ;;  %v1419_v18 = vpop.f32.mrb[73].mxu1  ;;  %v12265_v41 = vpack.c.bf16 %v1811_v62, %v1807_v36 }
 0x291   : > { %v1420_v23 = vadd.f32 %v1419_v18, %v11843_v44  ;;  %v1421_v3 = vpop.f32.mrb[74].mxu1 }
 0x292   : > { %v1686_v14 = vmul.f32 0.01, %v1418_v45  ;;  %v1422_v52 = vadd.f32 %v1421_v3, %v11793_v12  ;;  %v1423_v28 = vpop.f32.mrb[75].mxu1  ;;  %vm1558_vm12 = vcmp.gt.f32.partialorder %v1418_v45, 0.0 }
 0x293   : > { %v1687_v1 = vmul.f32 0.01, %v1420_v23  ;;  %v1424_v61 = vadd.f32 %v1423_v28, %v11843_v44  ;;  %2970 = vmatmul.mubr.bf16.gmra.mrb[44].mxu0 %v12190_v27  ;;  %3356 = vmatmul.mubr.bf16.gmra.mrb[108].mxu1 %v12190_v27  ;;  %vm1559_vm11 = vcmp.gt.f32.partialorder %v1420_v23, 0.0 }
 0x294   : > { %vm1562_vm10 = vcmp.gt.f32.partialorder %v1422_v52, 0.0  ;;  %v1690_v58 = vmul.f32 0.01, %v1422_v52  ;;  %2979 = vmatprep.mubr.bf16.mxu0 %v12205_v46  ;;  %3365 = vmatprep.mubr.bf16.mxu1 %v12205_v46  ;;  %v1814_v5 = vsel %vm1558_vm12, %v1418_v45, %v1686_v14 }
 0x295   : > { %vm1563_vm13 = vcmp.gt.f32.partialorder %v1424_v61, 0.0  ;;  %v1691_v22 = vmul.f32 0.01, %v1424_v61  ;;  %v1815_v49 = vsel %vm1559_vm11, %v1420_v23, %v1687_v1 }
 0x296   : > { %v1818_v17 = vsel %vm1562_vm10, %v1422_v52, %v1690_v58 }
 0x297   : > { %v1427_v20 = vpop.f32.mrb[76].mxu1  ;;  %v1819_v21 = vsel %vm1563_vm13, %v1424_v61, %v1691_v22  ;;  %v12274_v59 = vpack.c.bf16 %v1818_v17, %v1814_v5 }
 0x298   : > { %v1428_v24 = vadd.f32 %v1427_v20, %v11793_v12  ;;  %v1429_v42 = vpop.f32.mrb[77].mxu1  ;;  %v12277_v27 = vpack.c.bf16 %v1819_v21, %v1815_v49 }
 0x299   : > { %v1430_v47 = vadd.f32 %v1429_v42, %v11843_v44  ;;  %v1431_v0 = vpop.f32.mrb[78].mxu1 }
 0x29a   : > { %v1694_v32 = vmul.f32 0.01, %v1428_v24  ;;  %v1432_v46 = vadd.f32 %v1431_v0, %v11793_v12  ;;  %v1433_v10 = vpop.f32.mrb[79].mxu1  ;;  %vm1566_vm15 = vcmp.gt.f32.partialorder %v1428_v24, 0.0 }
 0x29b   : > { %v1695_v34 = vmul.f32 0.01, %v1430_v47  ;;  %v1434_v25 = vadd.f32 %v1433_v10, %v11843_v44  ;;  %2980 = vmatmul.mubr.bf16.gmra.mrb[48].mxu0 %v12202_v43  ;;  %3366 = vmatmul.mubr.bf16.gmra.mrb[112].mxu1 %v12202_v43  ;;  %vm1567_vm1 = vcmp.gt.f32.partialorder %v1430_v47, 0.0 }
 0x29c   : > { %vm1570_vm14 = vcmp.gt.f32.partialorder %v1432_v46, 0.0  ;;  %v1698_v11 = vmul.f32 0.01, %v1432_v46  ;;  %2989 = vmatprep.mubr.bf16.mxu0 %v12217_v29  ;;  %3375 = vmatprep.mubr.bf16.mxu1 %v12217_v29  ;;  %v1822_v9 = vsel %vm1566_vm15, %v1428_v24, %v1694_v32 }
 0x29d   : > { %vm1571_vm3 = vcmp.gt.f32.partialorder %v1434_v25, 0.0  ;;  %v1699_v51 = vmul.f32 0.01, %v1434_v25  ;;  %v1823_v39 = vsel %vm1567_vm1, %v1430_v47, %v1695_v34 }
 0x29e   : > { %v1826_v19 = vsel %vm1570_vm14, %v1432_v46, %v1698_v11 }
 0x29f   : > { %v1437_v26 = vpop.f32.mrb[80].mxu1  ;;  %v1827_v57 = vsel %vm1571_vm3, %v1434_v25, %v1699_v51  ;;  %v12286_v4 = vpack.c.bf16 %v1826_v19, %v1822_v9 }
 0x2a0   : > { %v1438_v7 = vadd.f32 %v1437_v26, %v11793_v12  ;;  %v1439_v13 = vpop.f32.mrb[81].mxu1  ;;  %v12289_v43 = vpack.c.bf16 %v1827_v57, %v1823_v39 }
 0x2a1   : > { %v1440_v6 = vadd.f32 %v1439_v13, %v11843_v44  ;;  %v1441_v40 = vpop.f32.mrb[82].mxu1 }
 0x2a2   : > { %v1702_v55 = vmul.f32 0.01, %v1438_v7  ;;  %v1442_v29 = vadd.f32 %v1441_v40, %v11793_v12  ;;  %v1443_v16 = vpop.f32.mrb[83].mxu1  ;;  %vm1574_vm7 = vcmp.gt.f32.partialorder %v1438_v7, 0.0 }
 0x2a3   : > { %v1703_v33 = vmul.f32 0.01, %v1440_v6  ;;  %v1444_v48 = vadd.f32 %v1443_v16, %v11843_v44  ;;  %2990 = vmatmul.mubr.bf16.gmra.mrb[52].mxu0 %v12214_v37  ;;  %3376 = vmatmul.mubr.bf16.gmra.mrb[116].mxu1 %v12214_v37  ;;  %vm1575_vm4 = vcmp.gt.f32.partialorder %v1440_v6, 0.0 }
 0x2a4   : > { %vm1578_vm8 = vcmp.gt.f32.partialorder %v1442_v29, 0.0  ;;  %v1706_v53 = vmul.f32 0.01, %v1442_v29  ;;  %2999 = vmatprep.mubr.bf16.mxu0 %v12229_v2  ;;  %3385 = vmatprep.mubr.bf16.mxu1 %v12229_v2  ;;  %v1830_v30 = vsel %vm1574_vm7, %v1438_v7, %v1702_v55 }
 0x2a5   : > { %vm1579_vm0 = vcmp.gt.f32.partialorder %v1444_v48, 0.0  ;;  %v1707_v56 = vmul.f32 0.01, %v1444_v48  ;;  %v1831_v45 = vsel %vm1575_vm4, %v1440_v6, %v1703_v33 }
 0x2a6   : > { %v1834_v36 = vsel %vm1578_vm8, %v1442_v29, %v1706_v53 }
 0x2a7   : > { %v1447_v62 = vpop.f32.mrb[84].mxu1  ;;  %v1835_v18 = vsel %vm1579_vm0, %v1444_v48, %v1707_v56  ;;  %v12298_v23 = vpack.c.bf16 %v1834_v36, %v1830_v30 }
 0x2a8   : > { %v1448_v3 = vadd.f32 %v1447_v62, %v11793_v12  ;;  %v1449_v14 = vpop.f32.mrb[85].mxu1  ;;  %v12301_v37 = vpack.c.bf16 %v1835_v18, %v1831_v45 }
 0x2a9   : > { %v1450_v52 = vadd.f32 %v1449_v14, %v11843_v44  ;;  %v1451_v28 = vpop.f32.mrb[86].mxu1 }
 0x2aa   : > { %v1710_v1 = vmul.f32 0.01, %v1448_v3  ;;  %v1452_v2 = vadd.f32 %v1451_v28, %v11793_v12  ;;  %v1453_v61 = vpop.f32.mrb[87].mxu1  ;;  %vm1582_vm6 = vcmp.gt.f32.partialorder %v1448_v3, 0.0  ;;  %v17032_v28 = vld [vmem:[#allocation26_spill] sm:$0xff] }
 0x2ab   : > { %v1711_v58 = vmul.f32 0.01, %v1450_v52  ;;  %v1454_v22 = vadd.f32 %v1453_v61, %v11843_v44  ;;  %3000 = vmatmul.mubr.bf16.gmra.mrb[56].mxu0 %v12226_v35  ;;  %3386 = vmatmul.mubr.bf16.gmra.mrb[120].mxu1 %v12226_v35  ;;  %vm1583_vm2 = vcmp.gt.f32.partialorder %v1450_v52, 0.0  ;;  %v10386_v61 = vld [vmem:[%s16608_s8 + $0x10] ss:$8 sps:$4 sm:$0xff]  }
 0x2ac   : > { %vm1586_vm9 = vcmp.gt.f32.partialorder %v1452_v2, 0.0  ;;  %v1714_v5 = vmul.f32 0.01, %v1452_v2  ;;  %3009 = vmatprep.mubr.bf16.mxu0 %v12241_v31  ;;  %3395 = vmatprep.mubr.bf16.mxu1 %v12241_v31  ;;  %v1838_v20 = vsel %vm1582_vm6, %v1448_v3, %v1710_v1 }
 0x2ad   : > { %vm1587_vm5 = vcmp.gt.f32.partialorder %v1454_v22, 0.0  ;;  %v1715_v17 = vmul.f32 0.01, %v1454_v22  ;;  %v1839_v24 = vsel %vm1583_vm2, %v1450_v52, %v1711_v58  ;;  %v10388_v58 = vld [vmem:[%s16608_s8 + $0x14] ss:$8 sps:$4 sm:$0xff]  }
 0x2ae   : > { %v1842_v49 = vsel %vm1586_vm9, %v1452_v2, %v1714_v5 }
 0x2af   : > { %v1457_v21 = vpop.f32.mrb[88].mxu1  ;;  %v1843_v42 = vsel %vm1587_vm5, %v1454_v22, %v1715_v17  ;;  %v12310_v47 = vpack.c.bf16 %v1842_v49, %v1838_v20 }
 0x2b0   : > { %v1458_v0 = vadd.f32 %v1457_v21, %v11793_v12  ;;  %v1459_v32 = vpop.f32.mrb[89].mxu1  ;;  %v12313_v35 = vpack.c.bf16 %v1843_v42, %v1839_v24 }
 0x2b1   : > { %v1460_v46 = vadd.f32 %v1459_v32, %v11843_v44  ;;  %v1461_v10 = vpop.f32.mrb[90].mxu1 }
 0x2b2   : > { %v1718_v34 = vmul.f32 0.01, %v1458_v0  ;;  %v1462_v31 = vadd.f32 %v1461_v10, %v11793_v12  ;;  %v1463_v25 = vpop.f32.mrb[91].mxu1  ;;  %vm1590_vm12 = vcmp.gt.f32.partialorder %v1458_v0, 0.0 }
 0x2b3   : > { %v1719_v11 = vmul.f32 0.01, %v1460_v46  ;;  %v1464_v51 = vadd.f32 %v1463_v25, %v11843_v44  ;;  %3010 = vmatmul.mubr.bf16.gmra.mrb[60].mxu0 %v12238_v15  ;;  %3396 = vmatmul.mubr.bf16.gmra.mrb[124].mxu1 %v12238_v15  ;;  %vm1591_vm11 = vcmp.gt.f32.partialorder %v1460_v46, 0.0 }
 0x2b4   : > { %vm1594_vm10 = vcmp.gt.f32.partialorder %v1462_v31, 0.0  ;;  %v1722_v9 = vmul.f32 0.01, %v1462_v31  ;;  %3019 = vmatprep.mubr.bf16.mxu0 %v12253_v54  ;;  %3405 = vmatprep.mubr.bf16.mxu1 %v12253_v54  ;;  %v1846_v26 = vsel %vm1590_vm12, %v1458_v0, %v1718_v34  ;;  %v10389_v34 = vld [vmem:[%s16608_s8 + $0x20] ss:$8 sps:$4 sm:$0xff]  }
 0x2b5   : > { %vm1595_vm13 = vcmp.gt.f32.partialorder %v1464_v51, 0.0  ;;  %v1723_v19 = vmul.f32 0.01, %v1464_v51  ;;  %v1847_v7 = vsel %vm1591_vm11, %v1460_v46, %v1719_v11 }
 0x2b6   : > { %v1850_v39 = vsel %vm1594_vm10, %v1462_v31, %v1722_v9  ;;  %v10391_v31 = vld [vmem:[%s16608_s8 + $0x24] ss:$8 sps:$4 sm:$0xff]  }
 0x2b7   : > { %v1467_v57 = vpop.f32.mrb[92].mxu1  ;;  %v1851_v13 = vsel %vm1595_vm13, %v1464_v51, %v1723_v19  ;;  %v2046_v6 = vpack.c.bf16 %v1850_v39, %v1846_v26 }
 0x2b8   : > { %v1468_v40 = vadd.f32 %v1467_v57, %v11793_v12  ;;  %v1469_v55 = vpop.f32.mrb[93].mxu1  ;;  %v2047_v29 = vpack.c.bf16 %v1851_v13, %v1847_v7 }
 0x2b9   : > { %v1470_v15 = vadd.f32 %v1469_v55, %v11843_v44  ;;  %v1471_v16 = vpop.f32.mrb[94].mxu1 }
 0x2ba   : > { %v1726_v33 = vmul.f32 0.01, %v1468_v40  ;;  %v1472_v48 = vadd.f32 %v1471_v16, %v11793_v12  ;;  %v1473_v53 = vpop.f32.mrb[95].mxu1  ;;  %vm1598_vm15 = vcmp.gt.f32.partialorder %v1468_v40, 0.0  ;;  %v10392_v16 = vld [vmem:[%s16608_s8 + $0x30] ss:$8 sps:$4 sm:$0xff]  }
 0x2bb   : > { %v1727_v54 = vmul.f32 0.01, %v1470_v15  ;;  %v1474_v56 = vadd.f32 %v1473_v53, %v11843_v44  ;;  %3020 = vmatmul.mubr.bf16.gmra.mrb[64].mxu0 %v12250_v63  ;;  %3406 = vmatmul.mubr.bf16.gmra.mrb[128].mxu1 %v12250_v63  ;;  %vm1599_vm1 = vcmp.gt.f32.partialorder %v1470_v15, 0.0  ;;  %v2052_v44 = vld [vmem:[%s16605_s5] sm:$0xf] }
 0x2bc   : > { %vm1602_vm14 = vcmp.gt.f32.partialorder %v1472_v48, 0.0  ;;  %v1730_v30 = vmul.f32 0.01, %v1472_v48  ;;  %3029 = vmatprep.mubr.bf16.mxu0 %v12265_v41  ;;  %3415 = vmatprep.mubr.bf16.mxu1 %v12265_v41  ;;  %v1854_v62 = vsel %vm1598_vm15, %v1468_v40, %v1726_v33  ;;  %v12352_v63 = vrot.slane %v2052_v44, %v11728_v8  ;;  %v10394_v33 = vld [vmem:[%s16608_s8 + $0x34] ss:$8 sps:$4 sm:$0xff]  }
 0x2bd   : > { %vm1603_vm3 = vcmp.gt.f32.partialorder %v1474_v56, 0.0  ;;  %v1731_v36 = vmul.f32 0.01, %v1474_v56  ;;  %v1855_v45 = vsel %vm1599_vm1, %v1470_v15, %v1727_v54  ;;  %v12358_v41 = vrot.slane %v2052_v44, %v11731_v50 }
 0x2be   : > { %v1858_v12 = vsel %vm1602_vm14, %v1472_v48, %v1730_v30  ;;  %v12373_v1 = vrot.slane %v2052_v44, %v17032_v28 }
 0x2bf   : > { %v1859_v18 = vsel %vm1603_vm3, %v1474_v56, %v1731_v36  ;;  %v2050_v3 = vpack.c.bf16 %v1858_v12, %v1854_v62 }
 0x2c0   : > { %v2051_v14 = vpack.c.bf16 %v1859_v18, %v1855_v45 }
 0x2c3   : > { %3030 = vmatmul.mubr.bf16.gmra.mrb[68].mxu0 %v12262_v38  ;;  %3416 = vmatmul.mubr.bf16.gmra.mrb[132].mxu1 %v12262_v38  ;;  %v12355_v38 = vrot.slane %v2052_v44, %v11778_v60  ;;  %v10397_v44 = vld [vmem:[%s16608_s8 + $0x44] ss:$8 sps:$4 sm:$0xff]  }
 0x2c4   : > { %3039 = vmatprep.mubr.bf16.mxu0 %v12277_v27  ;;  %3425 = vmatprep.mubr.bf16.mxu1 %v12277_v27  ;;  %v10385_v27 = vld [vmem:[%s16608_s8 + $0x4] ss:$8 sps:$4 sm:$0xff]  }
 0x2c5   : > { %5559 = vmatprep.subr.bf16.mxu0 %v10385_v27 }
 0x2cb   : > { %3040 = vmatmul.mubr.bf16.gmra.mrb[72].mxu0 %v12274_v59  ;;  %3426 = vmatmul.mubr.bf16.gmra.mrb[136].mxu1 %v12274_v59  ;;  %v10383_v59 = vld [vmem:[%s16608_s8] ss:$8 sps:$4 sm:$0xff]  }
 0x2cc   : > { %3049 = vmatprep.mubr.bf16.mxu0 %v12289_v43  ;;  %3435 = vmatprep.mubr.bf16.mxu1 %v12289_v43 }
 0x2cd   : > { %5560 = vmatpush1.bf16.msra.mxu0 %v10383_v59 }
 0x2ce   : > { %5561 = vmatprep.subr.bf16.mxu0 %v10388_v58 }
 0x2d1   : > { %5562 = vmatpush1.bf16.msra.mxu0 %v10386_v61 }
 0x2d2   : > { %5563 = vmatprep.subr.bf16.mxu0 %v10391_v31 }
 0x2d3   : > { %3050 = vmatmul.mubr.bf16.gmra.mrb[76].mxu0 %v12286_v4  ;;  %3436 = vmatmul.mubr.bf16.gmra.mrb[140].mxu1 %v12286_v4 }
 0x2d4   : > { %3059 = vmatprep.mubr.bf16.mxu0 %v12301_v37  ;;  %3445 = vmatprep.mubr.bf16.mxu1 %v12301_v37 }
 0x2d5   : > { %5564 = vmatpush1.bf16.msra.mxu0 %v10389_v34 }
 0x2d6   : > { %5565 = vmatprep.subr.bf16.mxu0 %v10394_v33 }
 0x2d9   : > { %5566 = vmatpush1.bf16.msra.mxu0 %v10392_v16 }
 0x2da   : > { %5567 = vmatprep.subr.bf16.mxu0 %v10397_v44 }
 0x2db   : > { %3060 = vmatmul.mubr.bf16.gmra.mrb[80].mxu0 %v12298_v23  ;;  %3446 = vmatmul.mubr.bf16.gmra.mrb[144].mxu1 %v12298_v23 }
 0x2dc   : > { %3069 = vmatprep.mubr.bf16.mxu0 %v12313_v35  ;;  %3455 = vmatprep.mubr.bf16.mxu1 %v12313_v35 }
 0x2e3   : > { %3070 = vmatmul.mubr.bf16.gmra.mrb[84].mxu0 %v12310_v47  ;;  %3456 = vmatmul.mubr.bf16.gmra.mrb[148].mxu1 %v12310_v47 }
 0x2e4   : > { %3079 = vmatprep.mubr.bf16.mxu0 %v2047_v29  ;;  %3465 = vmatprep.mubr.bf16.mxu1 %v2047_v29 }
 0x2eb   : > { %3080 = vmatmul.mubr.bf16.gmra.mrb[88].mxu0 %v2046_v6  ;;  %3466 = vmatmul.mubr.bf16.gmra.mrb[152].mxu1 %v2046_v6 }
 0x2ec   : > { %3089 = vmatprep.mubr.bf16.mxu0 %v2051_v14  ;;  %3475 = vmatprep.mubr.bf16.mxu1 %v2051_v14 }
 0x2f3   : > { %3090 = vmatmul.mubr.bf16.gmra.mrb[92].mxu0 %v2050_v3  ;;  %3476 = vmatmul.mubr.bf16.gmra.mrb[156].mxu1 %v2050_v3 }
 0x34e   : > { %v2941_v4 = vpop.f32.mrb[32].mxu0  ;;  %v3327_v43 = vpop.f32.mrb[96].mxu1 }
 0x34f   : > { %v12367_v23 = vadd.f32 %v2941_v4, %v12352_v63  ;;  %v12370_v37 = vadd.f32 %v3327_v43, %v12355_v38  ;;  %v2943_v52 = vpop.f32.mrb[33].mxu0  ;;  %v3329_v2 = vpop.f32.mrb[97].mxu1 }
 0x350   : > { %v12382_v22 = vadd.f32 %v2943_v52, %v12358_v41  ;;  %v2945_v5 = vpop.f32.mrb[34].mxu0  ;;  %v3331_v17 = vpop.f32.mrb[98].mxu1  ;;  %v12399_v35 = vadd.f32 %v3329_v2, %v12373_v1 }
 0x351   : > { %17031 = vst [vmem:[#allocation27_spill] sm:$0xff] %v12370_v37  ;;  %v3681_v20 = vmul.f32 %v12367_v23, %v12367_v23  ;;  %v12387_v49 = vadd.f32 %v2945_v5, %v12352_v63  ;;  %v2947_v21 = vpop.f32.mrb[35].mxu0  ;;  %v3333_v24 = vpop.f32.mrb[99].mxu1  ;;  %v3683_v32 = vmul.f32 %v12370_v37, %v12370_v37  ;;  %v12404_v10 = vadd.f32 %v3331_v17, %v12355_v38  ;;  %v10395_v5 = vld [vmem:[%s16608_s8 + $0x40] ss:$8 sps:$4 sm:$0xff]  }
 0x352   : > { %v3488_v42 = vadd.f32 %v12382_v22, %v12367_v23  ;;  %v3682_v47 = vmul.f32 %v12382_v22, %v12382_v22  ;;  %v12394_v0 = vadd.f32 %v2947_v21, %v12358_v41  ;;  %v12418_v19 = vadd.f32 %v3333_v24, %v12373_v1  ;;  %5568 = vmatpush1.bf16.msra.mxu0 %v10395_v5 }
 0x353   : > { %v3685_v46 = vmul.f32 %v12387_v49, %v12387_v49  ;;  %17033 = vst [vmem:[#allocation28_spill] sm:$0xff] %v12404_v10  ;;  %v3687_v48 = vmul.f32 %v12404_v10, %v12404_v10  ;;  %v3684_v36 = vmul.f32 %v12399_v35, %v12399_v35 }
 0x354   : > { %v3493_v25 = vadd.f32 %v12394_v0, %v12387_v49  ;;  %v3686_v11 = vmul.f32 %v12394_v0, %v12394_v0  ;;  %v3489_v51 = vadd.f32 %v12370_v37, %v3488_v42  ;;  %v3809_v9 = vadd.f32 %v3682_v47, %v3681_v20  ;;  %17034 = vst [vmem:[#allocation29_spill] sm:$0xff] %v12418_v19 }
 0x355   : > { %v3688_v14 = vmul.f32 %v12418_v19, %v12418_v19 }
 0x356   : > { %v2951_v26 = vpop.f32.mrb[36].mxu0  ;;  %v3337_v39 = vpop.f32.mrb[100].mxu1  ;;  %v3490_v57 = vadd.f32 %v12399_v35, %v3489_v51  ;;  %v3494_v7 = vadd.f32 %v12404_v10, %v3493_v25  ;;  %v3810_v13 = vadd.f32 %v3809_v9, %v3683_v32  ;;  %v3814_v15 = vadd.f32 %v3686_v11, %v3685_v46  ;;  %v10400_v32 = vld [vmem:[%s16608_s8 + $0x54] ss:$8 sps:$4 sm:$0xff]  }
 0x357   : > { %v12423_v6 = vadd.f32 %v2951_v26, %v12352_v63  ;;  %v12426_v40 = vadd.f32 %v3337_v39, %v12355_v38  ;;  %v2953_v55 = vpop.f32.mrb[37].mxu0  ;;  %v3339_v29 = vpop.f32.mrb[101].mxu1  ;;  %5569 = vmatprep.subr.bf16.mxu0 %v10400_v32 }
 0x358   : > { %v12437_v53 = vadd.f32 %v2953_v55, %v12358_v41  ;;  %v2955_v54 = vpop.f32.mrb[38].mxu0  ;;  %v3341_v56 = vpop.f32.mrb[102].mxu1  ;;  %3491 = vadd.xlane.f32.xlu0 %v3490_v57  ;;  %v3495_v30 = vadd.f32 %v12418_v19, %v3494_v7  ;;  %v12445_v12 = vadd.f32 %v3339_v29, %v12373_v1  ;;  %v3811_v43 = vadd.f32 %v3810_v13, %v3684_v36 }
 0x359   : > { %17035 = vst [vmem:[#allocation30_spill] sm:$0xff] %v12426_v40  ;;  %v3689_v62 = vmul.f32 %v12423_v6, %v12423_v6  ;;  %v12448_v45 = vadd.f32 %v2955_v54, %v12352_v63  ;;  %v2957_v18 = vpop.f32.mrb[39].mxu0  ;;  %v3343_v3 = vpop.f32.mrb[103].mxu1  ;;  %v3691_v52 = vmul.f32 %v12426_v40, %v12426_v40  ;;  %v12467_v61 = vadd.f32 %v3341_v56, %v12355_v38 }
 0x35a   : > { %17036 = vst [vmem:[#allocation31_spill] sm:$0xff] %v12445_v12  ;;  %v3498_v59 = vadd.f32 %v12437_v53, %v12423_v6  ;;  %v3690_v27 = vmul.f32 %v12437_v53, %v12437_v53  ;;  %v12460_v4 = vadd.f32 %v2957_v18, %v12358_v41  ;;  %3496 = vadd.xlane.f32.xlu1 %v3495_v30 }
 0x35b   : > { %v3693_v2 = vmul.f32 %v12448_v45, %v12448_v45  ;;  %17037 = vst [vmem:[#allocation32_spill] sm:$0xff] %v12467_v61  ;;  %v3815_v58 = vadd.f32 %v3814_v15, %v3687_v48  ;;  %v12478_v42 = vadd.f32 %v3343_v3, %v12373_v1  ;;  %v3695_v7 = vmul.f32 %v12467_v61, %v12467_v61 }
 0x35c   : > { %v3503_v17 = vadd.f32 %v12460_v4, %v12448_v45  ;;  %v3694_v20 = vmul.f32 %v12460_v4, %v12460_v4  ;;  %3812 = vadd.xlane.f32.xlu0 %v3811_v43  ;;  %v3499_v21 = vadd.f32 %v12426_v40, %v3498_v59  ;;  %v3819_v24 = vadd.f32 %v3690_v27, %v3689_v62  ;;  %v10398_v62 = vld [vmem:[%s16608_s8 + $0x50] ss:$8 sps:$4 sm:$0xff]   ;;  %v10403_v59 = vld [vmem:[%s16608_s8 + $0x64] ss:$8 sps:$4 sm:$0xff]  }
 0x35d   : > { %17038 = vst [vmem:[#allocation33_spill] sm:$0xff] %v12478_v42  ;;  %v3816_v47 = vadd.f32 %v3815_v58, %v3688_v14  ;;  %v3692_v16 = vmul.f32 %v12445_v12, %v12445_v12  ;;  %v3696_v36 = vmul.f32 %v12478_v42, %v12478_v42  ;;  %5570 = vmatpush1.bf16.msra.mxu0 %v10398_v62 }
 0x35e   : > { %v2961_v46 = vpop.f32.mrb[40].mxu0  ;;  %v3347_v34 = vpop.f32.mrb[104].mxu1  ;;  %v3500_v31 = vadd.f32 %v12445_v12, %v3499_v21  ;;  %v3504_v25 = vadd.f32 %v12467_v61, %v3503_v17  ;;  %v3820_v11 = vadd.f32 %v3819_v24, %v3691_v52  ;;  %v3824_v57 = vadd.f32 %v3694_v20, %v3693_v2  ;;  %5571 = vmatprep.subr.bf16.mxu0 %v10403_v59 }
 0x35f   : > { %v12486_v51 = vadd.f32 %v2961_v46, %v12352_v63  ;;  %v12489_v9 = vadd.f32 %v3347_v34, %v12355_v38  ;;  %3817 = vadd.xlane.f32.xlu1 %v3816_v47  ;;  %v2963_v26 = vpop.f32.mrb[41].mxu0  ;;  %v3349_v39 = vpop.f32.mrb[105].mxu1  ;;  %v10401_v47 = vld [vmem:[%s16608_s8 + $0x60] ss:$8 sps:$4 sm:$0xff]  }
 0x360   : > { %v12494_v13 = vadd.f32 %v2963_v26, %v12358_v41  ;;  %v2965_v55 = vpop.f32.mrb[42].mxu0  ;;  %v3351_v29 = vpop.f32.mrb[106].mxu1  ;;  %3501 = vadd.xlane.f32.xlu0 %v3500_v31  ;;  %v3505_v15 = vadd.f32 %v12478_v42, %v3504_v25  ;;  %v12502_v48 = vadd.f32 %v3349_v39, %v12373_v1  ;;  %v3821_v44 = vadd.f32 %v3820_v11, %v3692_v16 }
 0x361   : > { %17039 = vst [vmem:[#allocation34_spill] sm:$0xff] %v12489_v9  ;;  %v3697_v33 = vmul.f32 %v12486_v51, %v12486_v51  ;;  %v12505_v54 = vadd.f32 %v2965_v55, %v12352_v63  ;;  %v2967_v56 = vpop.f32.mrb[43].mxu0  ;;  %v3353_v30 = vpop.f32.mrb[107].mxu1  ;;  %v3699_v27 = vmul.f32 %v12489_v9, %v12489_v9  ;;  %v12527_v52 = vadd.f32 %v3351_v29, %v12355_v38 }
 0x362   : > { %17040 = vst [vmem:[#allocation35_spill] sm:$0xff] %v12502_v48  ;;  %v3508_v18 = vadd.f32 %v12494_v13, %v12486_v51  ;;  %v3698_v3 = vmul.f32 %v12494_v13, %v12494_v13  ;;  %v12517_v14 = vadd.f32 %v2967_v56, %v12358_v41  ;;  %v3825_v2 = vadd.f32 %v3824_v57, %v3695_v7 }
 0x363   : > { %v3701_v43 = vmul.f32 %v12505_v54, %v12505_v54  ;;  %17041 = vst [vmem:[#allocation36_spill] sm:$0xff] %v12527_v52  ;;  %3506 = vadd.xlane.f32.xlu1 %v3505_v15  ;;  %v12535_v21 = vadd.f32 %v3353_v30, %v12373_v1  ;;  %v3703_v55 = vmul.f32 %v12527_v52, %v12527_v52  ;;  %v10406_v30 = vld [vmem:[%s16608_s8 + $0x74] ss:$8 sps:$4 sm:$0xff]  }
 0x364   : > { %v3513_v58 = vadd.f32 %v12517_v14, %v12505_v54  ;;  %v3702_v5 = vmul.f32 %v12517_v14, %v12517_v14  ;;  %3822 = vadd.xlane.f32.xlu0 %v3821_v44  ;;  %v3509_v17 = vadd.f32 %v12489_v9, %v3508_v18  ;;  %v3829_v20 = vadd.f32 %v3698_v3, %v3697_v33 }
 0x365   : > { %17042 = vst [vmem:[#allocation37_spill] sm:$0xff] %v12535_v21  ;;  %v3826_v24 = vadd.f32 %v3825_v2, %v3696_v36  ;;  %v3700_v56 = vmul.f32 %v12502_v48, %v12502_v48  ;;  %v3704_v59 = vmul.f32 %v12535_v21, %v12535_v21  ;;  %5572 = vmatpush1.bf16.msra.mxu0 %v10401_v47 }
 0x366   : > { %v2971_v32 = vpop.f32.mrb[44].mxu0  ;;  %v3357_v46 = vpop.f32.mrb[108].mxu1  ;;  %v3510_v34 = vadd.f32 %v12502_v48, %v3509_v17  ;;  %v3514_v31 = vadd.f32 %v12527_v52, %v3513_v58  ;;  %v3830_v25 = vadd.f32 %v3829_v20, %v3699_v27  ;;  %v3834_v7 = vadd.f32 %v3702_v5, %v3701_v43  ;;  %v10404_v27 = vld [vmem:[%s16608_s8 + $0x70] ss:$8 sps:$4 sm:$0xff]   ;;  %5573 = vmatprep.subr.bf16.mxu0 %v10406_v30 }
 0x367   : > { %v12543_v11 = vadd.f32 %v2971_v32, %v12352_v63  ;;  %v12546_v26 = vadd.f32 %v3357_v46, %v12355_v38  ;;  %3827 = vadd.xlane.f32.xlu1 %v3826_v24  ;;  %v2973_v39 = vpop.f32.mrb[45].mxu0  ;;  %v3359_v57 = vpop.f32.mrb[109].mxu1 }
 0x368   : > { %v12551_v29 = vadd.f32 %v2973_v39, %v12358_v41  ;;  %v2975_v15 = vpop.f32.mrb[46].mxu0  ;;  %v3361_v16 = vpop.f32.mrb[110].mxu1  ;;  %3511 = vadd.xlane.f32.xlu0 %v3510_v34  ;;  %v3515_v33 = vadd.f32 %v12535_v21, %v3514_v31  ;;  %v12562_v62 = vadd.f32 %v3359_v57, %v12373_v1  ;;  %v3831_v5 = vadd.f32 %v3830_v25, %v3700_v56 }
 0x369   : > { %17043 = vst [vmem:[#allocation38_spill] sm:$0xff] %v12546_v26  ;;  %v3705_v36 = vmul.f32 %v12543_v11, %v12543_v11  ;;  %v12565_v18 = vadd.f32 %v2975_v15, %v12352_v63  ;;  %v2977_v3 = vpop.f32.mrb[47].mxu0  ;;  %v3363_v44 = vpop.f32.mrb[111].mxu1  ;;  %v3707_v17 = vmul.f32 %v12546_v26, %v12546_v26  ;;  %v12584_v24 = vadd.f32 %v3361_v16, %v12355_v38 }
 0x36a   : > { %17044 = vst [vmem:[#allocation39_spill] sm:$0xff] %v12562_v62  ;;  %v3518_v43 = vadd.f32 %v12551_v29, %v12543_v11  ;;  %v3706_v2 = vmul.f32 %v12551_v29, %v12551_v29  ;;  %v12577_v58 = vadd.f32 %v2977_v3, %v12358_v41  ;;  %v3835_v47 = vadd.f32 %v3834_v7, %v3703_v55 }
 0x36b   : > { %v3709_v20 = vmul.f32 %v12565_v18, %v12565_v18  ;;  %17045 = vst [vmem:[#allocation40_spill] sm:$0xff] %v12584_v24  ;;  %3516 = vadd.xlane.f32.xlu1 %v3515_v33  ;;  %v12592_v25 = vadd.f32 %v3363_v44, %v12373_v1  ;;  %5574 = vmatpush1.bf16.msra.mxu0 %v10404_v27 }
 0x36c   : > { %v3523_v32 = vadd.f32 %v12577_v58, %v12565_v18  ;;  %v3710_v46 = vmul.f32 %v12577_v58, %v12577_v58  ;;  %3832 = vadd.xlane.f32.xlu0 %v3831_v5  ;;  %v3519_v34 = vadd.f32 %v12546_v26, %v3518_v43  ;;  %v3839_v31 = vadd.f32 %v3706_v2, %v3705_v36 }
 0x36d   : > { %17046 = vst [vmem:[#allocation41_spill] sm:$0xff] %v12592_v25  ;;  %v3836_v39 = vadd.f32 %v3835_v47, %v3704_v59  ;;  %v3711_v44 = vmul.f32 %v12584_v24, %v12584_v24  ;;  %v3708_v5 = vmul.f32 %v12562_v62, %v12562_v62 }
 0x36e   : > { %v2981_v57 = vpop.f32.mrb[48].mxu0  ;;  %v3367_v15 = vpop.f32.mrb[112].mxu1  ;;  %v3520_v16 = vadd.f32 %v12562_v62, %v3519_v34  ;;  %v3524_v7 = vadd.f32 %v12584_v24, %v3523_v32  ;;  %v3840_v55 = vadd.f32 %v3839_v31, %v3707_v17  ;;  %v3844_v3 = vadd.f32 %v3710_v46, %v3709_v20 }
 0x36f   : > { %v12597_v33 = vadd.f32 %v2981_v57, %v12352_v63  ;;  %v12600_v56 = vadd.f32 %v3367_v15, %v12355_v38  ;;  %3837 = vadd.xlane.f32.xlu1 %v3836_v39  ;;  %v2983_v30 = vpop.f32.mrb[49].mxu0  ;;  %v3369_v36 = vpop.f32.mrb[113].mxu1  ;;  %v3712_v34 = vmul.f32 %v12592_v25, %v12592_v25 }
 0x370   : > { %v12605_v59 = vadd.f32 %v2983_v30, %v12358_v41  ;;  %v2985_v27 = vpop.f32.mrb[50].mxu0  ;;  %v3371_v43 = vpop.f32.mrb[114].mxu1  ;;  %3521 = vadd.xlane.f32.xlu0 %v3520_v16  ;;  %v3525_v2 = vadd.f32 %v12592_v25, %v3524_v7  ;;  %v12613_v47 = vadd.f32 %v3369_v36, %v12373_v1  ;;  %v3841_v15 = vadd.f32 %v3840_v55, %v3708_v5  ;;  %v10407_v16 = vld [vmem:[%s16608_s8 + $0x80] ss:$8 sps:$4 sm:$0xff]   ;;  %v10409_v7 = vld [vmem:[%s16608_s8 + $0x84] ss:$8 sps:$4 sm:$0xff]  }
 0x371   : > { %17047 = vst [vmem:[#allocation42_spill] sm:$0xff] %v12597_v33  ;;  %17048 = vst [vmem:[#allocation43_spill] sm:$0xff] %v12600_v56  ;;  %v3713_v17 = vmul.f32 %v12597_v33, %v12597_v33  ;;  %v12616_v20 = vadd.f32 %v2985_v27, %v12352_v63  ;;  %v2987_v32 = vpop.f32.mrb[51].mxu0  ;;  %v3373_v46 = vpop.f32.mrb[115].mxu1  ;;  %v3715_v30 = vmul.f32 %v12600_v56, %v12600_v56  ;;  %5575 = vmatprep.subr.bf16.mxu0 %v10409_v7 }
 0x372   : > { %17049 = vst [vmem:[#allocation44_spill] sm:$0xff] %v12605_v59  ;;  %17050 = vst [vmem:[#allocation45_spill] sm:$0xff] %v12613_v47  ;;  %v3528_v31 = vadd.f32 %v12605_v59, %v12597_v33  ;;  %v3714_v39 = vmul.f32 %v12605_v59, %v12605_v59  ;;  %v12625_v57 = vadd.f32 %v2987_v32, %v12358_v41  ;;  %5576 = vmatpush1.bf16.msra.mxu0 %v10407_v16 }
 0x373   : > { %17051 = vst [vmem:[#allocation46_spill] sm:$0xff] %v12616_v20  ;;  %v3717_v36 = vmul.f32 %v12616_v20, %v12616_v20  ;;  %v12638_v27 = vadd.f32 %v3371_v43, %v12355_v38  ;;  %3526 = vadd.xlane.f32.xlu1 %v3525_v2  ;;  %v3845_v32 = vadd.f32 %v3844_v3, %v3711_v44  ;;  %v10412_v43 = vld [vmem:[%s16608_s8 + $0x94] ss:$8 sps:$4 sm:$0xff]  }
 0x374   : > { %17052 = vst [vmem:[#allocation47_spill] sm:$0xff] %v12625_v57  ;;  %v3533_v55 = vadd.f32 %v12625_v57, %v12616_v20  ;;  %v3718_v5 = vmul.f32 %v12625_v57, %v12625_v57  ;;  %3842 = vadd.xlane.f32.xlu0 %v3841_v15  ;;  %v3529_v60 = vadd.f32 %v12600_v56, %v3528_v31 }
 0x375   : > { %17053 = vst [vmem:[#allocation48_spill] sm:$0xff] %v12638_v27  ;;  %v3849_v28 = vadd.f32 %v3714_v39, %v3713_v17  ;;  %v12646_v59 = vadd.f32 %v3373_v46, %v12373_v1  ;;  %v3846_v33 = vadd.f32 %v3845_v32, %v3712_v34  ;;  %v10410_v17 = vld [vmem:[%s16608_s8 + $0x90] ss:$8 sps:$4 sm:$0xff]   ;;  %5577 = vmatprep.subr.bf16.mxu0 %v10412_v43 }
 0x376   : > { %v2991_v3 = vpop.f32.mrb[52].mxu0  ;;  %v3377_v44 = vpop.f32.mrb[116].mxu1  ;;  %v3530_v2 = vadd.f32 %v12613_v47, %v3529_v60  ;;  %v3534_v20 = vadd.f32 %v12638_v27, %v3533_v55  ;;  %v3854_v15 = vadd.f32 %v3718_v5, %v3717_v36  ;;  %v3719_v60 = vmul.f32 %v12638_v27, %v12638_v27  ;;  %5578 = vmatpush1.bf16.msra.mxu0 %v10410_v17 }
 0x377   : > { %17054 = vst [vmem:[#allocation49_spill] sm:$0xff] %v12646_v59  ;;  %v3850_v57 = vadd.f32 %v3849_v28, %v3715_v30  ;;  %v12657_v46 = vadd.f32 %v2991_v3, %v12352_v63  ;;  %v12660_v34 = vadd.f32 %v3377_v44, %v12355_v38  ;;  %3847 = vadd.xlane.f32.xlu1 %v3846_v33  ;;  %v2993_v31 = vpop.f32.mrb[53].mxu0  ;;  %v3379_v39 = vpop.f32.mrb[117].mxu1 }
 0x378   : > { %v12665_v28 = vadd.f32 %v2993_v31, %v12358_v41  ;;  %v2995_v16 = vpop.f32.mrb[54].mxu0  ;;  %v3381_v7 = vpop.f32.mrb[118].mxu1  ;;  %3531 = vadd.xlane.f32.xlu0 %v3530_v2  ;;  %v3535_v30 = vadd.f32 %v12646_v59, %v3534_v20  ;;  %v3716_v32 = vmul.f32 %v12613_v47, %v12613_v47  ;;  %v12673_v36 = vadd.f32 %v3379_v39, %v12373_v1  ;;  %v10413_v39 = vld [vmem:[%s16608_s8 + $0xa0] ss:$8 sps:$4 sm:$0xff]  }
 0x379   : > { %17055 = vst [vmem:[#allocation50_spill] sm:$0xff] %v12657_v46  ;;  %17056 = vst [vmem:[#allocation51_spill] sm:$0xff] %v12660_v34  ;;  %v3721_v33 = vmul.f32 %v12657_v46, %v12657_v46  ;;  %v12676_v55 = vadd.f32 %v2995_v16, %v12352_v63  ;;  %v2997_v5 = vpop.f32.mrb[55].mxu0  ;;  %v3383_v43 = vpop.f32.mrb[119].mxu1  ;;  %v3720_v3 = vmul.f32 %v12646_v59, %v12646_v59  ;;  %v10415_v16 = vld [vmem:[%s16608_s8 + $0xa4] ss:$8 sps:$4 sm:$0xff]  }
 0x37a   : > { %17057 = vst [vmem:[#allocation52_spill] sm:$0xff] %v12665_v28  ;;  %17058 = vst [vmem:[#allocation53_spill] sm:$0xff] %v12673_v36  ;;  %v3538_v20 = vadd.f32 %v12665_v28, %v12657_v46  ;;  %v3722_v44 = vmul.f32 %v12665_v28, %v12665_v28  ;;  %v12685_v2 = vadd.f32 %v2997_v5, %v12358_v41  ;;  %5579 = vmatprep.subr.bf16.mxu0 %v10415_v16  ;;  %v17161_v21 = vld [vmem:[#allocation44_spill] sm:$0xff] }
 0x37b   : > { %17059 = vst [vmem:[#allocation54_spill] sm:$0xff] %v12676_v55  ;;  %v3851_v31 = vadd.f32 %v3850_v57, %v3716_v32  ;;  %v3723_v59 = vmul.f32 %v12660_v34, %v12660_v34  ;;  %v3725_v46 = vmul.f32 %v12676_v55, %v12676_v55  ;;  %v12698_v28 = vadd.f32 %v3381_v7, %v12355_v38  ;;  %v10418_v7 = vld [vmem:[%s16608_s8 + $0xb4] ss:$8 sps:$4 sm:$0xff]  }
 0x37c   : > { %17060 = vst [vmem:[#allocation55_spill] sm:$0xff] %v12685_v2  ;;  %3536 = vadd.xlane.f32.xlu1 %v3535_v30  ;;  %v3855_v57 = vadd.f32 %v3854_v15, %v3719_v60  ;;  %v3543_v17 = vadd.f32 %v12685_v2, %v12676_v55  ;;  %v3726_v32 = vmul.f32 %v12685_v2, %v12685_v2 }
 0x37d   : > { %17061 = vst [vmem:[#allocation56_spill] sm:$0xff] %v12698_v28  ;;  %3852 = vadd.xlane.f32.xlu0 %v3851_v31  ;;  %v3539_v5 = vadd.f32 %v12660_v34, %v3538_v20  ;;  %v3859_v27 = vadd.f32 %v3722_v44, %v3721_v33  ;;  %v12706_v47 = vadd.f32 %v3383_v43, %v12373_v1  ;;  %v10416_v33 = vld [vmem:[%s16608_s8 + $0xb0] ss:$8 sps:$4 sm:$0xff]  }
 0x37e   : > { %v3856_v56 = vadd.f32 %v3855_v57, %v3720_v3  ;;  %v3001_v15 = vpop.f32.mrb[56].mxu0  ;;  %v3387_v60 = vpop.f32.mrb[120].mxu1  ;;  %v3544_v55 = vadd.f32 %v12698_v28, %v3543_v17  ;;  %5580 = vmatpush1.bf16.msra.mxu0 %v10413_v39  ;;  %v3864_v31 = vadd.f32 %v3726_v32, %v3725_v46  ;;  %v3727_v16 = vmul.f32 %v12698_v28, %v12698_v28 }
 0x37f   : > { %17062 = vst [vmem:[#allocation57_spill] sm:$0xff] %v12706_v47  ;;  %v3540_v30 = vadd.f32 %v12673_v36, %v3539_v5  ;;  %v3860_v2 = vadd.f32 %v3859_v27, %v3723_v59  ;;  %v12717_v43 = vadd.f32 %v3001_v15, %v12352_v63  ;;  %v12720_v3 = vadd.f32 %v3387_v60, %v12355_v38  ;;  %v3003_v20 = vpop.f32.mrb[57].mxu0  ;;  %v3389_v44 = vpop.f32.mrb[121].mxu1 }
 0x380   : > { %3857 = vadd.xlane.f32.xlu1 %v3856_v56  ;;  %5581 = vmatprep.subr.bf16.mxu0 %v10418_v7  ;;  %v12725_v59 = vadd.f32 %v3003_v20, %v12358_v41  ;;  %v3005_v27 = vpop.f32.mrb[58].mxu0  ;;  %v3391_v39 = vpop.f32.mrb[122].mxu1  ;;  %v3545_v57 = vadd.f32 %v12706_v47, %v3544_v55  ;;  %v3724_v17 = vmul.f32 %v12673_v36, %v12673_v36 }
 0x381   : > { %17063 = vst [vmem:[#allocation58_spill] sm:$0xff] %v12717_v43  ;;  %17064 = vst [vmem:[#allocation59_spill] sm:$0xff] %v12720_v3  ;;  %3541 = vadd.xlane.f32.xlu0 %v3540_v30  ;;  %v3729_v56 = vmul.f32 %v12717_v43, %v12717_v43  ;;  %v12733_v46 = vadd.f32 %v3389_v44, %v12373_v1  ;;  %v12736_v32 = vadd.f32 %v3005_v27, %v12352_v63  ;;  %v3007_v5 = vpop.f32.mrb[59].mxu0  ;;  %v3393_v7 = vpop.f32.mrb[123].mxu1  ;;  %v10419_v44 = vld [vmem:[%s16608_s8 + $0xc0] ss:$8 sps:$4 sm:$0xff]  }
 0x382   : > { %17065 = vst [vmem:[#allocation60_spill] sm:$0xff] %v12725_v59  ;;  %v3728_v15 = vmul.f32 %v12706_v47, %v12706_v47  ;;  %v3548_v55 = vadd.f32 %v12725_v59, %v12717_v43  ;;  %v3730_v60 = vmul.f32 %v12725_v59, %v12725_v59  ;;  %v12745_v30 = vadd.f32 %v3007_v5, %v12358_v41  ;;  %v10421_v27 = vld [vmem:[%s16608_s8 + $0xc4] ss:$8 sps:$4 sm:$0xff]  }
 0x383   : > { %17066 = vst [vmem:[#allocation61_spill] sm:$0xff] %v12733_v46  ;;  %17067 = vst [vmem:[#allocation62_spill] sm:$0xff] %v12736_v32  ;;  %v3861_v20 = vadd.f32 %v3860_v2, %v3724_v17  ;;  %5582 = vmatpush1.bf16.msra.mxu0 %v10416_v33  ;;  %v3731_v47 = vmul.f32 %v12720_v3, %v12720_v3  ;;  %v3733_v43 = vmul.f32 %v12736_v32, %v12736_v32 }
 0x384   : > { %17068 = vst [vmem:[#allocation63_spill] sm:$0xff] %v12745_v30  ;;  %v12758_v59 = vadd.f32 %v3391_v39, %v12355_v38  ;;  %3546 = vadd.xlane.f32.xlu1 %v3545_v57  ;;  %v3865_v2 = vadd.f32 %v3864_v31, %v3727_v16  ;;  %v3553_v33 = vadd.f32 %v12745_v30, %v12736_v32  ;;  %v10424_v39 = vld [vmem:[%s16608_s8 + $0xd4] ss:$8 sps:$4 sm:$0xff]  }
 0x385   : > { %v3734_v17 = vmul.f32 %v12745_v30, %v12745_v30  ;;  %3862 = vadd.xlane.f32.xlu0 %v3861_v20  ;;  %v3549_v5 = vadd.f32 %v12720_v3, %v3548_v55  ;;  %v3869_v28 = vadd.f32 %v3730_v60, %v3729_v56  ;;  %v12766_v36 = vadd.f32 %v3393_v7, %v12373_v1  ;;  %v10422_v56 = vld [vmem:[%s16608_s8 + $0xd0] ss:$8 sps:$4 sm:$0xff]  }
 0x386   : > { %17069 = vst [vmem:[#allocation64_spill] sm:$0xff] %v12758_v59  ;;  %v3866_v34 = vadd.f32 %v3865_v2, %v3728_v15  ;;  %5583 = vmatprep.subr.bf16.mxu0 %v10421_v27  ;;  %v3011_v31 = vpop.f32.mrb[60].mxu0  ;;  %v3397_v16 = vpop.f32.mrb[124].mxu1  ;;  %v3554_v32 = vadd.f32 %v12758_v59, %v3553_v33  ;;  %v3735_v27 = vmul.f32 %v12758_v59, %v12758_v59 }
 0x387   : > { %17070 = vst [vmem:[#allocation65_spill] sm:$0xff] %v12766_v36  ;;  %v3550_v57 = vadd.f32 %v12733_v46, %v3549_v5  ;;  %v3870_v30 = vadd.f32 %v3869_v28, %v3731_v47  ;;  %5584 = vmatpush1.bf16.msra.mxu0 %v10419_v44  ;;  %v12777_v7 = vadd.f32 %v3011_v31, %v12352_v63  ;;  %v3013_v55 = vpop.f32.mrb[61].mxu0  ;;  %v3399_v60 = vpop.f32.mrb[125].mxu1 }
 0x388   : > { %v12780_v15 = vadd.f32 %v3397_v16, %v12355_v38  ;;  %3867 = vadd.xlane.f32.xlu1 %v3866_v34  ;;  %v3874_v20 = vadd.f32 %v3734_v17, %v3733_v43  ;;  %5585 = vmatprep.subr.bf16.mxu0 %v10424_v39  ;;  %v12785_v47 = vadd.f32 %v3013_v55, %v12358_v41  ;;  %v3015_v28 = vpop.f32.mrb[62].mxu0  ;;  %v3401_v44 = vpop.f32.mrb[126].mxu1 }
 0x389   : > { %17071 = vst [vmem:[#allocation66_spill] sm:$0xff] %v12777_v7  ;;  %3551 = vadd.xlane.f32.xlu0 %v3550_v57  ;;  %v3555_v2 = vadd.f32 %v12766_v36, %v3554_v32  ;;  %v3732_v33 = vmul.f32 %v12733_v46, %v12733_v46  ;;  %v3737_v34 = vmul.f32 %v12777_v7, %v12777_v7  ;;  %v3017_v5 = vpop.f32.mrb[63].mxu0  ;;  %v3403_v39 = vpop.f32.mrb[127].mxu1 }
 0x38a   : > { %17072 = vst [vmem:[#allocation67_spill] sm:$0xff] %v12780_v15  ;;  %17073 = vst [vmem:[#allocation68_spill] sm:$0xff] %v12785_v47  ;;  %v12793_v43 = vadd.f32 %v3399_v60, %v12373_v1  ;;  %v12796_v17 = vadd.f32 %v3015_v28, %v12352_v63  ;;  %v3736_v31 = vmul.f32 %v12766_v36, %v12766_v36  ;;  %v10425_v60 = vld [vmem:[%s16608_s8 + $0xe0] ss:$8 sps:$4 sm:$0xff]   ;;  %v10427_v28 = vld [vmem:[%s16608_s8 + $0xe4] ss:$8 sps:$4 sm:$0xff]  }
 0x38b   : > { %v3558_v32 = vadd.f32 %v12785_v47, %v12777_v7  ;;  %v3738_v16 = vmul.f32 %v12785_v47, %v12785_v47  ;;  %v12805_v57 = vadd.f32 %v3017_v5, %v12358_v41  ;;  %v3871_v55 = vadd.f32 %v3870_v30, %v3732_v33  ;;  %5586 = vmatpush1.bf16.msra.mxu0 %v10422_v56 }
 0x38c   : > { %17074 = vst [vmem:[#allocation69_spill] sm:$0xff] %v12793_v43  ;;  %17075 = vst [vmem:[#allocation70_spill] sm:$0xff] %v12796_v17  ;;  %v3739_v36 = vmul.f32 %v12780_v15, %v12780_v15  ;;  %v3741_v7 = vmul.f32 %v12796_v17, %v12796_v17  ;;  %v12818_v47 = vadd.f32 %v3401_v44, %v12355_v38  ;;  %3556 = vadd.xlane.f32.xlu1 %v3555_v2  ;;  %v10430_v44 = vld [vmem:[%s16608_s8 + $0xf4] ss:$8 sps:$4 sm:$0xff]  }
 0x38d   : > { %17076 = vst [vmem:[#allocation71_spill] sm:$0xff] %v12805_v57  ;;  %v3875_v30 = vadd.f32 %v3874_v20, %v3735_v27  ;;  %v3563_v56 = vadd.f32 %v12805_v57, %v12796_v17  ;;  %v3742_v33 = vmul.f32 %v12805_v57, %v12805_v57  ;;  %3872 = vadd.xlane.f32.xlu0 %v3871_v55 }
 0x38e   : > { %17077 = vst [vmem:[#allocation72_spill] sm:$0xff] %v12818_v47  ;;  %v3559_v5 = vadd.f32 %v12780_v15, %v3558_v32  ;;  %v3879_v59 = vadd.f32 %v3738_v16, %v3737_v34  ;;  %v12826_v46 = vadd.f32 %v3403_v39, %v12373_v1  ;;  %5587 = vmatprep.subr.bf16.mxu0 %v10427_v28  ;;  %v3021_v20 = vpop.f32.mrb[64].mxu0  ;;  %v3407_v27 = vpop.f32.mrb[128].mxu1  ;;  %v10428_v34 = vld [vmem:[%s16608_s8 + $0xf0] ss:$8 sps:$4 sm:$0xff]  }
 0x38f   : > { %v3876_v3 = vadd.f32 %v3875_v30, %v3736_v31  ;;  %v3564_v17 = vadd.f32 %v12818_v47, %v3563_v56  ;;  %5588 = vmatpush1.bf16.msra.mxu0 %v10425_v60  ;;  %v12837_v39 = vadd.f32 %v3021_v20, %v12352_v63  ;;  %v12840_v31 = vadd.f32 %v3407_v27, %v12355_v38  ;;  %v3023_v32 = vpop.f32.mrb[65].mxu0  ;;  %v3409_v16 = vpop.f32.mrb[129].mxu1 }
 0x390   : > { %17078 = vst [vmem:[#allocation73_spill] sm:$0xff] %v12826_v46  ;;  %v3560_v2 = vadd.f32 %v12793_v43, %v3559_v5  ;;  %v3880_v57 = vadd.f32 %v3879_v59, %v3739_v36  ;;  %v3884_v55 = vadd.f32 %v3742_v33, %v3741_v7  ;;  %5589 = vmatprep.subr.bf16.mxu0 %v10430_v44  ;;  %v3025_v59 = vpop.f32.mrb[66].mxu0  ;;  %v3411_v60 = vpop.f32.mrb[130].mxu1 }
 0x391   : > { %17079 = vst [vmem:[#allocation74_spill] sm:$0xff] %v12837_v39  ;;  %17080 = vst [vmem:[#allocation75_spill] sm:$0xff] %v12840_v31  ;;  %3877 = vadd.xlane.f32.xlu1 %v3876_v3  ;;  %v3743_v28 = vmul.f32 %v12818_v47, %v12818_v47  ;;  %v12845_v36 = vadd.f32 %v3023_v32, %v12358_v41  ;;  %v3565_v30 = vadd.f32 %v12826_v46, %v3564_v17  ;;  %v3027_v5 = vpop.f32.mrb[67].mxu0  ;;  %v3413_v44 = vpop.f32.mrb[131].mxu1 }
 0x392   : > { %3561 = vadd.xlane.f32.xlu0 %v3560_v2  ;;  %v3740_v56 = vmul.f32 %v12793_v43, %v12793_v43  ;;  %v3745_v3 = vmul.f32 %v12837_v39, %v12837_v39  ;;  %v12853_v7 = vadd.f32 %v3409_v16, %v12373_v1  ;;  %v12856_v33 = vadd.f32 %v3025_v59, %v12352_v63 }
 0x393   : > { %17081 = vst [vmem:[#allocation76_spill] sm:$0xff] %v12845_v36  ;;  %v3744_v20 = vmul.f32 %v12826_v46, %v12826_v46  ;;  %v3568_v17 = vadd.f32 %v12845_v36, %v12837_v39  ;;  %v3746_v27 = vmul.f32 %v12845_v36, %v12845_v36  ;;  %v12865_v2 = vadd.f32 %v3027_v5, %v12358_v41 }
 0x394   : > { %17082 = vst [vmem:[#allocation77_spill] sm:$0xff] %v12853_v7  ;;  %17083 = vst [vmem:[#allocation78_spill] sm:$0xff] %v12856_v33  ;;  %v3881_v32 = vadd.f32 %v3880_v57, %v3740_v56  ;;  %5590 = vmatpush1.bf16.msra.mxu0 %v10428_v34  ;;  %v3747_v16 = vmul.f32 %v12840_v31, %v12840_v31  ;;  %v3749_v59 = vmul.f32 %v12856_v33, %v12856_v33 }
 0x395   : > { %17084 = vst [vmem:[#allocation79_spill] sm:$0xff] %v12865_v2  ;;  %v12872_v47 = vadd.f32 %v3411_v60, %v12355_v38  ;;  %3566 = vadd.xlane.f32.xlu1 %v3565_v30  ;;  %v3885_v46 = vadd.f32 %v3884_v55, %v3743_v28  ;;  %v3573_v39 = vadd.f32 %v12865_v2, %v12856_v33 }
 0x396   : > { %v3750_v5 = vmul.f32 %v12865_v2, %v12865_v2  ;;  %3882 = vadd.xlane.f32.xlu0 %v3881_v32  ;;  %v3569_v57 = vadd.f32 %v12840_v31, %v3568_v17  ;;  %v3889_v34 = vadd.f32 %v3746_v27, %v3745_v3  ;;  %v12880_v56 = vadd.f32 %v3413_v44, %v12373_v1  ;;  %v3031_v43 = vpop.f32.mrb[68].mxu0  ;;  %v3417_v15 = vpop.f32.mrb[132].mxu1 }
 0x397   : > { %17085 = vst [vmem:[#allocation80_spill] sm:$0xff] %v12872_v47  ;;  %v3886_v36 = vadd.f32 %v3885_v46, %v3744_v20  ;;  %v3574_v55 = vadd.f32 %v12872_v47, %v3573_v39  ;;  %v12885_v30 = vadd.f32 %v3031_v43, %v12352_v63  ;;  %v12888_v2 = vadd.f32 %v3417_v15, %v12355_v38  ;;  %v3033_v17 = vpop.f32.mrb[69].mxu0  ;;  %v3419_v3 = vpop.f32.mrb[133].mxu1 }
 0x398   : > { %17086 = vst [vmem:[#allocation81_spill] sm:$0xff] %v12880_v56  ;;  %v3570_v60 = vadd.f32 %v12853_v7, %v3569_v57  ;;  %v3890_v28 = vadd.f32 %v3889_v34, %v3747_v16  ;;  %v3894_v27 = vadd.f32 %v3750_v5, %v3749_v59  ;;  %v3751_v46 = vmul.f32 %v12872_v47, %v12872_v47  ;;  %v3035_v20 = vpop.f32.mrb[70].mxu0  ;;  %v3421_v32 = vpop.f32.mrb[134].mxu1 }
 0x399   : > { %17087 = vst [vmem:[#allocation82_spill] sm:$0xff] %v12885_v30  ;;  %17088 = vst [vmem:[#allocation83_spill] sm:$0xff] %v12888_v2  ;;  %3887 = vadd.xlane.f32.xlu1 %v3886_v36  ;;  %v12893_v44 = vadd.f32 %v3033_v17, %v12358_v41  ;;  %v3575_v39 = vadd.f32 %v12880_v56, %v3574_v55  ;;  %v3748_v43 = vmul.f32 %v12853_v7, %v12853_v7  ;;  %v3037_v59 = vpop.f32.mrb[71].mxu0  ;;  %v3423_v5 = vpop.f32.mrb[135].mxu1 }
 0x39a   : > { %3571 = vadd.xlane.f32.xlu0 %v3570_v60  ;;  %v3753_v15 = vmul.f32 %v12885_v30, %v12885_v30  ;;  %v12901_v36 = vadd.f32 %v3419_v3, %v12373_v1  ;;  %v12904_v16 = vadd.f32 %v3035_v20, %v12352_v63  ;;  %v3752_v57 = vmul.f32 %v12880_v56, %v12880_v56 }
 0x39b   : > { %17089 = vst [vmem:[#allocation84_spill] sm:$0xff] %v12893_v44  ;;  %v3578_v34 = vadd.f32 %v12893_v44, %v12885_v30  ;;  %v3754_v60 = vmul.f32 %v12893_v44, %v12893_v44  ;;  %v12913_v55 = vadd.f32 %v3037_v59, %v12358_v41  ;;  %v3891_v17 = vadd.f32 %v3890_v28, %v3748_v43 }
 0x39c   : > { %17090 = vst [vmem:[#allocation85_spill] sm:$0xff] %v12901_v36  ;;  %17091 = vst [vmem:[#allocation86_spill] sm:$0xff] %v12904_v16  ;;  %v3755_v3 = vmul.f32 %v12888_v2, %v12888_v2  ;;  %v3757_v20 = vmul.f32 %v12904_v16, %v12904_v16  ;;  %v12920_v47 = vadd.f32 %v3421_v32, %v12355_v38 }
 0x39d   : > { %17092 = vst [vmem:[#allocation87_spill] sm:$0xff] %v12913_v55  ;;  %3576 = vadd.xlane.f32.xlu1 %v3575_v39  ;;  %v3895_v56 = vadd.f32 %v3894_v27, %v3751_v46  ;;  %v3583_v30 = vadd.f32 %v12913_v55, %v12904_v16  ;;  %v3758_v44 = vmul.f32 %v12913_v55, %v12913_v55 }
 0x39e   : > { %17093 = vst [vmem:[#allocation88_spill] sm:$0xff] %v12920_v47  ;;  %3892 = vadd.xlane.f32.xlu0 %v3891_v17  ;;  %v3579_v28 = vadd.f32 %v12888_v2, %v3578_v34  ;;  %v3899_v43 = vadd.f32 %v3754_v60, %v3753_v15  ;;  %v12928_v59 = vadd.f32 %v3423_v5, %v12373_v1  ;;  %v3041_v7 = vpop.f32.mrb[72].mxu0  ;;  %v3427_v31 = vpop.f32.mrb[136].mxu1 }
 0x39f   : > { %v3896_v33 = vadd.f32 %v3895_v56, %v3752_v57  ;;  %v3584_v27 = vadd.f32 %v12920_v47, %v3583_v30  ;;  %v12933_v39 = vadd.f32 %v3041_v7, %v12352_v63  ;;  %v12936_v55 = vadd.f32 %v3427_v31, %v12355_v38  ;;  %v3043_v34 = vpop.f32.mrb[73].mxu0  ;;  %v3429_v15 = vpop.f32.mrb[137].mxu1 }
 0x3a0   : > { %17094 = vst [vmem:[#allocation89_spill] sm:$0xff] %v12928_v59  ;;  %v3580_v32 = vadd.f32 %v12901_v36, %v3579_v28  ;;  %v3900_v46 = vadd.f32 %v3899_v43, %v3755_v3  ;;  %v3904_v60 = vadd.f32 %v3758_v44, %v3757_v20  ;;  %v3759_v56 = vmul.f32 %v12920_v47, %v12920_v47  ;;  %v3045_v57 = vpop.f32.mrb[74].mxu0  ;;  %v3431_v17 = vpop.f32.mrb[138].mxu1 }
 0x3a1   : > { %17095 = vst [vmem:[#allocation90_spill] sm:$0xff] %v12933_v39  ;;  %17096 = vst [vmem:[#allocation91_spill] sm:$0xff] %v12936_v55  ;;  %3897 = vadd.xlane.f32.xlu1 %v3896_v33  ;;  %v12941_v5 = vadd.f32 %v3043_v34, %v12358_v41  ;;  %v3585_v30 = vadd.f32 %v12928_v59, %v3584_v27  ;;  %v3756_v7 = vmul.f32 %v12901_v36, %v12901_v36  ;;  %v3047_v3 = vpop.f32.mrb[75].mxu0  ;;  %v3433_v20 = vpop.f32.mrb[139].mxu1 }
 0x3a2   : > { %3581 = vadd.xlane.f32.xlu0 %v3580_v32  ;;  %v3761_v31 = vmul.f32 %v12933_v39, %v12933_v39  ;;  %v12949_v33 = vadd.f32 %v3429_v15, %v12373_v1  ;;  %v12952_v44 = vadd.f32 %v3045_v57, %v12352_v63  ;;  %v3760_v28 = vmul.f32 %v12928_v59, %v12928_v59 }
 0x3a3   : > { %17097 = vst [vmem:[#allocation92_spill] sm:$0xff] %v12941_v5  ;;  %v3588_v43 = vadd.f32 %v12941_v5, %v12933_v39  ;;  %v3762_v32 = vmul.f32 %v12941_v5, %v12941_v5  ;;  %v12961_v27 = vadd.f32 %v3047_v3, %v12358_v41  ;;  %v3901_v34 = vadd.f32 %v3900_v46, %v3756_v7 }
 0x3a4   : > { %17098 = vst [vmem:[#allocation93_spill] sm:$0xff] %v12949_v33  ;;  %17099 = vst [vmem:[#allocation94_spill] sm:$0xff] %v12952_v44  ;;  %v3763_v15 = vmul.f32 %v12936_v55, %v12936_v55  ;;  %v3765_v57 = vmul.f32 %v12952_v44, %v12952_v44  ;;  %v12968_v47 = vadd.f32 %v3431_v17, %v12355_v38 }
 0x3a5   : > { %17100 = vst [vmem:[#allocation95_spill] sm:$0xff] %v12961_v27  ;;  %3586 = vadd.xlane.f32.xlu1 %v3585_v30  ;;  %v3905_v59 = vadd.f32 %v3904_v60, %v3759_v56  ;;  %v3593_v39 = vadd.f32 %v12961_v27, %v12952_v44  ;;  %v3766_v5 = vmul.f32 %v12961_v27, %v12961_v27 }
 0x3a6   : > { %17101 = vst [vmem:[#allocation96_spill] sm:$0xff] %v12968_v47  ;;  %3902 = vadd.xlane.f32.xlu0 %v3901_v34  ;;  %v3589_v46 = vadd.f32 %v12936_v55, %v3588_v43  ;;  %v3909_v7 = vadd.f32 %v3762_v32, %v3761_v31  ;;  %v12976_v3 = vadd.f32 %v3433_v20, %v12373_v1  ;;  %v3051_v36 = vpop.f32.mrb[76].mxu0  ;;  %v3437_v2 = vpop.f32.mrb[140].mxu1 }
 0x3a7   : > { %v3906_v16 = vadd.f32 %v3905_v59, %v3760_v28  ;;  %v3594_v60 = vadd.f32 %v12968_v47, %v3593_v39  ;;  %v12981_v30 = vadd.f32 %v3051_v36, %v12352_v63  ;;  %v12984_v27 = vadd.f32 %v3437_v2, %v12355_v38  ;;  %v3053_v43 = vpop.f32.mrb[77].mxu0  ;;  %v3439_v31 = vpop.f32.mrb[141].mxu1 }
 0x3a8   : > { %17102 = vst [vmem:[#allocation97_spill] sm:$0xff] %v12976_v3  ;;  %v3590_v17 = vadd.f32 %v12949_v33, %v3589_v46  ;;  %v3910_v56 = vadd.f32 %v3909_v7, %v3763_v15  ;;  %v3914_v32 = vadd.f32 %v3766_v5, %v3765_v57  ;;  %v3767_v59 = vmul.f32 %v12968_v47, %v12968_v47  ;;  %v3055_v28 = vpop.f32.mrb[78].mxu0  ;;  %v3441_v34 = vpop.f32.mrb[142].mxu1 }
 0x3a9   : > { %17103 = vst [vmem:[#allocation98_spill] sm:$0xff] %v12981_v30  ;;  %17104 = vst [vmem:[#allocation99_spill] sm:$0xff] %v12984_v27  ;;  %3907 = vadd.xlane.f32.xlu1 %v3906_v16  ;;  %v12989_v20 = vadd.f32 %v3053_v43, %v12358_v41  ;;  %v3595_v39 = vadd.f32 %v12976_v3, %v3594_v60  ;;  %v3764_v36 = vmul.f32 %v12949_v33, %v12949_v33  ;;  %v3057_v15 = vpop.f32.mrb[79].mxu0  ;;  %v3443_v57 = vpop.f32.mrb[143].mxu1 }
 0x3aa   : > { %3591 = vadd.xlane.f32.xlu0 %v3590_v17  ;;  %v3769_v2 = vmul.f32 %v12981_v30, %v12981_v30  ;;  %v12997_v16 = vadd.f32 %v3439_v31, %v12373_v1  ;;  %v13000_v5 = vadd.f32 %v3055_v28, %v12352_v63  ;;  %v3768_v46 = vmul.f32 %v12976_v3, %v12976_v3 }
 0x3ab   : > { %17105 = vst [vmem:[#allocation100_spill] sm:$0xff] %v12989_v20  ;;  %v3598_v7 = vadd.f32 %v12989_v20, %v12981_v30  ;;  %v3770_v17 = vmul.f32 %v12989_v20, %v12989_v20  ;;  %v13009_v60 = vadd.f32 %v3057_v15, %v12358_v41  ;;  %v3911_v43 = vadd.f32 %v3910_v56, %v3764_v36 }
 0x3ac   : > { %17106 = vst [vmem:[#allocation101_spill] sm:$0xff] %v12997_v16  ;;  %17107 = vst [vmem:[#allocation102_spill] sm:$0xff] %v13000_v5  ;;  %v3771_v31 = vmul.f32 %v12984_v27, %v12984_v27  ;;  %v3773_v28 = vmul.f32 %v13000_v5, %v13000_v5  ;;  %v13016_v47 = vadd.f32 %v3441_v34, %v12355_v38 }
 0x3ad   : > { %17108 = vst [vmem:[#allocation103_spill] sm:$0xff] %v13009_v60  ;;  %3596 = vadd.xlane.f32.xlu1 %v3595_v39  ;;  %v3915_v3 = vadd.f32 %v3914_v32, %v3767_v59  ;;  %v3603_v30 = vadd.f32 %v13009_v60, %v13000_v5  ;;  %v3774_v20 = vmul.f32 %v13009_v60, %v13009_v60 }
 0x3ae   : > { %17109 = vst [vmem:[#allocation104_spill] sm:$0xff] %v13016_v47  ;;  %3912 = vadd.xlane.f32.xlu0 %v3911_v43  ;;  %v3599_v56 = vadd.f32 %v12984_v27, %v3598_v7  ;;  %v3919_v36 = vadd.f32 %v3770_v17, %v3769_v2  ;;  %v13024_v15 = vadd.f32 %v3443_v57, %v12373_v1  ;;  %v3061_v33 = vpop.f32.mrb[80].mxu0  ;;  %v3447_v55 = vpop.f32.mrb[144].mxu1 }
 0x3af   : > { %v3916_v44 = vadd.f32 %v3915_v3, %v3768_v46  ;;  %v3604_v32 = vadd.f32 %v13016_v47, %v3603_v30  ;;  %v13029_v39 = vadd.f32 %v3061_v33, %v12352_v63  ;;  %v13032_v60 = vadd.f32 %v3447_v55, %v12355_v38  ;;  %v3063_v7 = vpop.f32.mrb[81].mxu0  ;;  %v3449_v2 = vpop.f32.mrb[145].mxu1 }
 0x3b0   : > { %17110 = vst [vmem:[#allocation105_spill] sm:$0xff] %v13024_v15  ;;  %v3600_v34 = vadd.f32 %v12997_v16, %v3599_v56  ;;  %v3920_v59 = vadd.f32 %v3919_v36, %v3771_v31  ;;  %v3924_v17 = vadd.f32 %v3774_v20, %v3773_v28  ;;  %v3775_v3 = vmul.f32 %v13016_v47, %v13016_v47  ;;  %v3065_v46 = vpop.f32.mrb[82].mxu0  ;;  %v3451_v43 = vpop.f32.mrb[146].mxu1 }
 0x3b1   : > { %17111 = vst [vmem:[#allocation106_spill] sm:$0xff] %v13029_v39  ;;  %17112 = vst [vmem:[#allocation107_spill] sm:$0xff] %v13032_v60  ;;  %3917 = vadd.xlane.f32.xlu1 %v3916_v44  ;;  %v13037_v57 = vadd.f32 %v3063_v7, %v12358_v41  ;;  %v3605_v30 = vadd.f32 %v13024_v15, %v3604_v32  ;;  %v3772_v33 = vmul.f32 %v12997_v16, %v12997_v16  ;;  %v3067_v31 = vpop.f32.mrb[83].mxu0  ;;  %v3453_v28 = vpop.f32.mrb[147].mxu1 }
 0x3b2   : > { %3601 = vadd.xlane.f32.xlu0 %v3600_v34  ;;  %v3777_v55 = vmul.f32 %v13029_v39, %v13029_v39  ;;  %v13045_v44 = vadd.f32 %v3449_v2, %v12373_v1  ;;  %v13048_v20 = vadd.f32 %v3065_v46, %v12352_v63  ;;  %v3776_v56 = vmul.f32 %v13024_v15, %v13024_v15 }
 0x3b3   : > { %17113 = vst [vmem:[#allocation108_spill] sm:$0xff] %v13037_v57  ;;  %v3608_v36 = vadd.f32 %v13037_v57, %v13029_v39  ;;  %v3778_v34 = vmul.f32 %v13037_v57, %v13037_v57  ;;  %v13057_v32 = vadd.f32 %v3067_v31, %v12358_v41  ;;  %v3921_v7 = vadd.f32 %v3920_v59, %v3772_v33 }
 0x3b4   : > { %17114 = vst [vmem:[#allocation109_spill] sm:$0xff] %v13045_v44  ;;  %17115 = vst [vmem:[#allocation110_spill] sm:$0xff] %v13048_v20  ;;  %v3779_v2 = vmul.f32 %v13032_v60, %v13032_v60  ;;  %v3781_v46 = vmul.f32 %v13048_v20, %v13048_v20  ;;  %v13064_v47 = vadd.f32 %v3451_v43, %v12355_v38 }
 0x3b5   : > { %17116 = vst [vmem:[#allocation111_spill] sm:$0xff] %v13057_v32  ;;  %3606 = vadd.xlane.f32.xlu1 %v3605_v30  ;;  %v3925_v15 = vadd.f32 %v3924_v17, %v3775_v3  ;;  %v3613_v39 = vadd.f32 %v13057_v32, %v13048_v20  ;;  %v3782_v57 = vmul.f32 %v13057_v32, %v13057_v32 }
 0x3b6   : > { %17117 = vst [vmem:[#allocation112_spill] sm:$0xff] %v13064_v47  ;;  %3922 = vadd.xlane.f32.xlu0 %v3921_v7  ;;  %v3609_v59 = vadd.f32 %v13032_v60, %v3608_v36  ;;  %v3929_v33 = vadd.f32 %v3778_v34, %v3777_v55  ;;  %v13072_v31 = vadd.f32 %v3453_v28, %v12373_v1  ;;  %v3071_v16 = vpop.f32.mrb[84].mxu0  ;;  %v3457_v27 = vpop.f32.mrb[148].mxu1 }
 0x3b7   : > { %v3926_v5 = vadd.f32 %v3925_v15, %v3776_v56  ;;  %v3614_v17 = vadd.f32 %v13064_v47, %v3613_v39  ;;  %v13077_v30 = vadd.f32 %v3071_v16, %v12352_v63  ;;  %v13080_v32 = vadd.f32 %v3457_v27, %v12355_v38  ;;  %v3073_v36 = vpop.f32.mrb[85].mxu0  ;;  %v3459_v55 = vpop.f32.mrb[149].mxu1 }
 0x3b8   : > { %17118 = vst [vmem:[#allocation113_spill] sm:$0xff] %v13072_v31  ;;  %v3610_v43 = vadd.f32 %v13045_v44, %v3609_v59  ;;  %v3930_v3 = vadd.f32 %v3929_v33, %v3779_v2  ;;  %v3934_v34 = vadd.f32 %v3782_v57, %v3781_v46  ;;  %v3783_v15 = vmul.f32 %v13064_v47, %v13064_v47  ;;  %v3075_v56 = vpop.f32.mrb[86].mxu0  ;;  %v3461_v7 = vpop.f32.mrb[150].mxu1 }
 0x3b9   : > { %17119 = vst [vmem:[#allocation114_spill] sm:$0xff] %v13077_v30  ;;  %17120 = vst [vmem:[#allocation115_spill] sm:$0xff] %v13080_v32  ;;  %3927 = vadd.xlane.f32.xlu1 %v3926_v5  ;;  %v13085_v28 = vadd.f32 %v3073_v36, %v12358_v41  ;;  %v3615_v39 = vadd.f32 %v13072_v31, %v3614_v17  ;;  %v3780_v16 = vmul.f32 %v13045_v44, %v13045_v44  ;;  %v3077_v2 = vpop.f32.mrb[87].mxu0  ;;  %v3463_v46 = vpop.f32.mrb[151].mxu1 }
 0x3ba   : > { %3611 = vadd.xlane.f32.xlu0 %v3610_v43  ;;  %v3785_v27 = vmul.f32 %v13077_v30, %v13077_v30  ;;  %v13093_v5 = vadd.f32 %v3459_v55, %v12373_v1  ;;  %v13096_v57 = vadd.f32 %v3075_v56, %v12352_v63  ;;  %v3784_v59 = vmul.f32 %v13072_v31, %v13072_v31 }
 0x3bb   : > { %17121 = vst [vmem:[#allocation116_spill] sm:$0xff] %v13085_v28  ;;  %v3618_v33 = vadd.f32 %v13085_v28, %v13077_v30  ;;  %v3786_v43 = vmul.f32 %v13085_v28, %v13085_v28  ;;  %v13105_v17 = vadd.f32 %v3077_v2, %v12358_v41  ;;  %v3931_v36 = vadd.f32 %v3930_v3, %v3780_v16 }
 0x3bc   : > { %17122 = vst [vmem:[#allocation117_spill] sm:$0xff] %v13093_v5  ;;  %17123 = vst [vmem:[#allocation118_spill] sm:$0xff] %v13096_v57  ;;  %v3787_v55 = vmul.f32 %v13080_v32, %v13080_v32  ;;  %v3789_v56 = vmul.f32 %v13096_v57, %v13096_v57  ;;  %v13112_v47 = vadd.f32 %v3461_v7, %v12355_v38 }
 0x3bd   : > { %17124 = vst [vmem:[#allocation119_spill] sm:$0xff] %v13105_v17  ;;  %3616 = vadd.xlane.f32.xlu1 %v3615_v39  ;;  %v3935_v31 = vadd.f32 %v3934_v34, %v3783_v15  ;;  %v3623_v30 = vadd.f32 %v13105_v17, %v13096_v57  ;;  %v3790_v28 = vmul.f32 %v13105_v17, %v13105_v17 }
 0x3be   : > { %17125 = vst [vmem:[#allocation120_spill] sm:$0xff] %v13112_v47  ;;  %3932 = vadd.xlane.f32.xlu0 %v3931_v36  ;;  %v3619_v3 = vadd.f32 %v13080_v32, %v3618_v33  ;;  %v3939_v16 = vadd.f32 %v3786_v43, %v3785_v27  ;;  %v13120_v2 = vadd.f32 %v3463_v46, %v12373_v1  ;;  %v3081_v44 = vpop.f32.mrb[88].mxu0  ;;  %v3467_v60 = vpop.f32.mrb[152].mxu1 }
 0x3bf   : > { %v3936_v20 = vadd.f32 %v3935_v31, %v3784_v59  ;;  %v3624_v34 = vadd.f32 %v13112_v47, %v3623_v30  ;;  %v13125_v39 = vadd.f32 %v3081_v44, %v12352_v63  ;;  %v13128_v17 = vadd.f32 %v3467_v60, %v12355_v38  ;;  %v3083_v33 = vpop.f32.mrb[89].mxu0  ;;  %v3469_v27 = vpop.f32.mrb[153].mxu1 }
 0x3c0   : > { %17126 = vst [vmem:[#allocation121_spill] sm:$0xff] %v13120_v2  ;;  %v3620_v7 = vadd.f32 %v13093_v5, %v3619_v3  ;;  %v3940_v15 = vadd.f32 %v3939_v16, %v3787_v55  ;;  %v3944_v43 = vadd.f32 %v3790_v28, %v3789_v56  ;;  %v3791_v31 = vmul.f32 %v13112_v47, %v13112_v47  ;;  %v3085_v59 = vpop.f32.mrb[90].mxu0  ;;  %v3471_v36 = vpop.f32.mrb[154].mxu1 }
 0x3c1   : > { %17127 = vst [vmem:[#allocation122_spill] sm:$0xff] %v13125_v39  ;;  %17128 = vst [vmem:[#allocation123_spill] sm:$0xff] %v13128_v17  ;;  %3937 = vadd.xlane.f32.xlu1 %v3936_v20  ;;  %v13133_v46 = vadd.f32 %v3083_v33, %v12358_v41  ;;  %v3625_v30 = vadd.f32 %v13120_v2, %v3624_v34  ;;  %v3788_v44 = vmul.f32 %v13093_v5, %v13093_v5  ;;  %v3087_v55 = vpop.f32.mrb[91].mxu0  ;;  %v3473_v56 = vpop.f32.mrb[155].mxu1 }
 0x3c2   : > { %3621 = vadd.xlane.f32.xlu0 %v3620_v7  ;;  %v3793_v60 = vmul.f32 %v13125_v39, %v13125_v39  ;;  %v13141_v20 = vadd.f32 %v3469_v27, %v12373_v1  ;;  %v13144_v28 = vadd.f32 %v3085_v59, %v12352_v63  ;;  %v3792_v3 = vmul.f32 %v13120_v2, %v13120_v2 }
 0x3c3   : > { %17129 = vst [vmem:[#allocation124_spill] sm:$0xff] %v13133_v46  ;;  %v3628_v16 = vadd.f32 %v13133_v46, %v13125_v39  ;;  %v3794_v7 = vmul.f32 %v13133_v46, %v13133_v46  ;;  %v13153_v34 = vadd.f32 %v3087_v55, %v12358_v41  ;;  %v3941_v33 = vadd.f32 %v3940_v15, %v3788_v44 }
 0x3c4   : > { %17130 = vst [vmem:[#allocation125_spill] sm:$0xff] %v13141_v20  ;;  %17131 = vst [vmem:[#allocation126_spill] sm:$0xff] %v13144_v28  ;;  %v3795_v27 = vmul.f32 %v13128_v17, %v13128_v17  ;;  %v3797_v59 = vmul.f32 %v13144_v28, %v13144_v28  ;;  %v13160_v47 = vadd.f32 %v3471_v36, %v12355_v38 }
 0x3c5   : > { %17132 = vst [vmem:[#allocation127_spill] sm:$0xff] %v13153_v34  ;;  %3626 = vadd.xlane.f32.xlu1 %v3625_v30  ;;  %v3945_v2 = vadd.f32 %v3944_v43, %v3791_v31  ;;  %v3633_v39 = vadd.f32 %v13153_v34, %v13144_v28  ;;  %v3798_v46 = vmul.f32 %v13153_v34, %v13153_v34 }
 0x3c6   : > { %17133 = vst [vmem:[#allocation128_spill] sm:$0xff] %v13160_v47  ;;  %3942 = vadd.xlane.f32.xlu0 %v3941_v33  ;;  %v3629_v15 = vadd.f32 %v13128_v17, %v3628_v16  ;;  %v3949_v44 = vadd.f32 %v3794_v7, %v3793_v60  ;;  %v13168_v55 = vadd.f32 %v3473_v56, %v12373_v1  ;;  %v3091_v5 = vpop.f32.mrb[92].mxu0  ;;  %v3477_v32 = vpop.f32.mrb[156].mxu1 }
 0x3c7   : > { %v3946_v57 = vadd.f32 %v3945_v2, %v3792_v3  ;;  %v3634_v43 = vadd.f32 %v13160_v47, %v3633_v39  ;;  %v13173_v30 = vadd.f32 %v3091_v5, %v12352_v63  ;;  %v13176_v34 = vadd.f32 %v3477_v32, %v12355_v38  ;;  %v3093_v16 = vpop.f32.mrb[93].mxu0  ;;  %v3479_v60 = vpop.f32.mrb[157].mxu1 }
 0x3c8   : > { %17134 = vst [vmem:[#allocation129_spill] sm:$0xff] %v13168_v55  ;;  %v3630_v36 = vadd.f32 %v13141_v20, %v3629_v15  ;;  %v3950_v31 = vadd.f32 %v3949_v44, %v3795_v27  ;;  %v3954_v7 = vadd.f32 %v3798_v46, %v3797_v59  ;;  %v3799_v2 = vmul.f32 %v13160_v47, %v13160_v47  ;;  %v3095_v3 = vpop.f32.mrb[94].mxu0  ;;  %v3481_v33 = vpop.f32.mrb[158].mxu1 }
 0x3c9   : > { %17135 = vst [vmem:[#allocation130_spill] sm:$0xff] %v13173_v30  ;;  %17136 = vst [vmem:[#allocation131_spill] sm:$0xff] %v13176_v34  ;;  %3947 = vadd.xlane.f32.xlu1 %v3946_v57  ;;  %v13181_v56 = vadd.f32 %v3093_v16, %v12358_v41  ;;  %v3635_v39 = vadd.f32 %v13168_v55, %v3634_v43  ;;  %v3796_v5 = vmul.f32 %v13141_v20, %v13141_v20  ;;  %v3097_v27 = vpop.f32.mrb[95].mxu0  ;;  %v3483_v59 = vpop.f32.mrb[159].mxu1 }
 0x3ca   : > { %3631 = vadd.xlane.f32.xlu0 %v3630_v36  ;;  %v3801_v32 = vmul.f32 %v13173_v30, %v13173_v30  ;;  %v13189_v57 = vadd.f32 %v3479_v60, %v12373_v1  ;;  %v13192_v46 = vadd.f32 %v3095_v3, %v12352_v63  ;;  %v3800_v15 = vmul.f32 %v13168_v55, %v13168_v55 }
 0x3cb   : > { %17137 = vst [vmem:[#allocation132_spill] sm:$0xff] %v13181_v56  ;;  %v3638_v44 = vadd.f32 %v13181_v56, %v13173_v30  ;;  %v3802_v36 = vmul.f32 %v13181_v56, %v13181_v56  ;;  %v13201_v43 = vadd.f32 %v3097_v27, %v12358_v41  ;;  %v3951_v16 = vadd.f32 %v3950_v31, %v3796_v5 }
 0x3cc   : > { %17138 = vst [vmem:[#allocation133_spill] sm:$0xff] %v13189_v57  ;;  %17139 = vst [vmem:[#allocation134_spill] sm:$0xff] %v13192_v46  ;;  %v3803_v60 = vmul.f32 %v13176_v34, %v13176_v34  ;;  %v3805_v63 = vmul.f32 %v13192_v46, %v13192_v46  ;;  %v13208_v3 = vadd.f32 %v3481_v33, %v12355_v38 }
 0x3cd   : > { %17140 = vst [vmem:[#allocation135_spill] sm:$0xff] %v13201_v43  ;;  %3636 = vadd.xlane.f32.xlu1 %v3635_v39  ;;  %v3955_v55 = vadd.f32 %v3954_v7, %v3799_v2  ;;  %v3643_v30 = vadd.f32 %v13201_v43, %v13192_v46  ;;  %v3806_v56 = vmul.f32 %v13201_v43, %v13201_v43 }
 0x3ce   : > { %17141 = vst [vmem:[#allocation136_spill] sm:$0xff] %v13208_v3  ;;  %3952 = vadd.xlane.f32.xlu0 %v3951_v16  ;;  %v3639_v41 = vadd.f32 %v13176_v34, %v3638_v44  ;;  %v3959_v31 = vadd.f32 %v3802_v36, %v3801_v32  ;;  %v13216_v5 = vadd.f32 %v3483_v59, %v12373_v1 }
 0x3cf   : > { %v3956_v27 = vadd.f32 %v3955_v55, %v3800_v15  ;;  %v3644_v38 = vadd.f32 %v13208_v3, %v3643_v30  ;;  %v3964_v7 = vadd.f32 %v3806_v56, %v3805_v63  ;;  %v3807_v2 = vmul.f32 %v13208_v3, %v13208_v3 }
 0x3d0   : > { %17142 = vst [vmem:[#allocation137_spill] sm:$0xff] %v13216_v5  ;;  %v3640_v47 = vadd.f32 %v13189_v57, %v3639_v41  ;;  %v3960_v33 = vadd.f32 %v3959_v31, %v3803_v60  ;;  %v3804_v32 = vmul.f32 %v13189_v57, %v13189_v57  ;;  %v3808_v55 = vmul.f32 %v13216_v5, %v13216_v5 }
 0x3d1   : > { %3957 = vadd.xlane.f32.xlu1 %v3956_v27  ;;  %v3645_v39 = vadd.f32 %v13216_v5, %v3644_v38  ;;  %v3965_v44 = vadd.f32 %v3964_v7, %v3807_v2  ;;  %v3486_v2 = vld [vmem:[%s16606_s6] sm:$0xf] }
 0x3d2   : > { %3641 = vadd.xlane.f32.xlu0 %v3640_v47  ;;  %v3961_v1 = vadd.f32 %v3960_v33, %v3804_v32 }
 0x3d3   : > { %v3966_v30 = vadd.f32 %v3965_v44, %v3808_v55 }
 0x3d5   : > { %3646 = vadd.xlane.f32.xlu1 %v3645_v39  ;;  %v3487_v39 = vld [vmem:[%s16607_s7] sm:$0xf] }
 0x3d6   : > { %3962 = vadd.xlane.f32.xlu0 %v3961_v1 }
 0x3d9   : > { %3967 = vadd.xlane.f32.xlu1 %v3966_v30 }
 0x3e5   : > { %v3492_v56 = vpop.xlane.xlu0 %3491 }
 0x3e6   : > { %v13227_v59 = vmul.f32 0.001953125, %v3492_v56 }
 0x3e7   : > { %v3497_v15 = vpop.xlane.xlu1 %3496 }
 0x3e8   : > { %17143 = vst [vmem:[#allocation138_spill] sm:$0xff] %v13227_v59  ;;  %v13229_v36 = vmul.f32 0.001953125, %v3497_v15  ;;  %v4001_v16 = vmul.f32 %v13227_v59, %v13227_v59  ;;  %v13246_v15 = vrot.slane %v3486_v2, %v11731_v50 }
 0x3e9   : > { %v3813_v47 = vpop.xlane.xlu0 %3812 }
 0x3ea   : > { %17144 = vst [vmem:[#allocation139_spill] sm:$0xff] %v13229_v36  ;;  %v3969_v60 = vmul.f32 0.001953125, %v3813_v47  ;;  %v4002_v31 = vmul.f32 %v13229_v36, %v13229_v36  ;;  %v13249_v47 = vrot.slane %v3487_v39, %v11731_v50 }
 0x3ec   : > { %v4033_v63 = vsub.f32 %v3969_v60, %v4001_v16  ;;  %v3818_v41 = vpop.xlane.xlu1 %3817 }
 0x3ed   : > { %v3970_v27 = vmul.f32 0.001953125, %v3818_v41  ;;  %v3502_v38 = vpop.xlane.xlu0 %3501  ;;  %v4097_v41 = vsub.f32 %v12367_v23, %v13227_v59  ;;  %v10433_v23 = vld [vmem:[%s16608_s8 + $0x104] ss:$8 sps:$4 sm:$0xff]  }
 0x3ee   : > { %v4065_v33 = vmax.f32 %v4033_v63, 0.0  ;;  %v13235_v7 = vmul.f32 0.001953125, %v3502_v38  ;;  %v13254_v63 = vrot.slane %v3486_v2, %v11728_v8  ;;  %v13261_v38 = vrot.slane %v3487_v39, %v11728_v8  ;;  %5752 = vmatprep.subr.bf16.mxu0 %v10433_v23 }
 0x3ef   : > { %v4034_v32 = vsub.f32 %v3970_v27, %v4002_v31  ;;  %v4098_v31 = vsub.f32 %v12382_v22, %v13227_v59 }
 0x3f0   : > { %17145 = vst [vmem:[#allocation140_spill] sm:$0xff] %v13235_v7  ;;  %v4225_v44 = vadd.f32 1e-05, %v4065_v33  ;;  %v3507_v1 = vpop.xlane.xlu1 %3506  ;;  %v4003_v16 = vmul.f32 %v13235_v7, %v13235_v7 }
 0x3f1   : > { %v4066_v55 = vmax.f32 %v4034_v32, 0.0  ;;  %v13243_v30 = vmul.f32 0.001953125, %v3507_v1  ;;  %v3823_v56 = vpop.xlane.xlu0 %3822  ;;  %v4100_v32 = vsub.f32 %v12399_v35, %v13227_v59 }
 0x3f2   : > { %10560 = vrsqrt.f32 %v4225_v44  ;;  %v3971_v60 = vmul.f32 0.001953125, %v3823_v56 }
 0x3f3   : > { %17146 = vst [vmem:[#allocation141_spill] sm:$0xff] %v13243_v30  ;;  %v4226_v27 = vadd.f32 1e-05, %v4066_v55  ;;  %v4004_v39 = vmul.f32 %v13243_v30, %v13243_v30 }
 0x3f4   : > { %v4035_v44 = vsub.f32 %v3971_v60, %v4003_v16  ;;  %v3828_v1 = vpop.xlane.xlu1 %3827 }
 0x3f5   : > { %10562 = vrsqrt.f32 %v4226_v27  ;;  %v3972_v55 = vmul.f32 0.001953125, %v3828_v1  ;;  %v3512_v56 = vpop.xlane.xlu0 %3511 }
 0x3f6   : > { %v4067_v60 = vmax.f32 %v4035_v44, 0.0  ;;  %v13280_v33 = vmul.f32 0.001953125, %v3512_v56 }
 0x3f7   : > { %v4036_v22 = vsub.f32 %v3972_v55, %v4004_v39 }
 0x3f8   : > { %17147 = vst [vmem:[#allocation142_spill] sm:$0xff] %v13280_v33  ;;  %v4227_v23 = vadd.f32 1e-05, %v4067_v60  ;;  %v3517_v56 = vpop.xlane.xlu1 %3516  ;;  %v4005_v35 = vmul.f32 %v13280_v33, %v13280_v33 }
 0x3f9   : > { %v4068_v50 = vmax.f32 %v4036_v22, 0.0  ;;  %v13298_v1 = vmul.f32 0.001953125, %v3517_v56  ;;  %v3833_v39 = vpop.xlane.xlu0 %3832 }
 0x3fa   : > { %10564 = vrsqrt.f32 %v4227_v23  ;;  %v3973_v16 = vmul.f32 0.001953125, %v3833_v39 }
 0x3fb   : > { %17148 = vst [vmem:[#allocation143_spill] sm:$0xff] %v13298_v1  ;;  %v4228_v60 = vadd.f32 1e-05, %v4068_v50  ;;  %v4006_v44 = vmul.f32 %v13298_v1, %v13298_v1  ;;  %v17198_v46 = vsub.f32 %v12517_v14, %v13298_v1  ;;  %v17200_v14 = vsub.f32 %v12505_v54, %v13298_v1  ;;  %v10443_v54 = vld [vmem:[%s16608_s8 + $0x140] ss:$8 sps:$4 sm:$0xff]  }
 0x3fc   : > { %v13310_v56 = vpop.eup %10560  ;;  %v4037_v39 = vsub.f32 %v3973_v16, %v4005_v35  ;;  %v3838_v55 = vpop.xlane.xlu1 %3837 }
 0x3fd   : > { %17149 = vst [vmem:[#allocation144_spill] sm:$0xff] %v13310_v56  ;;  %v3974_v2 = vmul.f32 0.001953125, %v3838_v55  ;;  %v3522_v8 = vpop.xlane.xlu0 %3521  ;;  %v4290_v22 = vmul.f32 %v13310_v56, %v4098_v31  ;;  %v4289_v9 = vmul.f32 %v13310_v56, %v4097_v41  ;;  %10566 = vrsqrt.f32 %v4228_v60 }
 0x3fe   : > { %v4069_v48 = vmax.f32 %v4037_v39, 0.0  ;;  %v13324_v27 = vmul.f32 0.001953125, %v3522_v8  ;;  %v13331_v55 = vmul.f32 %v13310_v56, %v4100_v32 }
 0x3ff   : > { %v13326_v61 = vpop.eup %10562  ;;  %v4038_v35 = vsub.f32 %v3974_v2, %v4006_v44  ;;  %v4439_v16 = vmul.f32 %v13246_v15, %v4290_v22  ;;  %v4438_v50 = vmul.f32 %v13254_v63, %v4289_v9  ;;  %v17154_v22 = vsub.f32 %v12394_v0, %v13229_v36 }
 0x400   : > { %17150 = vst [vmem:[#allocation145_spill] sm:$0xff] %v13324_v27  ;;  %17151 = vst [vmem:[#allocation146_spill] sm:$0xff] %v13326_v61  ;;  %v4229_v31 = vadd.f32 1e-05, %v4069_v48  ;;  %v3527_v39 = vpop.xlane.xlu1 %3526  ;;  %v4007_v9 = vmul.f32 %v13324_v27, %v13324_v27 }
 0x401   : > { %17152 = vst [vmem:[#allocation147_spill] sm:$0xff] %v13331_v55  ;;  %v4070_v23 = vmax.f32 %v4038_v35, 0.0  ;;  %v13341_v44 = vmul.f32 0.001953125, %v3527_v39  ;;  %v3843_v48 = vpop.xlane.xlu0 %3842  ;;  %v4294_v41 = vmul.f32 %v13326_v61, %v17154_v22  ;;  %v4588_v8 = vadd.f32 %v13249_v47, %v4439_v16 }
 0x402   : > { %10568 = vrsqrt.f32 %v4229_v31  ;;  %v3975_v32 = vmul.f32 0.001953125, %v3843_v48  ;;  %v17157_v31 = vsub.f32 %v12387_v49, %v13229_v36  ;;  %v4587_v25 = vadd.f32 %v13261_v38, %v4438_v50  ;;  %v17165_v49 = vld [vmem:[#allocation46_spill] sm:$0xff] }
 0x403   : > { %17153 = vst [vmem:[#allocation148_spill] sm:$0xff] %v13341_v44  ;;  %v4230_v60 = vadd.f32 1e-05, %v4070_v23  ;;  %v4008_v48 = vmul.f32 %v13341_v44, %v13341_v44  ;;  %v4443_v23 = vmul.f32 %v13246_v15, %v4294_v41  ;;  %vm4716_vm7 = vcmp.gt.f32.partialorder %v4588_v8, 0.0  ;;  %v10431_v50 = vld [vmem:[%s16608_s8 + $0x100] ss:$8 sps:$4 sm:$0xff]  }
 0x404   : > { %v13356_v26 = vpop.eup %10564  ;;  %v4039_v0 = vsub.f32 %v3975_v32, %v4007_v9  ;;  %v3848_v16 = vpop.xlane.xlu1 %3847  ;;  %v4844_v39 = vmul.f32 0.01, %v4588_v8  ;;  %v4293_v9 = vmul.f32 %v13326_v61, %v17157_v31  ;;  %v17158_v41 = vsub.f32 %v12437_v53, %v13235_v7 }
 0x405   : > { %17155 = vst [vmem:[#allocation149_spill] sm:$0xff] %v13356_v26  ;;  %10570 = vrsqrt.f32 %v4230_v60  ;;  %v3976_v22 = vmul.f32 0.001953125, %v3848_v16  ;;  %v3532_v35 = vpop.xlane.xlu0 %3531  ;;  %v4592_v2 = vadd.f32 %v13249_v47, %v4443_v23  ;;  %vm4715_vm8 = vcmp.gt.f32.partialorder %v4587_v25, 0.0 }
 0x406   : > { %v4071_v62 = vmax.f32 %v4039_v0, 0.0  ;;  %v13363_v52 = vmul.f32 0.001953125, %v3532_v35  ;;  %v4972_v24 = vsel %vm4716_vm7, %v4588_v8, %v4844_v39  ;;  %v4298_v60 = vmul.f32 %v13356_v26, %v17158_v41  ;;  %v17160_v0 = vld [vmem:[#allocation42_spill] sm:$0xff] }
 0x407   : > { %v4040_v32 = vsub.f32 %v3976_v22, %v4008_v48  ;;  %v13375_v16 = vpop.eup %10566  ;;  %vm4720_vm4 = vcmp.gt.f32.partialorder %v4592_v2, 0.0  ;;  %v4848_v23 = vmul.f32 0.01, %v4592_v2  ;;  %v17166_v48 = vld [vmem:[#allocation47_spill] sm:$0xff]  ;;  %v4442_v37 = vmul.f32 %v13254_v63, %v4293_v9 }
 0x408   : > { %17156 = vst [vmem:[#allocation150_spill] sm:$0xff] %v13363_v52  ;;  %17159 = vst [vmem:[#allocation151_spill] sm:$0xff] %v13375_v16  ;;  %v4231_v35 = vadd.f32 1e-05, %v4071_v62  ;;  %v4009_v41 = vmul.f32 %v13363_v52, %v13363_v52  ;;  %v4843_v22 = vmul.f32 0.01, %v4587_v25  ;;  %v17183_v36 = vsub.f32 %v12423_v6, %v13235_v7 }
 0x409   : > { %v3537_v8 = vpop.xlane.xlu1 %3536  ;;  %v4072_v39 = vmax.f32 %v4040_v32, 0.0  ;;  %v17193_v7 = vld [vmem:[#allocation63_spill] sm:$0xff] }
 0x40a   : > { %v13385_v53 = vmul.f32 0.001953125, %v3537_v8  ;;  %v3853_v62 = vpop.xlane.xlu0 %3852  ;;  %10572 = vrsqrt.f32 %v4231_v35  ;;  %v4976_v35 = vsel %vm4720_vm4, %v4592_v2, %v4848_v23  ;;  %v4591_v2 = vadd.f32 %v13261_v38, %v4442_v37  ;;  %v17179_v37 = vld [vmem:[#allocation54_spill] sm:$0xff] }
 0x40b   : > { %v3977_v40 = vmul.f32 0.001953125, %v3853_v62  ;;  %v4232_v42 = vadd.f32 1e-05, %v4072_v39  ;;  %v5164_v59 = vpack.c.bf16 %v4976_v35, %v4972_v24  ;;  %v17172_v23 = vsub.f32 %v12460_v4, %v13243_v30 }
 0x40c   : > { %17164 = vst [vmem:[#allocation42_spill] sm:$0xff] %v13385_v53  ;;  %v13395_v8 = vpop.eup %10568  ;;  %v4010_v62 = vmul.f32 %v13385_v53, %v13385_v53  ;;  %v4447_v24 = vmul.f32 %v13246_v15, %v4298_v60  ;;  %vm4719_vm0 = vcmp.gt.f32.partialorder %v4591_v2, 0.0  ;;  %v4297_v5 = vmul.f32 %v13356_v26, %v17183_v36 }
 0x40d   : > { %17168 = vst [vmem:[#allocation44_spill] sm:$0xff] %v13395_v8  ;;  %v4041_v56 = vsub.f32 %v3977_v40, %v4009_v41  ;;  %v3858_v39 = vpop.xlane.xlu1 %3857  ;;  %10574 = vrsqrt.f32 %v4232_v42  ;;  %5591 = vmatprep.mubr.bf16.mxu0 %v5164_v59  ;;  %v4302_v42 = vmul.f32 %v13375_v16, %v17172_v23  ;;  %v4971_v41 = vsel %vm4715_vm8, %v4587_v25, %v4843_v22 }
 0x40e   : > { %v3978_v12 = vmul.f32 0.001953125, %v3858_v39  ;;  %v3542_v32 = vpop.xlane.xlu0 %3541  ;;  %v4446_v36 = vmul.f32 %v13254_v63, %v4297_v5 }
 0x40f   : > { %v4073_v55 = vmax.f32 %v4041_v56, 0.0  ;;  %v13402_v31 = vmul.f32 0.001953125, %v3542_v32  ;;  %v13404_v61 = vpop.eup %10570  ;;  %v17173_v56 = vld [vmem:[#allocation50_spill] sm:$0xff]  ;;  %v17174_v32 = vld [vmem:[#allocation52_spill] sm:$0xff] }
 0x410   : > { %17171 = vst [vmem:[#allocation47_spill] sm:$0xff] %v13404_v61  ;;  %v4042_v40 = vsub.f32 %v3978_v12, %v4010_v62  ;;  %v4847_v12 = vmul.f32 0.01, %v4591_v2  ;;  %v4595_v26 = vadd.f32 %v13261_v38, %v4446_v36 }
 0x411   : > { %17170 = vst [vmem:[#allocation46_spill] sm:$0xff] %v13402_v31  ;;  %v4233_v9 = vadd.f32 1e-05, %v4073_v55  ;;  %v3547_v10 = vpop.xlane.xlu1 %3546  ;;  %v4011_v25 = vmul.f32 %v13402_v31, %v13402_v31 }
 0x412   : > { %v4074_v59 = vmax.f32 %v4042_v40, 0.0  ;;  %v3863_v4 = vpop.xlane.xlu0 %3862  ;;  %v13420_v55 = vmul.f32 0.001953125, %v3547_v10  ;;  %v4975_v35 = vsel %vm4719_vm0, %v4591_v2, %v4847_v12  ;;  %v4451_v40 = vmul.f32 %v13246_v15, %v4302_v42  ;;  %v17180_v10 = vld [vmem:[#allocation55_spill] sm:$0xff]  ;;  %v10436_v42 = vld [vmem:[%s16608_s8 + $0x114] ss:$8 sps:$4 sm:$0xff]  }
 0x413   : > { %10576 = vrsqrt.f32 %v4233_v9  ;;  %v3979_v39 = vmul.f32 0.001953125, %v3863_v4  ;;  %v5163_v9 = vpack.c.bf16 %v4975_v35, %v4971_v41  ;;  %v4596_v41 = vadd.f32 %v13249_v47, %v4447_v24 }
 0x414   : > { %17177 = vst [vmem:[#allocation50_spill] sm:$0xff] %v13420_v55  ;;  %v4234_v22 = vadd.f32 1e-05, %v4074_v59  ;;  %v13428_v62 = vpop.eup %10572  ;;  %v4600_v60 = vadd.f32 %v13249_v47, %v4451_v40  ;;  %v4012_v23 = vmul.f32 %v13420_v55, %v13420_v55  ;;  %v17185_v24 = vsub.f32 %v12448_v45, %v13243_v30  ;;  %v10434_v40 = vld [vmem:[%s16608_s8 + $0x110] ss:$8 sps:$4 sm:$0xff]  }
 0x415   : > { %17178 = vst [vmem:[#allocation52_spill] sm:$0xff] %v13428_v62  ;;  %v3868_v2 = vpop.xlane.xlu1 %3867  ;;  %v4043_v19 = vsub.f32 %v3979_v39, %v4011_v25  ;;  %5592 = vmatmul.mubr.bf16.vlgmr.msra.gmra.mrb[96].mxu0 %v5163_v9  ;;  %vm4724_vm6 = vcmp.gt.f32.partialorder %v4596_v41, 0.0  ;;  %v4852_v39 = vmul.f32 0.01, %v4596_v41  ;;  %vm4723_vm9 = vcmp.gt.f32.partialorder %v4595_v26, 0.0 }
 0x416   : > { %10578 = vrsqrt.f32 %v4234_v22  ;;  %v3552_v35 = vpop.xlane.xlu0 %3551  ;;  %v3980_v59 = vmul.f32 0.001953125, %v3868_v2  ;;  %v4301_v25 = vmul.f32 %v13375_v16, %v17185_v24  ;;  %5753 = vmatpush1.bf16.msra.mxu0 %v10431_v50  ;;  %vm4728_vm2 = vcmp.gt.f32.partialorder %v4600_v60, 0.0 }
 0x417   : > { %v13449_v22 = vpop.eup %10574  ;;  %v4075_v3 = vmax.f32 %v4043_v19, 0.0  ;;  %v4856_v9 = vmul.f32 0.01, %v4600_v60  ;;  %5754 = vmatprep.subr.bf16.mxu0 %v10436_v42  ;;  %v10439_v19 = vld [vmem:[%s16608_s8 + $0x124] ss:$8 sps:$4 sm:$0xff]   ;;  %v4980_v45 = vsel %vm4724_vm6, %v4596_v41, %v4852_v39  ;;  %v13463_v50 = vmul.f32 0.001953125, %v3552_v35 }
 0x418   : > { %17184 = vst [vmem:[#allocation54_spill] sm:$0xff] %v13449_v22  ;;  %v4044_v6 = vsub.f32 %v3980_v59, %v4012_v23  ;;  %v4450_v24 = vmul.f32 %v13254_v63, %v4301_v25  ;;  %v17187_v42 = vld [vmem:[#allocation58_spill] sm:$0xff] }
 0x419   : > { %v3557_v2 = vpop.xlane.xlu1 %3556  ;;  %v4235_v4 = vadd.f32 1e-05, %v4075_v3  ;;  %v4984_v16 = vsel %vm4728_vm2, %v4600_v60, %v4856_v9  ;;  %v10437_v3 = vld [vmem:[%s16608_s8 + $0x120] ss:$8 sps:$4 sm:$0xff]   ;;  %v10442_v60 = vld [vmem:[%s16608_s8 + $0x134] ss:$8 sps:$4 sm:$0xff]  }
 0x41a   : > { %v3873_v12 = vpop.xlane.xlu0 %3872  ;;  %v4076_v30 = vmax.f32 %v4044_v6, 0.0  ;;  %v13466_v23 = vmul.f32 0.001953125, %v3557_v2  ;;  %v5168_v5 = vpack.c.bf16 %v4984_v16, %v4980_v45  ;;  %v4599_v59 = vadd.f32 %v13261_v38, %v4450_v24  ;;  %5755 = vmatpush1.bf16.msra.mxu0 %v10434_v40  ;;  %v17189_v16 = vld [vmem:[#allocation60_spill] sm:$0xff] }
 0x41b   : > { %10580 = vrsqrt.f32 %v4235_v4  ;;  %v4851_v4 = vmul.f32 0.01, %v4595_v26  ;;  %5756 = vmatprep.subr.bf16.mxu0 %v10439_v19  ;;  %v4013_v2 = vmul.f32 %v13463_v50, %v13463_v50  ;;  %v3981_v24 = vmul.f32 0.001953125, %v3873_v12 }
 0x41c   : > { %17186 = vst [vmem:[#allocation55_spill] sm:$0xff] %v13466_v23  ;;  %v4236_v35 = vadd.f32 1e-05, %v4076_v30  ;;  %5601 = vmatprep.mubr.bf16.mxu0 %v5168_v5  ;;  %vm4727_vm5 = vcmp.gt.f32.partialorder %v4599_v59, 0.0  ;;  %v4855_v40 = vmul.f32 0.01, %v4599_v59  ;;  %v4310_v6 = vmul.f32 %v13404_v61, %v17198_v46 }
 0x41d   : > { %v13477_v41 = vpop.eup %10576  ;;  %v4979_v45 = vsel %vm4723_vm9, %v4595_v26, %v4851_v4  ;;  %v17192_v30 = vld [vmem:[#allocation62_spill] sm:$0xff]  ;;  %v10440_v26 = vld [vmem:[%s16608_s8 + $0x130] ss:$8 sps:$4 sm:$0xff]   ;;  %v4309_v46 = vmul.f32 %v13404_v61, %v17200_v14 }
 0x41e   : > { %17188 = vst [vmem:[#allocation58_spill] sm:$0xff] %v13477_v41  ;;  %v3878_v25 = vpop.xlane.xlu1 %3877  ;;  %10582 = vrsqrt.f32 %v4236_v35  ;;  %v4983_v19 = vsel %vm4727_vm5, %v4599_v59, %v4855_v40  ;;  %5757 = vmatpush1.bf16.msra.mxu0 %v10437_v3  ;;  %v17197_v59 = vsub.f32 %v12494_v13, %v13280_v33  ;;  %v10445_v3 = vld [vmem:[%s16608_s8 + $0x144] ss:$8 sps:$4 sm:$0xff]   ;;  %v17199_v13 = vsub.f32 %v12486_v51, %v13280_v33 }
 0x41f   : > { %v3562_v35 = vpop.xlane.xlu0 %3561  ;;  %v5167_v4 = vpack.c.bf16 %v4983_v19, %v4979_v45  ;;  %5758 = vmatprep.subr.bf16.mxu0 %v10442_v60  ;;  %v4014_v45 = vmul.f32 %v13466_v23, %v13466_v23  ;;  %v3982_v12 = vmul.f32 0.001953125, %v3878_v25  ;;  %v4045_v60 = vsub.f32 %v3981_v24, %v4013_v2 }
 0x420   : > { %v13489_v39 = vpop.eup %10578  ;;  %v4306_v40 = vmul.f32 %v13395_v8, %v17197_v59  ;;  %v4305_v19 = vmul.f32 %v13395_v8, %v17199_v13  ;;  %v4459_v5 = vmul.f32 %v13246_v15, %v4310_v6  ;;  %v13523_v9 = vmul.f32 0.001953125, %v3562_v35  ;;  %v17203_v6 = vld [vmem:[#allocation66_spill] sm:$0xff]  ;;  %v17205_v13 = vld [vmem:[#allocation68_spill] sm:$0xff] }
 0x421   : > { %17194 = vst [vmem:[#allocation60_spill] sm:$0xff] %v13489_v39  ;;  %5602 = vmatmul.mubr.bf16.gmra.mrb[100].mxu0 %v5167_v4  ;;  %v4046_v57 = vsub.f32 %v3982_v12, %v4014_v45  ;;  %v4458_v51 = vmul.f32 %v13254_v63, %v4309_v46  ;;  %v4077_v4 = vmax.f32 %v4045_v60, 0.0 }
 0x422   : > { %v3567_v43 = vpop.xlane.xlu1 %3566  ;;  %v4455_v59 = vmul.f32 %v13246_v15, %v4306_v40  ;;  %17201 = vst [vmem:[#allocation62_spill] sm:$0xff] %v13523_v9  ;;  %v4454_v25 = vmul.f32 %v13254_v63, %v4305_v19  ;;  %5759 = vmatpush1.bf16.msra.mxu0 %v10440_v26  ;;  %v4608_v24 = vadd.f32 %v13249_v47, %v4459_v5  ;;  %v10448_v40 = vld [vmem:[%s16608_s8 + $0x154] ss:$8 sps:$4 sm:$0xff]   ;;  %v10446_v5 = vld [vmem:[%s16608_s8 + $0x150] ss:$8 sps:$4 sm:$0xff]  }
 0x423   : > { %v13527_v36 = vmul.f32 0.001953125, %v3567_v43  ;;  %5760 = vmatprep.subr.bf16.mxu0 %v10445_v3  ;;  %v4078_v26 = vmax.f32 %v4046_v57, 0.0  ;;  %v4607_v12 = vadd.f32 %v13261_v38, %v4458_v51  ;;  %v3883_v14 = vpop.xlane.xlu0 %3882  ;;  %v4237_v3 = vadd.f32 1e-05, %v4077_v4  ;;  %v10451_v4 = vld [vmem:[%s16608_s8 + $0x164] ss:$8 sps:$4 sm:$0xff]  }
 0x424   : > { %v4604_v2 = vadd.f32 %v13249_v47, %v4455_v59  ;;  %v4603_v45 = vadd.f32 %v13261_v38, %v4454_v25  ;;  %vm4736_vm11 = vcmp.gt.f32.partialorder %v4608_v24, 0.0  ;;  %v4864_v59 = vmul.f32 0.01, %v4608_v24 }
 0x425   : > { %17202 = vst [vmem:[#allocation63_spill] sm:$0xff] %v13527_v36  ;;  %v13539_v43 = vpop.eup %10580  ;;  %v4238_v35 = vadd.f32 1e-05, %v4078_v26  ;;  %vm4735_vm13 = vcmp.gt.f32.partialorder %v4607_v12, 0.0  ;;  %10584 = vrsqrt.f32 %v4237_v3  ;;  %v4863_v19 = vmul.f32 0.01, %v4607_v12 }
 0x426   : > { %17204 = vst [vmem:[#allocation66_spill] sm:$0xff] %v13539_v43  ;;  %vm4732_vm12 = vcmp.gt.f32.partialorder %v4604_v2, 0.0  ;;  %v4860_v46 = vmul.f32 0.01, %v4604_v2  ;;  %v3888_v60 = vpop.xlane.xlu1 %3887  ;;  %vm4731_vm10 = vcmp.gt.f32.partialorder %v4603_v45, 0.0  ;;  %5761 = vmatpush1.bf16.msra.mxu0 %v10443_v54  ;;  %v4992_v61 = vsel %vm4736_vm11, %v4608_v24, %v4864_v59 }
 0x427   : > { %v4859_v51 = vmul.f32 0.01, %v4603_v45  ;;  %5762 = vmatprep.subr.bf16.mxu0 %v10448_v40  ;;  %10586 = vrsqrt.f32 %v4238_v35  ;;  %v4991_v28 = vsel %vm4735_vm13, %v4607_v12, %v4863_v19  ;;  %v17210_v40 = vld [vmem:[#allocation71_spill] sm:$0xff]  ;;  %v3572_v8 = vpop.xlane.xlu0 %3571  ;;  %v17214_v19 = vsub.f32 %v12577_v58, %v13341_v44 }
 0x428   : > { %v13548_v57 = vpop.eup %10582  ;;  %v4988_v25 = vsel %vm4732_vm12, %v4604_v2, %v4860_v46  ;;  %v17209_v2 = vld [vmem:[#allocation70_spill] sm:$0xff]  ;;  %v17216_v58 = vsub.f32 %v12565_v18, %v13341_v44  ;;  %v10452_v18 = vld [vmem:[%s16608_s8 + $0x170] ss:$8 sps:$4 sm:$0xff]  }
 0x429   : > { %17206 = vst [vmem:[#allocation68_spill] sm:$0xff] %v13548_v57  ;;  %v5172_v54 = vpack.c.bf16 %v4992_v61, %v4988_v25  ;;  %v4987_v34 = vsel %vm4731_vm10, %v4603_v45, %v4859_v51  ;;  %v10449_v61 = vld [vmem:[%s16608_s8 + $0x160] ss:$8 sps:$4 sm:$0xff]   ;;  %v4015_v45 = vmul.f32 %v13523_v9, %v13523_v9  ;;  %v4318_v25 = vmul.f32 %v13449_v22, %v17214_v19  ;;  %v10454_v51 = vld [vmem:[%s16608_s8 + $0x174] ss:$8 sps:$4 sm:$0xff]  }
 0x42a   : > { %v5171_v46 = vpack.c.bf16 %v4991_v28, %v4987_v34  ;;  %5763 = vmatpush1.bf16.msra.mxu0 %v10446_v5  ;;  %v3983_v28 = vmul.f32 0.001953125, %v3883_v14  ;;  %v17213_v34 = vsub.f32 %v12551_v29, %v13324_v27  ;;  %v3577_v5 = vpop.xlane.xlu1 %3576  ;;  %v4016_v14 = vmul.f32 %v13527_v36, %v13527_v36 }
 0x42b   : > { %5611 = vmatprep.mubr.bf16.mxu0 %v5172_v54  ;;  %5764 = vmatprep.subr.bf16.mxu0 %v10451_v4  ;;  %v3984_v54 = vmul.f32 0.001953125, %v3888_v60  ;;  %v17215_v29 = vsub.f32 %v12543_v11, %v13324_v27  ;;  %v4317_v19 = vmul.f32 %v13449_v22, %v17216_v58  ;;  %v4467_v59 = vmul.f32 %v13246_v15, %v4318_v25  ;;  %v10457_v25 = vld [vmem:[%s16608_s8 + $0x184] ss:$8 sps:$4 sm:$0xff]   ;;  %v3893_v58 = vpop.xlane.xlu0 %3892 }
 0x42c   : > { %v4314_v12 = vmul.f32 %v13428_v62, %v17213_v34  ;;  %5612 = vmatmul.mubr.bf16.gmra.mrb[104].mxu0 %v5171_v46  ;;  %v4047_v4 = vsub.f32 %v3983_v28, %v4015_v45  ;;  %v13593_v46 = vmul.f32 0.001953125, %v3572_v8  ;;  %v13597_v11 = vmul.f32 0.001953125, %v3577_v5  ;;  %v17219_v8 = vld [vmem:[#allocation74_spill] sm:$0xff] }
 0x42d   : > { %v4313_v34 = vmul.f32 %v13428_v62, %v17215_v29  ;;  %v4048_v33 = vsub.f32 %v3984_v54, %v4016_v14  ;;  %v4466_v3 = vmul.f32 %v13254_v63, %v4317_v19  ;;  %v4616_v28 = vadd.f32 %v13249_v47, %v4467_v59  ;;  %v17220_v54 = vld [vmem:[#allocation76_spill] sm:$0xff] }
 0x42e   : > { %v4463_v24 = vmul.f32 %v13246_v15, %v4314_v12  ;;  %17217 = vst [vmem:[#allocation70_spill] sm:$0xff] %v13593_v46  ;;  %17218 = vst [vmem:[#allocation71_spill] sm:$0xff] %v13597_v11  ;;  %5765 = vmatpush1.bf16.msra.mxu0 %v10449_v61  ;;  %v4079_v29 = vmax.f32 %v4047_v4, 0.0  ;;  %v3898_v4 = vpop.xlane.xlu1 %3897 }
 0x42f   : > { %v4462_v60 = vmul.f32 %v13254_v63, %v4313_v34  ;;  %5766 = vmatprep.subr.bf16.mxu0 %v10454_v51  ;;  %v4080_v5 = vmax.f32 %v4048_v33, 0.0  ;;  %v4615_v14 = vadd.f32 %v13261_v38, %v4466_v3  ;;  %v13616_v59 = vpop.eup %10584  ;;  %vm4744_vm1 = vcmp.gt.f32.partialorder %v4616_v28, 0.0  ;;  %v3582_v35 = vpop.xlane.xlu0 %3581 }
 0x430   : > { %v4612_v45 = vadd.f32 %v13249_v47, %v4463_v24  ;;  %v10455_v24 = vld [vmem:[%s16608_s8 + $0x180] ss:$8 sps:$4 sm:$0xff]   ;;  %v4239_v51 = vadd.f32 1e-05, %v4079_v29  ;;  %v10460_v29 = vld [vmem:[%s16608_s8 + $0x194] ss:$8 sps:$4 sm:$0xff]  }
 0x431   : > { %v4611_v61 = vadd.f32 %v13261_v38, %v4462_v60  ;;  %v13618_v33 = vpop.eup %10586  ;;  %v4872_v60 = vmul.f32 0.01, %v4616_v28  ;;  %v4240_v12 = vadd.f32 1e-05, %v4080_v5  ;;  %vm4743_vm3 = vcmp.gt.f32.partialorder %v4615_v14, 0.0 }
 0x432   : > { %vm4740_vm15 = vcmp.gt.f32.partialorder %v4612_v45, 0.0  ;;  %v4868_v19 = vmul.f32 0.01, %v4612_v45  ;;  %17221 = vst [vmem:[#allocation74_spill] sm:$0xff] %v13618_v33  ;;  %5767 = vmatpush1.bf16.msra.mxu0 %v10452_v18  ;;  %10588 = vrsqrt.f32 %v4239_v51  ;;  %v4871_v20 = vmul.f32 0.01, %v4615_v14 }
 0x433   : > { %vm4739_vm14 = vcmp.gt.f32.partialorder %v4611_v61, 0.0  ;;  %v4867_v34 = vmul.f32 0.01, %v4611_v61  ;;  %5768 = vmatprep.subr.bf16.mxu0 %v10457_v25  ;;  %v5000_v17 = vsel %vm4744_vm1, %v4616_v28, %v4872_v60  ;;  %10590 = vrsqrt.f32 %v4240_v12  ;;  %v17225_v25 = vld [vmem:[#allocation79_spill] sm:$0xff] }
 0x434   : > { %v4996_v3 = vsel %vm4740_vm15, %v4612_v45, %v4868_v19  ;;  %v4999_v18 = vsel %vm4743_vm3, %v4615_v14, %v4871_v20  ;;  %v17224_v45 = vld [vmem:[#allocation78_spill] sm:$0xff]  ;;  %v4017_v20 = vmul.f32 %v13593_v46, %v13593_v46 }
 0x435   : > { %v5176_v22 = vpack.c.bf16 %v5000_v17, %v4996_v3  ;;  %v4995_v44 = vsel %vm4739_vm14, %v4611_v61, %v4867_v34  ;;  %v10458_v17 = vld [vmem:[%s16608_s8 + $0x190] ss:$8 sps:$4 sm:$0xff]   ;;  %v17228_v61 = vsub.f32 %v17161_v21, %v13363_v52  ;;  %v17229_v34 = vsub.f32 %v17166_v48, %v13385_v53 }
 0x436   : > { %v5175_v19 = vpack.c.bf16 %v4999_v18, %v4995_v44  ;;  %5769 = vmatpush1.bf16.msra.mxu0 %v10455_v24  ;;  %v3985_v44 = vmul.f32 0.001953125, %v3893_v58  ;;  %v3587_v24 = vpop.xlane.xlu1 %3586  ;;  %v4018_v58 = vmul.f32 %v13597_v11, %v13597_v11  ;;  %v3986_v18 = vmul.f32 0.001953125, %v3898_v4 }
 0x437   : > { %5621 = vmatprep.mubr.bf16.mxu0 %v5176_v22  ;;  %v4322_v14 = vmul.f32 %v13477_v41, %v17228_v61  ;;  %v4326_v3 = vmul.f32 %v13489_v39, %v17229_v34  ;;  %5770 = vmatprep.subr.bf16.mxu0 %v10460_v29  ;;  %v10463_v22 = vld [vmem:[%s16608_s8 + $0x1a4] ss:$8 sps:$4 sm:$0xff]   ;;  %v17230_v21 = vsub.f32 %v17160_v0, %v13363_v52  ;;  %v13667_v0 = vmul.f32 0.001953125, %v3587_v24 }
 0x438   : > { %5622 = vmatmul.mubr.bf16.gmra.mrb[108].mxu0 %v5175_v19  ;;  %v17231_v48 = vsub.f32 %v17165_v49, %v13385_v53  ;;  %v4049_v29 = vsub.f32 %v3985_v44, %v4017_v20  ;;  %v13663_v19 = vmul.f32 0.001953125, %v3582_v35  ;;  %v4050_v5 = vsub.f32 %v3986_v18, %v4018_v58  ;;  %v10461_v49 = vld [vmem:[%s16608_s8 + $0x1a0] ss:$8 sps:$4 sm:$0xff]   ;;  %v17235_v18 = vld [vmem:[#allocation84_spill] sm:$0xff] }
 0x439   : > { %v4321_v61 = vmul.f32 %v13477_v41, %v17230_v21  ;;  %v4471_v28 = vmul.f32 %v13246_v15, %v4322_v14  ;;  %v4475_v60 = vmul.f32 %v13246_v15, %v4326_v3  ;;  %17233 = vst [vmem:[#allocation78_spill] sm:$0xff] %v13667_v0  ;;  %v17234_v35 = vld [vmem:[#allocation82_spill] sm:$0xff]  ;;  %v10466_v3 = vld [vmem:[%s16608_s8 + $0x1b4] ss:$8 sps:$4 sm:$0xff]  }
 0x43a   : > { %v4325_v34 = vmul.f32 %v13489_v39, %v17231_v48  ;;  %17232 = vst [vmem:[#allocation76_spill] sm:$0xff] %v13663_v19  ;;  %5771 = vmatpush1.bf16.msra.mxu0 %v10458_v17  ;;  %v4081_v21 = vmax.f32 %v4049_v29, 0.0  ;;  %v4082_v24 = vmax.f32 %v4050_v5, 0.0  ;;  %v3903_v48 = vpop.xlane.xlu0 %3902  ;;  %v3908_v29 = vpop.xlane.xlu1 %3907 }
 0x43b   : > { %v4470_v4 = vmul.f32 %v13254_v63, %v4321_v61  ;;  %v4620_v20 = vadd.f32 %v13249_v47, %v4471_v28  ;;  %v4624_v44 = vadd.f32 %v13249_v47, %v4475_v60  ;;  %5772 = vmatprep.subr.bf16.mxu0 %v10463_v22  ;;  %v10464_v28 = vld [vmem:[%s16608_s8 + $0x1b0] ss:$8 sps:$4 sm:$0xff]  }
 0x43c   : > { %v4474_v51 = vmul.f32 %v13254_v63, %v4325_v34  ;;  %v13686_v60 = vpop.eup %10588  ;;  %v4241_v22 = vadd.f32 1e-05, %v4081_v21  ;;  %v4242_v14 = vadd.f32 1e-05, %v4082_v24  ;;  %v10469_v21 = vld [vmem:[%s16608_s8 + $0x1c4] ss:$8 sps:$4 sm:$0xff]  }
 0x43d   : > { %v4619_v17 = vadd.f32 %v13261_v38, %v4470_v4  ;;  %17236 = vst [vmem:[#allocation79_spill] sm:$0xff] %v13686_v60  ;;  %vm4748_vm7 = vcmp.gt.f32.partialorder %v4620_v20, 0.0  ;;  %vm4752_vm4 = vcmp.gt.f32.partialorder %v4624_v44, 0.0  ;;  %v4876_v34 = vmul.f32 0.01, %v4620_v20  ;;  %v13688_v5 = vpop.eup %10590 }
 0x43e   : > { %v4623_v58 = vadd.f32 %v13261_v38, %v4474_v51  ;;  %17237 = vst [vmem:[#allocation82_spill] sm:$0xff] %v13688_v5  ;;  %v4880_v4 = vmul.f32 0.01, %v4624_v44  ;;  %5773 = vmatpush1.bf16.msra.mxu0 %v10461_v49  ;;  %10592 = vrsqrt.f32 %v4241_v22  ;;  %v3592_v12 = vpop.xlane.xlu0 %3591 }
 0x43f   : > { %vm4747_vm8 = vcmp.gt.f32.partialorder %v4619_v17, 0.0  ;;  %v5004_v51 = vsel %vm4748_vm7, %v4620_v20, %v4876_v34  ;;  %v4875_v61 = vmul.f32 0.01, %v4619_v17  ;;  %5774 = vmatprep.subr.bf16.mxu0 %v10466_v3  ;;  %10594 = vrsqrt.f32 %v4242_v14  ;;  %v17240_v20 = vld [vmem:[#allocation86_spill] sm:$0xff]  ;;  %v17241_v3 = vld [vmem:[#allocation87_spill] sm:$0xff] }
 0x440   : > { %vm4751_vm0 = vcmp.gt.f32.partialorder %v4623_v58, 0.0  ;;  %v4879_v62 = vmul.f32 0.01, %v4623_v58  ;;  %v5008_v27 = vsel %vm4752_vm4, %v4624_v44, %v4880_v4 }
 0x441   : > { %v5180_v39 = vpack.c.bf16 %v5008_v27, %v5004_v51  ;;  %v5003_v53 = vsel %vm4747_vm8, %v4619_v17, %v4875_v61  ;;  %v10467_v27 = vld [vmem:[%s16608_s8 + $0x1c0] ss:$8 sps:$4 sm:$0xff]   ;;  %v17244_v17 = vsub.f32 %v17174_v32, %v13402_v31  ;;  %v17245_v61 = vsub.f32 %v17180_v10, %v13420_v55 }
 0x442   : > { %v5007_v49 = vsel %vm4751_vm0, %v4623_v58, %v4879_v62  ;;  %5775 = vmatpush1.bf16.msra.mxu0 %v10464_v28  ;;  %v4019_v62 = vmul.f32 %v13663_v19, %v13663_v19  ;;  %v3597_v28 = vpop.xlane.xlu1 %3596  ;;  %v17246_v32 = vsub.f32 %v17173_v56, %v13402_v31  ;;  %v17247_v10 = vsub.f32 %v17179_v37, %v13420_v55  ;;  %v10470_v37 = vld [vmem:[%s16608_s8 + $0x1d0] ss:$8 sps:$4 sm:$0xff]  }
 0x443   : > { %v5179_v34 = vpack.c.bf16 %v5007_v49, %v5003_v53  ;;  %5631 = vmatprep.mubr.bf16.mxu0 %v5180_v39  ;;  %v3987_v53 = vmul.f32 0.001953125, %v3903_v48  ;;  %v4330_v58 = vmul.f32 %v13539_v43, %v17244_v17  ;;  %v4334_v51 = vmul.f32 %v13548_v57, %v17245_v61  ;;  %5776 = vmatprep.subr.bf16.mxu0 %v10469_v21  ;;  %v10472_v39 = vld [vmem:[%s16608_s8 + $0x1d4] ss:$8 sps:$4 sm:$0xff]  }
 0x444   : > { %v4020_v48 = vmul.f32 %v13667_v0, %v13667_v0  ;;  %v3988_v49 = vmul.f32 0.001953125, %v3908_v29  ;;  %v4329_v17 = vmul.f32 %v13539_v43, %v17246_v32  ;;  %v4333_v61 = vmul.f32 %v13548_v57, %v17247_v10  ;;  %v3913_v10 = vpop.xlane.xlu0 %3912 }
 0x445   : > { %5632 = vmatmul.mubr.bf16.gmra.mrb[112].mxu0 %v5179_v34  ;;  %v4051_v21 = vsub.f32 %v3987_v53, %v4019_v62  ;;  %v4479_v44 = vmul.f32 %v13246_v15, %v4330_v58  ;;  %v4483_v4 = vmul.f32 %v13246_v15, %v4334_v51  ;;  %v13733_v34 = vmul.f32 0.001953125, %v3592_v12  ;;  %v17249_v12 = vld [vmem:[#allocation90_spill] sm:$0xff] }
 0x446   : > { %v4052_v24 = vsub.f32 %v3988_v49, %v4020_v48  ;;  %v4478_v29 = vmul.f32 %v13254_v63, %v4329_v17  ;;  %v4482_v22 = vmul.f32 %v13254_v63, %v4333_v61  ;;  %v13737_v56 = vmul.f32 0.001953125, %v3597_v28  ;;  %5777 = vmatpush1.bf16.msra.mxu0 %v10467_v27  ;;  %v10475_v51 = vld [vmem:[%s16608_s8 + $0x1e4] ss:$8 sps:$4 sm:$0xff]   ;;  %v17250_v49 = vld [vmem:[#allocation92_spill] sm:$0xff] }
 0x447   : > { %v4083_v32 = vmax.f32 %v4051_v21, 0.0  ;;  %v4628_v62 = vadd.f32 %v13249_v47, %v4479_v44  ;;  %v4632_v53 = vadd.f32 %v13249_v47, %v4483_v4  ;;  %5778 = vmatprep.subr.bf16.mxu0 %v10472_v39  ;;  %v10473_v44 = vld [vmem:[%s16608_s8 + $0x1e0] ss:$8 sps:$4 sm:$0xff]   ;;  %v3918_v21 = vpop.xlane.xlu1 %3917 }
 0x448   : > { %17248 = vst [vmem:[#allocation84_spill] sm:$0xff] %v13737_v56  ;;  %v4084_v28 = vmax.f32 %v4052_v24, 0.0  ;;  %v4627_v27 = vadd.f32 %v13261_v38, %v4478_v29  ;;  %v4631_v48 = vadd.f32 %v13261_v38, %v4482_v22  ;;  %v13756_v4 = vpop.eup %10592  ;;  %v3602_v14 = vpop.xlane.xlu0 %3601 }
 0x449   : > { %17251 = vst [vmem:[#allocation86_spill] sm:$0xff] %v13756_v4  ;;  %v4243_v39 = vadd.f32 1e-05, %v4083_v32  ;;  %vm4756_vm6 = vcmp.gt.f32.partialorder %v4628_v62, 0.0  ;;  %vm4760_vm2 = vcmp.gt.f32.partialorder %v4632_v53, 0.0  ;;  %v13758_v24 = vpop.eup %10594 }
 0x44a   : > { %v4884_v61 = vmul.f32 0.01, %v4628_v62  ;;  %17252 = vst [vmem:[#allocation87_spill] sm:$0xff] %v13758_v24  ;;  %v4888_v29 = vmul.f32 0.01, %v4632_v53  ;;  %vm4755_vm9 = vcmp.gt.f32.partialorder %v4627_v27, 0.0  ;;  %5779 = vmatpush1.bf16.msra.mxu0 %v10470_v37 }
 0x44b   : > { %v4244_v58 = vadd.f32 1e-05, %v4084_v28  ;;  %vm4759_vm5 = vcmp.gt.f32.partialorder %v4631_v48, 0.0  ;;  %10596 = vrsqrt.f32 %v4243_v39  ;;  %v4883_v17 = vmul.f32 0.01, %v4627_v27  ;;  %5780 = vmatprep.subr.bf16.mxu0 %v10475_v51  ;;  %v17256_v51 = vld [vmem:[#allocation95_spill] sm:$0xff] }
 0x44c   : > { %v5012_v22 = vsel %vm4756_vm6, %v4628_v62, %v4884_v61  ;;  %v4887_v41 = vmul.f32 0.01, %v4631_v48  ;;  %v10478_v32 = vld [vmem:[%s16608_s8 + $0x1f4] ss:$8 sps:$4 sm:$0xff]   ;;  %v5016_v52 = vsel %vm4760_vm2, %v4632_v53, %v4888_v29  ;;  %v17255_v62 = vld [vmem:[#allocation94_spill] sm:$0xff] }
 0x44d   : > { %10598 = vrsqrt.f32 %v4244_v58  ;;  %v5184_v57 = vpack.c.bf16 %v5016_v52, %v5012_v22  ;;  %v5011_v55 = vsel %vm4755_vm9, %v4627_v27, %v4883_v17  ;;  %v10476_v52 = vld [vmem:[%s16608_s8 + $0x1f0] ss:$8 sps:$4 sm:$0xff]   ;;  %v17259_v27 = vsub.f32 %v17189_v16, %v13463_v50 }
 0x44e   : > { %v5015_v37 = vsel %vm4759_vm5, %v4631_v48, %v4887_v41  ;;  %5781 = vmatpush1.bf16.msra.mxu0 %v10473_v44  ;;  %v4021_v41 = vmul.f32 %v13733_v34, %v13733_v34  ;;  %v17260_v17 = vsub.f32 %v17193_v7, %v13466_v23  ;;  %v3607_v44 = vpop.xlane.xlu1 %3606  ;;  %v17262_v16 = vsub.f32 %v17192_v30, %v13466_v23 }
 0x44f   : > { %v5183_v61 = vpack.c.bf16 %v5015_v37, %v5011_v55  ;;  %5641 = vmatprep.mubr.bf16.mxu0 %v5184_v57  ;;  %v3989_v55 = vmul.f32 0.001953125, %v3913_v10  ;;  %v4338_v48 = vmul.f32 %v13616_v59, %v17259_v27  ;;  %5782 = vmatprep.subr.bf16.mxu0 %v10478_v32  ;;  %v4022_v57 = vmul.f32 %v13737_v56, %v13737_v56 }
 0x450   : > { %v4342_v22 = vmul.f32 %v13618_v33, %v17260_v17  ;;  %v3990_v37 = vmul.f32 0.001953125, %v3918_v21  ;;  %v17261_v10 = vsub.f32 %v17187_v42, %v13463_v50  ;;  %v4341_v27 = vmul.f32 %v13618_v33, %v17262_v16  ;;  %v17269_v33 = vld [vmem:[#allocation102_spill] sm:$0xff] }
 0x451   : > { %5642 = vmatmul.mubr.bf16.gmra.mrb[116].mxu0 %v5183_v61  ;;  %v4053_v7 = vsub.f32 %v3989_v55, %v4021_v41  ;;  %v4487_v17 = vmul.f32 %v13246_v15, %v4338_v48  ;;  %v13800_v61 = vmul.f32 0.001953125, %v3602_v14  ;;  %v13804_v42 = vmul.f32 0.001953125, %v3607_v44  ;;  %v17263_v41 = vld [vmem:[#allocation98_spill] sm:$0xff] }
 0x452   : > { %v4337_v53 = vmul.f32 %v13616_v59, %v17261_v10  ;;  %v4491_v32 = vmul.f32 %v13246_v15, %v4342_v22  ;;  %v4054_v29 = vsub.f32 %v3990_v37, %v4022_v57  ;;  %v4490_v28 = vmul.f32 %v13254_v63, %v4341_v27  ;;  %5783 = vmatpush1.bf16.msra.mxu0 %v10476_v52  ;;  %v3923_v37 = vpop.xlane.xlu0 %3922 }
 0x453   : > { %v4085_v10 = vmax.f32 %v4053_v7, 0.0  ;;  %v4636_v30 = vadd.f32 %v13249_v47, %v4487_v17  ;;  %v3928_v7 = vpop.xlane.xlu1 %3927 }
 0x454   : > { %v4486_v21 = vmul.f32 %v13254_v63, %v4337_v53  ;;  %v4640_v16 = vadd.f32 %v13249_v47, %v4491_v32  ;;  %v4086_v48 = vmax.f32 %v4054_v29, 0.0  ;;  %v4639_v22 = vadd.f32 %v13261_v38, %v4490_v28  ;;  %v17264_v53 = vld [vmem:[#allocation100_spill] sm:$0xff] }
 0x455   : > { %v13814_v44 = vpop.eup %10596  ;;  %v4245_v52 = vadd.f32 1e-05, %v4085_v10  ;;  %vm4764_vm12 = vcmp.gt.f32.partialorder %v4636_v30, 0.0  ;;  %v4892_v27 = vmul.f32 0.01, %v4636_v30 }
 0x456   : > { %v4635_v14 = vadd.f32 %v13261_v38, %v4486_v21  ;;  %17265 = vst [vmem:[#allocation90_spill] sm:$0xff] %v13814_v44  ;;  %vm4768_vm11 = vcmp.gt.f32.partialorder %v4640_v16, 0.0  ;;  %v4896_v32 = vmul.f32 0.01, %v4640_v16  ;;  %v4246_v55 = vadd.f32 1e-05, %v4086_v48  ;;  %v3612_v43 = vpop.xlane.xlu0 %3611 }
 0x457   : > { %v13816_v17 = vpop.eup %10598  ;;  %vm4767_vm13 = vcmp.gt.f32.partialorder %v4639_v22, 0.0  ;;  %10600 = vrsqrt.f32 %v4245_v52  ;;  %v5020_v29 = vsel %vm4764_vm12, %v4636_v30, %v4892_v27  ;;  %v4895_v21 = vmul.f32 0.01, %v4639_v22  ;;  %v17270_v52 = vld [vmem:[#allocation103_spill] sm:$0xff] }
 0x458   : > { %17266 = vst [vmem:[#allocation92_spill] sm:$0xff] %v13816_v17  ;;  %vm4763_vm10 = vcmp.gt.f32.partialorder %v4635_v14, 0.0  ;;  %v4891_v28 = vmul.f32 0.01, %v4635_v14  ;;  %v5024_v39 = vsel %vm4768_vm11, %v4640_v16, %v4896_v32  ;;  %10602 = vrsqrt.f32 %v4246_v55 }
 0x459   : > { %v5188_v1 = vpack.c.bf16 %v5024_v39, %v5020_v29  ;;  %v5023_v26 = vsel %vm4767_vm13, %v4639_v22, %v4895_v21  ;;  %v4023_v39 = vmul.f32 %v13800_v61, %v13800_v61  ;;  %v17273_v22 = vsub.f32 %v17205_v13, %v13523_v9 }
 0x45a   : > { %v5019_v58 = vsel %vm4763_vm10, %v4635_v14, %v4891_v28  ;;  %v3991_v14 = vmul.f32 0.001953125, %v3923_v37  ;;  %v3617_v28 = vpop.xlane.xlu1 %3616  ;;  %v4024_v21 = vmul.f32 %v13804_v42, %v13804_v42  ;;  %v17275_v16 = vsub.f32 %v17203_v6, %v13523_v9 }
 0x45b   : > { %v5187_v23 = vpack.c.bf16 %v5023_v26, %v5019_v58  ;;  %5651 = vmatprep.mubr.bf16.mxu0 %v5188_v1  ;;  %v4346_v26 = vmul.f32 %v13686_v60, %v17273_v22  ;;  %v17274_v58 = vsub.f32 %v17210_v40, %v13527_v36  ;;  %v3992_v1 = vmul.f32 0.001953125, %v3928_v7 }
 0x45c   : > { %v4345_v37 = vmul.f32 %v13686_v60, %v17275_v16  ;;  %v17276_v13 = vsub.f32 %v17209_v2, %v13527_v36  ;;  %v4055_v32 = vsub.f32 %v3991_v14, %v4023_v39  ;;  %v13856_v6 = vmul.f32 0.001953125, %v3617_v28  ;;  %v17277_v39 = vld [vmem:[#allocation106_spill] sm:$0xff] }
 0x45d   : > { %v4350_v29 = vmul.f32 %v13688_v5, %v17274_v58  ;;  %5652 = vmatmul.mubr.bf16.gmra.mrb[120].mxu0 %v5187_v23  ;;  %v4495_v40 = vmul.f32 %v13246_v15, %v4346_v26  ;;  %v13852_v23 = vmul.f32 0.001953125, %v3612_v43  ;;  %v4056_v31 = vsub.f32 %v3992_v1, %v4024_v21  ;;  %v17278_v21 = vld [vmem:[#allocation108_spill] sm:$0xff]  ;;  %v17283_v60 = vld [vmem:[#allocation110_spill] sm:$0xff] }
 0x45e   : > { %v4349_v22 = vmul.f32 %v13688_v5, %v17276_v13  ;;  %v4494_v7 = vmul.f32 %v13254_v63, %v4345_v37  ;;  %v4087_v16 = vmax.f32 %v4055_v32, 0.0  ;;  %v3933_v37 = vpop.xlane.xlu0 %3932 }
 0x45f   : > { %v4499_v58 = vmul.f32 %v13246_v15, %v4350_v29  ;;  %v4644_v30 = vadd.f32 %v13249_v47, %v4495_v40  ;;  %v4088_v26 = vmax.f32 %v4056_v31, 0.0 }
 0x460   : > { %v4498_v48 = vmul.f32 %v13254_v63, %v4349_v22  ;;  %v4643_v29 = vadd.f32 %v13261_v38, %v4494_v7  ;;  %v4247_v28 = vadd.f32 1e-05, %v4087_v16  ;;  %v3938_v22 = vpop.xlane.xlu1 %3937 }
 0x461   : > { %v4648_v2 = vadd.f32 %v13249_v47, %v4499_v58  ;;  %v13866_v13 = vpop.eup %10600  ;;  %vm4772_vm15 = vcmp.gt.f32.partialorder %v4644_v30, 0.0  ;;  %v4900_v32 = vmul.f32 0.01, %v4644_v30  ;;  %v4248_v14 = vadd.f32 1e-05, %v4088_v26 }
 0x462   : > { %v4647_v43 = vadd.f32 %v13261_v38, %v4498_v48  ;;  %17279 = vst [vmem:[#allocation94_spill] sm:$0xff] %v13866_v13  ;;  %v13868_v40 = vpop.eup %10602  ;;  %vm4771_vm14 = vcmp.gt.f32.partialorder %v4643_v29, 0.0  ;;  %10604 = vrsqrt.f32 %v4247_v28  ;;  %v4899_v48 = vmul.f32 0.01, %v4643_v29  ;;  %v17284_v28 = vld [vmem:[#allocation111_spill] sm:$0xff]  ;;  %v3622_v57 = vpop.xlane.xlu0 %3621 }
 0x463   : > { %vm4776_vm1 = vcmp.gt.f32.partialorder %v4648_v2, 0.0  ;;  %17280 = vst [vmem:[#allocation95_spill] sm:$0xff] %v13868_v40  ;;  %v4904_v58 = vmul.f32 0.01, %v4648_v2  ;;  %v5028_v31 = vsel %vm4772_vm15, %v4644_v30, %v4900_v32  ;;  %10606 = vrsqrt.f32 %v4248_v14 }
 0x464   : > { %vm4775_vm3 = vcmp.gt.f32.partialorder %v4647_v43, 0.0  ;;  %v4903_v7 = vmul.f32 0.01, %v4647_v43  ;;  %v5027_v5 = vsel %vm4771_vm14, %v4643_v29, %v4899_v48  ;;  %v3993_v29 = vmul.f32 0.001953125, %v3933_v37  ;;  %v3627_v48 = vpop.xlane.xlu1 %3626 }
 0x465   : > { %v5032_v27 = vsel %vm4776_vm1, %v4648_v2, %v4904_v58  ;;  %v17289_v2 = vsub.f32 %v17219_v8, %v13593_v46  ;;  %v13908_v8 = vmul.f32 0.001953125, %v3627_v48 }
 0x466   : > { %v5192_v10 = vpack.c.bf16 %v5032_v27, %v5028_v31  ;;  %v5031_v36 = vsel %vm4775_vm3, %v4647_v43, %v4903_v7  ;;  %v4025_v27 = vmul.f32 %v13852_v23, %v13852_v23  ;;  %v17287_v43 = vsub.f32 %v17220_v54, %v13593_v46 }
 0x467   : > { %v5191_v9 = vpack.c.bf16 %v5031_v36, %v5027_v5  ;;  %v17288_v5 = vsub.f32 %v17225_v25, %v13597_v11  ;;  %v4026_v7 = vmul.f32 %v13856_v6, %v13856_v6  ;;  %v4353_v37 = vmul.f32 %v13756_v4, %v17289_v2 }
 0x468   : > { %5661 = vmatprep.mubr.bf16.mxu0 %v5192_v10  ;;  %v4354_v36 = vmul.f32 %v13756_v4, %v17287_v43  ;;  %v3994_v10 = vmul.f32 0.001953125, %v3938_v22  ;;  %v17290_v54 = vsub.f32 %v17224_v45, %v13597_v11  ;;  %v4057_v58 = vsub.f32 %v3993_v29, %v4025_v27  ;;  %v17291_v27 = vld [vmem:[#allocation114_spill] sm:$0xff] }
 0x469   : > { %v4358_v31 = vmul.f32 %v13758_v24, %v17288_v5  ;;  %5662 = vmatmul.mubr.bf16.gmra.mrb[124].mxu0 %v5191_v9  ;;  %v13904_v9 = vmul.f32 0.001953125, %v3622_v57  ;;  %v4502_v22 = vmul.f32 %v13254_v63, %v4353_v37  ;;  %v3943_v37 = vpop.xlane.xlu0 %3942  ;;  %v17295_v4 = vld [vmem:[#allocation118_spill] sm:$0xff] }
 0x46a   : > { %v4357_v43 = vmul.f32 %v13758_v24, %v17290_v54  ;;  %v4503_v25 = vmul.f32 %v13246_v15, %v4354_v36  ;;  %v4058_v55 = vsub.f32 %v3994_v10, %v4026_v7  ;;  %v4089_v2 = vmax.f32 %v4057_v58, 0.0  ;;  %v17292_v7 = vld [vmem:[#allocation116_spill] sm:$0xff] }
 0x46b   : > { %v4507_v5 = vmul.f32 %v13246_v15, %v4358_v31  ;;  %v4651_v31 = vadd.f32 %v13261_v38, %v4502_v22 }
 0x46c   : > { %v4506_v26 = vmul.f32 %v13254_v63, %v4357_v43  ;;  %v4652_v30 = vadd.f32 %v13249_v47, %v4503_v25  ;;  %v4090_v36 = vmax.f32 %v4058_v55, 0.0  ;;  %v13918_v54 = vpop.eup %10604  ;;  %v4249_v48 = vadd.f32 1e-05, %v4089_v2  ;;  %v3948_v43 = vpop.xlane.xlu1 %3947 }
 0x46d   : > { %v4656_v45 = vadd.f32 %v13249_v47, %v4507_v5  ;;  %v13920_v25 = vpop.eup %10606  ;;  %vm4779_vm8 = vcmp.gt.f32.partialorder %v4651_v31, 0.0  ;;  %v3632_v1 = vpop.xlane.xlu0 %3631 }
 0x46e   : > { %v4655_v57 = vadd.f32 %v13261_v38, %v4506_v26  ;;  %vm4780_vm7 = vcmp.gt.f32.partialorder %v4652_v30, 0.0  ;;  %v4908_v58 = vmul.f32 0.01, %v4652_v30  ;;  %v4250_v29 = vadd.f32 1e-05, %v4090_v36 }
 0x46f   : > { %vm4784_vm4 = vcmp.gt.f32.partialorder %v4656_v45, 0.0  ;;  %v4912_v5 = vmul.f32 0.01, %v4656_v45  ;;  %10608 = vrsqrt.f32 %v4249_v48  ;;  %v4907_v26 = vmul.f32 0.01, %v4651_v31  ;;  %v17296_v48 = vld [vmem:[#allocation119_spill] sm:$0xff] }
 0x470   : > { %vm4783_vm0 = vcmp.gt.f32.partialorder %v4655_v57, 0.0  ;;  %v5036_v55 = vsel %vm4780_vm7, %v4652_v30, %v4908_v58  ;;  %v4911_v22 = vmul.f32 0.01, %v4655_v57  ;;  %10610 = vrsqrt.f32 %v4250_v29 }
 0x471   : > { %v5040_v32 = vsel %vm4784_vm4, %v4656_v45, %v4912_v5  ;;  %v5035_v24 = vsel %vm4779_vm8, %v4651_v31, %v4907_v26  ;;  %v3995_v31 = vmul.f32 0.001953125, %v3943_v37  ;;  %v3637_v26 = vpop.xlane.xlu1 %3636  ;;  %v17301_v45 = vsub.f32 %v17234_v35, %v13663_v19 }
 0x472   : > { %v5196_v16 = vpack.c.bf16 %v5040_v32, %v5036_v55  ;;  %v5039_v11 = vsel %vm4783_vm0, %v4655_v57, %v4911_v22  ;;  %v4027_v32 = vmul.f32 %v13904_v9, %v13904_v9  ;;  %v17299_v57 = vsub.f32 %v17235_v18, %v13663_v19 }
 0x473   : > { %v5195_v46 = vpack.c.bf16 %v5039_v11, %v5035_v24  ;;  %v17300_v24 = vsub.f32 %v17241_v3, %v13667_v0  ;;  %v4028_v22 = vmul.f32 %v13908_v8, %v13908_v8  ;;  %v4361_v37 = vmul.f32 %v13814_v44, %v17301_v45 }
 0x474   : > { %5671 = vmatprep.mubr.bf16.mxu0 %v5196_v16  ;;  %v4362_v11 = vmul.f32 %v13814_v44, %v17299_v57  ;;  %v3996_v16 = vmul.f32 0.001953125, %v3948_v43  ;;  %v17302_v18 = vsub.f32 %v17240_v20, %v13667_v0  ;;  %v4059_v5 = vsub.f32 %v3995_v31, %v4027_v32  ;;  %v17303_v32 = vld [vmem:[#allocation122_spill] sm:$0xff] }
 0x475   : > { %v4366_v55 = vmul.f32 %v13816_v17, %v17300_v24  ;;  %5672 = vmatmul.mubr.bf16.gmra.mrb[128].mxu0 %v5195_v46  ;;  %v13956_v46 = vmul.f32 0.001953125, %v3632_v1  ;;  %v4510_v43 = vmul.f32 %v13254_v63, %v4361_v37  ;;  %v13960_v35 = vmul.f32 0.001953125, %v3637_v26  ;;  %v3953_v37 = vpop.xlane.xlu0 %3952  ;;  %v17307_v44 = vld [vmem:[#allocation126_spill] sm:$0xff] }
 0x476   : > { %v4365_v57 = vmul.f32 %v13816_v17, %v17302_v18  ;;  %v4511_v3 = vmul.f32 %v13246_v15, %v4362_v11  ;;  %v4060_v14 = vsub.f32 %v3996_v16, %v4028_v22  ;;  %v4091_v45 = vmax.f32 %v4059_v5, 0.0  ;;  %v17304_v22 = vld [vmem:[#allocation124_spill] sm:$0xff] }
 0x477   : > { %v4515_v24 = vmul.f32 %v13246_v15, %v4366_v55  ;;  %v4659_v55 = vadd.f32 %v13261_v38, %v4510_v43 }
 0x478   : > { %v4514_v36 = vmul.f32 %v13254_v63, %v4365_v57  ;;  %v4660_v30 = vadd.f32 %v13249_v47, %v4511_v3  ;;  %v4092_v11 = vmax.f32 %v4060_v14, 0.0  ;;  %v4251_v26 = vadd.f32 1e-05, %v4091_v45  ;;  %v3958_v57 = vpop.xlane.xlu1 %3957 }
 0x479   : > { %v4664_v20 = vadd.f32 %v13249_v47, %v4515_v24  ;;  %v13970_v18 = vpop.eup %10608  ;;  %vm4787_vm9 = vcmp.gt.f32.partialorder %v4659_v55, 0.0  ;;  %v3642_v10 = vpop.xlane.xlu0 %3641 }
 0x47a   : > { %v4663_v1 = vadd.f32 %v13261_v38, %v4514_v36  ;;  %vm4788_vm6 = vcmp.gt.f32.partialorder %v4660_v30, 0.0  ;;  %v4916_v5 = vmul.f32 0.01, %v4660_v30  ;;  %v13972_v3 = vpop.eup %10610  ;;  %v4252_v31 = vadd.f32 1e-05, %v4092_v11 }
 0x47b   : > { %vm4792_vm2 = vcmp.gt.f32.partialorder %v4664_v20, 0.0  ;;  %v4920_v24 = vmul.f32 0.01, %v4664_v20  ;;  %10612 = vrsqrt.f32 %v4251_v26  ;;  %v4915_v36 = vmul.f32 0.01, %v4659_v55  ;;  %v17308_v26 = vld [vmem:[#allocation127_spill] sm:$0xff] }
 0x47c   : > { %vm4791_vm5 = vcmp.gt.f32.partialorder %v4663_v1, 0.0  ;;  %v5044_v14 = vsel %vm4788_vm6, %v4660_v30, %v4916_v5  ;;  %v4919_v43 = vmul.f32 0.01, %v4663_v1  ;;  %10614 = vrsqrt.f32 %v4252_v31 }
 0x47d   : > { %v5048_v58 = vsel %vm4792_vm2, %v4664_v20, %v4920_v24  ;;  %v5043_v17 = vsel %vm4787_vm9, %v4659_v55, %v4915_v36  ;;  %v3997_v55 = vmul.f32 0.001953125, %v3953_v37  ;;  %v3647_v36 = vpop.xlane.xlu1 %3646  ;;  %v17313_v20 = vsub.f32 %v17249_v12, %v13733_v34  ;;  %v3963_v16 = vpop.xlane.xlu0 %3962 }
 0x47e   : > { %v5200_v2 = vpack.c.bf16 %v5048_v58, %v5044_v14  ;;  %v5047_v0 = vsel %vm4791_vm5, %v4663_v1, %v4919_v43  ;;  %v4029_v58 = vmul.f32 %v13956_v46, %v13956_v46  ;;  %v17311_v1 = vsub.f32 %v17250_v49, %v13733_v34 }
 0x47f   : > { %v5199_v19 = vpack.c.bf16 %v5047_v0, %v5043_v17  ;;  %v17312_v17 = vsub.f32 %v17256_v51, %v13737_v56  ;;  %v4030_v43 = vmul.f32 %v13960_v35, %v13960_v35  ;;  %v4369_v37 = vmul.f32 %v13866_v13, %v17313_v20 }
 0x480   : > { %5681 = vmatprep.mubr.bf16.mxu0 %v5200_v2  ;;  %v4370_v0 = vmul.f32 %v13866_v13, %v17311_v1  ;;  %v3998_v2 = vmul.f32 0.001953125, %v3958_v57  ;;  %v17314_v49 = vsub.f32 %v17255_v62, %v13737_v56  ;;  %v4061_v24 = vsub.f32 %v3997_v55, %v4029_v58  ;;  %v17315_v58 = vld [vmem:[#allocation130_spill] sm:$0xff]  ;;  %v17317_v55 = vld [vmem:[#allocation131_spill] sm:$0xff] }
 0x481   : > { %v4374_v14 = vmul.f32 %v13868_v40, %v17312_v17  ;;  %5682 = vmatmul.mubr.bf16.gmra.mrb[132].mxu0 %v5199_v19  ;;  %v14008_v19 = vmul.f32 0.001953125, %v3642_v10  ;;  %v4518_v57 = vmul.f32 %v13254_v63, %v4369_v37  ;;  %v14012_v12 = vmul.f32 0.001953125, %v3647_v36  ;;  %v3968_v13 = vpop.xlane.xlu1 %3967 }
 0x482   : > { %v4373_v1 = vmul.f32 %v13868_v40, %v17314_v49  ;;  %v4519_v51 = vmul.f32 %v13246_v15, %v4370_v0  ;;  %v4062_v29 = vsub.f32 %v3998_v2, %v4030_v43  ;;  %v4093_v20 = vmax.f32 %v4061_v24, 0.0  ;;  %v17316_v43 = vld [vmem:[#allocation132_spill] sm:$0xff] }
 0x483   : > { %v4523_v17 = vmul.f32 %v13246_v15, %v4374_v14  ;;  %v4667_v14 = vadd.f32 %v13261_v38, %v4518_v57 }
 0x484   : > { %v4522_v11 = vmul.f32 %v13254_v63, %v4373_v1  ;;  %v4668_v30 = vadd.f32 %v13249_v47, %v4519_v51  ;;  %v4094_v0 = vmax.f32 %v4062_v29, 0.0  ;;  %v4253_v36 = vadd.f32 1e-05, %v4093_v20  ;;  %v17318_v20 = vld [vmem:[#allocation133_spill] sm:$0xff] }
 0x485   : > { %v4672_v62 = vadd.f32 %v13249_v47, %v4523_v17  ;;  %v14022_v37 = vpop.eup %10612  ;;  %vm4795_vm10 = vcmp.gt.f32.partialorder %v4667_v14, 0.0  ;;  %v4923_v17 = vmul.f32 0.01, %v4667_v14 }
 0x486   : > { %v4671_v10 = vadd.f32 %v13261_v38, %v4522_v11  ;;  %vm4796_vm12 = vcmp.gt.f32.partialorder %v4668_v30, 0.0  ;;  %v4924_v24 = vmul.f32 0.01, %v4668_v30  ;;  %v14024_v49 = vpop.eup %10614  ;;  %v4254_v51 = vadd.f32 1e-05, %v4094_v0  ;;  %v17319_v0 = vld [vmem:[#allocation134_spill] sm:$0xff] }
 0x487   : > { %vm4800_vm11 = vcmp.gt.f32.partialorder %v4672_v62, 0.0  ;;  %v4928_v1 = vmul.f32 0.01, %v4672_v62  ;;  %10616 = vrsqrt.f32 %v4253_v36  ;;  %v5051_v45 = vsel %vm4795_vm10, %v4667_v14, %v4923_v17 }
 0x488   : > { %vm4799_vm13 = vcmp.gt.f32.partialorder %v4671_v10, 0.0  ;;  %v5052_v29 = vsel %vm4796_vm12, %v4668_v30, %v4924_v24  ;;  %v4927_v57 = vmul.f32 0.01, %v4671_v10  ;;  %10618 = vrsqrt.f32 %v4254_v51  ;;  %v17320_v30 = vld [vmem:[#allocation135_spill] sm:$0xff]  ;;  %v17322_v51 = vld [vmem:[#allocation137_spill] sm:$0xff] }
 0x489   : > { %v5056_v11 = vsel %vm4800_vm11, %v4672_v62, %v4928_v1  ;;  %v3999_v14 = vmul.f32 0.001953125, %v3963_v16  ;;  %v17329_v24 = vsub.f32 %v17277_v39, %v13852_v23 }
 0x48a   : > { %v5204_v31 = vpack.c.bf16 %v5056_v11, %v5052_v29  ;;  %v5055_v40 = vsel %vm4799_vm13, %v4671_v10, %v4927_v57  ;;  %v4031_v29 = vmul.f32 %v14008_v19, %v14008_v19  ;;  %v17323_v10 = vsub.f32 %v17264_v53, %v13800_v61 }
 0x48b   : > { %v5203_v36 = vpack.c.bf16 %v5055_v40, %v5051_v45  ;;  %v17324_v40 = vsub.f32 %v17270_v52, %v13804_v42  ;;  %v4032_v57 = vmul.f32 %v14012_v12, %v14012_v12  ;;  %v4000_v11 = vmul.f32 0.001953125, %v3968_v13 }
 0x48c   : > { %5691 = vmatprep.mubr.bf16.mxu0 %v5204_v31  ;;  %v4378_v17 = vmul.f32 %v13918_v54, %v17323_v10  ;;  %v17325_v31 = vsub.f32 %v17263_v41, %v13800_v61  ;;  %v17326_v53 = vsub.f32 %v17269_v33, %v13804_v42  ;;  %v4063_v1 = vsub.f32 %v3999_v14, %v4031_v29 }
 0x48d   : > { %v4382_v45 = vmul.f32 %v13920_v25, %v17324_v40  ;;  %5692 = vmatmul.mubr.bf16.gmra.mrb[136].mxu0 %v5203_v36  ;;  %v17327_v36 = vsub.f32 %v17278_v21, %v13852_v23  ;;  %v4064_v2 = vsub.f32 %v4000_v11, %v4032_v57  ;;  %v17328_v33 = vsub.f32 %v17284_v28, %v13856_v6 }
 0x48e   : > { %v4377_v16 = vmul.f32 %v13918_v54, %v17325_v31  ;;  %v4381_v10 = vmul.f32 %v13920_v25, %v17326_v53  ;;  %v4527_v52 = vmul.f32 %v13246_v15, %v4378_v17  ;;  %v4095_v29 = vmax.f32 %v4063_v1, 0.0 }
 0x48f   : > { %v4531_v40 = vmul.f32 %v13246_v15, %v4382_v45  ;;  %v4386_v13 = vmul.f32 %v13970_v18, %v17327_v36  ;;  %v4390_v53 = vmul.f32 %v13972_v3, %v17328_v33  ;;  %v4096_v21 = vmax.f32 %v4064_v2, 0.0 }
 0x490   : > { %v4526_v41 = vmul.f32 %v13254_v63, %v4377_v16  ;;  %v4530_v31 = vmul.f32 %v13254_v63, %v4381_v10  ;;  %v4676_v14 = vadd.f32 %v13249_v47, %v4527_v52  ;;  %v4255_v10 = vadd.f32 1e-05, %v4095_v29 }
 0x491   : > { %v4680_v17 = vadd.f32 %v13249_v47, %v4531_v40  ;;  %v4535_v45 = vmul.f32 %v13246_v15, %v4386_v13  ;;  %v4539_v11 = vmul.f32 %v13246_v15, %v4390_v53  ;;  %v14076_v16 = vpop.eup %10616  ;;  %v4256_v33 = vadd.f32 1e-05, %v4096_v21 }
 0x492   : > { %v4675_v36 = vadd.f32 %v13261_v38, %v4526_v41  ;;  %v4679_v57 = vadd.f32 %v13261_v38, %v4530_v31  ;;  %vm4804_vm15 = vcmp.gt.f32.partialorder %v4676_v14, 0.0  ;;  %v4932_v28 = vmul.f32 0.01, %v4676_v14  ;;  %v14078_v1 = vpop.eup %10618 }
 0x493   : > { %vm4808_vm1 = vcmp.gt.f32.partialorder %v4680_v17, 0.0  ;;  %v4936_v52 = vmul.f32 0.01, %v4680_v17  ;;  %10620 = vrsqrt.f32 %v4255_v10  ;;  %v4684_v31 = vadd.f32 %v13249_v47, %v4535_v45 }
 0x494   : > { %vm4803_vm14 = vcmp.gt.f32.partialorder %v4675_v36, 0.0  ;;  %vm4807_vm3 = vcmp.gt.f32.partialorder %v4679_v57, 0.0  ;;  %v5060_v2 = vsel %vm4804_vm15, %v4676_v14, %v4932_v28  ;;  %v4931_v40 = vmul.f32 0.01, %v4675_v36 }
 0x495   : > { %v4935_v13 = vmul.f32 0.01, %v4679_v57  ;;  %v5064_v41 = vsel %vm4808_vm1, %v4680_v17, %v4936_v52  ;;  %10622 = vrsqrt.f32 %v4256_v33  ;;  %v4688_v53 = vadd.f32 %v13249_v47, %v4539_v11 }
 0x496   : > { %v5208_v29 = vpack.c.bf16 %v5064_v41, %v5060_v2  ;;  %v5059_v5 = vsel %vm4803_vm14, %v4675_v36, %v4931_v40  ;;  %v4385_v21 = vmul.f32 %v13970_v18, %v17329_v24  ;;  %vm4812_vm7 = vcmp.gt.f32.partialorder %v4684_v31, 0.0 }
 0x497   : > { %v5063_v56 = vsel %vm4807_vm3, %v4679_v57, %v4935_v13  ;;  %vm4816_vm4 = vcmp.gt.f32.partialorder %v4688_v53, 0.0  ;;  %v4940_v14 = vmul.f32 0.01, %v4684_v31  ;;  %v4944_v10 = vmul.f32 0.01, %v4688_v53 }
 0x498   : > { %v5207_v62 = vpack.c.bf16 %v5063_v56, %v5059_v5  ;;  %5701 = vmatprep.mubr.bf16.mxu0 %v5208_v29  ;;  %v17330_v17 = vsub.f32 %v17283_v60, %v13856_v6  ;;  %v4534_v11 = vmul.f32 %v13254_v63, %v4385_v21  ;;  %v17331_v36 = vsub.f32 %v17292_v7, %v13904_v9 }
 0x499   : > { %v5068_v24 = vsel %vm4812_vm7, %v4684_v31, %v4940_v14  ;;  %v17332_v56 = vsub.f32 %v17296_v48, %v13908_v8  ;;  %v17333_v57 = vsub.f32 %v17291_v27, %v13904_v9  ;;  %v17334_v28 = vsub.f32 %v17295_v4, %v13908_v8 }
 0x49a   : > { %v4389_v45 = vmul.f32 %v13972_v3, %v17330_v17  ;;  %v4394_v39 = vmul.f32 %v14022_v37, %v17331_v36  ;;  %5702 = vmatmul.mubr.bf16.gmra.mrb[140].mxu0 %v5207_v62  ;;  %v5072_v7 = vsel %vm4816_vm4, %v4688_v53, %v4944_v10  ;;  %v4683_v62 = vadd.f32 %v13261_v38, %v4534_v11 }
 0x49b   : > { %v4398_v5 = vmul.f32 %v14024_v49, %v17332_v56  ;;  %v4393_v60 = vmul.f32 %v14022_v37, %v17333_v57  ;;  %v4397_v52 = vmul.f32 %v14024_v49, %v17334_v28  ;;  %v5212_v48 = vpack.c.bf16 %v5072_v7, %v5068_v24 }
 0x49c   : > { %v4538_v33 = vmul.f32 %v13254_v63, %v4389_v45  ;;  %v4543_v2 = vmul.f32 %v13246_v15, %v4394_v39  ;;  %vm4811_vm8 = vcmp.gt.f32.partialorder %v4683_v62, 0.0  ;;  %v4939_v4 = vmul.f32 0.01, %v4683_v62 }
 0x49d   : > { %v4547_v40 = vmul.f32 %v13246_v15, %v4398_v5  ;;  %v4542_v13 = vmul.f32 %v13254_v63, %v4393_v60  ;;  %v4546_v27 = vmul.f32 %v13254_v63, %v4397_v52  ;;  %5711 = vmatprep.mubr.bf16.mxu0 %v5212_v48  ;;  %v17335_v14 = vsub.f32 %v17304_v22, %v13956_v46  ;;  %v14122_v17 = vpop.eup %10620 }
 0x49e   : > { %v4687_v41 = vadd.f32 %v13261_v38, %v4538_v33  ;;  %v4692_v31 = vadd.f32 %v13249_v47, %v4543_v2  ;;  %v5067_v11 = vsel %vm4811_vm8, %v4683_v62, %v4939_v4  ;;  %v17336_v52 = vsub.f32 %v17308_v26, %v13960_v35 }
 0x49f   : > { %v4696_v53 = vadd.f32 %v13249_v47, %v4547_v40  ;;  %v4691_v29 = vadd.f32 %v13261_v38, %v4542_v13  ;;  %v4695_v21 = vadd.f32 %v13261_v38, %v4546_v27  ;;  %v4402_v10 = vmul.f32 %v14076_v16, %v17335_v14  ;;  %v14124_v36 = vpop.eup %10622 }
 0x4a0   : > { %vm4815_vm0 = vcmp.gt.f32.partialorder %v4687_v41, 0.0  ;;  %v4943_v45 = vmul.f32 0.01, %v4687_v41  ;;  %vm4820_vm6 = vcmp.gt.f32.partialorder %v4692_v31, 0.0  ;;  %v4948_v39 = vmul.f32 0.01, %v4692_v31 }
 0x4a1   : > { %vm4824_vm2 = vcmp.gt.f32.partialorder %v4696_v53, 0.0  ;;  %v4952_v24 = vmul.f32 0.01, %v4696_v53  ;;  %vm4819_vm9 = vcmp.gt.f32.partialorder %v4691_v29, 0.0  ;;  %vm4823_vm5 = vcmp.gt.f32.partialorder %v4695_v21, 0.0 }
 0x4a2   : > { %v5071_v56 = vsel %vm4815_vm0, %v4687_v41, %v4943_v45  ;;  %v4947_v5 = vmul.f32 0.01, %v4691_v29  ;;  %v4951_v57 = vmul.f32 0.01, %v4695_v21  ;;  %v5076_v22 = vsel %vm4820_vm6, %v4692_v31, %v4948_v39 }
 0x4a3   : > { %v5211_v60 = vpack.c.bf16 %v5071_v56, %v5067_v11  ;;  %v5080_v28 = vsel %vm4824_vm2, %v4696_v53, %v4952_v24  ;;  %v4406_v7 = vmul.f32 %v14078_v1, %v17336_v52  ;;  %v4551_v48 = vmul.f32 %v13246_v15, %v4402_v10 }
 0x4a4   : > { %v5216_v33 = vpack.c.bf16 %v5080_v28, %v5076_v22  ;;  %v5075_v62 = vsel %vm4819_vm9, %v4691_v29, %v4947_v5  ;;  %v5079_v2 = vsel %vm4823_vm5, %v4695_v21, %v4951_v57  ;;  %v17337_v27 = vsub.f32 %v17303_v32, %v13956_v46 }
 0x4a5   : > { %5712 = vmatmul.mubr.bf16.gmra.mrb[144].mxu0 %v5211_v60  ;;  %v5215_v40 = vpack.c.bf16 %v5079_v2, %v5075_v62  ;;  %v4555_v13 = vmul.f32 %v13246_v15, %v4406_v7  ;;  %v17338_v4 = vsub.f32 %v17307_v44, %v13960_v35  ;;  %v4700_v31 = vadd.f32 %v13249_v47, %v4551_v48 }
 0x4a6   : > { %v4401_v41 = vmul.f32 %v14076_v16, %v17337_v27  ;;  %5721 = vmatprep.mubr.bf16.mxu0 %v5216_v33  ;;  %v17339_v53 = vsub.f32 %v17316_v43, %v14008_v19  ;;  %v17340_v21 = vsub.f32 %v17320_v30, %v14012_v12  ;;  %v17341_v14 = vsub.f32 %v17315_v58, %v14008_v19 }
 0x4a7   : > { %v4405_v26 = vmul.f32 %v14078_v1, %v17338_v4  ;;  %v4704_v10 = vadd.f32 %v13249_v47, %v4555_v13  ;;  %v17342_v43 = vsub.f32 %v17319_v0, %v14012_v12  ;;  %vm4828_vm12 = vcmp.gt.f32.partialorder %v4700_v31, 0.0  ;;  %v17344_v4 = vld [vmem:[#allocation139_spill] sm:$0xff] }
 0x4a8   : > { %v4410_v29 = vmul.f32 %v14122_v17, %v17339_v53  ;;  %v4414_v32 = vmul.f32 %v14124_v36, %v17340_v21  ;;  %v4409_v44 = vmul.f32 %v14122_v17, %v17341_v14  ;;  %v4550_v45 = vmul.f32 %v13254_v63, %v4401_v41  ;;  %v17343_v41 = vld [vmem:[#allocation29_spill] sm:$0xff]  ;;  %v17347_v21 = vld [vmem:[#allocation26_spill] sm:$0xff] }
 0x4a9   : > { %v4554_v11 = vmul.f32 %v13254_v63, %v4405_v26  ;;  %v4413_v39 = vmul.f32 %v14124_v36, %v17342_v43  ;;  %v4956_v30 = vmul.f32 0.01, %v4700_v31  ;;  %vm4832_vm11 = vcmp.gt.f32.partialorder %v4704_v10, 0.0 }
 0x4aa   : > { %v4559_v24 = vmul.f32 %v13246_v15, %v4410_v29  ;;  %v4563_v56 = vmul.f32 %v13246_v15, %v4414_v32  ;;  %v4960_v58 = vmul.f32 0.01, %v4704_v10  ;;  %v4699_v5 = vadd.f32 %v13261_v38, %v4550_v45  ;;  %v10802_v29 = vld [vmem:[%s16606_s6] sm:$0xf] }
 0x4ab   : > { %v4703_v57 = vadd.f32 %v13261_v38, %v4554_v11  ;;  %v5084_v60 = vsel %vm4828_vm12, %v4700_v31, %v4956_v30  ;;  %v4558_v0 = vmul.f32 %v13254_v63, %v4409_v44  ;;  %v4562_v13 = vmul.f32 %v13254_v63, %v4413_v39  ;;  %v17346_v31 = vld [vmem:[#allocation146_spill] sm:$0xff]  ;;  %v17348_v11 = vld [vmem:[#allocation147_spill] sm:$0xff] }
 0x4ac   : > { %v4708_v22 = vadd.f32 %v13249_v47, %v4559_v24  ;;  %v4712_v28 = vadd.f32 %v13249_v47, %v4563_v56  ;;  %v5088_v52 = vsel %vm4832_vm11, %v4704_v10, %v4960_v58  ;;  %vm4827_vm10 = vcmp.gt.f32.partialorder %v4699_v5, 0.0  ;;  %v10803_v24 = vld [vmem:[%s16607_s7] sm:$0xf] }
 0x4ad   : > { %vm4831_vm13 = vcmp.gt.f32.partialorder %v4703_v57, 0.0  ;;  %v4955_v7 = vmul.f32 0.01, %v4699_v5  ;;  %v5220_v33 = vpack.c.bf16 %v5088_v52, %v5084_v60  ;;  %v4959_v62 = vmul.f32 0.01, %v4703_v57  ;;  %5722 = vmatmul.mubr.bf16.gmra.mrb[148].mxu0 %v5215_v40  ;;  %v17352_v60 = vld [vmem:[#allocation144_spill] sm:$0xff] }
 0x4ae   : > { %vm4836_vm15 = vcmp.gt.f32.partialorder %v4708_v22, 0.0  ;;  %vm4840_vm1 = vcmp.gt.f32.partialorder %v4712_v28, 0.0  ;;  %v4964_v2 = vmul.f32 0.01, %v4708_v22  ;;  %v4968_v48 = vmul.f32 0.01, %v4712_v28 }
 0x4af   : > { %v5083_v15 = vsel %vm4827_vm10, %v4699_v5, %v4955_v7  ;;  %5731 = vmatprep.mubr.bf16.mxu0 %v5220_v33  ;;  %v5087_v27 = vsel %vm4831_vm13, %v4703_v57, %v4959_v62  ;;  %v4707_v47 = vadd.f32 %v13261_v38, %v4558_v0  ;;  %v17345_v26 = vsub.f32 %v17343_v41, %v17344_v4  ;;  %v17349_v5 = vld [vmem:[#allocation27_spill] sm:$0xff]  ;;  %v17355_v7 = vld [vmem:[#allocation25_spill] sm:$0xff] }
 0x4b0   : > { %v14177_v40 = vrot.slane %v10802_v29, %v17347_v21  ;;  %v5219_v32 = vpack.c.bf16 %v5087_v27, %v5083_v15  ;;  %v5092_v14 = vsel %vm4836_vm15, %v4708_v22, %v4964_v2  ;;  %v5096_v44 = vsel %vm4840_vm1, %v4712_v28, %v4968_v48  ;;  %v17353_v28 = vld [vmem:[#allocation28_spill] sm:$0xff]  ;;  %v17356_v41 = vld [vmem:[#allocation31_spill] sm:$0xff] }
 0x4b1   : > { %v4296_v53 = vmul.f32 %v17346_v31, %v17345_v26  ;;  %v4711_v63 = vadd.f32 %v13261_v38, %v4562_v13  ;;  %v5224_v10 = vpack.c.bf16 %v5096_v44, %v5092_v14  ;;  %vm4835_vm14 = vcmp.gt.f32.partialorder %v4707_v47, 0.0  ;;  %v17350_v38 = vld [vmem:[#allocation138_spill] sm:$0xff] }
 0x4b2   : > { %v4963_v45 = vmul.f32 0.01, %v4707_v47  ;;  %v4441_v43 = vmul.f32 %v14177_v40, %v17348_v11  ;;  %v14187_v56 = vrot.slane %v10803_v24, %v17347_v21  ;;  %v17351_v57 = vsub.f32 %v17349_v5, %v17350_v38  ;;  %v17364_v5 = vld [vmem:[#allocation30_spill] sm:$0xff] }
 0x4b3   : > { %vm4839_vm3 = vcmp.gt.f32.partialorder %v4711_v63, 0.0  ;;  %v4967_v39 = vmul.f32 0.01, %v4711_v63  ;;  %v4445_v30 = vmul.f32 %v14177_v40, %v4296_v53  ;;  %v17354_v0 = vsub.f32 %v17353_v28, %v17344_v4  ;;  %v17357_v4 = vld [vmem:[#allocation140_spill] sm:$0xff] }
 0x4b4   : > { %v5091_v58 = vsel %vm4835_vm14, %v4707_v47, %v4963_v45  ;;  %v4291_v22 = vmul.f32 %v17352_v60, %v17351_v57  ;;  %v14198_v33 = vrot.slane %v10802_v29, %v17355_v7  ;;  %v4590_v15 = vadd.f32 %v14187_v56, %v4441_v43  ;;  %v17361_v45 = vld [vmem:[#allocation141_spill] sm:$0xff]  ;;  %v17363_v43 = vld [vmem:[#allocation151_spill] sm:$0xff]  ;;  %v17366_v57 = vld [vmem:[#allocation32_spill] sm:$0xff] }
 0x4b5   : > { %v4295_v52 = vmul.f32 %v17346_v31, %v17354_v0  ;;  %v5095_v62 = vsel %vm4839_vm3, %v4711_v63, %v4967_v39  ;;  %v4594_v2 = vadd.f32 %v14187_v56, %v4445_v30  ;;  %v14203_v48 = vrot.slane %v10803_v24, %v17355_v7  ;;  %v17359_v31 = vld [vmem:[#allocation149_spill] sm:$0xff]  ;;  %5732 = vmatmul.mubr.bf16.gmra.mrb[152].mxu0 %v5219_v32 }
 0x4b6   : > { %v5223_v13 = vpack.c.bf16 %v5095_v62, %v5091_v58  ;;  %v4440_v27 = vmul.f32 %v14198_v33, %v4291_v22  ;;  %v17358_v26 = vsub.f32 %v17356_v41, %v17357_v4  ;;  %vm4718_vm7 = vcmp.gt.f32.partialorder %v4590_v15, 0.0  ;;  %5741 = vmatprep.mubr.bf16.mxu0 %v5224_v10  ;;  %v17360_v63 = vld [vmem:[#allocation33_spill] sm:$0xff] }
 0x4b7   : > { %v4444_v47 = vmul.f32 %v14198_v33, %v4295_v52  ;;  %vm4722_vm4 = vcmp.gt.f32.partialorder %v4594_v2, 0.0  ;;  %v4846_v29 = vmul.f32 0.01, %v4590_v15  ;;  %v4850_v21 = vmul.f32 0.01, %v4594_v2 }
 0x4b8   : > { %v4300_v53 = vmul.f32 %v17359_v31, %v17358_v26  ;;  %v4589_v14 = vadd.f32 %v14203_v48, %v4440_v27  ;;  %v17362_v11 = vsub.f32 %v17360_v63, %v17361_v45  ;;  %v17365_v32 = vsub.f32 %v17364_v5, %v17357_v4  ;;  %v17368_v27 = vld [vmem:[#allocation35_spill] sm:$0xff]  ;;  %v17371_v4 = vld [vmem:[#allocation44_spill] sm:$0xff] }
 0x4b9   : > { %v4593_v44 = vadd.f32 %v14203_v48, %v4444_v47  ;;  %v4974_v24 = vsel %vm4718_vm7, %v4590_v15, %v4846_v29  ;;  %v4978_v58 = vsel %vm4722_vm4, %v4594_v2, %v4850_v21  ;;  %v17367_v10 = vsub.f32 %v17366_v57, %v17361_v45  ;;  %v17369_v47 = vld [vmem:[#allocation142_spill] sm:$0xff]  ;;  %v17375_v21 = vld [vmem:[#allocation47_spill] sm:$0xff] }
 0x4ba   : > { %v4304_v39 = vmul.f32 %v17363_v43, %v17362_v11  ;;  %v4449_v30 = vmul.f32 %v14177_v40, %v4300_v53  ;;  %v4299_v38 = vmul.f32 %v17359_v31, %v17365_v32  ;;  %v5166_v22 = vpack.c.bf16 %v4978_v58, %v4974_v24  ;;  %v17372_v31 = vld [vmem:[#allocation37_spill] sm:$0xff]  ;;  %v17373_v53 = vld [vmem:[#allocation143_spill] sm:$0xff] }
 0x4bb   : > { %v4303_v60 = vmul.f32 %v17363_v43, %v17367_v10  ;;  %vm4717_vm8 = vcmp.gt.f32.partialorder %v4589_v14, 0.0  ;;  %vm4721_vm0 = vcmp.gt.f32.partialorder %v4593_v44, 0.0  ;;  %v4845_v28 = vmul.f32 0.01, %v4589_v14 }
 0x4bc   : > { %v4849_v0 = vmul.f32 0.01, %v4593_v44  ;;  %v4453_v52 = vmul.f32 %v14177_v40, %v4304_v39  ;;  %v4598_v7 = vadd.f32 %v14187_v56, %v4449_v30  ;;  %v4448_v62 = vmul.f32 %v14198_v33, %v4299_v38 }
 0x4bd   : > { %v4973_v15 = vsel %vm4717_vm8, %v4589_v14, %v4845_v28  ;;  %v4452_v2 = vmul.f32 %v14198_v33, %v4303_v60  ;;  %v17370_v41 = vsub.f32 %v17368_v27, %v17369_v47  ;;  %v17374_v29 = vsub.f32 %v17372_v31, %v17373_v53  ;;  %5742 = vmatmul.mubr.bf16.gmra.mrb[156].mxu0 %v5223_v13  ;;  %v17376_v28 = vld [vmem:[#allocation34_spill] sm:$0xff] }
 0x4be   : > { %v4977_v45 = vsel %vm4721_vm0, %v4593_v44, %v4849_v0  ;;  %v4602_v11 = vadd.f32 %v14187_v56, %v4453_v52  ;;  %vm4726_vm6 = vcmp.gt.f32.partialorder %v4598_v7, 0.0  ;;  %v4854_v43 = vmul.f32 0.01, %v4598_v7  ;;  %5784 = vmatprep.mubr.bf16.mxu0 %v5166_v22 }
 0x4bf   : > { %v4308_v26 = vmul.f32 %v17371_v4, %v17370_v41  ;;  %v4312_v63 = vmul.f32 %v17375_v21, %v17374_v29  ;;  %v5165_v39 = vpack.c.bf16 %v4977_v45, %v4973_v15  ;;  %v4597_v14 = vadd.f32 %v14203_v48, %v4448_v62  ;;  %v17378_v15 = vld [vmem:[#allocation36_spill] sm:$0xff] }
 0x4c0   : > { %v4601_v30 = vadd.f32 %v14203_v48, %v4452_v2  ;;  %vm4730_vm2 = vcmp.gt.f32.partialorder %v4602_v11, 0.0  ;;  %v4858_v58 = vmul.f32 0.01, %v4602_v11  ;;  %v4982_v5 = vsel %vm4726_vm6, %v4598_v7, %v4854_v43  ;;  %v17383_v45 = vld [vmem:[#allocation52_spill] sm:$0xff] }
 0x4c1   : > { %v4457_v24 = vmul.f32 %v14177_v40, %v4308_v26  ;;  %v4461_v32 = vmul.f32 %v14177_v40, %v4312_v63  ;;  %vm4725_vm9 = vcmp.gt.f32.partialorder %v4597_v14, 0.0  ;;  %v4853_v44 = vmul.f32 0.01, %v4597_v14  ;;  %v17381_v63 = vld [vmem:[#allocation145_spill] sm:$0xff] }
 0x4c2   : > { %vm4729_vm5 = vcmp.gt.f32.partialorder %v4601_v30, 0.0  ;;  %v4857_v38 = vmul.f32 0.01, %v4601_v30  ;;  %v4986_v57 = vsel %vm4730_vm2, %v4602_v11, %v4858_v58  ;;  %v17377_v0 = vsub.f32 %v17376_v28, %v17369_v47  ;;  %v17380_v47 = vld [vmem:[#allocation39_spill] sm:$0xff]  ;;  %v17388_v58 = vld [vmem:[#allocation38_spill] sm:$0xff] }
 0x4c3   : > { %v4606_v10 = vadd.f32 %v14187_v56, %v4457_v24  ;;  %v4610_v60 = vadd.f32 %v14187_v56, %v4461_v32  ;;  %v5170_v52 = vpack.c.bf16 %v4986_v57, %v4982_v5  ;;  %v4981_v62 = vsel %vm4725_vm9, %v4597_v14, %v4853_v44  ;;  %v17384_v14 = vld [vmem:[#allocation41_spill] sm:$0xff]  ;;  %v17387_v24 = vld [vmem:[#allocation54_spill] sm:$0xff]  ;;  %v17390_v44 = vld [vmem:[#allocation40_spill] sm:$0xff] }
 0x4c4   : > { %v4307_v13 = vmul.f32 %v17371_v4, %v17377_v0  ;;  %v4985_v7 = vsel %vm4729_vm5, %v4601_v30, %v4857_v38  ;;  %v17379_v22 = vsub.f32 %v17378_v15, %v17373_v53  ;;  %v17382_v4 = vsub.f32 %v17380_v47, %v17381_v63  ;;  %v17385_v30 = vld [vmem:[#allocation148_spill] sm:$0xff] }
 0x4c5   : > { %v5169_v27 = vpack.c.bf16 %v4985_v7, %v4981_v62  ;;  %vm4734_vm12 = vcmp.gt.f32.partialorder %v4606_v10, 0.0  ;;  %vm4738_vm11 = vcmp.gt.f32.partialorder %v4610_v60, 0.0  ;;  %v4862_v41 = vmul.f32 0.01, %v4606_v10  ;;  %5785 = vmatmul.mubr.bf16.vlgmr.msra.gmra.mrb[96].mxu0 %v5165_v39 }
 0x4c6   : > { %v4311_v2 = vmul.f32 %v17375_v21, %v17379_v22  ;;  %v4866_v26 = vmul.f32 0.01, %v4610_v60  ;;  %v4456_v31 = vmul.f32 %v14198_v33, %v4307_v13  ;;  %v4316_v11 = vmul.f32 %v17383_v45, %v17382_v4  ;;  %5794 = vmatprep.mubr.bf16.mxu0 %v5170_v52  ;;  %v17393_v4 = vld [vmem:[#allocation150_spill] sm:$0xff]  ;;  %v17396_v52 = vld [vmem:[#allocation49_spill] sm:$0xff] }
 0x4c7   : > { %v4990_v43 = vsel %vm4734_vm12, %v4606_v10, %v4862_v41  ;;  %v17386_v53 = vsub.f32 %v17384_v14, %v17385_v30  ;;  %v17389_v5 = vsub.f32 %v17388_v58, %v17381_v63  ;;  %v17391_v38 = vsub.f32 %v17390_v44, %v17385_v30  ;;  %v17392_v63 = vld [vmem:[#allocation45_spill] sm:$0xff]  ;;  %v17397_v14 = vld [vmem:[#allocation42_spill] sm:$0xff] }
 0x4c8   : > { %v4460_v29 = vmul.f32 %v14198_v33, %v4311_v2  ;;  %v4994_v28 = vsel %vm4738_vm11, %v4610_v60, %v4866_v26  ;;  %v4605_v0 = vadd.f32 %v14203_v48, %v4456_v31  ;;  %v4465_v13 = vmul.f32 %v14177_v40, %v4316_v11  ;;  %v17395_v11 = vld [vmem:[#allocation58_spill] sm:$0xff] }
 0x4c9   : > { %v4320_v21 = vmul.f32 %v17387_v24, %v17386_v53  ;;  %v4315_v32 = vmul.f32 %v17383_v45, %v17389_v5  ;;  %v4319_v57 = vmul.f32 %v17387_v24, %v17391_v38  ;;  %v5174_v62 = vpack.c.bf16 %v4994_v28, %v4990_v43  ;;  %v17399_v53 = vld [vmem:[#allocation60_spill] sm:$0xff] }
 0x4ca   : > { %v4609_v10 = vadd.f32 %v14203_v48, %v4460_v29  ;;  %vm4733_vm10 = vcmp.gt.f32.partialorder %v4605_v0, 0.0  ;;  %v4861_v2 = vmul.f32 0.01, %v4605_v0  ;;  %v4614_v60 = vadd.f32 %v14187_v56, %v4465_v13  ;;  %v17400_v13 = vld [vmem:[#allocation43_spill] sm:$0xff] }
 0x4cb   : > { %v4469_v7 = vmul.f32 %v14177_v40, %v4320_v21  ;;  %v4464_v15 = vmul.f32 %v14198_v33, %v4315_v32  ;;  %v4468_v22 = vmul.f32 %v14198_v33, %v4319_v57  ;;  %v17394_v45 = vsub.f32 %v17392_v63, %v17393_v4 }
 0x4cc   : > { %vm4737_vm13 = vcmp.gt.f32.partialorder %v4609_v10, 0.0  ;;  %v4865_v41 = vmul.f32 0.01, %v4609_v10  ;;  %v4989_v29 = vsel %vm4733_vm10, %v4605_v0, %v4861_v2  ;;  %v17398_v30 = vsub.f32 %v17396_v52, %v17397_v14  ;;  %v17407_v52 = vld [vmem:[#allocation66_spill] sm:$0xff] }
 0x4cd   : > { %v4618_v26 = vadd.f32 %v14187_v56, %v4469_v7  ;;  %v4613_v31 = vadd.f32 %v14203_v48, %v4464_v15  ;;  %v4617_v39 = vadd.f32 %v14203_v48, %v4468_v22  ;;  %v4324_v43 = vmul.f32 %v17395_v11, %v17394_v45  ;;  %v17402_v22 = vld [vmem:[#allocation48_spill] sm:$0xff]  ;;  %5795 = vmatmul.mubr.bf16.gmra.mrb[100].mxu0 %v5169_v27  ;;  %v17404_v45 = vld [vmem:[#allocation53_spill] sm:$0xff] }
 0x4ce   : > { %v4993_v47 = vsel %vm4737_vm13, %v4609_v10, %v4865_v41  ;;  %v4328_v24 = vmul.f32 %v17399_v53, %v17398_v30  ;;  %vm4742_vm15 = vcmp.gt.f32.partialorder %v4614_v60, 0.0  ;;  %v4870_v58 = vmul.f32 0.01, %v4614_v60  ;;  %5804 = vmatprep.mubr.bf16.mxu0 %v5174_v62 }
 0x4cf   : > { %v5173_v21 = vpack.c.bf16 %v4993_v47, %v4989_v29  ;;  %vm4746_vm1 = vcmp.gt.f32.partialorder %v4618_v26, 0.0  ;;  %v4874_v5 = vmul.f32 0.01, %v4618_v26  ;;  %vm4741_vm14 = vcmp.gt.f32.partialorder %v4613_v31, 0.0 }
 0x4d0   : > { %vm4745_vm3 = vcmp.gt.f32.partialorder %v4617_v39, 0.0  ;;  %v4869_v32 = vmul.f32 0.01, %v4613_v31  ;;  %v4998_v44 = vsel %vm4742_vm15, %v4614_v60, %v4870_v58  ;;  %v4873_v38 = vmul.f32 0.01, %v4617_v39 }
 0x4d1   : > { %v4473_v57 = vmul.f32 %v14177_v40, %v4324_v43  ;;  %v4477_v28 = vmul.f32 %v14177_v40, %v4328_v24  ;;  %v5002_v0 = vsel %vm4746_vm1, %v4618_v26, %v4874_v5  ;;  %v17401_v7 = vsub.f32 %v17400_v13, %v17393_v4  ;;  %v17409_v24 = vld [vmem:[#allocation50_spill] sm:$0xff]  ;;  %v17411_v5 = vld [vmem:[#allocation68_spill] sm:$0xff] }
 0x4d2   : > { %v14291_v10 = vsel %vm4741_vm14, %v4613_v31, %v4869_v32  ;;  %v17403_v2 = vsub.f32 %v17402_v22, %v17397_v14  ;;  %v5178_v60 = vpack.c.bf16 %v5002_v0, %v4998_v44  ;;  %v14301_v29 = vsel %vm4745_vm3, %v4617_v39, %v4873_v38  ;;  %v17414_v13 = vld [vmem:[#allocation56_spill] sm:$0xff] }
 0x4d3   : > { %v4323_v15 = vmul.f32 %v17395_v11, %v17401_v7  ;;  %v4622_v47 = vadd.f32 %v14187_v56, %v4473_v57  ;;  %v4626_v26 = vadd.f32 %v14187_v56, %v4477_v28  ;;  %v5177_v31 = vpack.c.bf16 %v14301_v29, %v14291_v10  ;;  %v17405_v11 = vld [vmem:[#allocation46_spill] sm:$0xff]  ;;  %v17412_v28 = vld [vmem:[#allocation51_spill] sm:$0xff] }
 0x4d4   : > { %v4327_v41 = vmul.f32 %v17399_v53, %v17403_v2  ;;  %v17406_v43 = vsub.f32 %v17404_v45, %v17405_v11  ;;  %v17408_v53 = vld [vmem:[#allocation57_spill] sm:$0xff]  ;;  %v17413_v0 = vsub.f32 %v17412_v28, %v17405_v11  ;;  %v17415_v7 = vsub.f32 %v17414_v13, %v17409_v24 }
 0x4d5   : > { %v4472_v63 = vmul.f32 %v14198_v33, %v4323_v15  ;;  %vm4750_vm7 = vcmp.gt.f32.partialorder %v4622_v47, 0.0  ;;  %vm4754_vm4 = vcmp.gt.f32.partialorder %v4626_v26, 0.0  ;;  %v4878_v39 = vmul.f32 0.01, %v4622_v47  ;;  %v17416_v45 = vld [vmem:[#allocation61_spill] sm:$0xff]  ;;  %5805 = vmatmul.mubr.bf16.gmra.mrb[104].mxu0 %v5173_v21 }
 0x4d6   : > { %v4476_v4 = vmul.f32 %v14198_v33, %v4327_v41  ;;  %v4332_v27 = vmul.f32 %v17407_v52, %v17406_v43  ;;  %v4882_v14 = vmul.f32 0.01, %v4626_v26  ;;  %v17410_v58 = vsub.f32 %v17408_v53, %v17409_v24  ;;  %5814 = vmatprep.mubr.bf16.mxu0 %v5178_v60 }
 0x4d7   : > { %v4621_v30 = vadd.f32 %v14203_v48, %v4472_v63  ;;  %v5006_v38 = vsel %vm4750_vm7, %v4622_v47, %v4878_v39  ;;  %v4331_v10 = vmul.f32 %v17407_v52, %v17413_v0  ;;  %v4335_v15 = vmul.f32 %v17411_v5, %v17415_v7  ;;  %v17418_v52 = vld [vmem:[#allocation65_spill] sm:$0xff]  ;;  %v17422_v7 = vld [vmem:[#allocation59_spill] sm:$0xff] }
 0x4d8   : > { %v4625_v62 = vadd.f32 %v14203_v48, %v4476_v4  ;;  %v4336_v32 = vmul.f32 %v17411_v5, %v17410_v58  ;;  %v4481_v44 = vmul.f32 %v14177_v40, %v4332_v27  ;;  %v5010_v57 = vsel %vm4754_vm4, %v4626_v26, %v4882_v14  ;;  %v17419_v27 = vld [vmem:[#allocation55_spill] sm:$0xff]  ;;  %v17421_v14 = vld [vmem:[#allocation74_spill] sm:$0xff] }
 0x4d9   : > { %v5182_v22 = vpack.c.bf16 %v5010_v57, %v5006_v38  ;;  %vm4749_vm8 = vcmp.gt.f32.partialorder %v4621_v30, 0.0  ;;  %v4877_v2 = vmul.f32 0.01, %v4621_v30  ;;  %v4480_v26 = vmul.f32 %v14198_v33, %v4331_v10 }
 0x4da   : > { %vm4753_vm0 = vcmp.gt.f32.partialorder %v4625_v62, 0.0  ;;  %v4881_v41 = vmul.f32 0.01, %v4625_v62  ;;  %v4485_v29 = vmul.f32 %v14177_v40, %v4336_v32  ;;  %v4630_v47 = vadd.f32 %v14187_v56, %v4481_v44 }
 0x4db   : > { %v14331_v63 = vsel %vm4749_vm8, %v4621_v30, %v4877_v2  ;;  %v4484_v4 = vmul.f32 %v14198_v33, %v4335_v15  ;;  %v17417_v11 = vsub.f32 %v17416_v45, %v13463_v50  ;;  %v17420_v39 = vsub.f32 %v17418_v52, %v17419_v27  ;;  %v17426_v52 = vld [vmem:[#allocation69_spill] sm:$0xff] }
 0x4dc   : > { %v14342_v24 = vsel %vm4753_vm0, %v4625_v62, %v4881_v41  ;;  %v4634_v58 = vadd.f32 %v14187_v56, %v4485_v29  ;;  %vm4758_vm6 = vcmp.gt.f32.partialorder %v4630_v47, 0.0  ;;  %v4886_v30 = vmul.f32 0.01, %v4630_v47 }
 0x4dd   : > { %v4340_v43 = vmul.f32 %v13616_v59, %v17417_v11  ;;  %v4344_v53 = vmul.f32 %v17421_v14, %v17420_v39  ;;  %v5181_v5 = vpack.c.bf16 %v14342_v24, %v14331_v63  ;;  %v4629_v32 = vadd.f32 %v14203_v48, %v4480_v26  ;;  %v17424_v26 = vld [vmem:[#allocation64_spill] sm:$0xff]  ;;  %v17427_v39 = vld [vmem:[#allocation62_spill] sm:$0xff]  ;;  %v17429_v24 = vld [vmem:[#allocation79_spill] sm:$0xff]  ;;  %5815 = vmatmul.mubr.bf16.gmra.mrb[108].mxu0 %v5177_v31 }
 0x4de   : > { %v4633_v44 = vadd.f32 %v14203_v48, %v4484_v4  ;;  %vm4762_vm2 = vcmp.gt.f32.partialorder %v4634_v58, 0.0  ;;  %v4890_v57 = vmul.f32 0.01, %v4634_v58  ;;  %v5014_v28 = vsel %vm4758_vm6, %v4630_v47, %v4886_v30  ;;  %v17431_v30 = vld [vmem:[#allocation63_spill] sm:$0xff]  ;;  %5824 = vmatprep.mubr.bf16.mxu0 %v5182_v22 }
 0x4df   : > { %v4489_v38 = vmul.f32 %v14177_v40, %v4340_v43  ;;  %v4493_v21 = vmul.f32 %v14177_v40, %v4344_v53  ;;  %vm4757_vm9 = vcmp.gt.f32.partialorder %v4629_v32, 0.0  ;;  %v4885_v62 = vmul.f32 0.01, %v4629_v32 }
 0x4e0   : > { %vm4761_vm5 = vcmp.gt.f32.partialorder %v4633_v44, 0.0  ;;  %v4889_v0 = vmul.f32 0.01, %v4633_v44  ;;  %v5018_v10 = vsel %vm4762_vm2, %v4634_v58, %v4890_v57  ;;  %v17423_v15 = vsub.f32 %v17422_v7, %v13463_v50  ;;  %v17434_v57 = vld [vmem:[#allocation67_spill] sm:$0xff] }
 0x4e1   : > { %v4638_v60 = vadd.f32 %v14187_v56, %v4489_v38  ;;  %v4642_v13 = vadd.f32 %v14187_v56, %v4493_v21  ;;  %v5186_v41 = vpack.c.bf16 %v5018_v10, %v5014_v28  ;;  %v14357_v29 = vsel %vm4757_vm9, %v4629_v32, %v4885_v62  ;;  %v17436_v62 = vld [vmem:[#allocation72_spill] sm:$0xff] }
 0x4e2   : > { %v4339_v2 = vmul.f32 %v13616_v59, %v17423_v15  ;;  %v14359_v47 = vsel %vm4761_vm5, %v4633_v44, %v4889_v0  ;;  %v17425_v63 = vsub.f32 %v17424_v26, %v17419_v27  ;;  %v17428_v53 = vsub.f32 %v17426_v52, %v17427_v39  ;;  %v17433_v44 = vld [vmem:[#allocation82_spill] sm:$0xff] }
 0x4e3   : > { %v5185_v45 = vpack.c.bf16 %v14359_v47, %v14357_v29  ;;  %vm4766_vm12 = vcmp.gt.f32.partialorder %v4638_v60, 0.0  ;;  %vm4770_vm11 = vcmp.gt.f32.partialorder %v4642_v13, 0.0  ;;  %v4894_v11 = vmul.f32 0.01, %v4638_v60  ;;  %v17464_v29 = vld [vmem:[#allocation94_spill] sm:$0xff] }
 0x4e4   : > { %v4343_v4 = vmul.f32 %v17421_v14, %v17425_v63  ;;  %v4898_v43 = vmul.f32 0.01, %v4642_v13  ;;  %v4488_v50 = vmul.f32 %v14198_v33, %v4339_v2  ;;  %v4348_v58 = vmul.f32 %v17429_v24, %v17428_v53  ;;  %v17430_v14 = vld [vmem:[#allocation73_spill] sm:$0xff] }
 0x4e5   : > { %v14373_v27 = vsel %vm4766_vm12, %v4638_v60, %v4894_v11  ;;  %v17432_v32 = vsub.f32 %v17430_v14, %v17431_v30  ;;  %v17435_v28 = vsub.f32 %v17434_v57, %v17427_v39  ;;  %v17437_v0 = vsub.f32 %v17436_v62, %v17431_v30  ;;  %v17438_v53 = vld [vmem:[#allocation77_spill] sm:$0xff]  ;;  %v17441_v14 = vld [vmem:[#allocation86_spill] sm:$0xff]  ;;  %v17445_v57 = vld [vmem:[#allocation87_spill] sm:$0xff]  ;;  %5825 = vmatmul.mubr.bf16.gmra.mrb[112].mxu0 %v5181_v5 }
 0x4e6   : > { %v4492_v59 = vmul.f32 %v14198_v33, %v4343_v4  ;;  %v14387_v7 = vsel %vm4770_vm11, %v4642_v13, %v4898_v43  ;;  %v4637_v31 = vadd.f32 %v14203_v48, %v4488_v50  ;;  %v4497_v15 = vmul.f32 %v14177_v40, %v4348_v58  ;;  %5834 = vmatprep.mubr.bf16.mxu0 %v5186_v41 }
 0x4e7   : > { %v4352_v38 = vmul.f32 %v17433_v44, %v17432_v32  ;;  %v4347_v21 = vmul.f32 %v17429_v24, %v17435_v28  ;;  %v4351_v10 = vmul.f32 %v17433_v44, %v17437_v0  ;;  %v5190_v2 = vpack.c.bf16 %v14387_v7, %v14373_v27  ;;  %v17439_v24 = vld [vmem:[#allocation70_spill] sm:$0xff]  ;;  %v17442_v32 = vld [vmem:[#allocation81_spill] sm:$0xff]  ;;  %v17443_v44 = vld [vmem:[#allocation71_spill] sm:$0xff] }
 0x4e8   : > { %v4641_v60 = vadd.f32 %v14203_v48, %v4492_v59  ;;  %vm4765_vm10 = vcmp.gt.f32.partialorder %v4637_v31, 0.0  ;;  %v4893_v22 = vmul.f32 0.01, %v4637_v31  ;;  %v4646_v11 = vadd.f32 %v14187_v56, %v4497_v15 }
 0x4e9   : > { %v4501_v26 = vmul.f32 %v14177_v40, %v4352_v38  ;;  %v4496_v63 = vmul.f32 %v14198_v33, %v4347_v21  ;;  %v4500_v4 = vmul.f32 %v14198_v33, %v4351_v10  ;;  %v17440_v58 = vsub.f32 %v17438_v53, %v17439_v24 }
 0x4ea   : > { %vm4769_vm13 = vcmp.gt.f32.partialorder %v4641_v60, 0.0  ;;  %v4897_v13 = vmul.f32 0.01, %v4641_v60  ;;  %v14401_v52 = vsel %vm4765_vm10, %v4637_v31, %v4893_v22  ;;  %v17444_v38 = vsub.f32 %v17442_v32, %v17443_v44  ;;  %v17446_v22 = vld [vmem:[#allocation75_spill] sm:$0xff] }
 0x4eb   : > { %v4650_v43 = vadd.f32 %v14187_v56, %v4501_v26  ;;  %v4645_v50 = vadd.f32 %v14203_v48, %v4496_v63  ;;  %v4649_v59 = vadd.f32 %v14203_v48, %v4500_v4  ;;  %v4356_v30 = vmul.f32 %v17441_v14, %v17440_v58  ;;  %v17448_v58 = vld [vmem:[#allocation80_spill] sm:$0xff] }
 0x4ec   : > { %v14403_v39 = vsel %vm4769_vm13, %v4641_v60, %v4897_v13  ;;  %v4360_v28 = vmul.f32 %v17445_v57, %v17444_v38  ;;  %vm4774_vm15 = vcmp.gt.f32.partialorder %v4646_v11, 0.0  ;;  %v4902_v62 = vmul.f32 0.01, %v4646_v11  ;;  %v17450_v38 = vld [vmem:[#allocation85_spill] sm:$0xff] }
 0x4ed   : > { %v5189_v21 = vpack.c.bf16 %v14403_v39, %v14401_v52  ;;  %vm4778_vm1 = vcmp.gt.f32.partialorder %v4650_v43, 0.0  ;;  %v4906_v0 = vmul.f32 0.01, %v4650_v43  ;;  %vm4773_vm14 = vcmp.gt.f32.partialorder %v4645_v50, 0.0  ;;  %5835 = vmatmul.mubr.bf16.gmra.mrb[116].mxu0 %v5185_v45  ;;  %v17465_v45 = vld [vmem:[#allocation97_spill] sm:$0xff] }
 0x4ee   : > { %vm4777_vm3 = vcmp.gt.f32.partialorder %v4649_v59, 0.0  ;;  %v4901_v10 = vmul.f32 0.01, %v4645_v50  ;;  %v14415_v31 = vsel %vm4774_vm15, %v4646_v11, %v4902_v62  ;;  %v4905_v60 = vmul.f32 0.01, %v4649_v59  ;;  %5844 = vmatprep.mubr.bf16.mxu0 %v5190_v2  ;;  %v17475_v52 = vld [vmem:[#allocation105_spill] sm:$0xff] }
 0x4ef   : > { %v4505_v15 = vmul.f32 %v14177_v40, %v4356_v30  ;;  %v4509_v26 = vmul.f32 %v14177_v40, %v4360_v28  ;;  %v14419_v63 = vsel %vm4778_vm1, %v4650_v43, %v4906_v0  ;;  %v17447_v13 = vsub.f32 %v17446_v22, %v17439_v24 }
 0x4f0   : > { %v14421_v4 = vsel %vm4773_vm14, %v4645_v50, %v4901_v10  ;;  %v17449_v5 = vsub.f32 %v17448_v58, %v17443_v44  ;;  %v5194_v30 = vpack.c.bf16 %v14419_v63, %v14415_v31  ;;  %v14433_v32 = vsel %vm4777_vm3, %v4649_v59, %v4905_v60  ;;  %v17451_v44 = vld [vmem:[#allocation76_spill] sm:$0xff]  ;;  %v17454_v60 = vld [vmem:[#allocation89_spill] sm:$0xff] }
 0x4f1   : > { %v4355_v53 = vmul.f32 %v17441_v14, %v17447_v13  ;;  %v4654_v41 = vadd.f32 %v14187_v56, %v4505_v15  ;;  %v4658_v43 = vadd.f32 %v14187_v56, %v4509_v26  ;;  %v5193_v50 = vpack.c.bf16 %v14433_v32, %v14421_v4  ;;  %v17455_v15 = vld [vmem:[#allocation78_spill] sm:$0xff]  ;;  %v17457_v63 = vld [vmem:[#allocation92_spill] sm:$0xff] }
 0x4f2   : > { %v4359_v11 = vmul.f32 %v17445_v57, %v17449_v5  ;;  %v17452_v28 = vsub.f32 %v17450_v38, %v17451_v44  ;;  %v17453_v57 = vld [vmem:[#allocation90_spill] sm:$0xff]  ;;  %v17456_v26 = vsub.f32 %v17454_v60, %v17455_v15  ;;  %v17458_v5 = vld [vmem:[#allocation83_spill] sm:$0xff]  ;;  %v17476_v39 = vsub.f32 %v17475_v52, %v13804_v42  ;;  %v17481_v52 = vld [vmem:[#allocation109_spill] sm:$0xff] }
 0x4f3   : > { %v4504_v24 = vmul.f32 %v14198_v33, %v4355_v53  ;;  %vm4782_vm7 = vcmp.gt.f32.partialorder %v4654_v41, 0.0  ;;  %vm4786_vm4 = vcmp.gt.f32.partialorder %v4658_v43, 0.0  ;;  %v4910_v59 = vmul.f32 0.01, %v4654_v41 }
 0x4f4   : > { %v4508_v14 = vmul.f32 %v14198_v33, %v4359_v11  ;;  %v4364_v62 = vmul.f32 %v17453_v57, %v17452_v28  ;;  %v4914_v0 = vmul.f32 0.01, %v4658_v43  ;;  %v4368_v22 = vmul.f32 %v17457_v63, %v17456_v26  ;;  %v17460_v28 = vld [vmem:[#allocation88_spill] sm:$0xff] }
 0x4f5   : > { %v4653_v10 = vadd.f32 %v14203_v48, %v4504_v24  ;;  %v14452_v53 = vsel %vm4782_vm7, %v4654_v41, %v4910_v59  ;;  %v17459_v11 = vsub.f32 %v17458_v5, %v17451_v44  ;;  %v17461_v24 = vsub.f32 %v17460_v28, %v17455_v15  ;;  %v17462_v15 = vld [vmem:[#allocation93_spill] sm:$0xff]  ;;  %v17468_v5 = vld [vmem:[#allocation95_spill] sm:$0xff]  ;;  %5845 = vmatmul.mubr.bf16.gmra.mrb[120].mxu0 %v5189_v21 }
 0x4f6   : > { %v4657_v31 = vadd.f32 %v14203_v48, %v4508_v14  ;;  %v4513_v13 = vmul.f32 %v14177_v40, %v4364_v62  ;;  %v14454_v58 = vsel %vm4786_vm4, %v4658_v43, %v4914_v0  ;;  %v4517_v43 = vmul.f32 %v14177_v40, %v4368_v22  ;;  %5854 = vmatprep.mubr.bf16.mxu0 %v5194_v30 }
 0x4f7   : > { %v4363_v38 = vmul.f32 %v17453_v57, %v17459_v11  ;;  %v4367_v14 = vmul.f32 %v17457_v63, %v17461_v24  ;;  %v5198_v60 = vpack.c.bf16 %v14454_v58, %v14452_v53  ;;  %vm4781_vm8 = vcmp.gt.f32.partialorder %v4653_v10, 0.0  ;;  %v17466_v63 = vld [vmem:[#allocation84_spill] sm:$0xff] }
 0x4f8   : > { %vm4785_vm0 = vcmp.gt.f32.partialorder %v4657_v31, 0.0  ;;  %v4909_v62 = vmul.f32 0.01, %v4653_v10  ;;  %v4913_v41 = vmul.f32 0.01, %v4657_v31  ;;  %v4662_v44 = vadd.f32 %v14187_v56, %v4513_v13  ;;  %v17487_v58 = vld [vmem:[#allocation112_spill] sm:$0xff] }
 0x4f9   : > { %v4512_v57 = vmul.f32 %v14198_v33, %v4363_v38  ;;  %v4516_v0 = vmul.f32 %v14198_v33, %v4367_v14  ;;  %v17463_v26 = vsub.f32 %v17462_v15, %v13733_v34  ;;  %v17467_v22 = vsub.f32 %v17465_v45, %v17466_v63 }
 0x4fa   : > { %v14475_v59 = vsel %vm4781_vm8, %v4653_v10, %v4909_v62  ;;  %v14486_v11 = vsel %vm4785_vm0, %v4657_v31, %v4913_v41  ;;  %v4666_v38 = vadd.f32 %v14187_v56, %v4517_v43  ;;  %vm4790_vm6 = vcmp.gt.f32.partialorder %v4662_v44, 0.0 }
 0x4fb   : > { %v4372_v47 = vmul.f32 %v17464_v29, %v17463_v26  ;;  %v4376_v13 = vmul.f32 %v17468_v5, %v17467_v22  ;;  %v4918_v27 = vmul.f32 0.01, %v4662_v44  ;;  %v5197_v7 = vpack.c.bf16 %v14486_v11, %v14475_v59  ;;  %v17469_v26 = vld [vmem:[#allocation91_spill] sm:$0xff] }
 0x4fc   : > { %v4661_v2 = vadd.f32 %v14203_v48, %v4512_v57  ;;  %v4665_v10 = vadd.f32 %v14203_v48, %v4516_v0  ;;  %vm4794_vm2 = vcmp.gt.f32.partialorder %v4666_v38, 0.0  ;;  %v4922_v24 = vmul.f32 0.01, %v4666_v38 }
 0x4fd   : > { %v4521_v28 = vmul.f32 %v14177_v40, %v4372_v47  ;;  %v14494_v14 = vsel %vm4790_vm6, %v4662_v44, %v4918_v27  ;;  %v4525_v31 = vmul.f32 %v14177_v40, %v4376_v13  ;;  %v17470_v0 = vsub.f32 %v17469_v26, %v13733_v34  ;;  %v17471_v13 = vld [vmem:[#allocation96_spill] sm:$0xff]  ;;  %5855 = vmatmul.mubr.bf16.gmra.mrb[124].mxu0 %v5193_v50 }
 0x4fe   : > { %vm4789_vm9 = vcmp.gt.f32.partialorder %v4661_v2, 0.0  ;;  %vm4793_vm5 = vcmp.gt.f32.partialorder %v4665_v10, 0.0  ;;  %v4917_v62 = vmul.f32 0.01, %v4661_v2  ;;  %v4921_v41 = vmul.f32 0.01, %v4665_v10  ;;  %5864 = vmatprep.mubr.bf16.mxu0 %v5198_v60 }
 0x4ff   : > { %v14497_v43 = vsel %vm4794_vm2, %v4666_v38, %v4922_v24  ;;  %v4670_v15 = vadd.f32 %v14187_v56, %v4521_v28  ;;  %v4674_v57 = vadd.f32 %v14187_v56, %v4525_v31  ;;  %v4371_v47 = vmul.f32 %v17464_v29, %v17470_v0  ;;  %v17473_v24 = vld [vmem:[#allocation101_spill] sm:$0xff]  ;;  %v17479_v26 = vld [vmem:[#allocation104_spill] sm:$0xff] }
 0x500   : > { %v5202_v44 = vpack.c.bf16 %v14497_v43, %v14494_v14  ;;  %v14507_v45 = vsel %vm4789_vm9, %v4661_v2, %v4917_v62  ;;  %v14509_v22 = vsel %vm4793_vm5, %v4665_v10, %v4921_v41  ;;  %v17472_v38 = vsub.f32 %v17471_v13, %v17466_v63  ;;  %v17477_v62 = vld [vmem:[#allocation99_spill] sm:$0xff] }
 0x501   : > { %v5201_v34 = vpack.c.bf16 %v14509_v22, %v14507_v45  ;;  %vm4798_vm12 = vcmp.gt.f32.partialorder %v4670_v15, 0.0  ;;  %vm4802_vm11 = vcmp.gt.f32.partialorder %v4674_v57, 0.0  ;;  %v4926_v29 = vmul.f32 0.01, %v4670_v15  ;;  %v17503_v45 = vld [vmem:[#allocation128_spill] sm:$0xff] }
 0x502   : > { %v4375_v27 = vmul.f32 %v17468_v5, %v17472_v38  ;;  %v4930_v2 = vmul.f32 0.01, %v4674_v57  ;;  %v4520_v10 = vmul.f32 %v14198_v33, %v4371_v47  ;;  %v17474_v63 = vsub.f32 %v17473_v24, %v13800_v61 }
 0x503   : > { %v14526_v31 = vsel %vm4798_vm12, %v4670_v15, %v4926_v29  ;;  %v4384_v21 = vmul.f32 %v13920_v25, %v17476_v39  ;;  %v17478_v30 = vsub.f32 %v17477_v62, %v13800_v61  ;;  %v17480_v0 = vsub.f32 %v17479_v26, %v13804_v42  ;;  %v17483_v62 = vld [vmem:[#allocation113_spill] sm:$0xff] }
 0x504   : > { %v4524_v28 = vmul.f32 %v14198_v33, %v4375_v27  ;;  %v4380_v5 = vmul.f32 %v13918_v54, %v17474_v63  ;;  %v14540_v13 = vsel %vm4802_vm11, %v4674_v57, %v4930_v2  ;;  %v4669_v15 = vadd.f32 %v14203_v48, %v4520_v10 }
 0x505   : > { %v4379_v41 = vmul.f32 %v13918_v54, %v17478_v30  ;;  %v4383_v47 = vmul.f32 %v13920_v25, %v17480_v0  ;;  %v5206_v29 = vpack.c.bf16 %v14540_v13, %v14526_v31  ;;  %v4533_v61 = vmul.f32 %v14177_v40, %v4384_v21  ;;  %5865 = vmatmul.mubr.bf16.gmra.mrb[128].mxu0 %v5197_v7 }
 0x506   : > { %v4673_v38 = vadd.f32 %v14203_v48, %v4524_v28  ;;  %v4529_v27 = vmul.f32 %v14177_v40, %v4380_v5  ;;  %vm4797_vm10 = vcmp.gt.f32.partialorder %v4669_v15, 0.0  ;;  %v4925_v42 = vmul.f32 0.01, %v4669_v15  ;;  %5874 = vmatprep.mubr.bf16.mxu0 %v5202_v44  ;;  %v17499_v44 = vld [vmem:[#allocation129_spill] sm:$0xff] }
 0x507   : > { %v4528_v54 = vmul.f32 %v14198_v33, %v4379_v41  ;;  %v4532_v24 = vmul.f32 %v14198_v33, %v4383_v47  ;;  %v4682_v2 = vadd.f32 %v14187_v56, %v4533_v61  ;;  %v17482_v39 = vsub.f32 %v17481_v52, %v13852_v23 }
 0x508   : > { %vm4801_vm13 = vcmp.gt.f32.partialorder %v4673_v38, 0.0  ;;  %v4929_v25 = vmul.f32 0.01, %v4673_v38  ;;  %v4678_v57 = vadd.f32 %v14187_v56, %v4529_v27  ;;  %v14554_v63 = vsel %vm4797_vm10, %v4669_v15, %v4925_v42 }
 0x509   : > { %v4677_v10 = vadd.f32 %v14203_v48, %v4528_v54  ;;  %v4681_v28 = vadd.f32 %v14203_v48, %v4532_v24  ;;  %v4388_v21 = vmul.f32 %v13970_v18, %v17482_v39  ;;  %v17484_v30 = vsub.f32 %v17483_v62, %v13856_v6  ;;  %v17485_v54 = vld [vmem:[#allocation107_spill] sm:$0xff]  ;;  %v17489_v39 = vld [vmem:[#allocation117_spill] sm:$0xff] }
 0x50a   : > { %v14556_v5 = vsel %vm4801_vm13, %v4673_v38, %v4929_v25  ;;  %vm4806_vm15 = vcmp.gt.f32.partialorder %v4678_v57, 0.0  ;;  %vm4810_vm1 = vcmp.gt.f32.partialorder %v4682_v2, 0.0  ;;  %v4934_v0 = vmul.f32 0.01, %v4678_v57 }
 0x50b   : > { %v4392_v41 = vmul.f32 %v13972_v3, %v17484_v30  ;;  %v5205_v26 = vpack.c.bf16 %v14556_v5, %v14554_v63  ;;  %v4938_v47 = vmul.f32 0.01, %v4682_v2  ;;  %vm4805_vm14 = vcmp.gt.f32.partialorder %v4677_v10, 0.0 }
 0x50c   : > { %vm4809_vm3 = vcmp.gt.f32.partialorder %v4681_v28, 0.0  ;;  %v4933_v15 = vmul.f32 0.01, %v4677_v10  ;;  %v14574_v38 = vsel %vm4806_vm15, %v4678_v57, %v4934_v0  ;;  %v4937_v27 = vmul.f32 0.01, %v4681_v28 }
 0x50d   : > { %v4537_v4 = vmul.f32 %v14177_v40, %v4388_v21  ;;  %v4541_v32 = vmul.f32 %v14177_v40, %v4392_v41  ;;  %v14578_v50 = vsel %vm4810_vm1, %v4682_v2, %v4938_v47  ;;  %v17486_v24 = vsub.f32 %v17485_v54, %v13852_v23  ;;  %v17491_v41 = vld [vmem:[#allocation121_spill] sm:$0xff]  ;;  %5875 = vmatmul.mubr.bf16.gmra.mrb[132].mxu0 %v5201_v34 }
 0x50e   : > { %v14580_v61 = vsel %vm4805_vm14, %v4677_v10, %v4933_v15  ;;  %v17488_v60 = vsub.f32 %v17487_v58, %v13856_v6  ;;  %v5210_v25 = vpack.c.bf16 %v14578_v50, %v14574_v38  ;;  %v14592_v57 = vsel %vm4809_vm3, %v4681_v28, %v4937_v27  ;;  %5884 = vmatprep.mubr.bf16.mxu0 %v5206_v29  ;;  %v5227_v38 = vld [vmem:[%s16609_s9] sm:$0x3]  ;;  %v17510_v50 = vld [vmem:[#allocation23_spill] sm:$0xff] }
 0x50f   : > { %v4387_v53 = vmul.f32 %v13970_v18, %v17486_v24  ;;  %v4686_v2 = vadd.f32 %v14187_v56, %v4537_v4  ;;  %v4690_v10 = vadd.f32 %v14187_v56, %v4541_v32  ;;  %v5209_v52 = vpack.c.bf16 %v14592_v57, %v14580_v61  ;;  %v17493_v32 = vld [vmem:[#allocation115_spill] sm:$0xff] }
 0x510   : > { %v4391_v42 = vmul.f32 %v13972_v3, %v17488_v60  ;;  %v17490_v6 = vsub.f32 %v17489_v39, %v13904_v9  ;;  %v17492_v0 = vsub.f32 %v17491_v41, %v13908_v8  ;;  %v17494_v54 = vsub.f32 %v17493_v32, %v13904_v9 }
 0x511   : > { %v4536_v23 = vmul.f32 %v14198_v33, %v4387_v53  ;;  %vm4814_vm7 = vcmp.gt.f32.partialorder %v4686_v2, 0.0  ;;  %vm4818_vm4 = vcmp.gt.f32.partialorder %v4690_v10, 0.0  ;;  %v4942_v28 = vmul.f32 0.01, %v4686_v2  ;;  %v17495_v53 = vld [vmem:[#allocation120_spill] sm:$0xff] }
 0x512   : > { %v4540_v18 = vmul.f32 %v14198_v33, %v4391_v42  ;;  %v4396_v3 = vmul.f32 %v14022_v37, %v17490_v6  ;;  %v4946_v21 = vmul.f32 0.01, %v4690_v10  ;;  %v4400_v47 = vmul.f32 %v14024_v49, %v17492_v0 }
 0x513   : > { %v4685_v62 = vadd.f32 %v14203_v48, %v4536_v23  ;;  %v14614_v27 = vsel %vm4814_vm7, %v4686_v2, %v4942_v28  ;;  %v4395_v24 = vmul.f32 %v14022_v37, %v17494_v54  ;;  %v17496_v58 = vsub.f32 %v17495_v53, %v13908_v8  ;;  %v17497_v2 = vld [vmem:[#allocation125_spill] sm:$0xff]  ;;  %v17501_v53 = vld [vmem:[#allocation123_spill] sm:$0xff] }
 0x514   : > { %v4689_v30 = vadd.f32 %v14203_v48, %v4540_v18  ;;  %v4545_v15 = vmul.f32 %v14177_v40, %v4396_v3  ;;  %v14616_v4 = vsel %vm4818_vm4, %v4690_v10, %v4946_v21  ;;  %v4549_v9 = vmul.f32 %v14177_v40, %v4400_v47 }
 0x515   : > { %v4399_v60 = vmul.f32 %v14024_v49, %v17496_v58  ;;  %v5214_v59 = vpack.c.bf16 %v14616_v4, %v14614_v27  ;;  %vm4813_vm8 = vcmp.gt.f32.partialorder %v4685_v62, 0.0  ;;  %v4941_v11 = vmul.f32 0.01, %v4685_v62  ;;  %5885 = vmatmul.mubr.bf16.gmra.mrb[136].mxu0 %v5205_v26  ;;  %v10480_v27 = vld [vmem:[#allocation6] sm:$0xff]  }
 0x516   : > { %vm4817_vm0 = vcmp.gt.f32.partialorder %v4689_v30, 0.0  ;;  %v4945_v7 = vmul.f32 0.01, %v4689_v30  ;;  %v4694_v37 = vadd.f32 %v14187_v56, %v4545_v15  ;;  %v4544_v42 = vmul.f32 %v14198_v33, %v4395_v24  ;;  %5894 = vmatprep.mubr.bf16.mxu0 %v5210_v25  ;;  %v17511_v25 = vld [vmem:[#allocation24_spill] sm:$0xff] }
 0x517   : > { %v14634_v8 = vsel %vm4813_vm8, %v4685_v62, %v4941_v11  ;;  %v4548_v49 = vmul.f32 %v14198_v33, %v4399_v60  ;;  %v17498_v14 = vsub.f32 %v17497_v2, %v13956_v46  ;;  %v17500_v10 = vsub.f32 %v17499_v44, %v13960_v35 }
 0x518   : > { %v14645_v18 = vsel %vm4817_vm0, %v4689_v30, %v4945_v7  ;;  %v4698_v39 = vadd.f32 %v14187_v56, %v4549_v9  ;;  %vm4822_vm6 = vcmp.gt.f32.partialorder %v4694_v37, 0.0  ;;  %v4950_v6 = vmul.f32 0.01, %v4694_v37 }
 0x519   : > { %v4404_v43 = vmul.f32 %v14076_v16, %v17498_v14  ;;  %v4408_v23 = vmul.f32 %v14078_v1, %v17500_v10  ;;  %v5213_v3 = vpack.c.bf16 %v14645_v18, %v14634_v8  ;;  %v4693_v28 = vadd.f32 %v14203_v48, %v4544_v42 }
 0x51a   : > { %v4697_v21 = vadd.f32 %v14203_v48, %v4548_v49  ;;  %vm4826_vm2 = vcmp.gt.f32.partialorder %v4698_v39, 0.0  ;;  %v4954_v41 = vmul.f32 0.01, %v4698_v39  ;;  %v14653_v0 = vsel %vm4822_vm6, %v4694_v37, %v4950_v6 }
 0x51b   : > { %v4553_v62 = vmul.f32 %v14177_v40, %v4404_v43  ;;  %v4557_v30 = vmul.f32 %v14177_v40, %v4408_v23  ;;  %vm4821_vm9 = vcmp.gt.f32.partialorder %v4693_v28, 0.0  ;;  %v4949_v47 = vmul.f32 0.01, %v4693_v28  ;;  %v17508_v43 = vld [vmem:[#allocation136_spill] sm:$0xff] }
 0x51c   : > { %vm4825_vm5 = vcmp.gt.f32.partialorder %v4697_v21, 0.0  ;;  %v4953_v15 = vmul.f32 0.01, %v4697_v21  ;;  %v5082_v32 = vsel %vm4826_vm2, %v4698_v39, %v4954_v41  ;;  %v17502_v58 = vsub.f32 %v17501_v53, %v13956_v46 }
 0x51d   : > { %v4702_v54 = vadd.f32 %v14187_v56, %v4553_v62  ;;  %v4706_v24 = vadd.f32 %v14187_v56, %v4557_v30  ;;  %v5218_v11 = vpack.c.bf16 %v5082_v32, %v14653_v0  ;;  %v5077_v7 = vsel %vm4821_vm9, %v4693_v28, %v4949_v47  ;;  %5895 = vmatmul.mubr.bf16.gmra.mrb[140].mxu0 %v5209_v52  ;;  %v10479_v52 = vld [vmem:[#allocation6 + $0x40] sm:$0xff]  }
 0x51e   : > { %v4403_v60 = vmul.f32 %v14076_v16, %v17502_v58  ;;  %v5081_v9 = vsel %vm4825_vm5, %v4697_v21, %v4953_v15  ;;  %v17504_v22 = vsub.f32 %v17503_v45, %v13960_v35  ;;  %v17505_v31 = vsub.f32 %v17318_v20, %v14008_v19  ;;  %5904 = vmatprep.mubr.bf16.mxu0 %v5214_v59  ;;  %v10482_v45 = vld [vmem:[#allocation6 + $0x8] sm:$0xff]  }
 0x51f   : > { %v5217_v37 = vpack.c.bf16 %v5081_v9, %v5077_v7  ;;  %vm4830_vm12 = vcmp.gt.f32.partialorder %v4702_v54, 0.0  ;;  %vm4834_vm11 = vcmp.gt.f32.partialorder %v4706_v24, 0.0  ;;  %v4958_v42 = vmul.f32 0.01, %v4702_v54  ;;  %9493 = vmatprep.subr.bf16.mxu1 %v10479_v52  ;;  %v10481_v9 = vld [vmem:[#allocation6 + $0x48] sm:$0xff]  }
 0x520   : > { %v4407_v34 = vmul.f32 %v14078_v1, %v17504_v22  ;;  %v4962_v46 = vmul.f32 0.01, %v4706_v24  ;;  %v4552_v16 = vmul.f32 %v14198_v33, %v4403_v60  ;;  %v4412_v13 = vmul.f32 %v14122_v17, %v17505_v31  ;;  %9494 = vmatpush3.bf16.msra.mxu1 %v10480_v27 }
 0x521   : > { %v5086_v29 = vsel %vm4830_vm12, %v4702_v54, %v4958_v42  ;;  %v17506_v35 = vsub.f32 %v17322_v51, %v14012_v12  ;;  %v17507_v2 = vsub.f32 %v17317_v55, %v14008_v19  ;;  %v17509_v44 = vsub.f32 %v17508_v43, %v14012_v12  ;;  %9495 = vmatprep.subr.bf16.mxu1 %v10481_v9 }
 0x522   : > { %v4556_v49 = vmul.f32 %v14198_v33, %v4407_v34  ;;  %v5090_v23 = vsel %vm4834_vm11, %v4706_v24, %v4962_v46  ;;  %v4701_v20 = vadd.f32 %v14203_v48, %v4552_v16  ;;  %v4561_v6 = vmul.f32 %v14177_v40, %v4412_v13 }
 0x523   : > { %v4416_v1 = vmul.f32 %v14124_v36, %v17506_v35  ;;  %v4411_v14 = vmul.f32 %v14122_v17, %v17507_v2  ;;  %v4415_v10 = vmul.f32 %v14124_v36, %v17509_v44  ;;  %v5222_v51 = vpack.c.bf16 %v5090_v23, %v5086_v29 }
 0x524   : > { %v4705_v39 = vadd.f32 %v14203_v48, %v4556_v49  ;;  %vm4829_vm10 = vcmp.gt.f32.partialorder %v4701_v20, 0.0  ;;  %v4957_v55 = vmul.f32 0.01, %v4701_v20  ;;  %v4710_v17 = vadd.f32 %v14187_v56, %v4561_v6  ;;  %9496 = vmatpush3.bf16.msra.mxu1 %v10482_v45 }
 0x525   : > { %v4565_v28 = vmul.f32 %v14177_v40, %v4416_v1  ;;  %v4560_v21 = vmul.f32 %v14198_v33, %v4411_v14  ;;  %v4564_v19 = vmul.f32 %v14198_v33, %v4415_v10  ;;  %5905 = vmatmul.mubr.bf16.gmra.mrb[144].mxu0 %v5213_v3  ;;  %v14720_v61 = vrot.slane %v5227_v38, %v17510_v50 }
 0x526   : > { %vm4833_vm13 = vcmp.gt.f32.partialorder %v4705_v39, 0.0  ;;  %v4961_v12 = vmul.f32 0.01, %v4705_v39  ;;  %v5085_v33 = vsel %vm4829_vm10, %v4701_v20, %v4957_v55  ;;  %vm4838_vm15 = vcmp.gt.f32.partialorder %v4710_v17, 0.0  ;;  %5914 = vmatprep.mubr.bf16.mxu0 %v5218_v11 }
 0x527   : > { %v4714_v36 = vadd.f32 %v14187_v56, %v4565_v28  ;;  %v4709_v62 = vadd.f32 %v14203_v48, %v4560_v21  ;;  %v4713_v40 = vadd.f32 %v14203_v48, %v4564_v19  ;;  %v4966_v30 = vmul.f32 0.01, %v4710_v17 }
 0x528   : > { %v5089_v41 = vsel %vm4833_vm13, %v4705_v39, %v4961_v12  ;;  %v14723_v57 = vrot.slane %v5227_v38, %v17511_v25 }
 0x529   : > { %v5221_v0 = vpack.c.bf16 %v5089_v41, %v5085_v33  ;;  %vm4842_vm1 = vcmp.gt.f32.partialorder %v4714_v36, 0.0  ;;  %v4970_v63 = vmul.f32 0.01, %v4714_v36  ;;  %vm4837_vm14 = vcmp.gt.f32.partialorder %v4709_v62, 0.0 }
 0x52a   : > { %vm4841_vm3 = vcmp.gt.f32.partialorder %v4713_v40, 0.0  ;;  %v4965_v5 = vmul.f32 0.01, %v4709_v62  ;;  %v4969_v26 = vmul.f32 0.01, %v4713_v40  ;;  %v5094_v56 = vsel %vm4838_vm15, %v4710_v17, %v4966_v30 }
 0x52b   : > { %v5098_v47 = vsel %vm4842_vm1, %v4714_v36, %v4970_v63 }
 0x52c   : > { %v5226_v15 = vpack.c.bf16 %v5098_v47, %v5094_v56  ;;  %v5093_v32 = vsel %vm4837_vm14, %v4709_v62, %v4965_v5  ;;  %v5097_v48 = vsel %vm4841_vm3, %v4713_v40, %v4969_v26 }
 0x52d   : > { %v5225_v54 = vpack.c.bf16 %v5097_v48, %v5093_v32  ;;  %5915 = vmatmul.mubr.bf16.gmra.mrb[148].mxu0 %v5217_v37 }
 0x52e   : > { %5924 = vmatprep.mubr.bf16.mxu0 %v5222_v51 }
 0x535   : > { %5925 = vmatmul.mubr.bf16.gmra.mrb[152].mxu0 %v5221_v0 }
 0x536   : > { %5934 = vmatprep.mubr.bf16.mxu0 %v5226_v15 }
 0x53d   : > { %5935 = vmatmul.mubr.bf16.gmra.mrb[156].mxu0 %v5225_v54 }
 0x598   : > { %v5786_v4 = vpop.f32.mrb[96].mxu0 }
 0x599   : > { %v14726_v59 = vadd.f32 %v5786_v4, %v14720_v61  ;;  %v5788_v8 = vpop.f32.mrb[97].mxu0 }
 0x59a   : > { %v14729_v18 = vadd.f32 %v5788_v8, %v14723_v57  ;;  %v5790_v3 = vpop.f32.mrb[98].mxu0 }
 0x59b   : > { %v14732_v24 = vadd.f32 %v5790_v3, %v14720_v61  ;;  %v5792_v53 = vpop.f32.mrb[99].mxu0  ;;  %v6076_v58 = vmul.f32 %v14726_v59, %v14726_v59 }
 0x59c   : > { %v6077_v60 = vmul.f32 %v14729_v18, %v14729_v18  ;;  %v14739_v11 = vadd.f32 %v5792_v53, %v14723_v57  ;;  %v5947_v7 = vadd.f32 %v14729_v18, %v14726_v59 }
 0x59d   : > { %v6078_v22 = vmul.f32 %v14732_v24, %v14732_v24 }
 0x59e   : > { %v6079_v34 = vmul.f32 %v14739_v11, %v14739_v11  ;;  %5948 = vadd.xlane.f32.xlu0 %v5947_v7  ;;  %v5950_v37 = vadd.f32 %v14739_v11, %v14732_v24  ;;  %v6140_v46 = vadd.f32 %v6077_v60, %v6076_v58 }
 0x5a0   : > { %v5796_v42 = vpop.f32.mrb[100].mxu0  ;;  %5951 = vadd.xlane.f32.xlu1 %v5950_v37  ;;  %v6143_v29 = vadd.f32 %v6079_v34, %v6078_v22 }
 0x5a1   : > { %v14750_v16 = vadd.f32 %v5796_v42, %v14720_v61  ;;  %v5798_v49 = vpop.f32.mrb[101].mxu0 }
 0x5a2   : > { %v14753_v31 = vadd.f32 %v5798_v49, %v14723_v57  ;;  %v5800_v13 = vpop.f32.mrb[102].mxu0  ;;  %6141 = vadd.xlane.f32.xlu0 %v6140_v46 }
 0x5a3   : > { %v14756_v35 = vadd.f32 %v5800_v13, %v14720_v61  ;;  %v5802_v1 = vpop.f32.mrb[103].mxu0  ;;  %v6080_v2 = vmul.f32 %v14750_v16, %v14750_v16 }
 0x5a4   : > { %v6081_v14 = vmul.f32 %v14753_v31, %v14753_v31  ;;  %v14763_v43 = vadd.f32 %v5802_v1, %v14723_v57  ;;  %6144 = vadd.xlane.f32.xlu1 %v6143_v29  ;;  %v5953_v44 = vadd.f32 %v14753_v31, %v14750_v16 }
 0x5a5   : > { %v6082_v10 = vmul.f32 %v14756_v35, %v14756_v35 }
 0x5a6   : > { %v6083_v23 = vmul.f32 %v14763_v43, %v14763_v43  ;;  %5954 = vadd.xlane.f32.xlu0 %v5953_v44  ;;  %v5956_v20 = vadd.f32 %v14763_v43, %v14756_v35  ;;  %v6146_v6 = vadd.f32 %v6081_v14, %v6080_v2 }
 0x5a8   : > { %v5806_v39 = vpop.f32.mrb[104].mxu0  ;;  %5957 = vadd.xlane.f32.xlu1 %v5956_v20  ;;  %v6149_v55 = vadd.f32 %v6083_v23, %v6082_v10 }
 0x5a9   : > { %v14774_v51 = vadd.f32 %v5806_v39, %v14720_v61  ;;  %v5808_v28 = vpop.f32.mrb[105].mxu0 }
 0x5aa   : > { %v14777_v21 = vadd.f32 %v5808_v28, %v14723_v57  ;;  %v5810_v19 = vpop.f32.mrb[106].mxu0  ;;  %6147 = vadd.xlane.f32.xlu0 %v6146_v6 }
 0x5ab   : > { %v14780_v12 = vadd.f32 %v5810_v19, %v14720_v61  ;;  %v5812_v17 = vpop.f32.mrb[107].mxu0  ;;  %v6084_v36 = vmul.f32 %v14774_v51, %v14774_v51 }
 0x5ac   : > { %v6085_v62 = vmul.f32 %v14777_v21, %v14777_v21  ;;  %v14787_v40 = vadd.f32 %v5812_v17, %v14723_v57  ;;  %6150 = vadd.xlane.f32.xlu1 %v6149_v55  ;;  %v5959_v33 = vadd.f32 %v14777_v21, %v14774_v51 }
 0x5ad   : > { %v6086_v41 = vmul.f32 %v14780_v12, %v14780_v12 }
 0x5ae   : > { %v6087_v0 = vmul.f32 %v14787_v40, %v14787_v40  ;;  %5960 = vadd.xlane.f32.xlu0 %v5959_v33  ;;  %v5962_v30 = vadd.f32 %v14787_v40, %v14780_v12  ;;  %v6152_v5 = vadd.f32 %v6085_v62, %v6084_v36 }
 0x5b0   : > { %v5816_v63 = vpop.f32.mrb[108].mxu0  ;;  %5963 = vadd.xlane.f32.xlu1 %v5962_v30  ;;  %v6155_v32 = vadd.f32 %v6087_v0, %v6086_v41 }
 0x5b1   : > { %v14798_v26 = vadd.f32 %v5816_v63, %v14720_v61  ;;  %v5818_v56 = vpop.f32.mrb[109].mxu0  ;;  %v10483_v63 = vld [vmem:[#allocation6 + $0x50] sm:$0xff]  }
 0x5b2   : > { %v14801_v47 = vadd.f32 %v5818_v56, %v14723_v57  ;;  %v5820_v15 = vpop.f32.mrb[110].mxu0  ;;  %6153 = vadd.xlane.f32.xlu0 %v6152_v5  ;;  %v10484_v5 = vld [vmem:[#allocation6 + $0x10] sm:$0xff]   ;;  %v10485_v56 = vld [vmem:[#allocation6 + $0x58] sm:$0xff]   ;;  %9497 = vmatprep.subr.bf16.mxu1 %v10483_v63 }
 0x5b3   : > { %v14804_v48 = vadd.f32 %v5820_v15, %v14720_v61  ;;  %v5822_v54 = vpop.f32.mrb[111].mxu0  ;;  %v6088_v38 = vmul.f32 %v14798_v26, %v14798_v26  ;;  %9498 = vmatpush3.bf16.msra.mxu1 %v10484_v5 }
 0x5b4   : > { %v6089_v52 = vmul.f32 %v14801_v47, %v14801_v47  ;;  %v14811_v27 = vadd.f32 %v5822_v54, %v14723_v57  ;;  %6156 = vadd.xlane.f32.xlu1 %v6155_v32  ;;  %v5965_v4 = vadd.f32 %v14801_v47, %v14798_v26  ;;  %9499 = vmatprep.subr.bf16.mxu1 %v10485_v56 }
 0x5b5   : > { %v6090_v8 = vmul.f32 %v14804_v48, %v14804_v48 }
 0x5b6   : > { %v6091_v3 = vmul.f32 %v14811_v27, %v14811_v27  ;;  %5966 = vadd.xlane.f32.xlu0 %v5965_v4  ;;  %v5968_v53 = vadd.f32 %v14811_v27, %v14804_v48  ;;  %v6158_v60 = vadd.f32 %v6089_v52, %v6088_v38 }
 0x5b8   : > { %v5826_v58 = vpop.f32.mrb[112].mxu0  ;;  %5969 = vadd.xlane.f32.xlu1 %v5968_v53  ;;  %v6161_v34 = vadd.f32 %v6091_v3, %v6090_v8  ;;  %v10486_v3 = vld [vmem:[#allocation6 + $0x18] sm:$0xff]  }
 0x5b9   : > { %v14822_v7 = vadd.f32 %v5826_v58, %v14720_v61  ;;  %v5828_v9 = vpop.f32.mrb[113].mxu0  ;;  %9500 = vmatpush3.bf16.msra.mxu1 %v10486_v3 }
 0x5ba   : > { %v14825_v45 = vadd.f32 %v5828_v9, %v14723_v57  ;;  %v5830_v22 = vpop.f32.mrb[114].mxu0  ;;  %6159 = vadd.xlane.f32.xlu0 %v6158_v60  ;;  %v10487_v60 = vld [vmem:[#allocation6 + $0x60] sm:$0xff]  }
 0x5bb   : > { %v14828_v37 = vadd.f32 %v5830_v22, %v14720_v61  ;;  %v5832_v42 = vpop.f32.mrb[115].mxu0  ;;  %v6092_v46 = vmul.f32 %v14822_v7, %v14822_v7  ;;  %9501 = vmatprep.subr.bf16.mxu1 %v10487_v60 }
 0x5bc   : > { %v6093_v49 = vmul.f32 %v14825_v45, %v14825_v45  ;;  %v14835_v13 = vadd.f32 %v5832_v42, %v14723_v57  ;;  %6162 = vadd.xlane.f32.xlu1 %v6161_v34  ;;  %v5971_v29 = vadd.f32 %v14825_v45, %v14822_v7 }
 0x5bd   : > { %17512 = vst [vmem:[#allocation98_spill] sm:$0xff] %v14828_v37  ;;  %v6094_v1 = vmul.f32 %v14828_v37, %v14828_v37 }
 0x5be   : > { %v6095_v2 = vmul.f32 %v14835_v13, %v14835_v13  ;;  %5972 = vadd.xlane.f32.xlu0 %v5971_v29  ;;  %v5974_v14 = vadd.f32 %v14835_v13, %v14828_v37  ;;  %v6164_v10 = vadd.f32 %v6093_v49, %v6092_v46 }
 0x5c0   : > { %v5836_v44 = vpop.f32.mrb[116].mxu0  ;;  %5975 = vadd.xlane.f32.xlu1 %v5974_v14  ;;  %v6167_v28 = vadd.f32 %v6095_v2, %v6094_v1  ;;  %v10488_v1 = vld [vmem:[#allocation6 + $0x20] sm:$0xff]   ;;  %v10489_v2 = vld [vmem:[#allocation6 + $0x68] sm:$0xff]  }
 0x5c1   : > { %v14846_v23 = vadd.f32 %v5836_v44, %v14720_v61  ;;  %v5838_v20 = vpop.f32.mrb[117].mxu0  ;;  %9502 = vmatpush3.bf16.msra.mxu1 %v10488_v1 }
 0x5c2   : > { %v14849_v39 = vadd.f32 %v5838_v20, %v14723_v57  ;;  %v5840_v6 = vpop.f32.mrb[118].mxu0  ;;  %6165 = vadd.xlane.f32.xlu0 %v6164_v10  ;;  %9503 = vmatprep.subr.bf16.mxu1 %v10489_v2 }
 0x5c3   : > { %v14852_v19 = vadd.f32 %v5840_v6, %v14720_v61  ;;  %v5842_v55 = vpop.f32.mrb[119].mxu0  ;;  %v6096_v17 = vmul.f32 %v14846_v23, %v14846_v23 }
 0x5c4   : > { %v6097_v36 = vmul.f32 %v14849_v39, %v14849_v39  ;;  %v14859_v62 = vadd.f32 %v5842_v55, %v14723_v57  ;;  %6168 = vadd.xlane.f32.xlu1 %v6167_v28  ;;  %v5977_v33 = vadd.f32 %v14849_v39, %v14846_v23 }
 0x5c5   : > { %v6098_v41 = vmul.f32 %v14852_v19, %v14852_v19 }
 0x5c6   : > { %v6099_v0 = vmul.f32 %v14859_v62, %v14859_v62  ;;  %5978 = vadd.xlane.f32.xlu0 %v5977_v33  ;;  %v5980_v30 = vadd.f32 %v14859_v62, %v14852_v19  ;;  %v6170_v32 = vadd.f32 %v6097_v36, %v6096_v17  ;;  %v10490_v17 = vld [vmem:[#allocation6 + $0x28] sm:$0xff]  }
 0x5c7   : > { %9504 = vmatpush3.bf16.msra.mxu1 %v10490_v17 }
 0x5c8   : > { %v5846_v15 = vpop.f32.mrb[120].mxu0  ;;  %5981 = vadd.xlane.f32.xlu1 %v5980_v30  ;;  %v6173_v8 = vadd.f32 %v6099_v0, %v6098_v41  ;;  %v10491_v41 = vld [vmem:[#allocation6 + $0x70] sm:$0xff]  }
 0x5c9   : > { %v14870_v54 = vadd.f32 %v5846_v15, %v14720_v61  ;;  %v5848_v38 = vpop.f32.mrb[121].mxu0  ;;  %9505 = vmatprep.subr.bf16.mxu1 %v10491_v41 }
 0x5ca   : > { %v14873_v52 = vadd.f32 %v5848_v38, %v14723_v57  ;;  %v5850_v4 = vpop.f32.mrb[122].mxu0  ;;  %6171 = vadd.xlane.f32.xlu0 %v6170_v32  ;;  %v10492_v38 = vld [vmem:[#allocation6 + $0x30] sm:$0xff]  }
 0x5cb   : > { %v14876_v53 = vadd.f32 %v5850_v4, %v14720_v61  ;;  %v5852_v58 = vpop.f32.mrb[123].mxu0  ;;  %v6100_v9 = vmul.f32 %v14870_v54, %v14870_v54  ;;  %v10493_v4 = vld [vmem:[#allocation6 + $0x78] sm:$0xff]   ;;  %9506 = vmatpush3.bf16.msra.mxu1 %v10492_v38 }
 0x5cc   : > { %v6101_v22 = vmul.f32 %v14873_v52, %v14873_v52  ;;  %v14883_v34 = vadd.f32 %v5852_v58, %v14723_v57  ;;  %6174 = vadd.xlane.f32.xlu1 %v6173_v8  ;;  %v5983_v42 = vadd.f32 %v14873_v52, %v14870_v54  ;;  %9507 = vmatprep.subr.bf16.mxu1 %v10493_v4 }
 0x5cd   : > { %v6102_v46 = vmul.f32 %v14876_v53, %v14876_v53 }
 0x5ce   : > { %v6103_v49 = vmul.f32 %v14883_v34, %v14883_v34  ;;  %5984 = vadd.xlane.f32.xlu0 %v5983_v42  ;;  %v5986_v29 = vadd.f32 %v14883_v34, %v14876_v53  ;;  %v6176_v44 = vadd.f32 %v6101_v22, %v6100_v9 }
 0x5d0   : > { %v5856_v14 = vpop.f32.mrb[124].mxu0  ;;  %5987 = vadd.xlane.f32.xlu1 %v5986_v29  ;;  %v6179_v55 = vadd.f32 %v6103_v49, %v6102_v46  ;;  %v10494_v46 = vld [vmem:[#allocation6 + $0x38] sm:$0xff]  }
 0x5d1   : > { %v14894_v10 = vadd.f32 %v5856_v14, %v14720_v61  ;;  %v5858_v20 = vpop.f32.mrb[125].mxu0  ;;  %9508 = vmatpush3.bf16.msra.mxu1 %v10494_v46 }
 0x5d2   : > { %v14897_v6 = vadd.f32 %v5858_v20, %v14723_v57  ;;  %v5860_v28 = vpop.f32.mrb[126].mxu0  ;;  %6177 = vadd.xlane.f32.xlu0 %v6176_v44 }
 0x5d3   : > { %v14900_v36 = vadd.f32 %v5860_v28, %v14720_v61  ;;  %v5862_v33 = vpop.f32.mrb[127].mxu0  ;;  %v6104_v0 = vmul.f32 %v14894_v10, %v14894_v10 }
 0x5d4   : > { %v6105_v30 = vmul.f32 %v14897_v6, %v14897_v6  ;;  %v14907_v63 = vadd.f32 %v5862_v33, %v14723_v57  ;;  %6180 = vadd.xlane.f32.xlu1 %v6179_v55  ;;  %v5989_v5 = vadd.f32 %v14897_v6, %v14894_v10 }
 0x5d5   : > { %v6106_v56 = vmul.f32 %v14900_v36, %v14900_v36 }
 0x5d6   : > { %v6107_v15 = vmul.f32 %v14907_v63, %v14907_v63  ;;  %5990 = vadd.xlane.f32.xlu0 %v5989_v5  ;;  %v5992_v32 = vadd.f32 %v14907_v63, %v14900_v36  ;;  %v6182_v3 = vadd.f32 %v6105_v30, %v6104_v0 }
 0x5d8   : > { %v5866_v8 = vpop.f32.mrb[128].mxu0  ;;  %5993 = vadd.xlane.f32.xlu1 %v5992_v32  ;;  %v6185_v42 = vadd.f32 %v6107_v15, %v6106_v56 }
 0x5d9   : > { %v14918_v58 = vadd.f32 %v5866_v8, %v14720_v61  ;;  %v5868_v60 = vpop.f32.mrb[129].mxu0 }
 0x5da   : > { %v14921_v9 = vadd.f32 %v5868_v60, %v14723_v57  ;;  %v5870_v22 = vpop.f32.mrb[130].mxu0  ;;  %6183 = vadd.xlane.f32.xlu0 %v6182_v3 }
 0x5db   : > { %v14924_v49 = vadd.f32 %v5870_v22, %v14720_v61  ;;  %v5872_v29 = vpop.f32.mrb[131].mxu0  ;;  %v6108_v1 = vmul.f32 %v14918_v58, %v14918_v58 }
 0x5dc   : > { %v6109_v2 = vmul.f32 %v14921_v9, %v14921_v9  ;;  %v14931_v14 = vadd.f32 %v5872_v29, %v14723_v57  ;;  %6186 = vadd.xlane.f32.xlu1 %v6185_v42  ;;  %v5995_v44 = vadd.f32 %v14921_v9, %v14918_v58 }
 0x5dd   : > { %17513 = vst [vmem:[#allocation100_spill] sm:$0xff] %v14924_v49  ;;  %v6110_v20 = vmul.f32 %v14924_v49, %v14924_v49 }
 0x5de   : > { %17514 = vst [vmem:[#allocation102_spill] sm:$0xff] %v14931_v14  ;;  %v6111_v28 = vmul.f32 %v14931_v14, %v14931_v14  ;;  %5996 = vadd.xlane.f32.xlu0 %v5995_v44  ;;  %v5998_v55 = vadd.f32 %v14931_v14, %v14924_v49  ;;  %v6188_v33 = vadd.f32 %v6109_v2, %v6108_v1 }
 0x5e0   : > { %v5876_v17 = vpop.f32.mrb[132].mxu0  ;;  %5999 = vadd.xlane.f32.xlu1 %v5998_v55  ;;  %v6191_v56 = vadd.f32 %v6111_v28, %v6110_v20 }
 0x5e1   : > { %v14942_v41 = vadd.f32 %v5876_v17, %v14720_v61  ;;  %v5878_v0 = vpop.f32.mrb[133].mxu0 }
 0x5e2   : > { %v14945_v30 = vadd.f32 %v5878_v0, %v14723_v57  ;;  %v5880_v5 = vpop.f32.mrb[134].mxu0  ;;  %6189 = vadd.xlane.f32.xlu0 %v6188_v33 }
 0x5e3   : > { %17515 = vst [vmem:[#allocation103_spill] sm:$0xff] %v14942_v41  ;;  %v14948_v15 = vadd.f32 %v5880_v5, %v14720_v61  ;;  %v5882_v32 = vpop.f32.mrb[135].mxu0  ;;  %v6112_v38 = vmul.f32 %v14942_v41, %v14942_v41 }
 0x5e4   : > { %17516 = vst [vmem:[#allocation106_spill] sm:$0xff] %v14945_v30  ;;  %v6113_v4 = vmul.f32 %v14945_v30, %v14945_v30  ;;  %v14955_v8 = vadd.f32 %v5882_v32, %v14723_v57  ;;  %6192 = vadd.xlane.f32.xlu1 %v6191_v56  ;;  %v6001_v3 = vadd.f32 %v14945_v30, %v14942_v41 }
 0x5e5   : > { %17517 = vst [vmem:[#allocation108_spill] sm:$0xff] %v14948_v15  ;;  %v6114_v60 = vmul.f32 %v14948_v15, %v14948_v15 }
 0x5e6   : > { %17518 = vst [vmem:[#allocation110_spill] sm:$0xff] %v14955_v8  ;;  %v6115_v22 = vmul.f32 %v14955_v8, %v14955_v8  ;;  %6002 = vadd.xlane.f32.xlu0 %v6001_v3  ;;  %v6004_v42 = vadd.f32 %v14955_v8, %v14948_v15  ;;  %v6194_v29 = vadd.f32 %v6113_v4, %v6112_v38 }
 0x5e8   : > { %v5886_v46 = vpop.f32.mrb[136].mxu0  ;;  %6005 = vadd.xlane.f32.xlu1 %v6004_v42  ;;  %v6197_v28 = vadd.f32 %v6115_v22, %v6114_v60 }
 0x5e9   : > { %v14966_v1 = vadd.f32 %v5886_v46, %v14720_v61  ;;  %v5888_v2 = vpop.f32.mrb[137].mxu0 }
 0x5ea   : > { %v14969_v44 = vadd.f32 %v5888_v2, %v14723_v57  ;;  %v5890_v20 = vpop.f32.mrb[138].mxu0  ;;  %6195 = vadd.xlane.f32.xlu0 %v6194_v29 }
 0x5eb   : > { %17519 = vst [vmem:[#allocation111_spill] sm:$0xff] %v14966_v1  ;;  %v14972_v55 = vadd.f32 %v5890_v20, %v14720_v61  ;;  %v5892_v17 = vpop.f32.mrb[139].mxu0  ;;  %v6116_v33 = vmul.f32 %v14966_v1, %v14966_v1 }
 0x5ec   : > { %17520 = vst [vmem:[#allocation114_spill] sm:$0xff] %v14969_v44  ;;  %v6117_v0 = vmul.f32 %v14969_v44, %v14969_v44  ;;  %v14979_v5 = vadd.f32 %v5892_v17, %v14723_v57  ;;  %6198 = vadd.xlane.f32.xlu1 %v6197_v28  ;;  %v6007_v56 = vadd.f32 %v14969_v44, %v14966_v1 }
 0x5ed   : > { %17521 = vst [vmem:[#allocation116_spill] sm:$0xff] %v14972_v55  ;;  %v6118_v32 = vmul.f32 %v14972_v55, %v14972_v55 }
 0x5ee   : > { %17522 = vst [vmem:[#allocation118_spill] sm:$0xff] %v14979_v5  ;;  %v6119_v38 = vmul.f32 %v14979_v5, %v14979_v5  ;;  %6008 = vadd.xlane.f32.xlu0 %v6007_v56  ;;  %v6010_v4 = vadd.f32 %v14979_v5, %v14972_v55  ;;  %v6200_v60 = vadd.f32 %v6117_v0, %v6116_v33 }
 0x5f0   : > { %v5896_v3 = vpop.f32.mrb[140].mxu0  ;;  %6011 = vadd.xlane.f32.xlu1 %v6010_v4  ;;  %v6203_v2 = vadd.f32 %v6119_v38, %v6118_v32 }
 0x5f1   : > { %v14990_v22 = vadd.f32 %v5896_v3, %v14720_v61  ;;  %v5898_v42 = vpop.f32.mrb[141].mxu0 }
 0x5f2   : > { %v14993_v46 = vadd.f32 %v5898_v42, %v14723_v57  ;;  %v5900_v29 = vpop.f32.mrb[142].mxu0  ;;  %6201 = vadd.xlane.f32.xlu0 %v6200_v60 }
 0x5f3   : > { %17523 = vst [vmem:[#allocation119_spill] sm:$0xff] %v14990_v22  ;;  %v14996_v20 = vadd.f32 %v5900_v29, %v14720_v61  ;;  %v5902_v28 = vpop.f32.mrb[143].mxu0  ;;  %v6120_v17 = vmul.f32 %v14990_v22, %v14990_v22 }
 0x5f4   : > { %17524 = vst [vmem:[#allocation122_spill] sm:$0xff] %v14993_v46  ;;  %v6121_v33 = vmul.f32 %v14993_v46, %v14993_v46  ;;  %v15003_v0 = vadd.f32 %v5902_v28, %v14723_v57  ;;  %6204 = vadd.xlane.f32.xlu1 %v6203_v2  ;;  %v6013_v56 = vadd.f32 %v14993_v46, %v14990_v22 }
 0x5f5   : > { %17525 = vst [vmem:[#allocation124_spill] sm:$0xff] %v14996_v20  ;;  %v6122_v32 = vmul.f32 %v14996_v20, %v14996_v20 }
 0x5f6   : > { %17526 = vst [vmem:[#allocation126_spill] sm:$0xff] %v15003_v0  ;;  %v6123_v38 = vmul.f32 %v15003_v0, %v15003_v0  ;;  %6014 = vadd.xlane.f32.xlu0 %v6013_v56  ;;  %v6016_v4 = vadd.f32 %v15003_v0, %v14996_v20  ;;  %v6206_v60 = vadd.f32 %v6121_v33, %v6120_v17 }
 0x5f8   : > { %v5906_v3 = vpop.f32.mrb[144].mxu0  ;;  %6017 = vadd.xlane.f32.xlu1 %v6016_v4  ;;  %v6209_v46 = vadd.f32 %v6123_v38, %v6122_v32 }
 0x5f9   : > { %v15014_v42 = vadd.f32 %v5906_v3, %v14720_v61  ;;  %v5908_v29 = vpop.f32.mrb[145].mxu0 }
 0x5fa   : > { %v15017_v2 = vadd.f32 %v5908_v29, %v14723_v57  ;;  %v5910_v28 = vpop.f32.mrb[146].mxu0  ;;  %6207 = vadd.xlane.f32.xlu0 %v6206_v60 }
 0x5fb   : > { %17527 = vst [vmem:[#allocation127_spill] sm:$0xff] %v15014_v42  ;;  %v15020_v22 = vadd.f32 %v5910_v28, %v14720_v61  ;;  %v5912_v56 = vpop.f32.mrb[147].mxu0  ;;  %v6124_v0 = vmul.f32 %v15014_v42, %v15014_v42 }
 0x5fc   : > { %17528 = vst [vmem:[#allocation130_spill] sm:$0xff] %v15017_v2  ;;  %v6125_v17 = vmul.f32 %v15017_v2, %v15017_v2  ;;  %v15027_v33 = vadd.f32 %v5912_v56, %v14723_v57  ;;  %6210 = vadd.xlane.f32.xlu1 %v6209_v46  ;;  %v6019_v4 = vadd.f32 %v15017_v2, %v15014_v42 }
 0x5fd   : > { %17529 = vst [vmem:[#allocation132_spill] sm:$0xff] %v15020_v22  ;;  %v6126_v32 = vmul.f32 %v15020_v22, %v15020_v22 }
 0x5fe   : > { %17530 = vst [vmem:[#allocation131_spill] sm:$0xff] %v15027_v33  ;;  %v6127_v38 = vmul.f32 %v15027_v33, %v15027_v33  ;;  %6020 = vadd.xlane.f32.xlu0 %v6019_v4  ;;  %v6022_v3 = vadd.f32 %v15027_v33, %v15020_v22  ;;  %v6212_v29 = vadd.f32 %v6125_v17, %v6124_v0 }
 0x600   : > { %v5916_v60 = vpop.f32.mrb[148].mxu0  ;;  %6023 = vadd.xlane.f32.xlu1 %v6022_v3  ;;  %v6215_v42 = vadd.f32 %v6127_v38, %v6126_v32 }
 0x601   : > { %v15038_v28 = vadd.f32 %v5916_v60, %v14720_v61  ;;  %v5918_v46 = vpop.f32.mrb[149].mxu0 }
 0x602   : > { %v15041_v56 = vadd.f32 %v5918_v46, %v14723_v57  ;;  %v5920_v2 = vpop.f32.mrb[150].mxu0  ;;  %6213 = vadd.xlane.f32.xlu0 %v6212_v29 }
 0x603   : > { %17531 = vst [vmem:[#allocation133_spill] sm:$0xff] %v15038_v28  ;;  %v15044_v20 = vadd.f32 %v5920_v2, %v14720_v61  ;;  %v5922_v4 = vpop.f32.mrb[151].mxu0  ;;  %v6128_v33 = vmul.f32 %v15038_v28, %v15038_v28 }
 0x604   : > { %17532 = vst [vmem:[#allocation134_spill] sm:$0xff] %v15041_v56  ;;  %v6129_v0 = vmul.f32 %v15041_v56, %v15041_v56  ;;  %v15051_v17 = vadd.f32 %v5922_v4, %v14723_v57  ;;  %6216 = vadd.xlane.f32.xlu1 %v6215_v42  ;;  %v6025_v3 = vadd.f32 %v15041_v56, %v15038_v28 }
 0x605   : > { %17533 = vst [vmem:[#allocation135_spill] sm:$0xff] %v15044_v20  ;;  %v6130_v32 = vmul.f32 %v15044_v20, %v15044_v20 }
 0x606   : > { %17534 = vst [vmem:[#allocation137_spill] sm:$0xff] %v15051_v17  ;;  %v6131_v2 = vmul.f32 %v15051_v17, %v15051_v17  ;;  %6026 = vadd.xlane.f32.xlu0 %v6025_v3  ;;  %v6028_v38 = vadd.f32 %v15051_v17, %v15044_v20  ;;  %v6218_v29 = vadd.f32 %v6129_v0, %v6128_v33 }
 0x608   : > { %v5926_v60 = vpop.f32.mrb[152].mxu0  ;;  %6029 = vadd.xlane.f32.xlu1 %v6028_v38  ;;  %v6221_v28 = vadd.f32 %v6131_v2, %v6130_v32 }
 0x609   : > { %v15062_v46 = vadd.f32 %v5926_v60, %v14720_v61  ;;  %v5928_v42 = vpop.f32.mrb[153].mxu0 }
 0x60a   : > { %v15065_v4 = vadd.f32 %v5928_v42, %v14723_v57  ;;  %v5930_v56 = vpop.f32.mrb[154].mxu0  ;;  %6219 = vadd.xlane.f32.xlu0 %v6218_v29 }
 0x60b   : > { %17535 = vst [vmem:[#allocation29_spill] sm:$0xff] %v15062_v46  ;;  %v15068_v22 = vadd.f32 %v5930_v56, %v14720_v61  ;;  %v5932_v3 = vpop.f32.mrb[155].mxu0  ;;  %v6132_v17 = vmul.f32 %v15062_v46, %v15062_v46 }
 0x60c   : > { %17536 = vst [vmem:[#allocation139_spill] sm:$0xff] %v15065_v4  ;;  %v6133_v33 = vmul.f32 %v15065_v4, %v15065_v4  ;;  %v15075_v0 = vadd.f32 %v5932_v3, %v14723_v57  ;;  %6222 = vadd.xlane.f32.xlu1 %v6221_v28  ;;  %v6031_v38 = vadd.f32 %v15065_v4, %v15062_v46 }
 0x60d   : > { %17537 = vst [vmem:[#allocation146_spill] sm:$0xff] %v15068_v22  ;;  %v6134_v32 = vmul.f32 %v15068_v22, %v15068_v22 }
 0x60e   : > { %17538 = vst [vmem:[#allocation26_spill] sm:$0xff] %v15075_v0  ;;  %v6135_v56 = vmul.f32 %v15075_v0, %v15075_v0  ;;  %6032 = vadd.xlane.f32.xlu0 %v6031_v38  ;;  %v6034_v2 = vadd.f32 %v15075_v0, %v15068_v22  ;;  %v6224_v29 = vadd.f32 %v6133_v33, %v6132_v17 }
 0x610   : > { %v5936_v60 = vpop.f32.mrb[156].mxu0  ;;  %6035 = vadd.xlane.f32.xlu1 %v6034_v2  ;;  %v6227_v46 = vadd.f32 %v6135_v56, %v6134_v32 }
 0x611   : > { %v15086_v42 = vadd.f32 %v5936_v60, %v14720_v61  ;;  %v5938_v28 = vpop.f32.mrb[157].mxu0 }
 0x612   : > { %v15089_v3 = vadd.f32 %v5938_v28, %v14723_v57  ;;  %v5940_v4 = vpop.f32.mrb[158].mxu0  ;;  %6225 = vadd.xlane.f32.xlu0 %v6224_v29 }
 0x613   : > { %17539 = vst [vmem:[#allocation147_spill] sm:$0xff] %v15086_v42  ;;  %v15092_v20 = vadd.f32 %v5940_v4, %v14720_v61  ;;  %v5942_v38 = vpop.f32.mrb[159].mxu0  ;;  %v6136_v0 = vmul.f32 %v15086_v42, %v15086_v42 }
 0x614   : > { %17540 = vst [vmem:[#allocation27_spill] sm:$0xff] %v15089_v3  ;;  %v6137_v17 = vmul.f32 %v15089_v3, %v15089_v3  ;;  %v15099_v33 = vadd.f32 %v5942_v38, %v14723_v57  ;;  %6228 = vadd.xlane.f32.xlu1 %v6227_v46  ;;  %v6037_v2 = vadd.f32 %v15089_v3, %v15086_v42 }
 0x615   : > { %17541 = vst [vmem:[#allocation138_spill] sm:$0xff] %v15092_v20  ;;  %v6138_v32 = vmul.f32 %v15092_v20, %v15092_v20 }
 0x616   : > { %17542 = vst [vmem:[#allocation144_spill] sm:$0xff] %v15099_v33  ;;  %v6139_v61 = vmul.f32 %v15099_v33, %v15099_v33  ;;  %6038 = vadd.xlane.f32.xlu0 %v6037_v2  ;;  %v6040_v4 = vadd.f32 %v15099_v33, %v15092_v20  ;;  %v6230_v56 = vadd.f32 %v6137_v17, %v6136_v0 }
 0x618   : > { %6041 = vadd.xlane.f32.xlu1 %v6040_v4  ;;  %v6233_v60 = vadd.f32 %v6139_v61, %v6138_v32 }
 0x61a   : > { %6231 = vadd.xlane.f32.xlu0 %v6230_v56 }
 0x61c   : > { %6234 = vadd.xlane.f32.xlu1 %v6233_v60 }
 0x62b   : > { %v5949_v57 = vpop.xlane.xlu0 %5948 }
 0x62c   : > { %v15109_v46 = vmul.f32 0.00390625, %v5949_v57 }
 0x62d   : > { %v5952_v29 = vpop.xlane.xlu1 %5951 }
 0x62e   : > { %v15111_v28 = vmul.f32 0.00390625, %v5952_v29  ;;  %v6268_v3 = vmul.f32 %v15109_v46, %v15109_v46 }
 0x62f   : > { %v6142_v38 = vpop.xlane.xlu0 %6141 }
 0x630   : > { %v6236_v42 = vmul.f32 0.00390625, %v6142_v38  ;;  %v6269_v4 = vmul.f32 %v15111_v28, %v15111_v28 }
 0x631   : > { %v6145_v2 = vpop.xlane.xlu1 %6144 }
 0x632   : > { %v6300_v22 = vsub.f32 %v6236_v42, %v6268_v3  ;;  %v6237_v0 = vmul.f32 0.00390625, %v6145_v2 }
 0x633   : > { %v5955_v17 = vpop.xlane.xlu0 %5954 }
 0x634   : > { %v6332_v32 = vmax.f32 %v6300_v22, 0.0  ;;  %v6301_v61 = vsub.f32 %v6237_v0, %v6269_v4  ;;  %v15117_v56 = vmul.f32 0.00390625, %v5955_v17  ;;  %v5945_v22 = vld [vmem:[%s16610_s10] sm:$0x3] }
 0x635   : > { %v5958_v60 = vpop.xlane.xlu1 %5957  ;;  %v5946_v17 = vld [vmem:[%s16611_s11] sm:$0x3] }
 0x636   : > { %v6428_v57 = vadd.f32 1e-05, %v6332_v32  ;;  %v6333_v29 = vmax.f32 %v6301_v61, 0.0  ;;  %v15119_v33 = vmul.f32 0.00390625, %v5958_v60  ;;  %v6270_v42 = vmul.f32 %v15117_v56, %v15117_v56 }
 0x637   : > { %v6148_v20 = vpop.xlane.xlu0 %6147  ;;  %v17545_v37 = vsub.f32 %v14750_v16, %v15117_v56 }
 0x638   : > { %10624 = vrsqrt.f32 %v6428_v57  ;;  %v6429_v5 = vadd.f32 1e-05, %v6333_v29  ;;  %v6238_v3 = vmul.f32 0.00390625, %v6148_v20  ;;  %v6271_v4 = vmul.f32 %v15119_v33, %v15119_v33 }
 0x639   : > { %v6151_v38 = vpop.xlane.xlu1 %6150  ;;  %v15134_v20 = vrot.slane %v5945_v22, %v17510_v50 }
 0x63a   : > { %10626 = vrsqrt.f32 %v6429_v5  ;;  %v6302_v2 = vsub.f32 %v6238_v3, %v6270_v42  ;;  %v6239_v0 = vmul.f32 0.00390625, %v6151_v38  ;;  %v15137_v5 = vrot.slane %v5945_v22, %v17511_v25 }
 0x63b   : > { %v5961_v32 = vpop.xlane.xlu0 %5960  ;;  %v15140_v42 = vrot.slane %v5946_v17, %v17510_v50  ;;  %v15143_v3 = vrot.slane %v5946_v17, %v17511_v25  ;;  %v6364_v38 = vsub.f32 %v14726_v59, %v15109_v46  ;;  %v6367_v22 = vsub.f32 %v14739_v11, %v15111_v28 }
 0x63c   : > { %v6334_v61 = vmax.f32 %v6302_v2, 0.0  ;;  %v6303_v60 = vsub.f32 %v6239_v0, %v6271_v4  ;;  %v15131_v57 = vmul.f32 0.00390625, %v5961_v32  ;;  %v6365_v2 = vsub.f32 %v14729_v18, %v15109_v46 }
 0x63d   : > { %v5964_v29 = vpop.xlane.xlu1 %5963  ;;  %v6366_v32 = vsub.f32 %v14732_v24, %v15111_v28 }
 0x63e   : > { %v6430_v4 = vadd.f32 1e-05, %v6334_v61  ;;  %v6335_v0 = vmax.f32 %v6303_v60, 0.0  ;;  %v15155_v55 = vmul.f32 0.00390625, %v5964_v29  ;;  %v6272_v18 = vmul.f32 %v15131_v57, %v15131_v57 }
 0x63f   : > { %v6154_v17 = vpop.xlane.xlu0 %6153  ;;  %v17547_v16 = vsub.f32 %v14777_v21, %v15131_v57 }
 0x640   : > { %v6431_v25 = vadd.f32 1e-05, %v6335_v0  ;;  %v6240_v46 = vmul.f32 0.00390625, %v6154_v17  ;;  %10628 = vrsqrt.f32 %v6430_v4  ;;  %v6273_v50 = vmul.f32 %v15155_v55, %v15155_v55 }
 0x641   : > { %v6157_v60 = vpop.xlane.xlu1 %6156 }
 0x642   : > { %v10625_v29 = vpop.eup %10624  ;;  %v6304_v0 = vsub.f32 %v6240_v46, %v6272_v18  ;;  %v6241_v17 = vmul.f32 0.00390625, %v6157_v60  ;;  %10630 = vrsqrt.f32 %v6431_v25 }
 0x643   : > { %v6492_v59 = vmul.f32 %v10625_v29, %v6364_v38  ;;  %v5967_v44 = vpop.xlane.xlu0 %5966  ;;  %v6493_v28 = vmul.f32 %v10625_v29, %v6365_v2 }
 0x644   : > { %v10627_v1 = vpop.eup %10626  ;;  %v6336_v61 = vmax.f32 %v6304_v0, 0.0  ;;  %v6305_v8 = vsub.f32 %v6241_v17, %v6273_v50  ;;  %v15175_v15 = vmul.f32 0.00390625, %v5967_v44 }
 0x645   : > { %v6567_v4 = vmul.f32 %v15134_v20, %v6492_v59  ;;  %v6494_v18 = vmul.f32 %v10627_v1, %v6366_v32  ;;  %v5970_v46 = vpop.xlane.xlu1 %5969  ;;  %v6495_v60 = vmul.f32 %v10627_v1, %v6367_v22  ;;  %v6568_v38 = vmul.f32 %v15137_v5, %v6493_v28 }
 0x646   : > { %v6432_v30 = vadd.f32 1e-05, %v6336_v61  ;;  %v6337_v24 = vmax.f32 %v6305_v8, 0.0  ;;  %v15184_v50 = vmul.f32 0.00390625, %v5970_v46  ;;  %v6274_v44 = vmul.f32 %v15175_v15, %v15175_v15 }
 0x647   : > { %v6569_v25 = vmul.f32 %v15134_v20, %v6494_v18  ;;  %v6160_v32 = vpop.xlane.xlu0 %6159  ;;  %v6570_v1 = vmul.f32 %v15137_v5, %v6495_v60  ;;  %v6643_v8 = vadd.f32 %v15143_v3, %v6568_v38  ;;  %v6642_v38 = vadd.f32 %v15140_v42, %v6567_v4 }
 0x648   : > { %10632 = vrsqrt.f32 %v6432_v30  ;;  %v6433_v22 = vadd.f32 1e-05, %v6337_v24  ;;  %v6242_v59 = vmul.f32 0.00390625, %v6160_v32  ;;  %v6275_v29 = vmul.f32 %v15184_v50, %v15184_v50 }
 0x649   : > { %v6163_v0 = vpop.xlane.xlu1 %6162  ;;  %v6645_v17 = vadd.f32 %v15143_v3, %v6570_v1  ;;  %vm6707_vm7 = vcmp.gt.f32.partialorder %v6643_v8, 0.0  ;;  %v6771_v24 = vmul.f32 0.01, %v6643_v8  ;;  %v6644_v2 = vadd.f32 %v15140_v42, %v6569_v25 }
 0x64a   : > { %10634 = vrsqrt.f32 %v6433_v22  ;;  %v6306_v18 = vsub.f32 %v6242_v59, %v6274_v44  ;;  %v6243_v46 = vmul.f32 0.00390625, %v6163_v0  ;;  %v10629_v32 = vpop.eup %10628  ;;  %vm6706_vm8 = vcmp.gt.f32.partialorder %v6642_v38, 0.0 }
 0x64b   : > { %v5973_v30 = vpop.xlane.xlu0 %5972  ;;  %vm6709_vm4 = vcmp.gt.f32.partialorder %v6645_v17, 0.0  ;;  %v6773_v60 = vmul.f32 0.01, %v6645_v17  ;;  %v6835_v14 = vsel %vm6707_vm7, %v6643_v8, %v6771_v24  ;;  %v6770_v44 = vmul.f32 0.01, %v6642_v38 }
 0x64c   : > { %v6338_v28 = vmax.f32 %v6306_v18, 0.0  ;;  %v6307_v11 = vsub.f32 %v6243_v46, %v6275_v29  ;;  %v15198_v61 = vmul.f32 0.00390625, %v5973_v30  ;;  %v10631_v22 = vpop.eup %10630  ;;  %vm6708_vm0 = vcmp.gt.f32.partialorder %v6644_v2, 0.0 }
 0x64d   : > { %v5976_v41 = vpop.xlane.xlu1 %5975  ;;  %v6837_v1 = vsel %vm6709_vm4, %v6645_v17, %v6773_v60  ;;  %v6772_v30 = vmul.f32 0.01, %v6644_v2  ;;  %v6834_v60 = vsel %vm6706_vm8, %v6642_v38, %v6770_v44  ;;  %v6496_v38 = vmul.f32 %v10629_v32, %v17545_v37 }
 0x64e   : > { %v6434_v59 = vadd.f32 1e-05, %v6338_v28  ;;  %v6339_v0 = vmax.f32 %v6307_v11, 0.0  ;;  %v15205_v18 = vmul.f32 0.00390625, %v5976_v41  ;;  %v6276_v29 = vmul.f32 %v15198_v61, %v15198_v61 }
 0x64f   : > { %v6166_v25 = vpop.xlane.xlu0 %6165  ;;  %v6931_v46 = vpack.c.bf16 %v6837_v1, %v6835_v14  ;;  %v17543_v11 = vsub.f32 %v14753_v31, %v15117_v56 }
 0x650   : > { %10636 = vrsqrt.f32 %v6434_v59  ;;  %v6435_v8 = vadd.f32 1e-05, %v6339_v0  ;;  %v6244_v17 = vmul.f32 0.00390625, %v6166_v25  ;;  %v6277_v41 = vmul.f32 %v15205_v18, %v15205_v18 }
 0x651   : > { %7097 = vmatprep.mubr.bf16.mxu1 %v6931_v46  ;;  %v6169_v24 = vpop.xlane.xlu1 %6168  ;;  %v6836_v59 = vsel %vm6708_vm0, %v6644_v2, %v6772_v30  ;;  %v6497_v4 = vmul.f32 %v10629_v32, %v17543_v11  ;;  %v17544_v46 = vsub.f32 %v14763_v43, %v15119_v33  ;;  %v17546_v2 = vsub.f32 %v14756_v35, %v15119_v33 }
 0x652   : > { %v15216_v49 = vpop.eup %10632  ;;  %10638 = vrsqrt.f32 %v6435_v8  ;;  %v6308_v14 = vsub.f32 %v6244_v17, %v6276_v29  ;;  %v6245_v1 = vmul.f32 0.00390625, %v6169_v24  ;;  %v6930_v0 = vpack.c.bf16 %v6836_v59, %v6834_v60 }
 0x653   : > { %v5979_v25 = vpop.xlane.xlu0 %5978  ;;  %v6499_v28 = vmul.f32 %v10631_v22, %v17544_v46  ;;  %v6498_v30 = vmul.f32 %v10631_v22, %v17546_v2  ;;  %v6572_v11 = vmul.f32 %v15137_v5, %v6497_v4  ;;  %v6571_v24 = vmul.f32 %v15134_v20, %v6496_v38 }
 0x654   : > { %v15227_v44 = vpop.eup %10634  ;;  %v6340_v8 = vmax.f32 %v6308_v14, 0.0  ;;  %v6309_v29 = vsub.f32 %v6245_v1, %v6277_v41  ;;  %v15229_v17 = vmul.f32 0.00390625, %v5979_v25  ;;  %7098 = vmatmul.mubr.bf16.vlgmr.msra.gmra.mrb[160].mxu1 %v6930_v0  ;;  %v6501_v37 = vmul.f32 %v15216_v49, %v17547_v16 }
 0x655   : > { %v5982_v31 = vpop.xlane.xlu1 %5981  ;;  %v6574_v43 = vmul.f32 %v15137_v5, %v6499_v28  ;;  %v6647_v28 = vadd.f32 %v15143_v3, %v6572_v11  ;;  %v6573_v1 = vmul.f32 %v15134_v20, %v6498_v30  ;;  %v6646_v30 = vadd.f32 %v15140_v42, %v6571_v24 }
 0x656   : > { %v6436_v56 = vadd.f32 1e-05, %v6340_v8  ;;  %v6341_v32 = vmax.f32 %v6309_v29, 0.0  ;;  %v6385_v35 = vsub.f32 %v14849_v39, %v15229_v17  ;;  %v15245_v33 = vmul.f32 0.00390625, %v5982_v31 }
 0x657   : > { %v6278_v22 = vmul.f32 %v15229_v17, %v15229_v17  ;;  %v6172_v4 = vpop.xlane.xlu0 %6171  ;;  %v6649_v21 = vadd.f32 %v15143_v3, %v6574_v43  ;;  %vm6711_vm6 = vcmp.gt.f32.partialorder %v6647_v28, 0.0  ;;  %v6775_v8 = vmul.f32 0.01, %v6647_v28 }
 0x658   : > { %10640 = vrsqrt.f32 %v6436_v56  ;;  %v6437_v60 = vadd.f32 1e-05, %v6341_v32  ;;  %v6246_v14 = vmul.f32 0.00390625, %v6172_v4  ;;  %v6279_v2 = vmul.f32 %v15245_v33, %v15245_v33 }
 0x659   : > { %vm6713_vm2 = vcmp.gt.f32.partialorder %v6649_v21, 0.0  ;;  %v6175_v25 = vpop.xlane.xlu1 %6174  ;;  %v6777_v29 = vmul.f32 0.01, %v6649_v21  ;;  %v6648_v11 = vadd.f32 %v15140_v42, %v6573_v1  ;;  %v6839_v32 = vsel %vm6711_vm6, %v6647_v28, %v6775_v8 }
 0x65a   : > { %v15256_v46 = vpop.eup %10636  ;;  %10642 = vrsqrt.f32 %v6437_v60  ;;  %v6310_v38 = vsub.f32 %v6246_v14, %v6278_v22  ;;  %v6247_v31 = vmul.f32 0.00390625, %v6175_v25  ;;  %vm6710_vm9 = vcmp.gt.f32.partialorder %v6646_v30, 0.0 }
 0x65b   : > { %v5985_v43 = vpop.xlane.xlu0 %5984  ;;  %v6841_v4 = vsel %vm6713_vm2, %v6649_v21, %v6777_v29  ;;  %vm6712_vm5 = vcmp.gt.f32.partialorder %v6648_v11, 0.0  ;;  %v6774_v0 = vmul.f32 0.01, %v6646_v30  ;;  %v6776_v25 = vmul.f32 0.01, %v6648_v11 }
 0x65c   : > { %v15262_v16 = vpop.eup %10638  ;;  %v6342_v56 = vmax.f32 %v6310_v38, 0.0  ;;  %v15264_v59 = vmul.f32 0.00390625, %v5985_v43  ;;  %v6933_v60 = vpack.c.bf16 %v6841_v4, %v6839_v32  ;;  %v6311_v22 = vsub.f32 %v6247_v31, %v6279_v2  ;;  %v17565_v32 = vld [vmem:[#allocation110_spill] sm:$0xff] }
 0x65d   : > { %v5988_v14 = vpop.xlane.xlu1 %5987  ;;  %v6838_v29 = vsel %vm6710_vm9, %v6646_v30, %v6774_v0  ;;  %v6840_v2 = vsel %vm6712_vm5, %v6648_v11, %v6776_v25  ;;  %v17548_v24 = vsub.f32 %v14787_v40, %v15155_v55  ;;  %v6576_v0 = vmul.f32 %v15137_v5, %v6501_v37 }
 0x65e   : > { %v6438_v41 = vadd.f32 1e-05, %v6342_v56  ;;  %7105 = vmatprep.mubr.bf16.mxu1 %v6933_v60  ;;  %v6343_v1 = vmax.f32 %v6311_v22, 0.0  ;;  %v6389_v38 = vsub.f32 %v14873_v52, %v15264_v59  ;;  %v15270_v28 = vmul.f32 0.00390625, %v5988_v14 }
 0x65f   : > { %v6280_v21 = vmul.f32 %v15264_v59, %v15264_v59  ;;  %v6178_v8 = vpop.xlane.xlu0 %6177  ;;  %v6932_v56 = vpack.c.bf16 %v6840_v2, %v6838_v29  ;;  %v17549_v25 = vsub.f32 %v14774_v51, %v15131_v57  ;;  %v6651_v2 = vadd.f32 %v15143_v3, %v6576_v0 }
 0x660   : > { %10644 = vrsqrt.f32 %v6438_v41  ;;  %v6248_v31 = vmul.f32 0.00390625, %v6178_v8  ;;  %v6439_v43 = vadd.f32 1e-05, %v6343_v1  ;;  %v6503_v41 = vmul.f32 %v15227_v44, %v17548_v24 }
 0x661   : > { %v6181_v60 = vpop.xlane.xlu1 %6180  ;;  %v6281_v30 = vmul.f32 %v15270_v28, %v15270_v28  ;;  %7106 = vmatmul.mubr.bf16.gmra.mrb[164].mxu1 %v6932_v56  ;;  %v6500_v1 = vmul.f32 %v15216_v49, %v17549_v25  ;;  %vm6715_vm12 = vcmp.gt.f32.partialorder %v6651_v2, 0.0  ;;  %v17567_v39 = vsub.f32 %v14846_v23, %v15229_v17 }
 0x662   : > { %v15278_v22 = vpop.eup %10640  ;;  %v6312_v14 = vsub.f32 %v6248_v31, %v6280_v21  ;;  %10646 = vrsqrt.f32 %v6439_v43  ;;  %v6249_v11 = vmul.f32 0.00390625, %v6181_v60  ;;  %v17550_v21 = vsub.f32 %v14780_v12, %v15155_v55 }
 0x663   : > { %v5991_v8 = vpop.xlane.xlu0 %5990  ;;  %v6578_v29 = vmul.f32 %v15137_v5, %v6503_v41  ;;  %v6575_v51 = vmul.f32 %v15134_v20, %v6500_v1  ;;  %v17551_v12 = vsub.f32 %v14801_v47, %v15175_v15  ;;  %v6779_v60 = vmul.f32 0.01, %v6651_v2 }
 0x664   : > { %v6502_v40 = vmul.f32 %v15227_v44, %v17550_v21  ;;  %v15295_v24 = vpop.eup %10642  ;;  %v6344_v37 = vmax.f32 %v6312_v14, 0.0  ;;  %v15299_v31 = vmul.f32 0.00390625, %v5991_v8  ;;  %v6313_v43 = vsub.f32 %v6249_v11, %v6281_v30 }
 0x665   : > { %v5994_v57 = vpop.xlane.xlu1 %5993  ;;  %v6505_v55 = vmul.f32 %v15256_v46, %v17551_v12  ;;  %v6653_v56 = vadd.f32 %v15143_v3, %v6578_v29  ;;  %v6650_v41 = vadd.f32 %v15140_v42, %v6575_v51  ;;  %v6843_v47 = vsel %vm6715_vm12, %v6651_v2, %v6779_v60 }
 0x666   : > { %v6577_v49 = vmul.f32 %v15134_v20, %v6502_v40  ;;  %v6440_v44 = vadd.f32 1e-05, %v6344_v37  ;;  %v6345_v14 = vmax.f32 %v6313_v43, 0.0  ;;  %v15316_v51 = vmul.f32 0.00390625, %v5994_v57 }
 0x667   : > { %v6184_v11 = vpop.xlane.xlu0 %6183  ;;  %vm6717_vm11 = vcmp.gt.f32.partialorder %v6653_v56, 0.0  ;;  %v6781_v25 = vmul.f32 0.01, %v6653_v56  ;;  %vm6714_vm10 = vcmp.gt.f32.partialorder %v6650_v41, 0.0  ;;  %v6778_v21 = vmul.f32 0.01, %v6650_v41 }
 0x668   : > { %v6652_v0 = vadd.f32 %v15140_v42, %v6577_v49  ;;  %10648 = vrsqrt.f32 %v6440_v44  ;;  %v6441_v1 = vadd.f32 1e-05, %v6345_v14  ;;  %v6282_v2 = vmul.f32 %v15299_v31, %v15299_v31 }
 0x669   : > { %v6187_v40 = vpop.xlane.xlu1 %6186  ;;  %v6845_v37 = vsel %vm6717_vm11, %v6653_v56, %v6781_v25  ;;  %v6842_v12 = vsel %vm6714_vm10, %v6650_v41, %v6778_v21  ;;  %v6250_v25 = vmul.f32 0.00390625, %v6184_v11  ;;  %v17553_v11 = vsub.f32 %v14798_v26, %v15175_v15 }
 0x66a   : > { %vm6716_vm13 = vcmp.gt.f32.partialorder %v6652_v0, 0.0  ;;  %v15312_v8 = vpop.eup %10644  ;;  %v6780_v29 = vmul.f32 0.01, %v6652_v0  ;;  %v6935_v49 = vpack.c.bf16 %v6845_v37, %v6843_v47  ;;  %10650 = vrsqrt.f32 %v6441_v1 }
 0x66b   : > { %v5997_v44 = vpop.xlane.xlu0 %5996  ;;  %v17552_v47 = vsub.f32 %v14811_v27, %v15184_v50  ;;  %v6580_v1 = vmul.f32 %v15137_v5, %v6505_v55  ;;  %v6314_v37 = vsub.f32 %v6250_v25, %v6282_v2  ;;  %v6504_v14 = vmul.f32 %v15256_v46, %v17553_v11 }
 0x66c   : > { %v6844_v60 = vsel %vm6716_vm13, %v6652_v0, %v6780_v29  ;;  %v15324_v30 = vpop.eup %10646  ;;  %7113 = vmatprep.mubr.bf16.mxu1 %v6935_v49  ;;  %v6283_v0 = vmul.f32 %v15316_v51, %v15316_v51  ;;  %v6251_v29 = vmul.f32 0.00390625, %v6187_v40  ;;  %v17554_v49 = vsub.f32 %v14804_v48, %v15184_v50 }
 0x66d   : > { %v6934_v57 = vpack.c.bf16 %v6844_v60, %v6842_v12  ;;  %v6507_v41 = vmul.f32 %v15262_v16, %v17552_v47  ;;  %v6000_v21 = vpop.xlane.xlu1 %5999  ;;  %v6655_v55 = vadd.f32 %v15143_v3, %v6580_v1  ;;  %v15343_v60 = vmul.f32 0.00390625, %v5997_v44 }
 0x66e   : > { %v6506_v27 = vmul.f32 %v15262_v16, %v17554_v49  ;;  %v15345_v47 = vmul.f32 0.00390625, %v6000_v21  ;;  %v6346_v2 = vmax.f32 %v6314_v37, 0.0  ;;  %v6315_v25 = vsub.f32 %v6251_v29, %v6283_v0 }
 0x66f   : > { %7114 = vmatmul.mubr.bf16.gmra.mrb[168].mxu1 %v6934_v57  ;;  %v6582_v12 = vmul.f32 %v15137_v5, %v6507_v41  ;;  %v6190_v40 = vpop.xlane.xlu0 %6189  ;;  %v6579_v26 = vmul.f32 %v15134_v20, %v6504_v14  ;;  %vm6719_vm15 = vcmp.gt.f32.partialorder %v6655_v55, 0.0  ;;  %v6783_v50 = vmul.f32 0.01, %v6655_v55 }
 0x670   : > { %v6581_v15 = vmul.f32 %v15134_v20, %v6506_v27  ;;  %v6442_v44 = vadd.f32 1e-05, %v6346_v2  ;;  %v6347_v41 = vmax.f32 %v6315_v25, 0.0  ;;  %v17555_v25 = vld [vmem:[#allocation100_spill] sm:$0xff]  ;;  %v6252_v56 = vmul.f32 0.00390625, %v6190_v40 }
 0x671   : > { %v6657_v48 = vadd.f32 %v15143_v3, %v6582_v12  ;;  %v6193_v16 = vpop.xlane.xlu1 %6192  ;;  %v6654_v1 = vadd.f32 %v15140_v42, %v6579_v26  ;;  %v6847_v21 = vsel %vm6719_vm15, %v6655_v55, %v6783_v50  ;;  %v17556_v55 = vld [vmem:[#allocation102_spill] sm:$0xff] }
 0x672   : > { %v15352_v57 = vpop.eup %10648  ;;  %v6656_v0 = vadd.f32 %v15140_v42, %v6581_v15  ;;  %10652 = vrsqrt.f32 %v6442_v44  ;;  %v6443_v11 = vadd.f32 1e-05, %v6347_v41  ;;  %v6284_v44 = vmul.f32 %v15343_v60, %v15343_v60 }
 0x673   : > { %vm6721_vm1 = vcmp.gt.f32.partialorder %v6657_v48, 0.0  ;;  %v6785_v14 = vmul.f32 0.01, %v6657_v48  ;;  %v6003_v29 = vpop.xlane.xlu0 %6002  ;;  %vm6718_vm14 = vcmp.gt.f32.partialorder %v6654_v1, 0.0  ;;  %v6782_v12 = vmul.f32 0.01, %v6654_v1 }
 0x674   : > { %vm6720_vm3 = vcmp.gt.f32.partialorder %v6656_v0, 0.0  ;;  %v15358_v49 = vpop.eup %10650  ;;  %v6784_v2 = vmul.f32 0.01, %v6656_v0  ;;  %10654 = vrsqrt.f32 %v6443_v11  ;;  %v6253_v50 = vmul.f32 0.00390625, %v6193_v16 }
 0x675   : > { %v6849_v27 = vsel %vm6721_vm1, %v6657_v48, %v6785_v14  ;;  %v6006_v15 = vpop.xlane.xlu1 %6005  ;;  %v6846_v41 = vsel %vm6718_vm14, %v6654_v1, %v6782_v12  ;;  %v17557_v48 = vsub.f32 %v14825_v45, %v15198_v61  ;;  %v6316_v1 = vsub.f32 %v6252_v56, %v6284_v44  ;;  %v17560_v12 = vld [vmem:[#allocation98_spill] sm:$0xff] }
 0x676   : > { %v6937_v46 = vpack.c.bf16 %v6849_v27, %v6847_v21  ;;  %v6848_v37 = vsel %vm6720_vm3, %v6656_v0, %v6784_v2  ;;  %v17558_v21 = vsub.f32 %v14835_v13, %v15205_v18  ;;  %v6285_v27 = vmul.f32 %v15345_v47, %v15345_v47 }
 0x677   : > { %v6509_v14 = vmul.f32 %v15278_v22, %v17557_v48  ;;  %v6196_v43 = vpop.xlane.xlu0 %6195  ;;  %v6936_v26 = vpack.c.bf16 %v6848_v37, %v6846_v41  ;;  %v17559_v45 = vsub.f32 %v14822_v7, %v15198_v61  ;;  %v15386_v48 = vmul.f32 0.00390625, %v6003_v29 }
 0x678   : > { %7121 = vmatprep.mubr.bf16.mxu1 %v6937_v46  ;;  %v6511_v11 = vmul.f32 %v15295_v24, %v17558_v21  ;;  %v17561_v46 = vsub.f32 %v17560_v12, %v15205_v18  ;;  %v6317_v41 = vsub.f32 %v6253_v50, %v6285_v27  ;;  %v15388_v56 = vmul.f32 0.00390625, %v6006_v15 }
 0x679   : > { %v6584_v40 = vmul.f32 %v15137_v5, %v6509_v14  ;;  %v6508_v0 = vmul.f32 %v15278_v22, %v17559_v45  ;;  %v6199_v13 = vpop.xlane.xlu1 %6198  ;;  %7122 = vmatmul.mubr.bf16.gmra.mrb[172].mxu1 %v6936_v26  ;;  %v6348_v16 = vmax.f32 %v6316_v1, 0.0  ;;  %v17563_v14 = vld [vmem:[#allocation106_spill] sm:$0xff]  ;;  %v17564_v26 = vld [vmem:[#allocation108_spill] sm:$0xff] }
 0x67a   : > { %v6510_v37 = vmul.f32 %v15295_v24, %v17561_v46  ;;  %v6586_v2 = vmul.f32 %v15137_v5, %v6511_v11  ;;  %v6349_v22 = vmax.f32 %v6317_v41, 0.0  ;;  %v17562_v24 = vld [vmem:[#allocation103_spill] sm:$0xff] }
 0x67b   : > { %v6659_v44 = vadd.f32 %v15143_v3, %v6584_v40  ;;  %v6583_v7 = vmul.f32 %v15134_v20, %v6508_v0  ;;  %v6444_v29 = vadd.f32 1e-05, %v6348_v16  ;;  %v6009_v11 = vpop.xlane.xlu0 %6008 }
 0x67c   : > { %v6585_v61 = vmul.f32 %v15134_v20, %v6510_v37  ;;  %v6661_v18 = vadd.f32 %v15143_v3, %v6586_v2  ;;  %v15399_v1 = vpop.eup %10652  ;;  %v6445_v45 = vadd.f32 1e-05, %v6349_v22  ;;  %v6403_v22 = vsub.f32 %v17565_v32, %v15388_v56 }
 0x67d   : > { %vm6723_vm7 = vcmp.gt.f32.partialorder %v6659_v44, 0.0  ;;  %v6787_v15 = vmul.f32 0.01, %v6659_v44  ;;  %v6658_v21 = vadd.f32 %v15140_v42, %v6583_v7  ;;  %v6012_v27 = vpop.xlane.xlu1 %6011  ;;  %10656 = vrsqrt.f32 %v6444_v29 }
 0x67e   : > { %vm6725_vm4 = vcmp.gt.f32.partialorder %v6661_v18, 0.0  ;;  %v6789_v40 = vmul.f32 0.01, %v6661_v18  ;;  %v6660_v0 = vadd.f32 %v15140_v42, %v6585_v61  ;;  %v15402_v37 = vpop.eup %10654  ;;  %10658 = vrsqrt.f32 %v6445_v45 }
 0x67f   : > { %v6851_v12 = vsel %vm6723_vm7, %v6659_v44, %v6787_v15  ;;  %vm6722_vm8 = vcmp.gt.f32.partialorder %v6658_v21, 0.0  ;;  %v6786_v46 = vmul.f32 0.01, %v6658_v21  ;;  %v6286_v44 = vmul.f32 %v15386_v48, %v15386_v48 }
 0x680   : > { %v6853_v2 = vsel %vm6725_vm4, %v6661_v18, %v6789_v40  ;;  %vm6724_vm0 = vcmp.gt.f32.partialorder %v6660_v0, 0.0  ;;  %v6788_v41 = vmul.f32 0.01, %v6660_v0  ;;  %v6254_v61 = vmul.f32 0.00390625, %v6196_v43 }
 0x681   : > { %v6939_v16 = vpack.c.bf16 %v6853_v2, %v6851_v12  ;;  %v6850_v7 = vsel %vm6722_vm8, %v6658_v21, %v6786_v46  ;;  %v6513_v18 = vmul.f32 %v15312_v8, %v6385_v35  ;;  %v17566_v15 = vsub.f32 %v14859_v62, %v15245_v33  ;;  %v6205_v12 = vpop.xlane.xlu1 %6204 }
 0x682   : > { %v6852_v4 = vsel %vm6724_vm0, %v6660_v0, %v6788_v41  ;;  %v6287_v40 = vmul.f32 %v15388_v56, %v15388_v56  ;;  %v6255_v45 = vmul.f32 0.00390625, %v6199_v13  ;;  %v6202_v0 = vpop.xlane.xlu0 %6201  ;;  %v6318_v46 = vsub.f32 %v6254_v61, %v6286_v44  ;;  %v17570_v61 = vld [vmem:[#allocation114_spill] sm:$0xff] }
 0x683   : > { %7129 = vmatprep.mubr.bf16.mxu1 %v6939_v16  ;;  %v6938_v29 = vpack.c.bf16 %v6852_v4, %v6850_v7  ;;  %v6515_v21 = vmul.f32 %v15324_v30, %v17566_v15  ;;  %v6588_v43 = vmul.f32 %v15137_v5, %v6513_v18  ;;  %v6512_v35 = vmul.f32 %v15312_v8, %v17567_v39 }
 0x684   : > { %v17568_v4 = vsub.f32 %v14852_v19, %v15245_v33  ;;  %v6319_v41 = vsub.f32 %v6255_v45, %v6287_v40  ;;  %v15430_v13 = vmul.f32 0.00390625, %v6009_v11  ;;  %v15432_v16 = vmul.f32 0.00390625, %v6012_v27  ;;  %v17569_v33 = vld [vmem:[#allocation111_spill] sm:$0xff] }
 0x685   : > { %7130 = vmatmul.mubr.bf16.gmra.mrb[176].mxu1 %v6938_v29  ;;  %v6590_v2 = vmul.f32 %v15137_v5, %v6515_v21  ;;  %v6350_v7 = vmax.f32 %v6318_v46, 0.0  ;;  %v6663_v44 = vadd.f32 %v15143_v3, %v6588_v43  ;;  %v6587_v23 = vmul.f32 %v15134_v20, %v6512_v35  ;;  %v6018_v43 = vpop.xlane.xlu1 %6017 }
 0x686   : > { %v6514_v62 = vmul.f32 %v15324_v30, %v17568_v4  ;;  %v6351_v19 = vmax.f32 %v6319_v41, 0.0  ;;  %v6015_v46 = vpop.xlane.xlu0 %6014  ;;  %v6288_v50 = vmul.f32 %v15430_v13, %v15430_v13 }
 0x687   : > { %v6665_v8 = vadd.f32 %v15143_v3, %v6590_v2  ;;  %v6446_v11 = vadd.f32 1e-05, %v6350_v7  ;;  %vm6727_vm6 = vcmp.gt.f32.partialorder %v6663_v44, 0.0  ;;  %v6791_v27 = vmul.f32 0.01, %v6663_v44  ;;  %v15443_v15 = vpop.eup %10656 }
 0x688   : > { %v6589_v17 = vmul.f32 %v15134_v20, %v6514_v62  ;;  %v6662_v29 = vadd.f32 %v15140_v42, %v6587_v23  ;;  %v6447_v40 = vadd.f32 1e-05, %v6351_v19  ;;  %v15446_v39 = vpop.eup %10658  ;;  %v17571_v23 = vld [vmem:[#allocation116_spill] sm:$0xff]  ;;  %v17572_v19 = vld [vmem:[#allocation118_spill] sm:$0xff] }
 0x689   : > { %vm6729_vm2 = vcmp.gt.f32.partialorder %v6665_v8, 0.0  ;;  %v6793_v21 = vmul.f32 0.01, %v6665_v8  ;;  %10660 = vrsqrt.f32 %v6446_v11  ;;  %v6855_v35 = vsel %vm6727_vm6, %v6663_v44, %v6791_v27 }
 0x68a   : > { %v6664_v45 = vadd.f32 %v15140_v42, %v6589_v17  ;;  %vm6726_vm9 = vcmp.gt.f32.partialorder %v6662_v29, 0.0  ;;  %v6790_v4 = vmul.f32 0.01, %v6662_v29  ;;  %10662 = vrsqrt.f32 %v6447_v40 }
 0x68b   : > { %v6857_v62 = vsel %vm6729_vm2, %v6665_v8, %v6793_v21  ;;  %v6406_v30 = vsub.f32 %v17571_v23, %v15432_v16  ;;  %v6407_v17 = vsub.f32 %v17572_v19, %v15432_v16  ;;  %v6256_v11 = vmul.f32 0.00390625, %v6202_v0 }
 0x68c   : > { %vm6728_vm5 = vcmp.gt.f32.partialorder %v6664_v45, 0.0  ;;  %v6792_v2 = vmul.f32 0.01, %v6664_v45  ;;  %v6941_v41 = vpack.c.bf16 %v6857_v62, %v6855_v35  ;;  %v6854_v7 = vsel %vm6726_vm9, %v6662_v29, %v6790_v4  ;;  %v6211_v4 = vpop.xlane.xlu1 %6210 }
 0x68d   : > { %v6517_v44 = vmul.f32 %v15352_v57, %v6389_v38  ;;  %v17573_v27 = vsub.f32 %v14883_v34, %v15270_v28  ;;  %v6289_v21 = vmul.f32 %v15432_v16, %v15432_v16  ;;  %v6257_v40 = vmul.f32 0.00390625, %v6205_v12  ;;  %v6208_v34 = vpop.xlane.xlu0 %6207 }
 0x68e   : > { %v6856_v18 = vsel %vm6728_vm5, %v6664_v45, %v6792_v2  ;;  %7137 = vmatprep.mubr.bf16.mxu1 %v6941_v41  ;;  %v6320_v45 = vsub.f32 %v6256_v11, %v6288_v50  ;;  %v17574_v0 = vsub.f32 %v14870_v54, %v15264_v59  ;;  %v17575_v38 = vsub.f32 %v14876_v53, %v15270_v28  ;;  %v17577_v11 = vld [vmem:[#allocation122_spill] sm:$0xff] }
 0x68f   : > { %v6940_v8 = vpack.c.bf16 %v6856_v18, %v6854_v7  ;;  %v6519_v29 = vmul.f32 %v15358_v49, %v17573_v27  ;;  %v6592_v35 = vmul.f32 %v15137_v5, %v6517_v44  ;;  %v6321_v2 = vsub.f32 %v6257_v40, %v6289_v21 }
 0x690   : > { %v6516_v52 = vmul.f32 %v15352_v57, %v17574_v0  ;;  %v6518_v18 = vmul.f32 %v15358_v49, %v17575_v38  ;;  %v15474_v12 = vmul.f32 0.00390625, %v6015_v46  ;;  %v15476_v50 = vmul.f32 0.00390625, %v6018_v43  ;;  %v17576_v49 = vld [vmem:[#allocation119_spill] sm:$0xff]  ;;  %v6024_v38 = vpop.xlane.xlu1 %6023 }
 0x691   : > { %7138 = vmatmul.mubr.bf16.gmra.mrb[180].mxu1 %v6940_v8  ;;  %v6594_v62 = vmul.f32 %v15137_v5, %v6519_v29  ;;  %v6352_v41 = vmax.f32 %v6320_v45, 0.0  ;;  %v6667_v54 = vadd.f32 %v15143_v3, %v6592_v35  ;;  %v6353_v28 = vmax.f32 %v6321_v2, 0.0 }
 0x692   : > { %v6591_v59 = vmul.f32 %v15134_v20, %v6516_v52  ;;  %v6593_v57 = vmul.f32 %v15134_v20, %v6518_v18  ;;  %v6021_v52 = vpop.xlane.xlu0 %6020 }
 0x693   : > { %v6669_v53 = vadd.f32 %v15143_v3, %v6594_v62  ;;  %v6448_v46 = vadd.f32 1e-05, %v6352_v41  ;;  %vm6731_vm12 = vcmp.gt.f32.partialorder %v6667_v54, 0.0  ;;  %v6795_v43 = vmul.f32 0.01, %v6667_v54  ;;  %v15487_v27 = vpop.eup %10660 }
 0x694   : > { %v6666_v8 = vadd.f32 %v15140_v42, %v6591_v59  ;;  %v6449_v21 = vadd.f32 1e-05, %v6353_v28  ;;  %v6668_v40 = vadd.f32 %v15140_v42, %v6593_v57  ;;  %v15490_v45 = vpop.eup %10662  ;;  %v17578_v59 = vld [vmem:[#allocation124_spill] sm:$0xff]  ;;  %v17579_v28 = vld [vmem:[#allocation126_spill] sm:$0xff] }
 0x695   : > { %vm6733_vm11 = vcmp.gt.f32.partialorder %v6669_v53, 0.0  ;;  %v6797_v29 = vmul.f32 0.01, %v6669_v53  ;;  %10664 = vrsqrt.f32 %v6448_v46  ;;  %v6859_v35 = vsel %vm6731_vm12, %v6667_v54, %v6795_v43 }
 0x696   : > { %vm6730_vm10 = vcmp.gt.f32.partialorder %v6666_v8, 0.0  ;;  %v6794_v0 = vmul.f32 0.01, %v6666_v8  ;;  %10666 = vrsqrt.f32 %v6449_v21  ;;  %vm6732_vm13 = vcmp.gt.f32.partialorder %v6668_v40, 0.0 }
 0x697   : > { %v6861_v18 = vsel %vm6733_vm11, %v6669_v53, %v6797_v29  ;;  %v6796_v62 = vmul.f32 0.01, %v6668_v40  ;;  %v6290_v54 = vmul.f32 %v15474_v12, %v15474_v12  ;;  %v6258_v46 = vmul.f32 0.00390625, %v6208_v34 }
 0x698   : > { %v6943_v2 = vpack.c.bf16 %v6861_v18, %v6859_v35  ;;  %v6858_v41 = vsel %vm6730_vm10, %v6666_v8, %v6794_v0  ;;  %v17580_v43 = vsub.f32 %v14897_v6, %v15299_v31  ;;  %v17581_v8 = vsub.f32 %v14907_v63, %v15316_v51 }
 0x699   : > { %v6860_v44 = vsel %vm6732_vm13, %v6668_v40, %v6796_v62  ;;  %v6291_v35 = vmul.f32 %v15476_v50, %v15476_v50  ;;  %v6259_v40 = vmul.f32 0.00390625, %v6211_v4  ;;  %v6322_v0 = vsub.f32 %v6258_v46, %v6290_v54  ;;  %v6214_v54 = vpop.xlane.xlu0 %6213  ;;  %v6217_v46 = vpop.xlane.xlu1 %6216 }
 0x69a   : > { %v6521_v53 = vmul.f32 %v15399_v1, %v17580_v43  ;;  %7145 = vmatprep.mubr.bf16.mxu1 %v6943_v2  ;;  %v6942_v29 = vpack.c.bf16 %v6860_v44, %v6858_v41  ;;  %v6523_v21 = vmul.f32 %v15402_v37, %v17581_v8  ;;  %v17582_v34 = vsub.f32 %v14894_v10, %v15299_v31 }
 0x69b   : > { %v17583_v44 = vsub.f32 %v14900_v36, %v15316_v51  ;;  %v6323_v2 = vsub.f32 %v6259_v40, %v6291_v35  ;;  %v15518_v41 = vmul.f32 0.00390625, %v6021_v52  ;;  %v15520_v4 = vmul.f32 0.00390625, %v6024_v38  ;;  %v17585_v52 = vld [vmem:[#allocation130_spill] sm:$0xff] }
 0x69c   : > { %v6596_v18 = vmul.f32 %v15137_v5, %v6521_v53  ;;  %v6520_v6 = vmul.f32 %v15399_v1, %v17582_v34  ;;  %7146 = vmatmul.mubr.bf16.gmra.mrb[184].mxu1 %v6942_v29  ;;  %v6598_v63 = vmul.f32 %v15137_v5, %v6523_v21  ;;  %v6354_v43 = vmax.f32 %v6322_v0, 0.0  ;;  %v17586_v29 = vld [vmem:[#allocation132_spill] sm:$0xff] }
 0x69d   : > { %v6522_v62 = vmul.f32 %v15402_v37, %v17583_v44  ;;  %v6355_v51 = vmax.f32 %v6323_v2, 0.0  ;;  %v17584_v37 = vld [vmem:[#allocation127_spill] sm:$0xff]  ;;  %v6027_v2 = vpop.xlane.xlu0 %6026 }
 0x69e   : > { %v6671_v10 = vadd.f32 %v15143_v3, %v6596_v18  ;;  %v6595_v31 = vmul.f32 %v15134_v20, %v6520_v6  ;;  %v6673_v36 = vadd.f32 %v15143_v3, %v6598_v63  ;;  %v6450_v38 = vadd.f32 1e-05, %v6354_v43  ;;  %v6030_v43 = vpop.xlane.xlu1 %6029 }
 0x69f   : > { %v6597_v1 = vmul.f32 %v15134_v20, %v6522_v62  ;;  %v15531_v35 = vpop.eup %10664  ;;  %v6451_v0 = vadd.f32 1e-05, %v6355_v51  ;;  %v17587_v51 = vld [vmem:[#allocation131_spill] sm:$0xff] }
 0x6a0   : > { %vm6735_vm15 = vcmp.gt.f32.partialorder %v6671_v10, 0.0  ;;  %v6799_v8 = vmul.f32 0.01, %v6671_v10  ;;  %v6670_v21 = vadd.f32 %v15140_v42, %v6595_v31  ;;  %vm6737_vm1 = vcmp.gt.f32.partialorder %v6673_v36, 0.0  ;;  %v15534_v34 = vpop.eup %10666 }
 0x6a1   : > { %v6801_v40 = vmul.f32 0.01, %v6673_v36  ;;  %v6672_v18 = vadd.f32 %v15140_v42, %v6597_v1  ;;  %10668 = vrsqrt.f32 %v6450_v38  ;;  %v6260_v38 = vmul.f32 0.00390625, %v6214_v54 }
 0x6a2   : > { %v6863_v6 = vsel %vm6735_vm15, %v6671_v10, %v6799_v8  ;;  %vm6734_vm14 = vcmp.gt.f32.partialorder %v6670_v21, 0.0  ;;  %v6798_v44 = vmul.f32 0.01, %v6670_v21  ;;  %10670 = vrsqrt.f32 %v6451_v0 }
 0x6a3   : > { %v6865_v62 = vsel %vm6737_vm1, %v6673_v36, %v6801_v40  ;;  %vm6736_vm3 = vcmp.gt.f32.partialorder %v6672_v18, 0.0  ;;  %v6800_v63 = vmul.f32 0.01, %v6672_v18  ;;  %v6292_v10 = vmul.f32 %v15518_v41, %v15518_v41 }
 0x6a4   : > { %v6945_v31 = vpack.c.bf16 %v6865_v62, %v6863_v6  ;;  %v6862_v53 = vsel %vm6734_vm14, %v6670_v21, %v6798_v44  ;;  %v17588_v36 = vsub.f32 %v14921_v9, %v15343_v60  ;;  %v17589_v21 = vsub.f32 %v17556_v55, %v15345_v47 }
 0x6a5   : > { %v6864_v57 = vsel %vm6736_vm3, %v6672_v18, %v6800_v63  ;;  %v6293_v6 = vmul.f32 %v15520_v4, %v15520_v4  ;;  %v6261_v18 = vmul.f32 0.00390625, %v6217_v46  ;;  %v6324_v44 = vsub.f32 %v6260_v38, %v6292_v10 }
 0x6a6   : > { %v6525_v8 = vmul.f32 %v15443_v15, %v17588_v36  ;;  %7153 = vmatprep.mubr.bf16.mxu1 %v6945_v31  ;;  %v6944_v40 = vpack.c.bf16 %v6864_v57, %v6862_v53  ;;  %v6527_v0 = vmul.f32 %v15446_v39, %v17589_v21  ;;  %v17590_v54 = vsub.f32 %v14918_v58, %v15343_v60  ;;  %v6223_v36 = vpop.xlane.xlu1 %6222 }
 0x6a7   : > { %v17591_v57 = vsub.f32 %v17555_v25, %v15345_v47  ;;  %v6325_v63 = vsub.f32 %v6261_v18, %v6293_v6  ;;  %v15562_v31 = vmul.f32 0.00390625, %v6027_v2  ;;  %v15564_v46 = vmul.f32 0.00390625, %v6030_v43  ;;  %v17593_v2 = vld [vmem:[#allocation134_spill] sm:$0xff] }
 0x6a8   : > { %v6600_v62 = vmul.f32 %v15137_v5, %v6525_v8  ;;  %v6524_v9 = vmul.f32 %v15443_v15, %v17590_v54  ;;  %7154 = vmatmul.mubr.bf16.gmra.mrb[188].mxu1 %v6944_v40  ;;  %v6602_v55 = vmul.f32 %v15137_v5, %v6527_v0  ;;  %v6356_v10 = vmax.f32 %v6324_v44, 0.0  ;;  %v6220_v15 = vpop.xlane.xlu0 %6219  ;;  %v17595_v40 = vld [vmem:[#allocation137_spill] sm:$0xff] }
 0x6a9   : > { %v6526_v53 = vmul.f32 %v15446_v39, %v17591_v57  ;;  %v6357_v25 = vmax.f32 %v6325_v63, 0.0  ;;  %v17592_v39 = vld [vmem:[#allocation133_spill] sm:$0xff] }
 0x6aa   : > { %v6675_v38 = vadd.f32 %v15143_v3, %v6600_v62  ;;  %v6599_v58 = vmul.f32 %v15134_v20, %v6524_v9  ;;  %v6677_v47 = vadd.f32 %v15143_v3, %v6602_v55  ;;  %v6452_v43 = vadd.f32 1e-05, %v6356_v10 }
 0x6ab   : > { %v6601_v60 = vmul.f32 %v15134_v20, %v6526_v53  ;;  %v15575_v6 = vpop.eup %10668  ;;  %v6453_v44 = vadd.f32 1e-05, %v6357_v25  ;;  %v6419_v25 = vsub.f32 %v17595_v40, %v15564_v46 }
 0x6ac   : > { %vm6739_vm7 = vcmp.gt.f32.partialorder %v6675_v38, 0.0  ;;  %v6803_v21 = vmul.f32 0.01, %v6675_v38  ;;  %v6674_v0 = vadd.f32 %v15140_v42, %v6599_v58  ;;  %vm6741_vm4 = vcmp.gt.f32.partialorder %v6677_v47, 0.0  ;;  %v15578_v54 = vpop.eup %10670  ;;  %v17594_v58 = vld [vmem:[#allocation135_spill] sm:$0xff]  ;;  %v6033_v7 = vpop.xlane.xlu0 %6032 }
 0x6ad   : > { %v6805_v18 = vmul.f32 0.01, %v6677_v47  ;;  %v6676_v62 = vadd.f32 %v15140_v42, %v6601_v60  ;;  %10672 = vrsqrt.f32 %v6452_v43  ;;  %v6418_v8 = vsub.f32 %v17594_v58, %v15564_v46  ;;  %v6036_v60 = vpop.xlane.xlu1 %6035 }
 0x6ae   : > { %v6867_v9 = vsel %vm6739_vm7, %v6675_v38, %v6803_v21  ;;  %vm6738_vm8 = vcmp.gt.f32.partialorder %v6674_v0, 0.0  ;;  %v6802_v57 = vmul.f32 0.01, %v6674_v0  ;;  %10674 = vrsqrt.f32 %v6453_v44 }
 0x6af   : > { %v6869_v53 = vsel %vm6741_vm4, %v6677_v47, %v6805_v18  ;;  %vm6740_vm0 = vcmp.gt.f32.partialorder %v6676_v62, 0.0  ;;  %v6804_v55 = vmul.f32 0.01, %v6676_v62  ;;  %v6294_v38 = vmul.f32 %v15562_v31, %v15562_v31 }
 0x6b0   : > { %v6947_v63 = vpack.c.bf16 %v6869_v53, %v6867_v9  ;;  %v6866_v10 = vsel %vm6738_vm8, %v6674_v0, %v6802_v57  ;;  %v6262_v43 = vmul.f32 0.00390625, %v6220_v15  ;;  %v17596_v47 = vsub.f32 %v17563_v14, %v15386_v48 }
 0x6b1   : > { %v6868_v1 = vsel %vm6740_vm0, %v6676_v62, %v6804_v55  ;;  %v6531_v18 = vmul.f32 %v15490_v45, %v6403_v22  ;;  %v6295_v44 = vmul.f32 %v15564_v46, %v15564_v46  ;;  %v6263_v62 = vmul.f32 0.00390625, %v6223_v36 }
 0x6b2   : > { %v6529_v21 = vmul.f32 %v15487_v27, %v17596_v47  ;;  %7161 = vmatprep.mubr.bf16.mxu1 %v6947_v63  ;;  %v6946_v0 = vpack.c.bf16 %v6868_v1, %v6866_v10  ;;  %v6326_v9 = vsub.f32 %v6262_v43, %v6294_v38  ;;  %v17597_v15 = vsub.f32 %v17562_v24, %v15386_v48  ;;  %v17600_v38 = vld [vmem:[#allocation139_spill] sm:$0xff]  ;;  %v6229_v47 = vpop.xlane.xlu1 %6228 }
 0x6b3   : > { %v17598_v1 = vsub.f32 %v17564_v26, %v15388_v56  ;;  %v6606_v32 = vmul.f32 %v15137_v5, %v6531_v18  ;;  %v6327_v22 = vsub.f32 %v6263_v62, %v6295_v44  ;;  %v15606_v55 = vmul.f32 0.00390625, %v6033_v7  ;;  %v17599_v26 = vld [vmem:[#allocation29_spill] sm:$0xff]  ;;  %v6226_v7 = vpop.xlane.xlu0 %6225 }
 0x6b4   : > { %v6604_v57 = vmul.f32 %v15137_v5, %v6529_v21  ;;  %v6528_v14 = vmul.f32 %v15487_v27, %v17597_v15  ;;  %7162 = vmatmul.mubr.bf16.gmra.mrb[192].mxu1 %v6946_v0  ;;  %v15608_v36 = vmul.f32 0.00390625, %v6036_v60  ;;  %v6358_v63 = vmax.f32 %v6326_v9, 0.0 }
 0x6b5   : > { %v6530_v53 = vmul.f32 %v15490_v45, %v17598_v1  ;;  %v6681_v27 = vadd.f32 %v15143_v3, %v6606_v32  ;;  %v6359_v56 = vmax.f32 %v6327_v22, 0.0  ;;  %v17602_v45 = vld [vmem:[#allocation26_spill] sm:$0xff] }
 0x6b6   : > { %v6679_v10 = vadd.f32 %v15143_v3, %v6604_v57  ;;  %v6603_v48 = vmul.f32 %v15134_v20, %v6528_v14  ;;  %v6454_v60 = vadd.f32 1e-05, %v6358_v63  ;;  %v17601_v63 = vld [vmem:[#allocation146_spill] sm:$0xff] }
 0x6b7   : > { %v6605_v24 = vmul.f32 %v15134_v20, %v6530_v53  ;;  %v15619_v18 = vpop.eup %10672  ;;  %vm6745_vm2 = vcmp.gt.f32.partialorder %v6681_v27, 0.0  ;;  %v6809_v44 = vmul.f32 0.01, %v6681_v27  ;;  %v6455_v62 = vadd.f32 1e-05, %v6359_v56 }
 0x6b8   : > { %vm6743_vm6 = vcmp.gt.f32.partialorder %v6679_v10, 0.0  ;;  %v6807_v21 = vmul.f32 0.01, %v6679_v10  ;;  %v6678_v0 = vadd.f32 %v15140_v42, %v6603_v48  ;;  %v15622_v57 = vpop.eup %10674  ;;  %10676 = vrsqrt.f32 %v6454_v60 }
 0x6b9   : > { %v6680_v9 = vadd.f32 %v15140_v42, %v6605_v24  ;;  %v6873_v1 = vsel %vm6745_vm2, %v6681_v27, %v6809_v44  ;;  %10678 = vrsqrt.f32 %v6455_v62  ;;  %v6422_v48 = vsub.f32 %v17601_v63, %v15608_v36  ;;  %v6042_v44 = vpop.xlane.xlu1 %6041 }
 0x6ba   : > { %v6871_v15 = vsel %vm6743_vm6, %v6679_v10, %v6807_v21  ;;  %vm6742_vm9 = vcmp.gt.f32.partialorder %v6678_v0, 0.0  ;;  %v6806_v14 = vmul.f32 0.01, %v6678_v0  ;;  %v6423_v56 = vsub.f32 %v17602_v45, %v15608_v36  ;;  %v6039_v21 = vpop.xlane.xlu0 %6038 }
 0x6bb   : > { %vm6744_vm5 = vcmp.gt.f32.partialorder %v6680_v9, 0.0  ;;  %v6808_v53 = vmul.f32 0.01, %v6680_v9  ;;  %v6949_v32 = vpack.c.bf16 %v6873_v1, %v6871_v15  ;;  %v6296_v24 = vmul.f32 %v15606_v55, %v15606_v55 }
 0x6bc   : > { %v6870_v22 = vsel %vm6742_vm9, %v6678_v0, %v6806_v14  ;;  %v6264_v60 = vmul.f32 0.00390625, %v6226_v7  ;;  %v17603_v10 = vsub.f32 %v17570_v61, %v15430_v13  ;;  %v6535_v62 = vmul.f32 %v15534_v34, %v6407_v17 }
 0x6bd   : > { %v6872_v43 = vsel %vm6744_vm5, %v6680_v9, %v6808_v53  ;;  %7169 = vmatprep.mubr.bf16.mxu1 %v6949_v32  ;;  %v6297_v9 = vmul.f32 %v15608_v36, %v15608_v36  ;;  %v6265_v15 = vmul.f32 0.00390625, %v6229_v47  ;;  %v17604_v61 = vsub.f32 %v17569_v33, %v15430_v13 }
 0x6be   : > { %v6533_v27 = vmul.f32 %v15531_v35, %v17603_v10  ;;  %v6948_v0 = vpack.c.bf16 %v6872_v43, %v6870_v22  ;;  %v6328_v14 = vsub.f32 %v6264_v60, %v6296_v24  ;;  %v6534_v43 = vmul.f32 %v15534_v34, %v6406_v30  ;;  %v17605_v30 = vld [vmem:[#allocation147_spill] sm:$0xff] }
 0x6bf   : > { %v6532_v1 = vmul.f32 %v15531_v35, %v17604_v61  ;;  %v6610_v19 = vmul.f32 %v15137_v5, %v6535_v62  ;;  %v6329_v17 = vsub.f32 %v6265_v15, %v6297_v9  ;;  %v15650_v53 = vmul.f32 0.00390625, %v6039_v21  ;;  %v17606_v34 = vld [vmem:[#allocation27_spill] sm:$0xff] }
 0x6c0   : > { %v6608_v7 = vmul.f32 %v15137_v5, %v6533_v27  ;;  %7170 = vmatmul.mubr.bf16.gmra.mrb[196].mxu1 %v6948_v0  ;;  %v15652_v47 = vmul.f32 0.00390625, %v6042_v44  ;;  %v6360_v32 = vmax.f32 %v6328_v14, 0.0  ;;  %v6609_v33 = vmul.f32 %v15134_v20, %v6534_v43  ;;  %v6235_v43 = vpop.xlane.xlu1 %6234 }
 0x6c1   : > { %v6607_v13 = vmul.f32 %v15134_v20, %v6532_v1  ;;  %v6685_v35 = vadd.f32 %v15143_v3, %v6610_v19  ;;  %v6361_v16 = vmax.f32 %v6329_v17, 0.0  ;;  %v6425_v24 = vsub.f32 %v17606_v34, %v15650_v53 }
 0x6c2   : > { %v6683_v22 = vadd.f32 %v15143_v3, %v6608_v7  ;;  %v6456_v60 = vadd.f32 1e-05, %v6360_v32  ;;  %v15663_v21 = vpop.eup %10676  ;;  %v6684_v62 = vadd.f32 %v15140_v42, %v6609_v33  ;;  %v6232_v7 = vpop.xlane.xlu0 %6231  ;;  %v17607_v32 = vld [vmem:[#allocation138_spill] sm:$0xff]  ;;  %v17621_v63 = vsub.f32 %v17605_v30, %v15650_v53 }
 0x6c3   : > { %v6682_v27 = vadd.f32 %v15140_v42, %v6607_v13  ;;  %vm6749_vm11 = vcmp.gt.f32.partialorder %v6685_v35, 0.0  ;;  %v6813_v44 = vmul.f32 0.01, %v6685_v35  ;;  %v6457_v0 = vadd.f32 1e-05, %v6361_v16  ;;  %v15666_v9 = vpop.eup %10678  ;;  %v17608_v16 = vld [vmem:[#allocation144_spill] sm:$0xff] }
 0x6c4   : > { %vm6747_vm12 = vcmp.gt.f32.partialorder %v6683_v22, 0.0  ;;  %v6811_v10 = vmul.f32 0.01, %v6683_v22  ;;  %10680 = vrsqrt.f32 %v6456_v60  ;;  %vm6748_vm13 = vcmp.gt.f32.partialorder %v6684_v62, 0.0 }
 0x6c5   : > { %vm6746_vm10 = vcmp.gt.f32.partialorder %v6682_v27, 0.0  ;;  %v6810_v14 = vmul.f32 0.01, %v6682_v27  ;;  %v6877_v61 = vsel %vm6749_vm11, %v6685_v35, %v6813_v44  ;;  %10682 = vrsqrt.f32 %v6457_v0 }
 0x6c6   : > { %v6875_v15 = vsel %vm6747_vm12, %v6683_v22, %v6811_v10  ;;  %v6812_v1 = vmul.f32 0.01, %v6684_v62  ;;  %v6426_v13 = vsub.f32 %v17607_v32, %v15652_v47  ;;  %v6427_v33 = vsub.f32 %v17608_v16, %v15652_v47 }
 0x6c7   : > { %v6951_v19 = vpack.c.bf16 %v6877_v61, %v6875_v15  ;;  %v6874_v17 = vsel %vm6746_vm10, %v6682_v27, %v6810_v14  ;;  %v6298_v22 = vmul.f32 %v15650_v53, %v15650_v53  ;;  %v6266_v60 = vmul.f32 0.00390625, %v6232_v7 }
 0x6c8   : > { %v6876_v23 = vsel %vm6748_vm13, %v6684_v62, %v6812_v1  ;;  %v17609_v35 = vsub.f32 %v17577_v11, %v15474_v12  ;;  %v17610_v27 = vsub.f32 %v17579_v28, %v15476_v50  ;;  %v6299_v15 = vmul.f32 %v15652_v47, %v15652_v47 }
 0x6c9   : > { %7177 = vmatprep.mubr.bf16.mxu1 %v6951_v19  ;;  %v6950_v44 = vpack.c.bf16 %v6876_v23, %v6874_v17  ;;  %v6267_v62 = vmul.f32 0.00390625, %v6235_v43  ;;  %v6330_v14 = vsub.f32 %v6266_v60, %v6298_v22  ;;  %v17611_v7 = vsub.f32 %v17576_v49, %v15474_v12 }
 0x6ca   : > { %v6537_v10 = vmul.f32 %v15575_v6, %v17609_v35  ;;  %v6539_v0 = vmul.f32 %v15578_v54, %v17610_v27  ;;  %v17612_v23 = vsub.f32 %v17578_v59, %v15476_v50  ;;  %v17613_v43 = vsub.f32 %v17585_v52, %v15518_v41 }
 0x6cb   : > { %v6536_v11 = vmul.f32 %v15575_v6, %v17611_v7  ;;  %7178 = vmatmul.mubr.bf16.gmra.mrb[200].mxu1 %v6950_v44  ;;  %v6331_v19 = vsub.f32 %v6267_v62, %v6299_v15  ;;  %v17614_v22 = vsub.f32 %v17587_v51, %v15520_v4  ;;  %v6362_v49 = vmax.f32 %v6330_v14, 0.0 }
 0x6cc   : > { %v6612_v61 = vmul.f32 %v15137_v5, %v6537_v10  ;;  %v6538_v1 = vmul.f32 %v15578_v54, %v17612_v23  ;;  %v6614_v28 = vmul.f32 %v15137_v5, %v6539_v0  ;;  %v6541_v17 = vmul.f32 %v15619_v18, %v17613_v43 }
 0x6cd   : > { %v6543_v12 = vmul.f32 %v15622_v57, %v17614_v22  ;;  %v6611_v50 = vmul.f32 %v15134_v20, %v6536_v11  ;;  %v6363_v60 = vmax.f32 %v6331_v19, 0.0  ;;  %v6458_v10 = vadd.f32 1e-05, %v6362_v49 }
 0x6ce   : > { %v6687_v6 = vadd.f32 %v15143_v3, %v6612_v61  ;;  %v6613_v59 = vmul.f32 %v15134_v20, %v6538_v1  ;;  %v6689_v54 = vadd.f32 %v15143_v3, %v6614_v28  ;;  %v6616_v35 = vmul.f32 %v15137_v5, %v6541_v17  ;;  %v15709_v27 = vpop.eup %10680 }
 0x6cf   : > { %v6618_v52 = vmul.f32 %v15137_v5, %v6543_v12  ;;  %v6686_v51 = vadd.f32 %v15140_v42, %v6611_v50  ;;  %v6459_v15 = vadd.f32 1e-05, %v6363_v60  ;;  %v15712_v14 = vpop.eup %10682  ;;  %10684 = vrsqrt.f32 %v6458_v10 }
 0x6d0   : > { %vm6751_vm15 = vcmp.gt.f32.partialorder %v6687_v6, 0.0  ;;  %v6815_v44 = vmul.f32 0.01, %v6687_v6  ;;  %vm6753_vm1 = vcmp.gt.f32.partialorder %v6689_v54, 0.0  ;;  %v6817_v0 = vmul.f32 0.01, %v6689_v54 }
 0x6d1   : > { %v6688_v62 = vadd.f32 %v15140_v42, %v6613_v59  ;;  %vm6750_vm14 = vcmp.gt.f32.partialorder %v6686_v51, 0.0  ;;  %v6814_v7 = vmul.f32 0.01, %v6686_v51  ;;  %10686 = vrsqrt.f32 %v6459_v15 }
 0x6d2   : > { %v6879_v61 = vsel %vm6751_vm15, %v6687_v6, %v6815_v44  ;;  %v6881_v11 = vsel %vm6753_vm1, %v6689_v54, %v6817_v0  ;;  %v6691_v19 = vadd.f32 %v15143_v3, %v6616_v35  ;;  %v6693_v43 = vadd.f32 %v15143_v3, %v6618_v52 }
 0x6d3   : > { %vm6752_vm3 = vcmp.gt.f32.partialorder %v6688_v62, 0.0  ;;  %v6816_v23 = vmul.f32 0.01, %v6688_v62  ;;  %v6953_v1 = vpack.c.bf16 %v6881_v11, %v6879_v61  ;;  %v6878_v28 = vsel %vm6750_vm14, %v6686_v51, %v6814_v7 }
 0x6d4   : > { %v17615_v22 = vsub.f32 %v17584_v37, %v15518_v41  ;;  %v17616_v49 = vsub.f32 %v17586_v29, %v15520_v4  ;;  %v17617_v50 = vsub.f32 %v17593_v2, %v15562_v31  ;;  %vm6755_vm7 = vcmp.gt.f32.partialorder %v6691_v19, 0.0 }
 0x6d5   : > { %v6880_v17 = vsel %vm6752_vm3, %v6688_v62, %v6816_v23  ;;  %7185 = vmatprep.mubr.bf16.mxu1 %v6953_v1  ;;  %vm6757_vm4 = vcmp.gt.f32.partialorder %v6693_v43, 0.0  ;;  %v6819_v60 = vmul.f32 0.01, %v6691_v19  ;;  %v6821_v35 = vmul.f32 0.01, %v6693_v43 }
 0x6d6   : > { %v6540_v12 = vmul.f32 %v15619_v18, %v17615_v22  ;;  %v6542_v6 = vmul.f32 %v15622_v57, %v17616_v49  ;;  %v6545_v59 = vmul.f32 %v15663_v21, %v17617_v50  ;;  %v6952_v54 = vpack.c.bf16 %v6880_v17, %v6878_v28 }
 0x6d7   : > { %v6547_v4 = vmul.f32 %v15666_v9, %v6419_v25  ;;  %v6883_v29 = vsel %vm6755_vm7, %v6691_v19, %v6819_v60  ;;  %v17618_v18 = vsub.f32 %v17592_v39, %v15562_v31  ;;  %v6546_v52 = vmul.f32 %v15666_v9, %v6418_v8 }
 0x6d8   : > { %v6615_v41 = vmul.f32 %v15134_v20, %v6540_v12  ;;  %v6617_v37 = vmul.f32 %v15134_v20, %v6542_v6  ;;  %7186 = vmatmul.mubr.bf16.gmra.mrb[204].mxu1 %v6952_v54  ;;  %v6620_v2 = vmul.f32 %v15137_v5, %v6545_v59  ;;  %v6885_v10 = vsel %vm6757_vm4, %v6693_v43, %v6821_v35 }
 0x6d9   : > { %v6544_v57 = vmul.f32 %v15663_v21, %v17618_v18  ;;  %v6622_v25 = vmul.f32 %v15137_v5, %v6547_v4  ;;  %v6955_v51 = vpack.c.bf16 %v6885_v10, %v6883_v29  ;;  %v6621_v31 = vmul.f32 %v15134_v20, %v6546_v52  ;;  %v10685_v58 = vpop.eup %10684 }
 0x6da   : > { %v6690_v44 = vadd.f32 %v15140_v42, %v6615_v41  ;;  %v6692_v40 = vadd.f32 %v15140_v42, %v6617_v37  ;;  %v6695_v0 = vadd.f32 %v15143_v3, %v6620_v2  ;;  %v17619_v23 = vsub.f32 %v17600_v38, %v15606_v55 }
 0x6db   : > { %v6619_v15 = vmul.f32 %v15134_v20, %v6544_v57  ;;  %7193 = vmatprep.mubr.bf16.mxu1 %v6955_v51  ;;  %v6697_v8 = vadd.f32 %v15143_v3, %v6622_v25  ;;  %v10687_v62 = vpop.eup %10686  ;;  %v6696_v11 = vadd.f32 %v15140_v42, %v6621_v31  ;;  %v6551_v49 = vmul.f32 %v15712_v14, %v6423_v56 }
 0x6dc   : > { %vm6754_vm8 = vcmp.gt.f32.partialorder %v6690_v44, 0.0  ;;  %vm6756_vm0 = vcmp.gt.f32.partialorder %v6692_v40, 0.0  ;;  %v6818_v39 = vmul.f32 0.01, %v6690_v44  ;;  %v6820_v46 = vmul.f32 0.01, %v6692_v40 }
 0x6dd   : > { %vm6759_vm6 = vcmp.gt.f32.partialorder %v6695_v0, 0.0  ;;  %v6823_v21 = vmul.f32 0.01, %v6695_v0  ;;  %v6694_v9 = vadd.f32 %v15140_v42, %v6619_v15  ;;  %v6549_v1 = vmul.f32 %v15709_v27, %v17619_v23 }
 0x6de   : > { %v6882_v61 = vsel %vm6754_vm8, %v6690_v44, %v6818_v39  ;;  %v6884_v7 = vsel %vm6756_vm0, %v6692_v40, %v6820_v46  ;;  %vm6761_vm2 = vcmp.gt.f32.partialorder %v6697_v8, 0.0  ;;  %v6825_v19 = vmul.f32 0.01, %v6697_v8 }
 0x6df   : > { %v6954_v28 = vpack.c.bf16 %v6884_v7, %v6882_v61  ;;  %v6887_v43 = vsel %vm6759_vm6, %v6695_v0, %v6823_v21  ;;  %vm6758_vm9 = vcmp.gt.f32.partialorder %v6694_v9, 0.0  ;;  %vm6760_vm5 = vcmp.gt.f32.partialorder %v6696_v11, 0.0 }
 0x6e0   : > { %v6822_v17 = vmul.f32 0.01, %v6694_v9  ;;  %v6824_v22 = vmul.f32 0.01, %v6696_v11  ;;  %v6889_v12 = vsel %vm6761_vm2, %v6697_v8, %v6825_v19  ;;  %v6624_v6 = vmul.f32 %v15137_v5, %v6549_v1 }
 0x6e1   : > { %7194 = vmatmul.mubr.bf16.gmra.mrb[208].mxu1 %v6954_v28  ;;  %v17620_v38 = vsub.f32 %v17599_v26, %v15606_v55  ;;  %v6957_v59 = vpack.c.bf16 %v6889_v12, %v6887_v43  ;;  %v6550_v35 = vmul.f32 %v15712_v14, %v6422_v48  ;;  %v6626_v45 = vmul.f32 %v15137_v5, %v6551_v49 }
 0x6e2   : > { %v6886_v54 = vsel %vm6758_vm9, %v6694_v9, %v6822_v17  ;;  %v6888_v60 = vsel %vm6760_vm5, %v6696_v11, %v6824_v22  ;;  %v6699_v56 = vadd.f32 %v15143_v3, %v6624_v6  ;;  %v6553_v26 = vmul.f32 %v10685_v58, %v6425_v24 }
 0x6e3   : > { %v6548_v50 = vmul.f32 %v15709_v27, %v17620_v38  ;;  %v6956_v41 = vpack.c.bf16 %v6888_v60, %v6886_v54  ;;  %7201 = vmatprep.mubr.bf16.mxu1 %v6957_v59  ;;  %v6625_v55 = vmul.f32 %v15134_v20, %v6550_v35  ;;  %v6555_v36 = vmul.f32 %v10687_v62, %v6427_v33 }
 0x6e4   : > { %v6552_v48 = vmul.f32 %v10685_v58, %v17621_v63  ;;  %v6701_v27 = vadd.f32 %v15143_v3, %v6626_v45  ;;  %vm6763_vm12 = vcmp.gt.f32.partialorder %v6699_v56, 0.0  ;;  %v6827_v14 = vmul.f32 0.01, %v6699_v56 }
 0x6e5   : > { %v6623_v37 = vmul.f32 %v15134_v20, %v6548_v50  ;;  %v6700_v29 = vadd.f32 %v15140_v42, %v6625_v55  ;;  %v6628_v2 = vmul.f32 %v15137_v5, %v6553_v26  ;;  %v6630_v34 = vmul.f32 %v15137_v5, %v6555_v36 }
 0x6e6   : > { %v6554_v24 = vmul.f32 %v10687_v62, %v6426_v13  ;;  %vm6765_vm11 = vcmp.gt.f32.partialorder %v6701_v27, 0.0  ;;  %v6829_v16 = vmul.f32 0.01, %v6701_v27  ;;  %v6891_v53 = vsel %vm6763_vm12, %v6699_v56, %v6827_v14 }
 0x6e7   : > { %v6698_v4 = vadd.f32 %v15140_v42, %v6623_v37  ;;  %vm6764_vm13 = vcmp.gt.f32.partialorder %v6700_v29, 0.0  ;;  %v6828_v33 = vmul.f32 0.01, %v6700_v29  ;;  %v6703_v18 = vadd.f32 %v15143_v3, %v6628_v2 }
 0x6e8   : > { %v6893_v57 = vsel %vm6765_vm11, %v6701_v27, %v6829_v16  ;;  %v6705_v52 = vadd.f32 %v15143_v3, %v6630_v34  ;;  %v6627_v10 = vmul.f32 %v15134_v20, %v6552_v48  ;;  %v6629_v5 = vmul.f32 %v15134_v20, %v6554_v24 }
 0x6e9   : > { %vm6762_vm10 = vcmp.gt.f32.partialorder %v6698_v4, 0.0  ;;  %v6826_v30 = vmul.f32 0.01, %v6698_v4  ;;  %7202 = vmatmul.mubr.bf16.gmra.mrb[212].mxu1 %v6956_v41  ;;  %v6959_v44 = vpack.c.bf16 %v6893_v57, %v6891_v53  ;;  %v6892_v47 = vsel %vm6764_vm13, %v6700_v29, %v6828_v33 }
 0x6ea   : > { %vm6767_vm15 = vcmp.gt.f32.partialorder %v6703_v18, 0.0  ;;  %vm6769_vm1 = vcmp.gt.f32.partialorder %v6705_v52, 0.0  ;;  %v6831_v32 = vmul.f32 0.01, %v6703_v18  ;;  %v6833_v13 = vmul.f32 0.01, %v6705_v52 }
 0x6eb   : > { %7209 = vmatprep.mubr.bf16.mxu1 %v6959_v44  ;;  %v6890_v40 = vsel %vm6762_vm10, %v6698_v4, %v6826_v30  ;;  %v6702_v25 = vadd.f32 %v15140_v42, %v6627_v10  ;;  %v6704_v51 = vadd.f32 %v15140_v42, %v6629_v5  ;;  %v17622_v21 = vmov 0   ;;  %v15801_v42 = vld [vmem:[%s16613_s13] ss:$0 sm:$0xff] }
 0x6ec   : > { %v6958_v0 = vpack.c.bf16 %v6892_v47, %v6890_v40  ;;  %v6895_v15 = vsel %vm6767_vm15, %v6703_v18, %v6831_v32  ;;  %v6897_v3 = vsel %vm6769_vm1, %v6705_v52, %v6833_v13 }
 0x6ed   : > { %v6961_v31 = vpack.c.bf16 %v6897_v3, %v6895_v15  ;;  %vm6768_vm14 = vcmp.gt.f32.partialorder %v6704_v51, 0.0  ;;  %v6832_v39 = vmul.f32 0.01, %v6704_v51  ;;  %v6830_v20 = vmul.f32 0.01, %v6702_v25 }
 0x6ee   : > { %vm6766_vm3 = vcmp.gt.f32.partialorder %v6702_v25, 0.0 }
 0x6ef   : > { %v6896_v46 = vsel %vm6768_vm14, %v6704_v51, %v6832_v39  ;;  %v6894_v58 = vsel %vm6766_vm3, %v6702_v25, %v6830_v20 }
 0x6f0   : > { %v6960_v8 = vpack.c.bf16 %v6896_v46, %v6894_v58 }
 0x6f1   : > { %7210 = vmatmul.mubr.bf16.gmra.mrb[216].mxu1 %v6958_v0 }
 0x6f2   : > { %7217 = vmatprep.mubr.bf16.mxu1 %v6961_v31 }
 0x6f9   : > { %7218 = vmatmul.mubr.bf16.gmra.mrb[220].mxu1 %v6960_v8 }
 0x6fa   : > { %7969 = vmatprep.mubr.bf16.mxu1 %v17622_v21 }
 0x727   : > { %v9509_v9 = vpop.f32.mrb[160].mxu1 }
 0x728   : > { %v9510_v62 = vpop.f32.mrb[161].mxu1 }
 0x729   : > { %v9511_v61 = vadd.f32 %v9510_v62, %v9509_v9  ;;  %v9512_v7 = vpop.f32.mrb[162].mxu1 }
 0x72a   : > { %v9513_v11 = vpop.f32.mrb[163].mxu1 }
 0x72b   : > { %v15804_v23 = vadd.f32 %v9511_v61, %v15801_v42  ;;  %v9514_v1 = vadd.f32 %v9513_v11, %v9512_v7 }
 0x72d   : > { %v15807_v28 = vadd.f32 %v9514_v1, %v15801_v42  ;;  %7228 = vadd.xlane.f32.xlu1 %v15804_v23  ;;  %v7325_v19 = vmul.f32 %v15804_v23, %v15804_v23 }
 0x72f   : > { %7230 = vadd.xlane.f32.xlu0 %v15807_v28  ;;  %v7326_v43 = vmul.f32 %v15807_v28, %v15807_v28 }
 0x731   : > { %7357 = vadd.xlane.f32.xlu1 %v7325_v19 }
 0x734   : > { %v9515_v17 = vpop.f32.mrb[164].mxu1 }
 0x735   : > { %7359 = vadd.xlane.f32.xlu1 %v7326_v43  ;;  %v9516_v22 = vpop.f32.mrb[165].mxu1 }
 0x736   : > { %v9517_v12 = vadd.f32 %v9516_v22, %v9515_v17  ;;  %v9518_v49 = vpop.f32.mrb[166].mxu1 }
 0x737   : > { %v9519_v6 = vpop.f32.mrb[167].mxu1 }
 0x738   : > { %v15816_v38 = vadd.f32 %v9517_v12, %v15801_v42  ;;  %v9520_v50 = vadd.f32 %v9519_v6, %v9518_v49 }
 0x73a   : > { %v15819_v59 = vadd.f32 %v9520_v50, %v15801_v42  ;;  %7232 = vadd.xlane.f32.xlu0 %v15816_v38  ;;  %v7327_v54 = vmul.f32 %v15816_v38, %v15816_v38 }
 0x73c   : > { %7361 = vadd.xlane.f32.xlu1 %v7327_v54  ;;  %v7328_v60 = vmul.f32 %v15819_v59, %v15819_v59 }
 0x73e   : > { %7234 = vadd.xlane.f32.xlu0 %v15819_v59 }
 0x740   : > { %7363 = vadd.xlane.f32.xlu1 %v7328_v60 }
 0x742   : > { %v9521_v35 = vpop.f32.mrb[168].mxu1 }
 0x743   : > { %v9522_v41 = vpop.f32.mrb[169].mxu1 }
 0x744   : > { %v9523_v45 = vadd.f32 %v9522_v41, %v9521_v35  ;;  %v9524_v56 = vpop.f32.mrb[170].mxu1 }
 0x745   : > { %v9525_v37 = vpop.f32.mrb[171].mxu1 }
 0x746   : > { %v15828_v55 = vadd.f32 %v9523_v45, %v15801_v42  ;;  %v9526_v26 = vadd.f32 %v9525_v37, %v9524_v56 }
 0x748   : > { %v15831_v36 = vadd.f32 %v9526_v26, %v15801_v42  ;;  %7236 = vadd.xlane.f32.xlu0 %v15828_v55  ;;  %v7329_v63 = vmul.f32 %v15828_v55, %v15828_v55 }
 0x74a   : > { %7365 = vadd.xlane.f32.xlu1 %v7329_v63  ;;  %v7330_v48 = vmul.f32 %v15831_v36, %v15831_v36 }
 0x74c   : > { %7238 = vadd.xlane.f32.xlu0 %v15831_v36  ;;  %v9527_v27 = vpop.f32.mrb[172].mxu1 }
 0x74d   : > { %v9528_v14 = vpop.f32.mrb[173].mxu1 }
 0x74e   : > { %7367 = vadd.xlane.f32.xlu1 %v7330_v48  ;;  %v9529_v4 = vadd.f32 %v9528_v14, %v9527_v27  ;;  %v9530_v29 = vpop.f32.mrb[174].mxu1 }
 0x74f   : > { %v9531_v2 = vpop.f32.mrb[175].mxu1 }
 0x750   : > { %v15840_v34 = vadd.f32 %v9529_v4, %v15801_v42  ;;  %v9532_v24 = vadd.f32 %v9531_v2, %v9530_v29 }
 0x752   : > { %v15843_v16 = vadd.f32 %v9532_v24, %v15801_v42  ;;  %7240 = vadd.xlane.f32.xlu0 %v15840_v34  ;;  %v7331_v53 = vmul.f32 %v15840_v34, %v15840_v34 }
 0x754   : > { %7369 = vadd.xlane.f32.xlu1 %v7331_v53  ;;  %v7332_v30 = vmul.f32 %v15843_v16, %v15843_v16 }
 0x756   : > { %7242 = vadd.xlane.f32.xlu0 %v15843_v16 }
 0x758   : > { %v9533_v33 = vpop.f32.mrb[176].mxu1  ;;  %7371 = vadd.xlane.f32.xlu1 %v7332_v30 }
 0x759   : > { %v9534_v18 = vpop.f32.mrb[177].mxu1 }
 0x75a   : > { %v9535_v57 = vadd.f32 %v9534_v18, %v9533_v33  ;;  %v9536_v52 = vpop.f32.mrb[178].mxu1 }
 0x75b   : > { %v9537_v10 = vpop.f32.mrb[179].mxu1 }
 0x75c   : > { %v15852_v5 = vadd.f32 %v9535_v57, %v15801_v42  ;;  %v9538_v44 = vadd.f32 %v9537_v10, %v9536_v52 }
 0x75e   : > { %v15855_v47 = vadd.f32 %v9538_v44, %v15801_v42  ;;  %7244 = vadd.xlane.f32.xlu0 %v15852_v5  ;;  %v7333_v32 = vmul.f32 %v15852_v5, %v15852_v5 }
 0x760   : > { %7373 = vadd.xlane.f32.xlu1 %v7333_v32  ;;  %v7334_v13 = vmul.f32 %v15855_v47, %v15855_v47 }
 0x762   : > { %7246 = vadd.xlane.f32.xlu0 %v15855_v47 }
 0x764   : > { %v9539_v40 = vpop.f32.mrb[180].mxu1  ;;  %7375 = vadd.xlane.f32.xlu1 %v7334_v13 }
 0x765   : > { %v9540_v25 = vpop.f32.mrb[181].mxu1 }
 0x766   : > { %v9541_v51 = vadd.f32 %v9540_v25, %v9539_v40  ;;  %v9542_v0 = vpop.f32.mrb[182].mxu1 }
 0x767   : > { %v9543_v15 = vpop.f32.mrb[183].mxu1 }
 0x768   : > { %v15864_v3 = vadd.f32 %v9541_v51, %v15801_v42  ;;  %v9544_v31 = vadd.f32 %v9543_v15, %v9542_v0 }
 0x76a   : > { %v15867_v39 = vadd.f32 %v9544_v31, %v15801_v42  ;;  %7248 = vadd.xlane.f32.xlu0 %v15864_v3  ;;  %v7335_v20 = vmul.f32 %v15864_v3, %v15864_v3 }
 0x76c   : > { %7377 = vadd.xlane.f32.xlu1 %v7335_v20  ;;  %v7336_v46 = vmul.f32 %v15867_v39, %v15867_v39 }
 0x76e   : > { %7250 = vadd.xlane.f32.xlu0 %v15867_v39 }
 0x76f   : > { %v9545_v58 = vpop.f32.mrb[184].mxu1 }
 0x770   : > { %v9546_v8 = vpop.f32.mrb[185].mxu1  ;;  %7379 = vadd.xlane.f32.xlu1 %v7336_v46 }
 0x771   : > { %v9547_v21 = vadd.f32 %v9546_v8, %v9545_v58  ;;  %v9548_v9 = vpop.f32.mrb[186].mxu1 }
 0x772   : > { %v9549_v62 = vpop.f32.mrb[187].mxu1 }
 0x773   : > { %v15876_v61 = vadd.f32 %v9547_v21, %v15801_v42  ;;  %v9550_v7 = vadd.f32 %v9549_v62, %v9548_v9 }
 0x775   : > { %v15879_v11 = vadd.f32 %v9550_v7, %v15801_v42  ;;  %7252 = vadd.xlane.f32.xlu0 %v15876_v61  ;;  %v7337_v1 = vmul.f32 %v15876_v61, %v15876_v61 }
 0x777   : > { %7381 = vadd.xlane.f32.xlu1 %v7337_v1  ;;  %v7338_v19 = vmul.f32 %v15879_v11, %v15879_v11 }
 0x779   : > { %7254 = vadd.xlane.f32.xlu0 %v15879_v11 }
 0x77b   : > { %v9551_v43 = vpop.f32.mrb[188].mxu1  ;;  %7383 = vadd.xlane.f32.xlu1 %v7338_v19 }
 0x77c   : > { %v9552_v17 = vpop.f32.mrb[189].mxu1 }
 0x77d   : > { %v9553_v22 = vadd.f32 %v9552_v17, %v9551_v43  ;;  %v9554_v12 = vpop.f32.mrb[190].mxu1 }
 0x77e   : > { %v9555_v49 = vpop.f32.mrb[191].mxu1 }
 0x77f   : > { %v15888_v6 = vadd.f32 %v9553_v22, %v15801_v42  ;;  %v9556_v50 = vadd.f32 %v9555_v49, %v9554_v12 }
 0x781   : > { %7256 = vadd.xlane.f32.xlu0 %v15888_v6  ;;  %v7339_v54 = vmul.f32 %v15888_v6, %v15888_v6  ;;  %v15894_v60 = vadd.f32 %v9556_v50, %v15801_v42 }
 0x783   : > { %7385 = vadd.xlane.f32.xlu1 %v7339_v54 }
 0x785   : > { %7258 = vadd.xlane.f32.xlu0 %v15894_v60 }
 0x787   : > { %v9557_v35 = vpop.f32.mrb[192].mxu1 }
 0x788   : > { %v9558_v41 = vpop.f32.mrb[193].mxu1 }
 0x789   : > { %v9559_v45 = vadd.f32 %v9558_v41, %v9557_v35  ;;  %v9560_v56 = vpop.f32.mrb[194].mxu1 }
 0x78a   : > { %v9561_v37 = vpop.f32.mrb[195].mxu1 }
 0x78b   : > { %v15898_v26 = vadd.f32 %v9559_v45, %v15801_v42  ;;  %v9562_v63 = vadd.f32 %v9561_v37, %v9560_v56 }
 0x78d   : > { %v15901_v48 = vadd.f32 %v9562_v63, %v15801_v42  ;;  %7260 = vadd.xlane.f32.xlu0 %v15898_v26  ;;  %v7341_v27 = vmul.f32 %v15898_v26, %v15898_v26 }
 0x78f   : > { %7389 = vadd.xlane.f32.xlu1 %v7341_v27  ;;  %v7342_v14 = vmul.f32 %v15901_v48, %v15901_v48 }
 0x791   : > { %7262 = vadd.xlane.f32.xlu0 %v15901_v48 }
 0x793   : > { %v9563_v4 = vpop.f32.mrb[196].mxu1  ;;  %7391 = vadd.xlane.f32.xlu1 %v7342_v14 }
 0x794   : > { %v9564_v29 = vpop.f32.mrb[197].mxu1 }
 0x795   : > { %v9565_v2 = vadd.f32 %v9564_v29, %v9563_v4  ;;  %v9566_v24 = vpop.f32.mrb[198].mxu1 }
 0x796   : > { %v9567_v53 = vpop.f32.mrb[199].mxu1 }
 0x797   : > { %v15910_v30 = vadd.f32 %v9565_v2, %v15801_v42  ;;  %v9568_v33 = vadd.f32 %v9567_v53, %v9566_v24 }
 0x799   : > { %v15913_v18 = vadd.f32 %v9568_v33, %v15801_v42  ;;  %7264 = vadd.xlane.f32.xlu0 %v15910_v30  ;;  %v7343_v57 = vmul.f32 %v15910_v30, %v15910_v30 }
 0x79b   : > { %7393 = vadd.xlane.f32.xlu1 %v7343_v57  ;;  %v7344_v52 = vmul.f32 %v15913_v18, %v15913_v18 }
 0x79d   : > { %7266 = vadd.xlane.f32.xlu0 %v15913_v18 }
 0x79e   : > { %v9569_v10 = vpop.f32.mrb[200].mxu1 }
 0x79f   : > { %v9570_v44 = vpop.f32.mrb[201].mxu1  ;;  %7395 = vadd.xlane.f32.xlu1 %v7344_v52 }
 0x7a0   : > { %v9571_v32 = vadd.f32 %v9570_v44, %v9569_v10  ;;  %v9572_v13 = vpop.f32.mrb[202].mxu1 }
 0x7a1   : > { %v9573_v40 = vpop.f32.mrb[203].mxu1 }
 0x7a2   : > { %v15922_v25 = vadd.f32 %v9571_v32, %v15801_v42  ;;  %v9574_v51 = vadd.f32 %v9573_v40, %v9572_v13 }
 0x7a4   : > { %v15925_v0 = vadd.f32 %v9574_v51, %v15801_v42  ;;  %7268 = vadd.xlane.f32.xlu0 %v15922_v25  ;;  %v7345_v15 = vmul.f32 %v15922_v25, %v15922_v25 }
 0x7a6   : > { %7397 = vadd.xlane.f32.xlu1 %v7345_v15  ;;  %v7346_v31 = vmul.f32 %v15925_v0, %v15925_v0 }
 0x7a8   : > { %7270 = vadd.xlane.f32.xlu0 %v15925_v0 }
 0x7aa   : > { %7399 = vadd.xlane.f32.xlu1 %v7346_v31 }
 0x7ab   : > { %v9575_v20 = vpop.f32.mrb[204].mxu1 }
 0x7ac   : > { %v9576_v46 = vpop.f32.mrb[205].mxu1 }
 0x7ad   : > { %v9577_v58 = vadd.f32 %v9576_v46, %v9575_v20  ;;  %v9578_v8 = vpop.f32.mrb[206].mxu1 }
 0x7ae   : > { %v9579_v21 = vpop.f32.mrb[207].mxu1 }
 0x7af   : > { %v15934_v9 = vadd.f32 %v9577_v58, %v15801_v42  ;;  %v9580_v62 = vadd.f32 %v9579_v21, %v9578_v8 }
 0x7b1   : > { %v15937_v7 = vadd.f32 %v9580_v62, %v15801_v42  ;;  %7272 = vadd.xlane.f32.xlu0 %v15934_v9  ;;  %v7347_v1 = vmul.f32 %v15934_v9, %v15934_v9 }
 0x7b3   : > { %7401 = vadd.xlane.f32.xlu1 %v7347_v1  ;;  %v7348_v12 = vmul.f32 %v15937_v7, %v15937_v7 }
 0x7b4   : > { %v9581_v19 = vpop.f32.mrb[208].mxu1 }
 0x7b5   : > { %v9582_v43 = vpop.f32.mrb[209].mxu1  ;;  %7274 = vadd.xlane.f32.xlu0 %v15937_v7 }
 0x7b6   : > { %v9583_v17 = vadd.f32 %v9582_v43, %v9581_v19  ;;  %v9584_v22 = vpop.f32.mrb[210].mxu1 }
 0x7b7   : > { %v9585_v49 = vpop.f32.mrb[211].mxu1  ;;  %7403 = vadd.xlane.f32.xlu1 %v7348_v12 }
 0x7b8   : > { %v15946_v50 = vadd.f32 %v9583_v17, %v15801_v42  ;;  %v9586_v54 = vadd.f32 %v9585_v49, %v9584_v22 }
 0x7ba   : > { %v15949_v35 = vadd.f32 %v9586_v54, %v15801_v42  ;;  %7276 = vadd.xlane.f32.xlu0 %v15946_v50  ;;  %v7349_v41 = vmul.f32 %v15946_v50, %v15946_v50  ;;  %v15966_v53 = vpop.xlane.xlu1 %7228 }
 0x7bc   : > { %7405 = vadd.xlane.f32.xlu1 %v7349_v41  ;;  %v9587_v45 = vpop.f32.mrb[212].mxu1  ;;  %v7350_v27 = vmul.f32 %v15949_v35, %v15949_v35  ;;  %v15982_v20 = vpop.xlane.xlu0 %7230  ;;  %v7340_v41 = vmul.f32 %v15894_v60, %v15894_v60 }
 0x7bd   : > { %v9588_v56 = vpop.f32.mrb[213].mxu1 }
 0x7be   : > { %v9589_v37 = vadd.f32 %v9588_v56, %v9587_v45  ;;  %7278 = vadd.xlane.f32.xlu0 %v15949_v35  ;;  %v9590_v63 = vpop.f32.mrb[214].mxu1  ;;  %v15971_v32 = vpop.xlane.xlu1 %7357 }
 0x7bf   : > { %v9591_v14 = vpop.f32.mrb[215].mxu1 }
 0x7c0   : > { %v15958_v4 = vadd.f32 %v9589_v37, %v15801_v42  ;;  %v9592_v29 = vadd.f32 %v9591_v14, %v9590_v63  ;;  %7407 = vadd.xlane.f32.xlu1 %v7350_v27 }
 0x7c2   : > { %v15961_v2 = vadd.f32 %v9592_v29, %v15801_v42  ;;  %7280 = vadd.xlane.f32.xlu0 %v15958_v4  ;;  %v7351_v24 = vmul.f32 %v15958_v4, %v15958_v4  ;;  %v15984_v58 = vpop.xlane.xlu1 %7359 }
 0x7c4   : > { %7409 = vadd.xlane.f32.xlu1 %v7351_v24  ;;  %v9593_v33 = vpop.f32.mrb[216].mxu1  ;;  %v7352_v44 = vmul.f32 %v15961_v2, %v15961_v2 }
 0x7c5   : > { %v9594_v57 = vpop.f32.mrb[217].mxu1 }
 0x7c6   : > { %v9595_v52 = vadd.f32 %v9594_v57, %v9593_v33  ;;  %7282 = vadd.xlane.f32.xlu0 %v15961_v2  ;;  %v9596_v10 = vpop.f32.mrb[218].mxu1 }
 0x7c7   : > { %v9597_v13 = vpop.f32.mrb[219].mxu1  ;;  %v15992_v22 = vpop.xlane.xlu0 %7232 }
 0x7c8   : > { %v15974_v40 = vadd.f32 %v9595_v52, %v15801_v42  ;;  %v9598_v51 = vadd.f32 %v9597_v13, %v9596_v10  ;;  %7411 = vadd.xlane.f32.xlu1 %v7352_v44 }
 0x7c9   : > { %v15997_v49 = vpop.xlane.xlu1 %7361 }
 0x7ca   : > { %v15977_v15 = vadd.f32 %v9598_v51, %v15801_v42  ;;  %7284 = vadd.xlane.f32.xlu0 %v15974_v40  ;;  %v7353_v31 = vmul.f32 %v15974_v40, %v15974_v40 }
 0x7cb   : > { %v16005_v45 = vpop.xlane.xlu0 %7234 }
 0x7cc   : > { %7413 = vadd.xlane.f32.xlu1 %v7353_v31  ;;  %v9599_v46 = vpop.f32.mrb[220].mxu1  ;;  %v7354_v1 = vmul.f32 %v15977_v15, %v15977_v15 }
 0x7cd   : > { %v9600_v8 = vpop.f32.mrb[221].mxu1  ;;  %v16009_v37 = vpop.xlane.xlu1 %7363 }
 0x7ce   : > { %v9601_v21 = vadd.f32 %v9600_v8, %v9599_v46  ;;  %7286 = vadd.xlane.f32.xlu0 %v15977_v15  ;;  %v9602_v62 = vpop.f32.mrb[222].mxu1 }
 0x7cf   : > { %v9603_v19 = vpop.f32.mrb[223].mxu1 }
 0x7d0   : > { %v15990_v43 = vadd.f32 %v9601_v21, %v15801_v42  ;;  %v9604_v17 = vadd.f32 %v9603_v19, %v9602_v62  ;;  %7415 = vadd.xlane.f32.xlu1 %v7354_v1 }
 0x7d2   : > { %7288 = vadd.xlane.f32.xlu0 %v15990_v43  ;;  %v7355_v12 = vmul.f32 %v15990_v43, %v15990_v43  ;;  %v16000_v54 = vadd.f32 %v9604_v17, %v15801_v42 }
 0x7d4   : > { %7417 = vadd.xlane.f32.xlu1 %v7355_v12  ;;  %v7356_v56 = vmul.f32 %v16000_v54, %v16000_v54 }
 0x7d5   : > { %v7237_v63 = vpop.xlane.xlu0 %7236 }
 0x7d6   : > { %7290 = vadd.xlane.f32.xlu0 %v16000_v54  ;;  %v7297_v27 = vmul.f32 0.0078125, %v7237_v63 }
 0x7d7   : > { %v7366_v14 = vpop.xlane.xlu1 %7365 }
 0x7d8   : > { %7387 = vadd.xlane.f32.xlu1 %v7340_v41  ;;  %v7457_v42 = vmul.f32 %v7297_v27, %v7297_v27  ;;  %v7425_v29 = vmul.f32 0.0078125, %v7366_v14 }
 0x7d9   : > { %v7239_v24 = vpop.xlane.xlu0 %7238 }
 0x7da   : > { %7419 = vadd.xlane.f32.xlu0 %v7356_v56  ;;  %v7489_v33 = vsub.f32 %v7425_v29, %v7457_v42  ;;  %v7298_v57 = vmul.f32 0.0078125, %v7239_v24  ;;  %v7553_v24 = vsub.f32 %v15828_v55, %v7297_v27 }
 0x7db   : > { %v7368_v52 = vpop.xlane.xlu1 %7367 }
 0x7dc   : > { %v7521_v10 = vmax.f32 %v7489_v33, 0.0  ;;  %v7458_v44 = vmul.f32 %v7298_v57, %v7298_v57  ;;  %v7426_v13 = vmul.f32 0.0078125, %v7368_v52 }
 0x7de   : > { %v7585_v51 = vadd.f32 1e-05, %v7521_v10  ;;  %v7490_v31 = vsub.f32 %v7426_v13, %v7458_v44 }
 0x7df   : > { %v7241_v8 = vpop.xlane.xlu0 %7240 }
 0x7e0   : > { %10688 = vrsqrt.f32 %v7585_v51  ;;  %v7522_v46 = vmax.f32 %v7490_v31, 0.0  ;;  %v7299_v21 = vmul.f32 0.0078125, %v7241_v8 }
 0x7e1   : > { %v7370_v1 = vpop.xlane.xlu1 %7369 }
 0x7e2   : > { %v7586_v62 = vadd.f32 1e-05, %v7522_v46  ;;  %v7459_v19 = vmul.f32 %v7299_v21, %v7299_v21  ;;  %v7427_v17 = vmul.f32 0.0078125, %v7370_v1  ;;  %v7554_v46 = vsub.f32 %v15831_v36, %v7298_v57 }
 0x7e3   : > { %v7243_v12 = vpop.xlane.xlu0 %7242 }
 0x7e4   : > { %10690 = vrsqrt.f32 %v7586_v62  ;;  %v7491_v41 = vsub.f32 %v7427_v17, %v7459_v19  ;;  %v7300_v56 = vmul.f32 0.0078125, %v7243_v12 }
 0x7e5   : > { %v7372_v63 = vpop.xlane.xlu1 %7371 }
 0x7e6   : > { %v7523_v14 = vmax.f32 %v7491_v41, 0.0  ;;  %v7460_v42 = vmul.f32 %v7300_v56, %v7300_v56  ;;  %v7428_v29 = vmul.f32 0.0078125, %v7372_v63 }
 0x7e8   : > { %v7587_v33 = vadd.f32 1e-05, %v7523_v14  ;;  %v7492_v52 = vsub.f32 %v7428_v29, %v7460_v42 }
 0x7ea   : > { %v10689_v10 = vpop.eup %10688  ;;  %10692 = vrsqrt.f32 %v7587_v33  ;;  %v7524_v44 = vmax.f32 %v7492_v52, 0.0 }
 0x7eb   : > { %v7245_v13 = vpop.xlane.xlu0 %7244  ;;  %v16012_v51 = vmul.f32 %v10689_v10, %v7553_v24  ;;  %v7555_v24 = vsub.f32 %v15840_v34, %v7299_v21 }
 0x7ec   : > { %v7301_v31 = vmul.f32 0.0078125, %v7245_v13  ;;  %v7588_v8 = vadd.f32 1e-05, %v7524_v44 }
 0x7ed   : > { %v7374_v62 = vpop.xlane.xlu1 %7373 }
 0x7ee   : > { %v10691_v1 = vpop.eup %10690  ;;  %v7461_v19 = vmul.f32 %v7301_v31, %v7301_v31  ;;  %v7429_v17 = vmul.f32 0.0078125, %v7374_v62  ;;  %10694 = vrsqrt.f32 %v7588_v8 }
 0x7ef   : > { %v7247_v12 = vpop.xlane.xlu0 %7246  ;;  %v16015_v41 = vmul.f32 %v10691_v1, %v7554_v46  ;;  %v7556_v46 = vsub.f32 %v15843_v16, %v7300_v56  ;;  %v16032_v56 = vmul.f32 0.0078125, %v15966_v53 }
 0x7f0   : > { %v7493_v55 = vsub.f32 %v7429_v17, %v7461_v19  ;;  %v7302_v27 = vmul.f32 0.0078125, %v7247_v12 }
 0x7f1   : > { %v7376_v63 = vpop.xlane.xlu1 %7375 }
 0x7f2   : > { %v7525_v14 = vmax.f32 %v7493_v55, 0.0  ;;  %v7462_v42 = vmul.f32 %v7302_v27, %v7302_v27  ;;  %v7430_v29 = vmul.f32 0.0078125, %v7376_v63 }
 0x7f4   : > { %v7589_v33 = vadd.f32 1e-05, %v7525_v14  ;;  %v7494_v52 = vsub.f32 %v7430_v29, %v7462_v42  ;;  %v10693_v36 = vpop.eup %10692  ;;  %v7557_v29 = vsub.f32 %v15852_v5, %v7301_v31  ;;  %v7422_v5 = vmul.f32 0.0078125, %v15984_v58 }
 0x7f5   : > { %v16018_v44 = vmul.f32 %v10693_v36, %v7555_v24  ;;  %v16036_v36 = vmul.f32 0.0078125, %v15982_v20  ;;  %v16047_v31 = vmul.f32 0.0078125, %v15992_v22  ;;  %v7558_v20 = vsub.f32 %v15855_v47, %v7302_v27 }
 0x7f6   : > { %10696 = vrsqrt.f32 %v7589_v33  ;;  %v7526_v57 = vmax.f32 %v7494_v52, 0.0 }
 0x7f7   : > { %v7249_v10 = vpop.xlane.xlu0 %7248  ;;  %v7455_v27 = vmul.f32 %v16047_v31, %v16047_v31 }
 0x7f8   : > { %v16020_v13 = vmul.f32 0.0078125, %v7249_v10  ;;  %v7590_v8 = vadd.f32 1e-05, %v7526_v57  ;;  %v10695_v1 = vpop.eup %10694  ;;  %v7421_v57 = vmul.f32 0.0078125, %v15971_v32 }
 0x7f9   : > { %v7378_v62 = vpop.xlane.xlu1 %7377  ;;  %v16025_v21 = vmul.f32 %v10695_v1, %v7556_v46 }
 0x7fa   : > { %v7463_v19 = vmul.f32 %v16020_v13, %v16020_v13  ;;  %v7431_v17 = vmul.f32 0.0078125, %v7378_v62  ;;  %10698 = vrsqrt.f32 %v7590_v8  ;;  %v7453_v62 = vmul.f32 %v16032_v56, %v16032_v56 }
 0x7fb   : > { %v7251_v34 = vpop.xlane.xlu0 %7250 }
 0x7fc   : > { %v7495_v12 = vsub.f32 %v7431_v17, %v7463_v19  ;;  %v16027_v55 = vmul.f32 0.0078125, %v7251_v34  ;;  %v7454_v17 = vmul.f32 %v16036_v36, %v16036_v36 }
 0x7fd   : > { %v7380_v63 = vpop.xlane.xlu1 %7379 }
 0x7fe   : > { %v7527_v14 = vmax.f32 %v7495_v12, 0.0  ;;  %v7464_v42 = vmul.f32 %v16027_v55, %v16027_v55  ;;  %v7432_v16 = vmul.f32 0.0078125, %v7380_v63  ;;  %v7485_v63 = vsub.f32 %v7421_v57, %v7453_v62 }
 0x7ff   : > { %v7486_v47 = vsub.f32 %v7422_v5, %v7454_v17  ;;  %v7559_v62 = vsub.f32 %v15864_v3, %v16020_v13 }
 0x800   : > { %v7591_v24 = vadd.f32 1e-05, %v7527_v14  ;;  %v7496_v33 = vsub.f32 %v7432_v16, %v7464_v42  ;;  %v10697_v52 = vpop.eup %10696  ;;  %v7423_v14 = vmul.f32 0.0078125, %v15997_v49  ;;  %v7517_v57 = vmax.f32 %v7485_v63, 0.0 }
 0x801   : > { %v16039_v8 = vmul.f32 %v10697_v52, %v7557_v29  ;;  %v7424_v49 = vmul.f32 0.0078125, %v16009_v37  ;;  %v7560_v37 = vsub.f32 %v15867_v39, %v16027_v55 }
 0x802   : > { %10700 = vrsqrt.f32 %v7591_v24  ;;  %v7528_v10 = vmax.f32 %v7496_v33, 0.0  ;;  %v7253_v46 = vpop.xlane.xlu0 %7252  ;;  %v16060_v24 = vmul.f32 0.0078125, %v16005_v45 }
 0x803   : > { %v16043_v53 = vmul.f32 0.0078125, %v7253_v46  ;;  %v7487_v46 = vsub.f32 %v7423_v14, %v7455_v27  ;;  %v7581_v14 = vadd.f32 1e-05, %v7517_v57 }
 0x804   : > { %v7592_v1 = vadd.f32 1e-05, %v7528_v10  ;;  %v7382_v19 = vpop.xlane.xlu1 %7381  ;;  %v10699_v32 = vpop.eup %10698 }
 0x805   : > { %v7465_v34 = vmul.f32 %v16043_v53, %v16043_v53  ;;  %v7433_v12 = vmul.f32 0.0078125, %v7382_v19  ;;  %v16055_v42 = vmul.f32 %v10699_v32, %v7558_v20  ;;  %v7518_v19 = vmax.f32 %v7486_v47, 0.0 }
 0x806   : > { %10702 = vrsqrt.f32 %v7592_v1  ;;  %v7255_v58 = vpop.xlane.xlu0 %7254  ;;  %v7456_v32 = vmul.f32 %v16060_v24, %v16060_v24  ;;  %v7561_v39 = vsub.f32 %v15876_v61, %v16043_v53 }
 0x807   : > { %v7497_v22 = vsub.f32 %v7433_v12, %v7465_v34  ;;  %v7306_v16 = vmul.f32 0.0078125, %v7255_v58  ;;  %v7519_v12 = vmax.f32 %v7487_v46, 0.0  ;;  %v7582_v27 = vadd.f32 1e-05, %v7518_v19 }
 0x808   : > { %v7384_v29 = vpop.xlane.xlu1 %7383  ;;  %v7488_v58 = vsub.f32 %v7424_v49, %v7456_v32 }
 0x809   : > { %v7529_v33 = vmax.f32 %v7497_v22, 0.0  ;;  %v7466_v52 = vmul.f32 %v7306_v16, %v7306_v16  ;;  %v7434_v10 = vmul.f32 0.0078125, %v7384_v29  ;;  %v7562_v32 = vsub.f32 %v15879_v11, %v7306_v16 }
 0x80a   : > { %v7520_v46 = vmax.f32 %v7488_v58, 0.0  ;;  %v7550_v11 = vsub.f32 %v15807_v28, %v16036_v36  ;;  %v16100_v28 = vld [vmem:[%s16614_s14] ss:$0 sm:$0xff] }
 0x80b   : > { %v7593_v20 = vadd.f32 1e-05, %v7529_v33  ;;  %v7498_v1 = vsub.f32 %v7434_v10, %v7466_v52  ;;  %v7583_v52 = vadd.f32 1e-05, %v7519_v12 }
 0x80c   : > { %v10701_v5 = vpop.eup %10700 }
 0x80d   : > { %10704 = vrsqrt.f32 %v7593_v20  ;;  %v7530_v45 = vmax.f32 %v7498_v1, 0.0  ;;  %v16067_v34 = vmul.f32 %v10701_v5, %v7559_v62  ;;  %v7584_v20 = vadd.f32 1e-05, %v7520_v46 }
 0x80e   : > { %v7257_v17 = vpop.xlane.xlu0 %7256 }
 0x80f   : > { %v7307_v63 = vmul.f32 0.0078125, %v7257_v17  ;;  %v7594_v3 = vadd.f32 1e-05, %v7530_v45 }
 0x810   : > { %v7386_v13 = vpop.xlane.xlu1 %7385  ;;  %v10703_v22 = vpop.eup %10702 }
 0x811   : > { %v7467_v47 = vmul.f32 %v7307_v63, %v7307_v63  ;;  %v7435_v29 = vmul.f32 0.0078125, %v7386_v13  ;;  %10706 = vrsqrt.f32 %v7594_v3  ;;  %v16071_v33 = vmul.f32 %v10703_v22, %v7560_v37 }
 0x812   : > { %v16073_v62 = vpop.xlane.xlu0 %7258  ;;  %10708 = vrsqrt.f32 %v7581_v14  ;;  %v7549_v22 = vsub.f32 %v15804_v23, %v16032_v56 }
 0x813   : > { %v7499_v10 = vsub.f32 %v7435_v29, %v7467_v47  ;;  %10710 = vrsqrt.f32 %v7582_v27 }
 0x814   : > { %10712 = vrsqrt.f32 %v7583_v52 }
 0x815   : > { %v7531_v57 = vmax.f32 %v7499_v10, 0.0  ;;  %v7551_v10 = vsub.f32 %v15816_v38, %v16047_v31 }
 0x817   : > { %v7595_v55 = vadd.f32 1e-05, %v7531_v57  ;;  %v10705_v49 = vpop.eup %10704  ;;  %v7563_v57 = vsub.f32 %v15888_v6, %v7307_v63 }
 0x818   : > { %v16077_v5 = vmul.f32 %v10705_v49, %v7561_v39 }
 0x819   : > { %10714 = vrsqrt.f32 %v7595_v55 }
 0x81a   : > { %v7261_v1 = vpop.xlane.xlu0 %7260  ;;  %10716 = vrsqrt.f32 %v7584_v20 }
 0x81b   : > { %v16079_v19 = vmul.f32 0.0078125, %v7261_v1  ;;  %v10707_v17 = vpop.eup %10706 }
 0x81c   : > { %v7390_v45 = vpop.xlane.xlu1 %7389  ;;  %v16084_v61 = vmul.f32 %v10707_v17, %v7562_v32  ;;  %v10709_v53 = vpop.eup %10708  ;;  %v7552_v17 = vsub.f32 %v15819_v59, %v16060_v24 }
 0x81d   : > { %v7469_v12 = vmul.f32 %v16079_v19, %v16079_v19  ;;  %v7437_v14 = vmul.f32 0.0078125, %v7390_v45  ;;  %v10711_v13 = vpop.eup %10710  ;;  %v7645_v46 = vmul.f32 %v10709_v53, %v7549_v22 }
 0x81e   : > { %v7263_v58 = vpop.xlane.xlu0 %7262  ;;  %v10713_v52 = vpop.eup %10712  ;;  %v7646_v49 = vmul.f32 %v10711_v13, %v7550_v11 }
 0x81f   : > { %v7501_v37 = vsub.f32 %v7437_v14, %v7469_v12  ;;  %v16086_v3 = vmul.f32 0.0078125, %v7263_v58  ;;  %v7647_v20 = vmul.f32 %v10713_v52, %v7551_v10  ;;  %v7683_v63 = vmul.f32 %v16100_v28, %v7645_v46  ;;  %v16115_v58 = vld [vmem:[%s16615_s15] ss:$0 sm:$0xff] }
 0x820   : > { %v7392_v27 = vpop.xlane.xlu1 %7391  ;;  %v7684_v45 = vmul.f32 %v16100_v28, %v7646_v49  ;;  %v7565_v10 = vsub.f32 %v15898_v26, %v16079_v19 }
 0x821   : > { %v7533_v16 = vmax.f32 %v7501_v37, 0.0  ;;  %v7470_v47 = vmul.f32 %v16086_v3, %v16086_v3  ;;  %v7438_v29 = vmul.f32 0.0078125, %v7392_v27  ;;  %v7685_v37 = vmul.f32 %v16100_v28, %v7647_v20 }
 0x822   : > { %v7721_v59 = vadd.f32 %v16115_v58, %v7683_v63  ;;  %v7722_v24 = vadd.f32 %v16115_v58, %v7684_v45  ;;  %v7687_v20 = vmul.f32 %v16100_v28, %v16012_v51  ;;  %v7566_v19 = vsub.f32 %v15901_v48, %v16086_v3 }
 0x823   : > { %v7597_v39 = vadd.f32 1e-05, %v7533_v16  ;;  %v7502_v55 = vsub.f32 %v7438_v29, %v7470_v47  ;;  %v10715_v23 = vpop.eup %10714  ;;  %v7723_v52 = vadd.f32 %v16115_v58, %v7685_v37  ;;  %v7688_v37 = vmul.f32 %v16100_v28, %v16015_v41 }
 0x824   : > { %v16102_v1 = vmul.f32 %v10715_v23, %v7563_v57  ;;  %v10717_v38 = vpop.eup %10716  ;;  %vm7753_vm7 = vcmp.gt.f32.partialorder %v7721_v59, 0.0  ;;  %v7785_v49 = vmul.f32 0.01, %v7721_v59  ;;  %vm7754_vm4 = vcmp.gt.f32.partialorder %v7722_v24, 0.0 }
 0x825   : > { %10718 = vrsqrt.f32 %v7597_v39  ;;  %v7534_v56 = vmax.f32 %v7502_v55, 0.0  ;;  %v7648_v27 = vmul.f32 %v10717_v38, %v7552_v17  ;;  %vm7755_vm8 = vcmp.gt.f32.partialorder %v7723_v52, 0.0 }
 0x826   : > { %v7265_v36 = vpop.xlane.xlu0 %7264  ;;  %v7787_v26 = vmul.f32 0.01, %v7723_v52  ;;  %v7817_v51 = vsel %vm7753_vm7, %v7721_v59, %v7785_v49 }
 0x827   : > { %v16104_v32 = vmul.f32 0.0078125, %v7265_v36  ;;  %v7598_v31 = vadd.f32 1e-05, %v7534_v56  ;;  %v7686_v39 = vmul.f32 %v16100_v28, %v7648_v27  ;;  %v7725_v27 = vadd.f32 %v16115_v58, %v7687_v20 }
 0x828   : > { %v7394_v6 = vpop.xlane.xlu1 %7393 }
 0x829   : > { %v7471_v12 = vmul.f32 %v16104_v32, %v16104_v32  ;;  %v7439_v14 = vmul.f32 0.0078125, %v7394_v6  ;;  %10720 = vrsqrt.f32 %v7598_v31  ;;  %v7786_v31 = vmul.f32 0.01, %v7722_v24 }
 0x82a   : > { %v7267_v53 = vpop.xlane.xlu0 %7266  ;;  %v7724_v17 = vadd.f32 %v16115_v58, %v7686_v39  ;;  %vm7757_vm2 = vcmp.gt.f32.partialorder %v7725_v27, 0.0 }
 0x82b   : > { %v7503_v13 = vsub.f32 %v7439_v14, %v7471_v12  ;;  %v16118_v22 = vmul.f32 0.0078125, %v7267_v53 }
 0x82c   : > { %v7396_v11 = vpop.xlane.xlu1 %7395  ;;  %vm7756_vm6 = vcmp.gt.f32.partialorder %v7724_v17, 0.0 }
 0x82d   : > { %v7535_v16 = vmax.f32 %v7503_v13, 0.0  ;;  %v7472_v47 = vmul.f32 %v16118_v22, %v16118_v22  ;;  %v7440_v29 = vmul.f32 0.0078125, %v7396_v11 }
 0x82f   : > { %v7599_v46 = vadd.f32 1e-05, %v7535_v16  ;;  %v7504_v57 = vsub.f32 %v7440_v29, %v7472_v47  ;;  %v10719_v55 = vpop.eup %10718  ;;  %v7818_v47 = vsel %vm7754_vm4, %v7722_v24, %v7786_v31  ;;  %v16147_v29 = vsel %vm7755_vm8, %v7723_v52, %v7787_v26 }
 0x830   : > { %v7661_v36 = vmul.f32 %v10719_v55, %v7565_v10  ;;  %v7726_v55 = vadd.f32 %v16115_v58, %v7688_v37  ;;  %v7788_v24 = vmul.f32 0.01, %v7724_v17  ;;  %v7567_v52 = vsub.f32 %v15910_v30, %v16104_v32 }
 0x831   : > { %10722 = vrsqrt.f32 %v7599_v46  ;;  %v7536_v23 = vmax.f32 %v7504_v57, 0.0  ;;  %v7269_v56 = vpop.xlane.xlu0 %7268  ;;  %v7690_v32 = vmul.f32 %v16100_v28, %v16025_v21 }
 0x832   : > { %v16130_v38 = vmul.f32 0.0078125, %v7269_v56  ;;  %v7699_v45 = vmul.f32 %v16100_v28, %v7661_v36  ;;  %vm7758_vm5 = vcmp.gt.f32.partialorder %v7726_v55, 0.0  ;;  %v7790_v30 = vmul.f32 0.01, %v7726_v55 }
 0x833   : > { %v7600_v6 = vadd.f32 1e-05, %v7536_v23  ;;  %v7398_v63 = vpop.xlane.xlu1 %7397  ;;  %v10721_v12 = vpop.eup %10720 }
 0x834   : > { %v7473_v14 = vmul.f32 %v16130_v38, %v16130_v38  ;;  %v7441_v53 = vmul.f32 0.0078125, %v7398_v63  ;;  %v7737_v48 = vadd.f32 %v16115_v58, %v7699_v45  ;;  %v7662_v3 = vmul.f32 %v10721_v12, %v7566_v19 }
 0x835   : > { %10724 = vrsqrt.f32 %v7600_v6  ;;  %v7271_v13 = vpop.xlane.xlu0 %7270  ;;  %v7789_v19 = vmul.f32 0.01, %v7725_v27  ;;  %v7689_v6 = vmul.f32 %v16100_v28, %v16018_v44 }
 0x836   : > { %v7505_v11 = vsub.f32 %v7441_v53, %v7473_v14  ;;  %v16143_v16 = vmul.f32 0.0078125, %v7271_v13  ;;  %vm7769_vm0 = vcmp.gt.f32.partialorder %v7737_v48, 0.0  ;;  %v7801_v59 = vmul.f32 0.01, %v7737_v48 }
 0x837   : > { %v7400_v10 = vpop.xlane.xlu1 %7399  ;;  %v7700_v41 = vmul.f32 %v16100_v28, %v7662_v3 }
 0x838   : > { %v7537_v46 = vmax.f32 %v7505_v11, 0.0  ;;  %v7474_v57 = vmul.f32 %v16143_v16, %v16143_v16  ;;  %v7442_v39 = vmul.f32 0.0078125, %v7400_v10  ;;  %v7833_v49 = vsel %vm7769_vm0, %v7737_v48, %v7801_v59 }
 0x839   : > { %v7738_v23 = vadd.f32 %v16115_v58, %v7700_v41  ;;  %v10073_v20 = vpack.i.bf16 %v7817_v51, %v7833_v49  ;;  %v7568_v51 = vsub.f32 %v15913_v18, %v16118_v22  ;;  %v7820_v59 = vsel %vm7756_vm6, %v7724_v17, %v7788_v24 }
 0x83a   : > { %v7601_v56 = vadd.f32 1e-05, %v7537_v46  ;;  %v7506_v36 = vsub.f32 %v7442_v39, %v7474_v57  ;;  %v7727_v41 = vadd.f32 %v16115_v58, %v7689_v6  ;;  %v7691_v22 = vmul.f32 %v16100_v28, %v16039_v8 }
 0x83b   : > { %v10723_v31 = vpop.eup %10722  ;;  %vm7770_vm9 = vcmp.gt.f32.partialorder %v7738_v23, 0.0  ;;  %v7802_v26 = vmul.f32 0.01, %v7738_v23  ;;  %10074 = vxpose.xlu0.b32.start [1/16] %v10073_v20, 128  ;;  %v16175_v39 = vsel %vm7757_vm2, %v7725_v27, %v7789_v19  ;;  %v16178_v49 = vsel %vm7758_vm5, %v7726_v55, %v7790_v30 }
 0x83c   : > { %10726 = vrsqrt.f32 %v7601_v56  ;;  %v7538_v63 = vmax.f32 %v7506_v36, 0.0  ;;  %v7663_v12 = vmul.f32 %v10723_v31, %v7567_v52  ;;  %v7728_v52 = vadd.f32 %v16115_v58, %v7690_v32 }
 0x83d   : > { %v7834_v53 = vsel %vm7770_vm9, %v7738_v23, %v7802_v26  ;;  %vm7759_vm11 = vcmp.gt.f32.partialorder %v7727_v41, 0.0  ;;  %v7791_v26 = vmul.f32 0.01, %v7727_v41  ;;  %v7729_v55 = vadd.f32 %v16115_v58, %v7691_v22 }
 0x83e   : > { %v7273_v45 = vpop.xlane.xlu0 %7272  ;;  %v7602_v37 = vadd.f32 1e-05, %v7538_v63  ;;  %v10075_v48 = vpack.i.bf16 %v7818_v47, %v7834_v53  ;;  %v7701_v44 = vmul.f32 %v16100_v28, %v7663_v12  ;;  %v7569_v53 = vsub.f32 %v15922_v25, %v16130_v38 }
 0x83f   : > { %v16158_v14 = vmul.f32 0.0078125, %v7273_v45  ;;  %v10725_v3 = vpop.eup %10724  ;;  %vm7760_vm13 = vcmp.gt.f32.partialorder %v7728_v52, 0.0  ;;  %v7692_v38 = vmul.f32 %v16100_v28, %v16055_v42  ;;  %vm7761_vm15 = vcmp.gt.f32.partialorder %v7729_v55, 0.0 }
 0x840   : > { %v7402_v13 = vpop.xlane.xlu1 %7401  ;;  %10728 = vrsqrt.f32 %v7602_v37  ;;  %10076 = vxpose.xlu0.b32.cont [2/16] %v10075_v48, 128  ;;  %v7739_v21 = vadd.f32 %v16115_v58, %v7701_v44  ;;  %v7664_v18 = vmul.f32 %v10725_v3, %v7568_v51 }
 0x841   : > { %v7475_v11 = vmul.f32 %v16158_v14, %v16158_v14  ;;  %v7443_v10 = vmul.f32 0.0078125, %v7402_v13  ;;  %v7792_v13 = vmul.f32 0.01, %v7728_v52 }
 0x842   : > { %v7275_v46 = vpop.xlane.xlu0 %7274  ;;  %vm7771_vm12 = vcmp.gt.f32.partialorder %v7739_v21, 0.0  ;;  %v7803_v23 = vmul.f32 0.01, %v7739_v21  ;;  %v7702_v24 = vmul.f32 %v16100_v28, %v7664_v18  ;;  %v7570_v18 = vsub.f32 %v15925_v0, %v16143_v16 }
 0x843   : > { %v7507_v47 = vsub.f32 %v7443_v10, %v7475_v11  ;;  %v16172_v57 = vmul.f32 0.0078125, %v7275_v46  ;;  %v16207_v0 = vsel %vm7760_vm13, %v7728_v52, %v7792_v13  ;;  %v7693_v52 = vmul.f32 %v16100_v28, %v16067_v34 }
 0x844   : > { %v7404_v17 = vpop.xlane.xlu1 %7403  ;;  %v7835_v31 = vsel %vm7771_vm12, %v7739_v21, %v7803_v23  ;;  %v7740_v27 = vadd.f32 %v16115_v58, %v7702_v24 }
 0x845   : > { %v7539_v56 = vmax.f32 %v7507_v47, 0.0  ;;  %v7476_v8 = vmul.f32 %v16172_v57, %v16172_v57  ;;  %v7444_v36 = vmul.f32 0.0078125, %v7404_v17  ;;  %v10077_v45 = vpack.i.bf16 %v16147_v29, %v7835_v31 }
 0x846   : > { %v10727_v12 = vpop.eup %10726  ;;  %vm7772_vm10 = vcmp.gt.f32.partialorder %v7740_v27, 0.0  ;;  %v7804_v32 = vmul.f32 0.01, %v7740_v27  ;;  %v7793_v29 = vmul.f32 0.01, %v7729_v55 }
 0x847   : > { %v7277_v20 = vpop.xlane.xlu0 %7276  ;;  %v7603_v19 = vadd.f32 1e-05, %v7539_v56  ;;  %v7508_v6 = vsub.f32 %v7444_v36, %v7476_v8  ;;  %10078 = vxpose.xlu0.b32.cont [3/16] %v10077_v45, 128  ;;  %v7665_v11 = vmul.f32 %v10727_v12, %v7569_v53 }
 0x848   : > { %v16186_v63 = vmul.f32 0.0078125, %v7277_v20  ;;  %v7836_v3 = vsel %vm7772_vm10, %v7740_v27, %v7804_v32  ;;  %v16211_v31 = vsel %vm7761_vm15, %v7729_v55, %v7793_v29  ;;  %v7730_v27 = vadd.f32 %v16115_v58, %v7692_v38 }
 0x849   : > { %v7406_v30 = vpop.xlane.xlu1 %7405  ;;  %10730 = vrsqrt.f32 %v7603_v19  ;;  %v7540_v51 = vmax.f32 %v7508_v6, 0.0  ;;  %v10079_v25 = vpack.i.bf16 %v7820_v59, %v7836_v3  ;;  %v7703_v17 = vmul.f32 %v16100_v28, %v7665_v11 }
 0x84a   : > { %v7477_v37 = vmul.f32 %v16186_v63, %v16186_v63  ;;  %v7445_v48 = vmul.f32 0.0078125, %v7406_v30  ;;  %v10729_v21 = vpop.eup %10728  ;;  %v16203_v59 = vsel %vm7759_vm11, %v7727_v41, %v7791_v26  ;;  %v7571_v55 = vsub.f32 %v15934_v9, %v16158_v14 }
 0x84b   : > { %v7279_v44 = vpop.xlane.xlu0 %7278  ;;  %v7604_v10 = vadd.f32 1e-05, %v7540_v51  ;;  %10080 = vxpose.xlu0.b32.cont [4/16] %v10079_v25, 128  ;;  %v7741_v8 = vadd.f32 %v16115_v58, %v7703_v17  ;;  %v7666_v36 = vmul.f32 %v10729_v21, %v7570_v18  ;;  %v7794_v34 = vmul.f32 0.01, %v7730_v27 }
 0x84c   : > { %v16193_v46 = vmul.f32 0.0078125, %v7279_v44  ;;  %v7509_v22 = vsub.f32 %v7445_v48, %v7477_v37  ;;  %vm7762_vm3 = vcmp.gt.f32.partialorder %v7730_v27, 0.0  ;;  %v7572_v14 = vsub.f32 %v15937_v7, %v16172_v57 }
 0x84d   : > { %v7408_v47 = vpop.xlane.xlu1 %7407  ;;  %10732 = vrsqrt.f32 %v7604_v10  ;;  %vm7773_vm1 = vcmp.gt.f32.partialorder %v7741_v8, 0.0  ;;  %v7805_v41 = vmul.f32 0.01, %v7741_v8  ;;  %v7704_v26 = vmul.f32 %v16100_v28, %v7666_v36 }
 0x84e   : > { %v7478_v23 = vmul.f32 %v16193_v46, %v16193_v46  ;;  %v7446_v24 = vmul.f32 0.0078125, %v7408_v47  ;;  %v7541_v56 = vmax.f32 %v7509_v22, 0.0  ;;  %v16238_v7 = vmul.f32 0.0078125, %v16073_v62 }
 0x84f   : > { %v7281_v42 = vpop.xlane.xlu0 %7280  ;;  %v7837_v32 = vsel %vm7773_vm1, %v7741_v8, %v7805_v41  ;;  %v7742_v51 = vadd.f32 %v16115_v58, %v7704_v26  ;;  %v7694_v62 = vmul.f32 %v16100_v28, %v16071_v33 }
 0x850   : > { %v7510_v16 = vsub.f32 %v7446_v24, %v7478_v23  ;;  %v16209_v20 = vmul.f32 0.0078125, %v7281_v42  ;;  %v7605_v19 = vadd.f32 1e-05, %v7541_v56  ;;  %v10081_v3 = vpack.i.bf16 %v16175_v39, %v7837_v32 }
 0x851   : > { %v7410_v6 = vpop.xlane.xlu1 %7409  ;;  %vm7774_vm14 = vcmp.gt.f32.partialorder %v7742_v51, 0.0  ;;  %v7806_v29 = vmul.f32 0.01, %v7742_v51  ;;  %v7731_v24 = vadd.f32 %v16115_v58, %v7693_v52  ;;  %v7573_v52 = vsub.f32 %v15946_v50, %v16186_v63 }
 0x852   : > { %v7542_v45 = vmax.f32 %v7510_v16, 0.0  ;;  %v7479_v12 = vmul.f32 %v16209_v20, %v16209_v20  ;;  %v7447_v53 = vmul.f32 0.0078125, %v7410_v6  ;;  %10734 = vrsqrt.f32 %v7605_v19  ;;  %10082 = vxpose.xlu0.b32.cont [5/16] %v10081_v3, 128 }
 0x853   : > { %v7283_v30 = vpop.xlane.xlu0 %7282  ;;  %v10731_v37 = vpop.eup %10730  ;;  %v7838_v18 = vsel %vm7774_vm14, %v7742_v51, %v7806_v29  ;;  %v16235_v16 = vsel %vm7762_vm3, %v7730_v27, %v7794_v34  ;;  %v7795_v27 = vmul.f32 0.01, %v7731_v24  ;;  %vm7763_vm8 = vcmp.gt.f32.partialorder %v7731_v24, 0.0 }
 0x854   : > { %v7606_v13 = vadd.f32 1e-05, %v7542_v45  ;;  %v7511_v48 = vsub.f32 %v7447_v53, %v7479_v12  ;;  %v16222_v44 = vmul.f32 0.0078125, %v7283_v30  ;;  %v7667_v10 = vmul.f32 %v10731_v37, %v7571_v55 }
 0x855   : > { %v7412_v11 = vpop.xlane.xlu1 %7411  ;;  %v10083_v23 = vpack.i.bf16 %v16178_v49, %v7838_v18  ;;  %v7574_v37 = vsub.f32 %v15949_v35, %v16193_v46 }
 0x856   : > { %10736 = vrsqrt.f32 %v7606_v13  ;;  %v7543_v25 = vmax.f32 %v7511_v48, 0.0  ;;  %v7480_v9 = vmul.f32 %v16222_v44, %v16222_v44  ;;  %v7448_v38 = vmul.f32 0.0078125, %v7412_v11 }
 0x857   : > { %v7285_v21 = vpop.xlane.xlu0 %7284  ;;  %v7705_v39 = vmul.f32 %v16100_v28, %v7667_v10  ;;  %v10733_v22 = vpop.eup %10732  ;;  %10084 = vxpose.xlu0.b32.cont [6/16] %v10083_v23, 128 }
 0x858   : > { %v7607_v47 = vadd.f32 1e-05, %v7543_v25  ;;  %v16230_v17 = vmul.f32 0.0078125, %v7285_v21  ;;  %v7512_v56 = vsub.f32 %v7448_v38, %v7480_v9  ;;  %v7668_v36 = vmul.f32 %v10733_v22, %v7572_v14 }
 0x859   : > { %v7414_v42 = vpop.xlane.xlu1 %7413  ;;  %v7743_v8 = vadd.f32 %v16115_v58, %v7705_v39  ;;  %v16258_v14 = vadd.f32 %v16115_v58, %v7694_v62  ;;  %v7575_v38 = vsub.f32 %v15958_v4, %v16209_v20  ;;  %v16271_v4 = vsel %vm7763_vm8, %v7731_v24, %v7795_v27 }
 0x85a   : > { %10738 = vrsqrt.f32 %v7607_v47  ;;  %v7481_v57 = vmul.f32 %v16230_v17, %v16230_v17  ;;  %v7449_v19 = vmul.f32 0.0078125, %v7414_v42  ;;  %v7544_v6 = vmax.f32 %v7512_v56, 0.0 }
 0x85b   : > { %v7287_v49 = vpop.xlane.xlu0 %7286  ;;  %vm7775_vm7 = vcmp.gt.f32.partialorder %v7743_v8, 0.0  ;;  %v7807_v41 = vmul.f32 0.01, %v7743_v8  ;;  %v7706_v26 = vmul.f32 %v16100_v28, %v7668_v36  ;;  %v7468_v42 = vmul.f32 %v16238_v7, %v16238_v7 }
 0x85c   : > { %v7513_v45 = vsub.f32 %v7449_v19, %v7481_v57  ;;  %v16243_v12 = vmul.f32 0.0078125, %v7287_v49  ;;  %v10735_v53 = vpop.eup %10734  ;;  %v7608_v55 = vadd.f32 1e-05, %v7544_v6  ;;  %vm7764_vm0 = vcmp.gt.f32.partialorder %v16258_v14, 0.0 }
 0x85d   : > { %v7416_v30 = vpop.xlane.xlu1 %7415  ;;  %v7839_v32 = vsel %vm7775_vm7, %v7743_v8, %v7807_v41  ;;  %v7744_v51 = vadd.f32 %v16115_v58, %v7706_v26  ;;  %v7669_v25 = vmul.f32 %v10735_v53, %v7573_v52 }
 0x85e   : > { %v7545_v13 = vmax.f32 %v7513_v45, 0.0  ;;  %v7482_v48 = vmul.f32 %v16243_v12, %v16243_v12  ;;  %v7450_v3 = vmul.f32 0.0078125, %v7416_v30  ;;  %10740 = vrsqrt.f32 %v7608_v55 }
 0x85f   : > { %v7289_v11 = vpop.xlane.xlu0 %7288  ;;  %v10085_v33 = vpack.i.bf16 %v16203_v59, %v7839_v32  ;;  %vm7776_vm4 = vcmp.gt.f32.partialorder %v7744_v51, 0.0  ;;  %v7808_v29 = vmul.f32 0.01, %v7744_v51  ;;  %v7707_v47 = vmul.f32 %v16100_v28, %v7669_v25 }
 0x860   : > { %v10737_v50 = vpop.eup %10736  ;;  %v7609_v63 = vadd.f32 1e-05, %v7545_v13  ;;  %v7514_v10 = vsub.f32 %v7450_v3, %v7482_v48  ;;  %v16255_v34 = vmul.f32 0.0078125, %v7289_v11  ;;  %v7576_v30 = vsub.f32 %v15961_v2, %v16222_v44 }
 0x861   : > { %10086 = vxpose.xlu0.b32.cont [7/16] %v10085_v33, 128  ;;  %v7418_v9 = vpop.xlane.xlu1 %7417  ;;  %v7840_v35 = vsel %vm7776_vm4, %v7744_v51, %v7808_v29  ;;  %v7670_v46 = vmul.f32 %v10737_v50, %v7574_v37  ;;  %v7745_v19 = vadd.f32 %v16115_v58, %v7707_v47  ;;  %v7695_v37 = vmul.f32 %v16100_v28, %v16077_v5 }
 0x862   : > { %10742 = vrsqrt.f32 %v7609_v63  ;;  %v7546_v59 = vmax.f32 %v7514_v10, 0.0  ;;  %v7483_v21 = vmul.f32 %v16255_v34, %v16255_v34  ;;  %v7451_v18 = vmul.f32 0.0078125, %v7418_v9 }
 0x863   : > { %v7291_v39 = vpop.xlane.xlu0 %7290  ;;  %v10087_v22 = vpack.i.bf16 %v16207_v0, %v7840_v35  ;;  %v7708_v23 = vmul.f32 %v16100_v28, %v7670_v46  ;;  %vm7777_vm6 = vcmp.gt.f32.partialorder %v7745_v19, 0.0  ;;  %v7809_v24 = vmul.f32 0.01, %v7745_v19 }
 0x864   : > { %v10739_v56 = vpop.eup %10738  ;;  %v7610_v8 = vadd.f32 1e-05, %v7546_v59  ;;  %v16269_v36 = vmul.f32 0.0078125, %v7291_v39  ;;  %v7515_v20 = vsub.f32 %v7451_v18, %v7483_v21  ;;  %v7577_v33 = vsub.f32 %v15974_v40, %v16230_v17 }
 0x865   : > { %10088 = vxpose.xlu0.b32.cont [8/16] %v10087_v22, 128  ;;  %v7388_v57 = vpop.xlane.xlu1 %7387  ;;  %v7746_v0 = vadd.f32 %v16115_v58, %v7708_v23  ;;  %v7671_v6 = vmul.f32 %v10739_v56, %v7575_v38  ;;  %v7841_v51 = vsel %vm7777_vm6, %v7745_v19, %v7809_v24  ;;  %v7796_v5 = vmul.f32 0.01, %v16258_v14 }
 0x866   : > { %10744 = vrsqrt.f32 %v7610_v8  ;;  %v7484_v49 = vmul.f32 %v16269_v36, %v16269_v36  ;;  %v7436_v41 = vmul.f32 0.0078125, %v7388_v57  ;;  %v7547_v26 = vmax.f32 %v7515_v20, 0.0 }
 0x867   : > { %v7420_v45 = vpop.xlane.xlu0 %7419  ;;  %vm7778_vm2 = vcmp.gt.f32.partialorder %v7746_v0, 0.0  ;;  %v7810_v53 = vmul.f32 0.01, %v7746_v0  ;;  %v7709_v52 = vmul.f32 %v16100_v28, %v7671_v6  ;;  %v10089_v3 = vpack.i.bf16 %v16211_v31, %v7841_v51 }
 0x868   : > { %v7500_v27 = vsub.f32 %v7436_v41, %v7468_v42  ;;  %v7452_v62 = vmul.f32 0.0078125, %v7420_v45  ;;  %v10741_v55 = vpop.eup %10740  ;;  %v7611_v32 = vadd.f32 1e-05, %v7547_v26  ;;  %v7733_v40 = vadd.f32 %v16115_v58, %v7695_v37 }
 0x869   : > { %v7842_v11 = vsel %vm7778_vm2, %v7746_v0, %v7810_v53  ;;  %v7747_v29 = vadd.f32 %v16115_v58, %v7709_v52  ;;  %v7672_v50 = vmul.f32 %v10741_v55, %v7576_v30  ;;  %10090 = vxpose.xlu0.b32.cont [9/16] %v10089_v3, 128  ;;  %v7696_v17 = vmul.f32 %v16100_v28, %v16084_v61 }
 0x86a   : > { %v7532_v13 = vmax.f32 %v7500_v27, 0.0  ;;  %v7516_v48 = vsub.f32 %v7452_v62, %v7484_v49  ;;  %10746 = vrsqrt.f32 %v7611_v32  ;;  %v10091_v44 = vpack.i.bf16 %v16235_v16, %v7842_v11 }
 0x86b   : > { %vm7779_vm9 = vcmp.gt.f32.partialorder %v7747_v29, 0.0  ;;  %v7811_v25 = vmul.f32 0.01, %v7747_v29  ;;  %v7710_v31 = vmul.f32 %v16100_v28, %v7672_v50  ;;  %v7578_v46 = vsub.f32 %v15977_v15, %v16243_v12 }
 0x86c   : > { %v10743_v63 = vpop.eup %10742  ;;  %v7596_v10 = vadd.f32 1e-05, %v7532_v13  ;;  %v7548_v2 = vmax.f32 %v7516_v48, 0.0  ;;  %v7828_v39 = vsel %vm7764_vm0, %v16258_v14, %v7796_v5  ;;  %vm7765_vm12 = vcmp.gt.f32.partialorder %v7733_v40, 0.0 }
 0x86d   : > { %v7673_v9 = vmul.f32 %v10743_v63, %v7577_v33  ;;  %v7843_v38 = vsel %vm7779_vm9, %v7747_v29, %v7811_v25  ;;  %v7748_v16 = vadd.f32 %v16115_v58, %v7710_v31  ;;  %10092 = vxpose.xlu0.b32.cont [10/16] %v10091_v44, 128  ;;  %v7797_v15 = vmul.f32 0.01, %v7733_v40 }
 0x86e   : > { %10748 = vrsqrt.f32 %v7596_v10  ;;  %v7612_v35 = vadd.f32 1e-05, %v7548_v2  ;;  %v10093_v18 = vpack.i.bf16 %v16271_v4, %v7843_v38  ;;  %v7734_v12 = vadd.f32 %v16115_v58, %v7696_v17 }
 0x86f   : > { %v7711_v59 = vmul.f32 %v16100_v28, %v7673_v9  ;;  %vm7780_vm5 = vcmp.gt.f32.partialorder %v7748_v16, 0.0  ;;  %v7812_v22 = vmul.f32 0.01, %v7748_v16  ;;  %v7697_v23 = vmul.f32 %v16100_v28, %v16102_v1 }
 0x870   : > { %v10745_v21 = vpop.eup %10744  ;;  %10750 = vrsqrt.f32 %v7612_v35  ;;  %v7579_v14 = vsub.f32 %v15990_v43, %v16255_v34  ;;  %v7564_v0 = vsub.f32 %v15894_v60, %v16238_v7  ;;  %v7829_v6 = vsel %vm7765_vm12, %v7733_v40, %v7797_v15 }
 0x871   : > { %v7749_v61 = vadd.f32 %v16115_v58, %v7711_v59  ;;  %v7674_v47 = vmul.f32 %v10745_v21, %v7578_v46  ;;  %v7844_v56 = vsel %vm7780_vm5, %v7748_v16, %v7812_v22  ;;  %10094 = vxpose.xlu0.b32.cont [11/16] %v10093_v18, 128  ;;  %v7798_v1 = vmul.f32 0.01, %v7734_v12 }
 0x872   : > { %v10095_v4 = vpack.i.bf16 %v7828_v39, %v7844_v56  ;;  %v7735_v26 = vadd.f32 %v16115_v58, %v7697_v23  ;;  %vm7766_vm13 = vcmp.gt.f32.partialorder %v7734_v12, 0.0  ;;  %v7580_v34 = vsub.f32 %v16000_v54, %v16269_v36 }
 0x873   : > { %vm7781_vm11 = vcmp.gt.f32.partialorder %v7749_v61, 0.0  ;;  %v7813_v42 = vmul.f32 0.01, %v7749_v61  ;;  %v7712_v8 = vmul.f32 %v16100_v28, %v7674_v47  ;;  %v7830_v7 = vsel %vm7766_vm13, %v7734_v12, %v7798_v1 }
 0x874   : > { %v10747_v20 = vpop.eup %10746  ;;  %v7799_v52 = vmul.f32 0.01, %v7735_v26  ;;  %vm7767_vm15 = vcmp.gt.f32.partialorder %v7735_v26, 0.0 }
 0x875   : > { %v7845_v57 = vsel %vm7781_vm11, %v7749_v61, %v7813_v42  ;;  %v7750_v19 = vadd.f32 %v16115_v58, %v7712_v8  ;;  %v7675_v49 = vmul.f32 %v10747_v20, %v7579_v14  ;;  %10096 = vxpose.xlu0.b32.cont [12/16] %v10095_v4, 128 }
 0x876   : > { %v10097_v24 = vpack.i.bf16 %v7829_v6, %v7845_v57  ;;  %v7831_v36 = vsel %vm7767_vm15, %v7735_v26, %v7799_v52 }
 0x877   : > { %vm7782_vm10 = vcmp.gt.f32.partialorder %v7750_v19, 0.0  ;;  %v7814_v41 = vmul.f32 0.01, %v7750_v19  ;;  %v7713_v43 = vmul.f32 %v16100_v28, %v7675_v49 }
 0x878   : > { %v10749_v45 = vpop.eup %10748 }
 0x879   : > { %v7846_v27 = vsel %vm7782_vm10, %v7750_v19, %v7814_v41  ;;  %v7660_v62 = vmul.f32 %v10749_v45, %v7564_v0  ;;  %v7751_v60 = vadd.f32 %v16115_v58, %v7713_v43  ;;  %10098 = vxpose.xlu0.b32.cont [13/16] %v10097_v24, 128 }
 0x87a   : > { %v10751_v53 = vpop.eup %10750  ;;  %v10099_v32 = vpack.i.bf16 %v7830_v7, %v7846_v27 }
 0x87b   : > { %v7676_v55 = vmul.f32 %v10751_v53, %v7580_v34  ;;  %v7698_v30 = vmul.f32 %v16100_v28, %v7660_v62  ;;  %vm7783_vm1 = vcmp.gt.f32.partialorder %v7751_v60, 0.0  ;;  %v7815_v51 = vmul.f32 0.01, %v7751_v60 }
 0x87d   : > { %v7714_v37 = vmul.f32 %v16100_v28, %v7676_v55  ;;  %v7736_v13 = vadd.f32 %v16115_v58, %v7698_v30  ;;  %v7847_v54 = vsel %vm7783_vm1, %v7751_v60, %v7815_v51  ;;  %10100 = vxpose.xlu0.b32.cont [14/16] %v10099_v32, 128 }
 0x87e   : > { %v10101_v11 = vpack.i.bf16 %v7831_v36, %v7847_v54 }
 0x87f   : > { %v7752_v48 = vadd.f32 %v16115_v58, %v7714_v37  ;;  %v7800_v3 = vmul.f32 0.01, %v7736_v13  ;;  %vm7768_vm14 = vcmp.gt.f32.partialorder %v7736_v13, 0.0 }
 0x881   : > { %vm7784_vm3 = vcmp.gt.f32.partialorder %v7752_v48, 0.0  ;;  %v7816_v33 = vmul.f32 0.01, %v7752_v48  ;;  %v7832_v29 = vsel %vm7768_vm14, %v7736_v13, %v7800_v3  ;;  %10102 = vxpose.xlu0.b32.cont [15/16] %v10101_v11, 128 }
 0x883   : > { %v7848_v50 = vsel %vm7784_vm3, %v7752_v48, %v7816_v33 }
 0x884   : > { %v10103_v63 = vpack.i.bf16 %v7832_v29, %v7848_v50 }
 0x886   : > { %10104 = vxpose.xlu0.b32.end [16/16] %v10103_v63, 128 }
 0x8ca   : > { %v10105_v10 = vpop.trf.xlu0 }
 0x8cb   : > { %v10109_v2 = vunpack.i.h.bf16 %v10105_v10  ;;  %v10106_v28 = vunpack.i.l.bf16 %v10105_v10  ;;  %v10495_v10 = vld [vmem:[%s17624_s20] sm:$0x3f]   ;;  %s9449_s20 = sld [smem:[#allocation8 + $0x2]] }
 0x8ce   : > { %v10110_v44 = vpop.trf.xlu0 }
 0x8cf   : > { %v10114_v5 = vunpack.i.h.bf16 %v10110_v44  ;;  %v10111_v25 = vunpack.i.l.bf16 %v10110_v44  ;;  %v7996_v44 = vstv %s7995_s16  ;;  %s9453_s16 = sld [smem:[#allocation8 + $0x3]] }
 0x8d1   : > { %v7916_v31 = vpack.c.bf16 %v10111_v25, %v10106_v28  ;;  %v7915_v9 = vpack.c.bf16 %v10114_v5, %v10109_v2  ;;  %v10959_v2 = vmov 0.0   ;;  %v9442_v28 = vld [vmem:[%s640_s23 + $0x1] ss:$2 sm:$0x3] }
 0x8d2   : > { %v10115_v58 = vpop.trf.xlu0  ;;  %7987 = vst [vmem:[%s16327_s27] sm:$0xff] %v10959_v2  ;;  %7988 = vst [vmem:[%s16327_s27 + $0x8] sm:$0xff] %v10959_v2  ;;  %v7997_v5 = vmul.f32 %v9442_v28, %v7996_v44  ;;  %v7980_v25 = vld [vmem:[%s640_s23] ss:$2 sm:$0x3]  ;;  %s9465_s23 = sld [smem:[#allocation8 + $0x6]] }
 0x8d3   : > { %7937 = vmatprep.subr.bf16.mxu1 %v7916_v31  ;;  %v10119_v35 = vunpack.i.h.bf16 %v10115_v58  ;;  %v10116_v40 = vunpack.i.l.bf16 %v10115_v58  ;;  %7989 = vst [vmem:[%s16327_s27 + $0x10] sm:$0xff] %v10959_v2  ;;  %7990 = vst [vmem:[%s16327_s27 + $0x18] sm:$0xff] %v10959_v2  ;;  %v17626_v31 = vld [vmem:[#allocation23_spill] sm:$0xff]  ;;  %v7982_v58 = vmul.f32 0.09090909, %v7980_v25 }
 0x8d4   : > { %7938 = vmatpush1.bf16.msra.mxu1 %v7915_v9  ;;  %v8002_v9 = vrot.slane %v7997_v5, %v17626_v31 }
 0x8d6   : > { %v10120_v17 = vpop.trf.xlu0 }
 0x8d7   : > { %v10124_v46 = vunpack.i.h.bf16 %v10120_v17  ;;  %v10121_v38 = vunpack.i.l.bf16 %v10120_v17 }
 0x8d9   : > { %v7918_v16 = vpack.c.bf16 %v10121_v38, %v10116_v40  ;;  %v7917_v59 = vpack.c.bf16 %v10124_v46, %v10119_v35  ;;  %v17627_v35 = vld [vmem:[#allocation24_spill] sm:$0xff]  ;;  %v8012_v46 = vstv %s9443_s24  ;;  %s9466_s24 = sld [smem:[#allocation8 + $0x86]] }
 0x8da   : > { %v10125_v21 = vpop.trf.xlu0  ;;  %v8006_v40 = vrot.slane %v7997_v5, %v17627_v35 }
 0x8db   : > { %7939 = vmatprep.subr.bf16.mxu1 %v7918_v16  ;;  %v10129_v18 = vunpack.i.h.bf16 %v10125_v21  ;;  %v10126_v39 = vunpack.i.l.bf16 %v10125_v21 }
 0x8dc   : > { %7940 = vmatpush1.bf16.msra.mxu1 %v7917_v59  ;;  %v7983_v59 = vmul.f32 11.0, %v7982_v58 }
 0x8de   : > { %v10130_v22 = vpop.trf.xlu0 }
 0x8df   : > { %v10134_v61 = vunpack.i.h.bf16 %v10130_v22  ;;  %v10131_v47 = vunpack.i.l.bf16 %v10130_v22 }
 0x8e1   : > { %v7920_v15 = vpack.c.bf16 %v10131_v47, %v10126_v39  ;;  %v7919_v12 = vpack.c.bf16 %v10134_v61, %v10129_v18  ;;  %v7991_v61 = vsub.f32 1.0, %v9442_v28  ;;  %v7993_v47 = vsub.f32 0.0, %v9442_v28 }
 0x8e2   : > { %v10135_v23 = vpop.trf.xlu0 }
 0x8e3   : > { %7941 = vmatprep.subr.bf16.mxu1 %v7920_v15  ;;  %v10139_v56 = vunpack.i.h.bf16 %v10135_v23  ;;  %v10136_v42 = vunpack.i.l.bf16 %v10135_v23  ;;  %v7992_v23 = vmin.f32 %v7991_v61, 0.4 }
 0x8e4   : > { %7942 = vmatpush1.bf16.msra.mxu1 %v7919_v12  ;;  %v9991_v12 = vtrunc.f32 %v7983_v59 }
 0x8e6   : > { %v10140_v8 = vpop.trf.xlu0 }
 0x8e7   : > { %v10144_v14 = vunpack.i.h.bf16 %v10140_v8  ;;  %v10141_v4 = vunpack.i.l.bf16 %v10140_v8 }
 0x8e9   : > { %v7922_v20 = vpack.c.bf16 %v10141_v4, %v10136_v42  ;;  %v7921_v57 = vpack.c.bf16 %v10144_v14, %v10139_v56  ;;  %v7994_v56 = vmax.f32 %v7993_v47, -0.4  ;;  %v16352_v42 = vcvt.f32.s32 %v9991_v12 }
 0x8ea   : > { %v10145_v19 = vpop.trf.xlu0 }
 0x8eb   : > { %7943 = vmatprep.subr.bf16.mxu1 %v7922_v20  ;;  %v10149_v0 = vunpack.i.h.bf16 %v10145_v19  ;;  %v10146_v6 = vunpack.i.l.bf16 %v10145_v19  ;;  %v8024_v8 = vsub.f32 %v7992_v23, %v7994_v56  ;;  %vm8015_vm7 = vcmp.le.s32.totalorder %v16352_v42, 1 }
 0x8ec   : > { %7944 = vmatpush1.bf16.msra.mxu1 %v7921_v57  ;;  %v9444_v19 = vsel %vm8015_vm7, 1.0, %v10959_v2  ;;  %vm8113_vm8 = vcmp.le.s32.totalorder %v16352_v42, 2  ;;  %vm8209_vm0 = vcmp.le.s32.totalorder %v16352_v42, 3  ;;  %vm8305_vm6 = vcmp.le.s32.totalorder %v16352_v42, 4 }
 0x8ed   : > { %v8029_v57 = vrot.slane %v8024_v8, %v17626_v31  ;;  %vm8402_vm2 = vcmp.le.s32.totalorder %v16352_v42, 5  ;;  %vm8497_vm9 = vcmp.le.s32.totalorder %v16352_v42, 6  ;;  %vm8593_vm5 = vcmp.le.s32.totalorder %v16352_v42, 7 }
 0x8ee   : > { %v10150_v49 = vpop.trf.xlu0  ;;  %vm8689_vm12 = vcmp.le.s32.totalorder %v16352_v42, 8  ;;  %vm8786_vm11 = vcmp.le.s32.totalorder %v16352_v42, 9  ;;  %vm8881_vm10 = vcmp.le.s32.totalorder %v16352_v42, 10  ;;  %vm8977_vm13 = vcmp.le.s32.totalorder %v16352_v42, 11 }
 0x8ef   : > { %v10154_v1 = vunpack.i.h.bf16 %v10150_v49  ;;  %v10151_v41 = vunpack.i.l.bf16 %v10150_v49  ;;  %v10960_v49 = vmov 1966171168  }
 0x8f1   : > { %v7924_v26 = vpack.c.bf16 %v10151_v41, %v10146_v6  ;;  %v7923_v45 = vpack.c.bf16 %v10154_v1, %v10149_v0  ;;  %v8033_v6 = vrot.slane %v8024_v8, %v17627_v35  ;;  %v8068_v1 = vunpack.c.l.s4 %v10960_v49 }
 0x8f2   : > { %v10155_v24 = vpop.trf.xlu0 }
 0x8f3   : > { %7945 = vmatprep.subr.bf16.mxu1 %v7924_v26  ;;  %v10159_v43 = vunpack.i.h.bf16 %v10155_v24  ;;  %v10156_v34 = vunpack.i.l.bf16 %v10155_v24  ;;  %v8042_v26 = vrot.slane %v7994_v56, %v17626_v31  ;;  %v8046_v24 = vrot.slane %v7994_v56, %v17627_v35 }
 0x8f4   : > { %7946 = vmatpush1.bf16.msra.mxu1 %v7923_v45 }
 0x8f6   : > { %v10160_v27 = vpop.trf.xlu0 }
 0x8f7   : > { %v10164_v62 = vunpack.i.h.bf16 %v10160_v27  ;;  %v10161_v53 = vunpack.i.l.bf16 %v10160_v27 }
 0x8f9   : > { %v7926_v60 = vpack.c.bf16 %v10161_v53, %v10156_v34  ;;  %v7925_v7 = vpack.c.bf16 %v10164_v62, %v10159_v43  ;;  %v8055_v34 = vrot.slane %v9444_v19, %v17626_v31  ;;  %v8059_v62 = vrot.slane %v9444_v19, %v17627_v35 }
 0x8fa   : > { %v10165_v52 = vpop.trf.xlu0  ;;  %v8069_v53 = vunpack.c.0.s8 %v8068_v1 }
 0x8fb   : > { %7947 = vmatprep.subr.bf16.mxu1 %v7926_v60  ;;  %v10169_v55 = vunpack.i.h.bf16 %v10165_v52  ;;  %v10166_v30 = vunpack.i.l.bf16 %v10165_v52 }
 0x8fc   : > { %7948 = vmatpush1.bf16.msra.mxu1 %v7925_v7 }
 0x8fe   : > { %v10170_v32 = vpop.trf.xlu0 }
 0x8ff   : > { %v10174_v51 = vunpack.i.h.bf16 %v10170_v32  ;;  %v10171_v37 = vunpack.i.l.bf16 %v10170_v32 }
 0x901   : > { %v7928_v13 = vpack.c.bf16 %v10171_v37, %v10166_v30  ;;  %v7927_v54 = vpack.c.bf16 %v10174_v51, %v10169_v55  ;;  %v17628_v30 = vld [vmem:[#allocation22_spill] sm:$0xff] }
 0x902   : > { %v10175_v36 = vpop.trf.xlu0  ;;  %v16363_v32 = vsub.s32 %v8069_v53, %v17628_v30 }
 0x903   : > { %7949 = vmatprep.subr.bf16.mxu1 %v7928_v13  ;;  %v10179_v48 = vunpack.i.h.bf16 %v10175_v36  ;;  %v10176_v3 = vunpack.i.l.bf16 %v10175_v36  ;;  %v17629_v13 = vlaneseq }
 0x904   : > { %7950 = vmatpush1.bf16.msra.mxu1 %v7927_v54 }
 0x905   : > { %vm16367_vm4 = vcmp.lt.s32.totalorder %v17629_v13, 256 }
 0x906   : > { %v10180_v11 = vpop.trf.xlu0 }
 0x907   : > { %v10184_v33 = vunpack.i.h.bf16 %v10180_v11  ;;  %v10181_v29 = vunpack.i.l.bf16 %v10180_v11 }
 0x909   : > { %v7929_v50 = vpack.c.bf16 %v10184_v33, %v10179_v48  ;;  %v7930_v63 = vpack.c.bf16 %v10181_v29, %v10176_v3  ;;  %v8094_v48 = vstv %s9445_s21  ;;  %s9469_s21 = sld [smem:[#allocation8 + $0x7]] }
 0x90b   : > { %7951 = vmatprep.subr.bf16.mxu1 %v7930_v63 }
 0x90c   : > { %7952 = vmatpush1.bf16.msra.mxu1 %v7929_v50  ;;  %v8110_v50 = vstv %s9446_s25  ;;  %s9470_s25 = sld [smem:[#allocation8 + $0x87]] }
 0x90f   : > { %7970 = vmatmul.mubr.bf16.vlgmr.msra.gmra.mrb[224].mxu1 %v10495_v10 }
 0x9e2   : > { %v16342_v17 = vpop.f32.mrb[224].mxu1 }
 0x9e3   : > { %v8009_v38 = vadd.f32 %v8002_v9, %v16342_v17  ;;  %v16345_v16 = vpop.f32.mrb[225].mxu1 }
 0x9e4   : > { %v8010_v21 = vadd.f32 %v8006_v40, %v16345_v16  ;;  %v16348_v18 = vpop.f32.mrb[226].mxu1 }
 0x9e5   : > { %v8013_v39 = vadd.f32 %v8012_v46, %v8009_v38  ;;  %v16350_v22 = vpop.f32.mrb[227].mxu1 }
 0x9e6   : > { %v8014_v15 = vadd.f32 %v8012_v46, %v8010_v21  ;;  %v9447_v21 = vsel %vm8113_vm8, 1.0, %v10959_v2 }
 0x9e7   : > { %10752 = vtanh.f32 %v8013_v39  ;;  %v8153_v8 = vrot.slane %v9447_v21, %v17626_v31 }
 0x9e8   : > { %10754 = vtanh.f32 %v8014_v15 }
 0x9f1   : > { %v10753_v14 = vpop.eup %10752 }
 0x9f2   : > { %v10755_v4 = vpop.eup %10754  ;;  %v8020_v20 = vadd.f32 1.0, %v10753_v14 }
 0x9f3   : > { %v8021_v0 = vadd.f32 1.0, %v10755_v4 }
 0x9f4   : > { %v8022_v41 = vmul.f32 0.5, %v8020_v20  ;;  %v8157_v20 = vrot.slane %v9447_v21, %v17627_v35 }
 0x9f5   : > { %v8023_v45 = vmul.f32 0.5, %v8021_v0 }
 0x9f6   : > { %v8036_v43 = vmul.f32 %v8029_v57, %v8022_v41 }
 0x9f7   : > { %v8037_v27 = vmul.f32 %v8033_v6, %v8023_v45  ;;  %v8190_v45 = vstv %s9449_s20  ;;  %s9473_s20 = sld [smem:[#allocation8 + $0x8]] }
 0x9f8   : > { %v8049_v60 = vadd.f32 %v8042_v26, %v8036_v43 }
 0x9f9   : > { %v8050_v7 = vadd.f32 %v8046_v24, %v8037_v27 }
 0x9fa   : > { %v8062_v52 = vmul.f32 %v8055_v34, %v8049_v60 }
 0x9fb   : > { %v8063_v55 = vmul.f32 %v8059_v62, %v8050_v7  ;;  %v8206_v62 = vstv %s9450_s29  ;;  %s9474_s29 = sld [smem:[#allocation8 + $0x88]] }
 0x9fd   : > { %v8066_v51 = vcombine.low %v8062_v52, %v8063_v55 }
 0x9ff   : > { %v8073_v37 = vrot.slane %v8066_v51, %v16363_v32 }
 0xa01   : > { %v8080_v36 = vrot.slane %v8073_v37, %v16363_v32 }
 0xa03   : > { %v8088_v3 = vadd.f32 %v9442_v28, %v8080_v36  ;;  %8086 = vst.msk [vmem:[%s16327_s27] ss:$8 sm:$0x3] %vm16367_vm4, %v8080_v36 }
 0xa05   : > { %v8095_v11 = vmul.f32 %v8094_v48, %v8088_v3  ;;  %v8089_v25 = vsub.f32 1.0, %v8088_v3  ;;  %v8091_v9 = vsub.f32 0.0, %v8088_v3 }
 0xa07   : > { %v8100_v33 = vrot.slane %v8095_v11, %v17626_v31  ;;  %v8104_v29 = vrot.slane %v8095_v11, %v17627_v35  ;;  %v8090_v28 = vmin.f32 %v8089_v25, 0.4  ;;  %v8092_v58 = vmax.f32 %v8091_v9, -0.4 }
 0xa08   : > { %v9451_v11 = vsel %vm8209_vm0, 1.0, %v10959_v2 }
 0xa09   : > { %v8107_v63 = vadd.f32 %v8100_v33, %v16342_v17  ;;  %v8108_v10 = vadd.f32 %v8104_v29, %v16345_v16  ;;  %v8122_v40 = vsub.f32 %v8090_v28, %v8092_v58  ;;  %v8140_v56 = vrot.slane %v8092_v58, %v17626_v31 }
 0xa0a   : > { %v8144_v4 = vrot.slane %v8092_v58, %v17627_v35  ;;  %v8249_v25 = vrot.slane %v9451_v11, %v17626_v31  ;;  %v8253_v58 = vrot.slane %v9451_v11, %v17627_v35 }
 0xa0b   : > { %v8111_v44 = vadd.f32 %v8110_v50, %v8107_v63  ;;  %v8112_v5 = vadd.f32 %v8110_v50, %v8108_v10  ;;  %v8127_v47 = vrot.slane %v8122_v40, %v17626_v31  ;;  %v8131_v12 = vrot.slane %v8122_v40, %v17627_v35 }
 0xa0d   : > { %10756 = vtanh.f32 %v8111_v44 }
 0xa0e   : > { %10758 = vtanh.f32 %v8112_v5 }
 0xa17   : > { %v10757_v46 = vpop.eup %10756 }
 0xa18   : > { %v10759_v38 = vpop.eup %10758  ;;  %v8118_v59 = vadd.f32 1.0, %v10757_v46 }
 0xa19   : > { %v8119_v39 = vadd.f32 1.0, %v10759_v38 }
 0xa1a   : > { %v8120_v61 = vmul.f32 0.5, %v8118_v59 }
 0xa1b   : > { %v8121_v15 = vmul.f32 0.5, %v8119_v39 }
 0xa1c   : > { %v8134_v23 = vmul.f32 %v8127_v47, %v8120_v61 }
 0xa1d   : > { %v8135_v14 = vmul.f32 %v8131_v12, %v8121_v15  ;;  %v8286_v15 = vstv %s9453_s16  ;;  %s9477_s16 = sld [smem:[#allocation8 + $0x9]] }
 0xa1e   : > { %v8147_v57 = vadd.f32 %v8140_v56, %v8134_v23 }
 0xa1f   : > { %v8148_v19 = vadd.f32 %v8144_v4, %v8135_v14  ;;  %v8302_v14 = vstv %s9454_s28  ;;  %s9478_s28 = sld [smem:[#allocation8 + $0x89]] }
 0xa20   : > { %v8160_v0 = vmul.f32 %v8153_v8, %v8147_v57 }
 0xa21   : > { %v8161_v6 = vmul.f32 %v8157_v20, %v8148_v19 }
 0xa23   : > { %v8164_v49 = vcombine.low %v8160_v0, %v8161_v6 }
 0xa25   : > { %v8171_v1 = vrot.slane %v8164_v49, %v16363_v32 }
 0xa27   : > { %v8172_v41 = vcombine.high %v8171_v1, %v8171_v1 }
 0xa29   : > { %v8179_v26 = vrot.slane %v8172_v41, %v16363_v32 }
 0xa2b   : > { %v8184_v24 = vadd.f32 %v8179_v26, %v8088_v3  ;;  %9448 = vst.msk [vmem:[%s16327_s27 + $0x1] ss:$8 sm:$0x3] %vm16367_vm4, %v8179_v26 }
 0xa2d   : > { %v8191_v43 = vmul.f32 %v8190_v45, %v8184_v24  ;;  %v8185_v55 = vsub.f32 1.0, %v8184_v24  ;;  %v8187_v30 = vsub.f32 0.0, %v8184_v24 }
 0xa2f   : > { %v8196_v34 = vrot.slane %v8191_v43, %v17626_v31  ;;  %v8200_v27 = vrot.slane %v8191_v43, %v17627_v35  ;;  %v8186_v51 = vmin.f32 %v8185_v55, 0.4  ;;  %v8188_v37 = vmax.f32 %v8187_v30, -0.4 }
 0xa30   : > { %v9455_v43 = vsel %vm8305_vm6, 1.0, %v10959_v2 }
 0xa31   : > { %v8203_v53 = vadd.f32 %v8196_v34, %v16342_v17  ;;  %v8204_v60 = vadd.f32 %v8200_v27, %v16345_v16  ;;  %v8218_v13 = vsub.f32 %v8186_v51, %v8188_v37  ;;  %v8236_v5 = vrot.slane %v8188_v37, %v17626_v31 }
 0xa32   : > { %v8240_v28 = vrot.slane %v8188_v37, %v17627_v35  ;;  %v8345_v55 = vrot.slane %v9455_v43, %v17626_v31  ;;  %v8349_v37 = vrot.slane %v9455_v43, %v17627_v35 }
 0xa33   : > { %v8207_v7 = vadd.f32 %v8206_v62, %v8203_v53  ;;  %v8208_v52 = vadd.f32 %v8206_v62, %v8204_v60  ;;  %v8223_v50 = vrot.slane %v8218_v13, %v17626_v31  ;;  %v8227_v10 = vrot.slane %v8218_v13, %v17627_v35 }
 0xa35   : > { %10760 = vtanh.f32 %v8207_v7 }
 0xa36   : > { %10762 = vtanh.f32 %v8208_v52 }
 0xa3f   : > { %v10761_v36 = vpop.eup %10760 }
 0xa40   : > { %v10763_v48 = vpop.eup %10762  ;;  %v8214_v3 = vadd.f32 1.0, %v10761_v36 }
 0xa41   : > { %v8215_v33 = vadd.f32 1.0, %v10763_v48 }
 0xa42   : > { %v8216_v29 = vmul.f32 0.5, %v8214_v3 }
 0xa43   : > { %v8217_v63 = vmul.f32 0.5, %v8215_v33 }
 0xa44   : > { %v8230_v44 = vmul.f32 %v8223_v50, %v8216_v29 }
 0xa45   : > { %v8231_v9 = vmul.f32 %v8227_v10, %v8217_v63  ;;  %v8383_v10 = vstv %s9457_s2  ;;  %s9481_s2 = sld [smem:[#allocation8 + $0xa]] }
 0xa46   : > { %v8243_v40 = vadd.f32 %v8236_v5, %v8230_v44 }
 0xa47   : > { %v8244_v46 = vadd.f32 %v8240_v28, %v8231_v9  ;;  %v8399_v28 = vstv %s9458_s22  ;;  %s9482_s22 = sld [smem:[#allocation8 + $0x8a]] }
 0xa48   : > { %v8256_v38 = vmul.f32 %v8249_v25, %v8243_v40 }
 0xa49   : > { %v8257_v59 = vmul.f32 %v8253_v58, %v8244_v46 }
 0xa4b   : > { %v8260_v21 = vcombine.low %v8256_v38, %v8257_v59 }
 0xa4d   : > { %v8267_v39 = vrot.slane %v8260_v21, %v16363_v32 }
 0xa4f   : > { %v8274_v61 = vrot.slane %v8267_v39, %v16363_v32 }
 0xa51   : > { %v8275_v47 = vcombine.high %v8274_v61, %v8274_v61 }
 0xa53   : > { %v8280_v12 = vadd.f32 %v8275_v47, %v8184_v24  ;;  %9452 = vst.msk [vmem:[%s16327_s27 + $0x2] ss:$8 sm:$0x3] %vm16367_vm4, %v8275_v47 }
 0xa55   : > { %v8287_v23 = vmul.f32 %v8286_v15, %v8280_v12  ;;  %v8281_v0 = vsub.f32 1.0, %v8280_v12  ;;  %v8283_v6 = vsub.f32 0.0, %v8280_v12 }
 0xa57   : > { %v8292_v56 = vrot.slane %v8287_v23, %v17626_v31  ;;  %v8296_v8 = vrot.slane %v8287_v23, %v17627_v35  ;;  %v8282_v49 = vmin.f32 %v8281_v0, 0.4  ;;  %v8284_v1 = vmax.f32 %v8283_v6, -0.4 }
 0xa59   : > { %v8299_v4 = vadd.f32 %v8292_v56, %v16342_v17  ;;  %v8300_v20 = vadd.f32 %v8296_v8, %v16345_v16  ;;  %v8314_v41 = vsub.f32 %v8282_v49, %v8284_v1  ;;  %v8332_v52 = vrot.slane %v8284_v1, %v17626_v31 }
 0xa5a   : > { %v8336_v51 = vrot.slane %v8284_v1, %v17627_v35  ;;  %v9459_v56 = vsel %vm8402_vm2, 1.0, %v10959_v2 }
 0xa5b   : > { %v8303_v57 = vadd.f32 %v8302_v14, %v8299_v4  ;;  %v8304_v19 = vadd.f32 %v8302_v14, %v8300_v20  ;;  %v8319_v62 = vrot.slane %v8314_v41, %v17626_v31  ;;  %v8323_v60 = vrot.slane %v8314_v41, %v17627_v35 }
 0xa5c   : > { %v8442_v6 = vrot.slane %v9459_v56, %v17626_v31  ;;  %v8446_v41 = vrot.slane %v9459_v56, %v17627_v35 }
 0xa5d   : > { %10764 = vtanh.f32 %v8303_v57 }
 0xa5e   : > { %10766 = vtanh.f32 %v8304_v19 }
 0xa67   : > { %v10765_v26 = vpop.eup %10764 }
 0xa68   : > { %v10767_v45 = vpop.eup %10766  ;;  %v8310_v24 = vadd.f32 1.0, %v10765_v26 }
 0xa69   : > { %v8311_v34 = vadd.f32 1.0, %v10767_v45 }
 0xa6a   : > { %v8312_v27 = vmul.f32 0.5, %v8310_v24 }
 0xa6b   : > { %v8313_v53 = vmul.f32 0.5, %v8311_v34 }
 0xa6c   : > { %v8326_v7 = vmul.f32 %v8319_v62, %v8312_v27 }
 0xa6d   : > { %v8327_v30 = vmul.f32 %v8323_v60, %v8313_v53  ;;  %v8478_v53 = vstv %s9461_s30  ;;  %s17632_s30 = sld [smem:[#allocation20_spill]] }
 0xa6e   : > { %v8339_v13 = vadd.f32 %v8332_v52, %v8326_v7 }
 0xa6f   : > { %v8340_v36 = vadd.f32 %v8336_v51, %v8327_v30  ;;  %v8494_v30 = vstv %s9462_s1  ;;  %s9492_s1 = sshll.u32 %s11081_s0, 8  ;;  %s16559_s0 = scalar_lea.sflag [#allocation4], %s627_s26 }
 0xa70   : > { %v8352_v48 = vmul.f32 %v8345_v55, %v8339_v13 }
 0xa71   : > { %v8353_v3 = vmul.f32 %v8349_v37, %v8340_v36 }
 0xa73   : > { %v8356_v11 = vcombine.low %v8352_v48, %v8353_v3  ;;  %p17634_p9 = scmp.ne.s32.totalorder %s17632_s30, 0 }
 0xa75   : > { %v8363_v33 = vrot.slane %v8356_v11, %v16363_v32 }
 0xa77   : > { %v8364_v29 = vcombine.high %v8363_v33, %v8363_v33 }
 0xa79   : > { %v8371_v50 = vrot.slane %v8364_v29, %v16363_v32 }
 0xa7b   : > { %v8372_v63 = vcombine.high %v8371_v50, %v8371_v50 }
 0xa7d   : > { %v8377_v44 = vadd.f32 %v8372_v63, %v8280_v12  ;;  %9456 = vst.msk [vmem:[%s16327_s27 + $0x3] ss:$8 sm:$0x3] %vm16367_vm4, %v8372_v63 }
 0xa7f   : > { %v8384_v5 = vmul.f32 %v8383_v10, %v8377_v44  ;;  %v8378_v59 = vsub.f32 1.0, %v8377_v44  ;;  %v8380_v21 = vsub.f32 0.0, %v8377_v44 }
 0xa81   : > { %v8389_v25 = vrot.slane %v8384_v5, %v17626_v31  ;;  %v8393_v9 = vrot.slane %v8384_v5, %v17627_v35  ;;  %v8379_v39 = vmin.f32 %v8378_v59, 0.4  ;;  %v8381_v61 = vmax.f32 %v8380_v21, -0.4 }
 0xa83   : > { %v8396_v58 = vadd.f32 %v8389_v25, %v16342_v17  ;;  %v8397_v40 = vadd.f32 %v8393_v9, %v16345_v16  ;;  %v8411_v47 = vsub.f32 %v8379_v39, %v8381_v61  ;;  %v8429_v0 = vrot.slane %v8381_v61, %v17626_v31 }
 0xa84   : > { %v8433_v1 = vrot.slane %v8381_v61, %v17627_v35 }
 0xa85   : > { %v8400_v46 = vadd.f32 %v8399_v28, %v8396_v58  ;;  %v8401_v38 = vadd.f32 %v8399_v28, %v8397_v40  ;;  %v8416_v4 = vrot.slane %v8411_v47, %v17626_v31  ;;  %v8420_v57 = vrot.slane %v8411_v47, %v17627_v35 }
 0xa87   : > { %10768 = vtanh.f32 %v8400_v46 }
 0xa88   : > { %10770 = vtanh.f32 %v8401_v38 }
 0xa91   : > { %v10769_v15 = vpop.eup %10768 }
 0xa92   : > { %v10771_v12 = vpop.eup %10770  ;;  %v8407_v23 = vadd.f32 1.0, %v10769_v15 }
 0xa93   : > { %v8408_v8 = vadd.f32 1.0, %v10771_v12 }
 0xa94   : > { %v8409_v14 = vmul.f32 0.5, %v8407_v23 }
 0xa95   : > { %v8410_v20 = vmul.f32 0.5, %v8408_v8 }
 0xa96   : > { %v8423_v19 = vmul.f32 %v8416_v4, %v8409_v14  ;;  %v8574_v4 = vstv %s9465_s23  ;;  %s9069_s23 = sshll.u32 %s16327_s27, 4  ;;  %s16552_s23 = int_to_ptr.vmem [resolvable:$true] %s9069_s23 }
 0xa97   : > { %v8424_v49 = vmul.f32 %v8420_v57, %v8410_v20 }
 0xa98   : > { %v8436_v26 = vadd.f32 %v8429_v0, %v8423_v19 }
 0xa99   : > { %v8437_v45 = vadd.f32 %v8433_v1, %v8424_v49 }
 0xa9a   : > { %v8449_v24 = vmul.f32 %v8442_v6, %v8436_v26  ;;  %v8590_v6 = vstv %s9466_s24 }
 0xa9b   : > { %v8450_v43 = vmul.f32 %v8446_v41, %v8437_v45 }
 0xa9d   : > { %v8453_v34 = vcombine.high %v8449_v24, %v8450_v43 }
 0xa9f   : > { %v8460_v27 = vrot.slane %v8453_v34, %v16363_v32 }
 0xaa1   : > { %v8467_v62 = vrot.slane %v8460_v27, %v16363_v32 }
 0xaa3   : > { %v8472_v60 = vadd.f32 %v8467_v62, %v8377_v44  ;;  %9460 = vst.msk [vmem:[%s16327_s27 + $0x4] ss:$8 sm:$0x3] %vm16367_vm4, %v8467_v62  ;;  %v9463_v44 = vsel %vm8497_vm9, 1.0, %v10959_v2 }
 0xaa4   : > { %v8537_v38 = vrot.slane %v9463_v44, %v17626_v31  ;;  %v8541_v39 = vrot.slane %v9463_v44, %v17627_v35 }
 0xaa5   : > { %v8479_v7 = vmul.f32 %v8478_v53, %v8472_v60  ;;  %v8473_v48 = vsub.f32 1.0, %v8472_v60  ;;  %v8475_v3 = vsub.f32 0.0, %v8472_v60 }
 0xaa7   : > { %v8484_v52 = vrot.slane %v8479_v7, %v17626_v31  ;;  %v8488_v55 = vrot.slane %v8479_v7, %v17627_v35  ;;  %v8474_v11 = vmin.f32 %v8473_v48, 0.4  ;;  %v8476_v33 = vmax.f32 %v8475_v3, -0.4 }
 0xaa8   : > { %v9467_v7 = vsel %vm8593_vm5, 1.0, %v10959_v2 }
 0xaa9   : > { %v8491_v51 = vadd.f32 %v8484_v52, %v16342_v17  ;;  %v8492_v37 = vadd.f32 %v8488_v55, %v16345_v16  ;;  %v8506_v29 = vsub.f32 %v8474_v11, %v8476_v33  ;;  %v8524_v46 = vrot.slane %v8476_v33, %v17626_v31 }
 0xaaa   : > { %v8528_v21 = vrot.slane %v8476_v33, %v17627_v35  ;;  %v8633_v48 = vrot.slane %v9467_v7, %v17626_v31  ;;  %v8637_v33 = vrot.slane %v9467_v7, %v17627_v35 }
 0xaab   : > { %v8495_v13 = vadd.f32 %v8494_v30, %v8491_v51  ;;  %v8496_v36 = vadd.f32 %v8494_v30, %v8492_v37  ;;  %v8511_v9 = vrot.slane %v8506_v29, %v17626_v31  ;;  %v8515_v58 = vrot.slane %v8506_v29, %v17627_v35 }
 0xaad   : > { %10772 = vtanh.f32 %v8495_v13 }
 0xaae   : > { %10774 = vtanh.f32 %v8496_v36 }
 0xab7   : > { %v10773_v50 = vpop.eup %10772 }
 0xab8   : > { %v10775_v63 = vpop.eup %10774  ;;  %v8502_v10 = vadd.f32 1.0, %v10773_v50 }
 0xab9   : > { %v8503_v5 = vadd.f32 1.0, %v10775_v63 }
 0xaba   : > { %v8504_v25 = vmul.f32 0.5, %v8502_v10 }
 0xabb   : > { %v8505_v28 = vmul.f32 0.5, %v8503_v5 }
 0xabc   : > { %v8518_v40 = vmul.f32 %v8511_v9, %v8504_v25 }
 0xabd   : > { %v8519_v59 = vmul.f32 %v8515_v58, %v8505_v28  ;;  %v8670_v28 = vstv %s9469_s21 }
 0xabe   : > { %v8531_v61 = vadd.f32 %v8524_v46, %v8518_v40 }
 0xabf   : > { %v8532_v47 = vadd.f32 %v8528_v21, %v8519_v59  ;;  %v8686_v59 = vstv %s9470_s25  ;;  %s17633_s25 = sld [smem:[#allocation156_spill]] }
 0xac0   : > { %v8544_v15 = vmul.f32 %v8537_v38, %v8531_v61 }
 0xac1   : > { %v8545_v12 = vmul.f32 %v8541_v39, %v8532_v47 }
 0xac3   : > { %v8548_v23 = vcombine.high %v8544_v15, %v8545_v12 }
 0xac5   : > { %v8555_v56 = vrot.slane %v8548_v23, %v16363_v32 }
 0xac7   : > { %v8556_v8 = vcombine.high %v8555_v56, %v8555_v56 }
 0xac9   : > { %v8563_v14 = vrot.slane %v8556_v8, %v16363_v32 }
 0xacb   : > { %v8568_v20 = vadd.f32 %v8563_v14, %v8472_v60  ;;  %9464 = vst.msk [vmem:[%s16327_s27 + $0x5] ss:$8 sm:$0x3] %vm16367_vm4, %v8563_v14 }
 0xacd   : > { %v8575_v57 = vmul.f32 %v8574_v4, %v8568_v20  ;;  %v8569_v45 = vsub.f32 1.0, %v8568_v20  ;;  %v8571_v24 = vsub.f32 0.0, %v8568_v20 }
 0xacf   : > { %v8580_v19 = vrot.slane %v8575_v57, %v17626_v31  ;;  %v8584_v0 = vrot.slane %v8575_v57, %v17627_v35  ;;  %v8570_v43 = vmin.f32 %v8569_v45, 0.4  ;;  %v8572_v34 = vmax.f32 %v8571_v24, -0.4 }
 0xad1   : > { %v8587_v49 = vadd.f32 %v8580_v19, %v16342_v17  ;;  %v8588_v1 = vadd.f32 %v8584_v0, %v16345_v16  ;;  %v8602_v27 = vsub.f32 %v8570_v43, %v8572_v34  ;;  %v8620_v36 = vrot.slane %v8572_v34, %v17626_v31 }
 0xad2   : > { %v8624_v11 = vrot.slane %v8572_v34, %v17627_v35  ;;  %v9471_v19 = vsel %vm8689_vm12, 1.0, %v10959_v2 }
 0xad3   : > { %v8591_v41 = vadd.f32 %v8590_v6, %v8587_v49  ;;  %v8592_v26 = vadd.f32 %v8590_v6, %v8588_v1  ;;  %v8607_v30 = vrot.slane %v8602_v27, %v17626_v31  ;;  %v8611_v37 = vrot.slane %v8602_v27, %v17627_v35 }
 0xad4   : > { %v8733_v24 = vrot.slane %v9471_v19, %v17627_v35 }
 0xad5   : > { %10776 = vtanh.f32 %v8591_v41  ;;  %v8729_v41 = vrot.slane %v9471_v19, %v17626_v31 }
 0xad6   : > { %10778 = vtanh.f32 %v8592_v26 }
 0xadf   : > { %v10777_v62 = vpop.eup %10776 }
 0xae0   : > { %v10779_v53 = vpop.eup %10778  ;;  %v8598_v60 = vadd.f32 1.0, %v10777_v62 }
 0xae1   : > { %v8599_v52 = vadd.f32 1.0, %v10779_v53 }
 0xae2   : > { %v8600_v55 = vmul.f32 0.5, %v8598_v60 }
 0xae3   : > { %v8601_v51 = vmul.f32 0.5, %v8599_v52 }
 0xae4   : > { %v8614_v13 = vmul.f32 %v8607_v30, %v8600_v55  ;;  %v8767_v30 = vstv %s9473_s20  ;;  %s16550_s20 = scalar_lea.hbm %s17633_s25, %s9492_s1 }
 0xae5   : > { %v8615_v3 = vmul.f32 %v8611_v37, %v8601_v51 }
 0xae6   : > { %v8627_v29 = vadd.f32 %v8620_v36, %v8614_v13 }
 0xae7   : > { %v8628_v50 = vadd.f32 %v8624_v11, %v8615_v3 }
 0xae8   : > { %v8640_v63 = vmul.f32 %v8633_v48, %v8627_v29  ;;  %v8783_v48 = vstv %s9474_s29  ;;  %s10875_s29 = scalar_lea.vmem %s16552_s23, 512 }
 0xae9   : > { %v8641_v10 = vmul.f32 %v8637_v33, %v8628_v50  ;;  %p10876_p6 = scmp.ne.s32.totalorder %s16552_s23, %s10875_s29 }
 0xaeb   : > { %v8644_v44 = vcombine.high %v8640_v63, %v8641_v10  ;;  %p10877_p10 = pnand %p10876_p6, %p17634_p9 }
 0xaed   : > { %v8651_v5 = vrot.slane %v8644_v44, %v16363_v32  ;;  %p10878_p1 = pneg %p10877_p10 }
 0xaef   : > { %v8658_v25 = vrot.slane %v8651_v5, %v16363_v32 }
 0xaf1   : > { %v8659_v9 = vcombine.high %v8658_v25, %v8658_v25 }
 0xaf3   : > { %v8664_v58 = vadd.f32 %v8659_v9, %v8568_v20  ;;  %9468 = vst.msk [vmem:[%s16327_s27 + $0x6] ss:$8 sm:$0x3] %vm16367_vm4, %v8659_v9 }
 0xaf5   : > { %v8671_v40 = vmul.f32 %v8670_v28, %v8664_v58  ;;  %v8665_v15 = vsub.f32 1.0, %v8664_v58  ;;  %v8667_v12 = vsub.f32 0.0, %v8664_v58 }
 0xaf7   : > { %v8676_v46 = vrot.slane %v8671_v40, %v17626_v31  ;;  %v8680_v38 = vrot.slane %v8671_v40, %v17627_v35  ;;  %v8666_v23 = vmin.f32 %v8665_v15, 0.4  ;;  %v8668_v56 = vmax.f32 %v8667_v12, -0.4 }
 0xaf9   : > { %v8683_v21 = vadd.f32 %v8676_v46, %v16342_v17  ;;  %v8684_v39 = vadd.f32 %v8680_v38, %v16345_v16  ;;  %v8698_v8 = vsub.f32 %v8666_v23, %v8668_v56  ;;  %v8716_v1 = vrot.slane %v8668_v56, %v17626_v31 }
 0xafa   : > { %v8720_v45 = vrot.slane %v8668_v56, %v17627_v35 }
 0xafb   : > { %v8687_v61 = vadd.f32 %v8686_v59, %v8683_v21  ;;  %v8688_v47 = vadd.f32 %v8686_v59, %v8684_v39  ;;  %v8703_v16 = vrot.slane %v8698_v8, %v17626_v31  ;;  %v8707_v6 = vrot.slane %v8698_v8, %v17627_v35 }
 0xafd   : > { %10780 = vtanh.f32 %v8687_v61 }
 0xafe   : > { %10782 = vtanh.f32 %v8688_v47 }
 0xb07   : > { %v10781_v14 = vpop.eup %10780 }
 0xb08   : > { %v10783_v4 = vpop.eup %10782  ;;  %v8694_v20 = vadd.f32 1.0, %v10781_v14 }
 0xb09   : > { %v8695_v57 = vadd.f32 1.0, %v10783_v4 }
 0xb0a   : > { %v8696_v17 = vmul.f32 0.5, %v8694_v20 }
 0xb0b   : > { %v8697_v0 = vmul.f32 0.5, %v8695_v57 }
 0xb0c   : > { %v8710_v49 = vmul.f32 %v8703_v16, %v8696_v17  ;;  %v8862_v17 = vstv %s9477_s16  ;;  %s10961_s16 = smov [#allocation9]  }
 0xb0d   : > { %v8711_v26 = vmul.f32 %v8707_v6, %v8697_v0 }
 0xb0e   : > { %v8723_v43 = vadd.f32 %v8716_v1, %v8710_v49  ;;  %v8878_v1 = vstv %s9478_s28  ;;  %s10879_s28 = sshll.u32 %s10961_s16, 4  ;;  %s10880_s28 = int_to_ptr.vmem [resolvable:$false] %s10879_s28 }
 0xb0f   : > { %v8724_v34 = vadd.f32 %v8720_v45, %v8711_v26  ;;  %p10882_p2 = scmp.lt.s32.totalorder %s16552_s23, %s10880_s28 }
 0xb10   : > { %v8736_v27 = vmul.f32 %v8729_v41, %v8723_v43 }
 0xb11   : > { %v8737_v62 = vmul.f32 %v8733_v24, %v8724_v34 }
 0xb13   : > { %v8740_v53 = vcombine.high %v8736_v27, %v8737_v62 }
 0xb15   : > { %v8747_v60 = vrot.slane %v8740_v53, %v16363_v32 }
 0xb17   : > { %v8748_v7 = vcombine.high %v8747_v60, %v8747_v60 }
 0xb19   : > { %v8755_v52 = vrot.slane %v8748_v7, %v16363_v32 }
 0xb1b   : > { %v8756_v55 = vcombine.high %v8755_v52, %v8755_v52 }
 0xb1d   : > { %9472 = vst.msk [vmem:[%s16327_s27 + $0x7] ss:$8 sm:$0x3] %vm16367_vm4, %v8756_v55  ;;  %v8761_v51 = vadd.f32 %v8756_v55, %v8664_v58  ;;  %v9475_v58 = vsel %vm8786_vm11, 1.0, %v10959_v2  ;;  %v9479_v55 = vsel %vm8881_vm10, 1.0, %v10959_v2 }
 0xb1e   : > { %v8826_v47 = vrot.slane %v9475_v58, %v17626_v31  ;;  %v8830_v23 = vrot.slane %v9475_v58, %v17627_v35 }
 0xb1f   : > { %v8768_v37 = vmul.f32 %v8767_v30, %v8761_v51  ;;  %v8762_v50 = vsub.f32 1.0, %v8761_v51  ;;  %v8764_v63 = vsub.f32 0.0, %v8761_v51 }
 0xb21   : > { %v8773_v13 = vrot.slane %v8768_v37, %v17626_v31  ;;  %v8777_v36 = vrot.slane %v8768_v37, %v17627_v35  ;;  %v8763_v10 = vmin.f32 %v8762_v50, 0.4  ;;  %v8765_v44 = vmax.f32 %v8764_v63, -0.4 }
 0xb22   : > { %v8925_v50 = vrot.slane %v9479_v55, %v17627_v35 }
 0xb23   : > { %v8780_v3 = vadd.f32 %v8773_v13, %v16348_v18  ;;  %v8781_v11 = vadd.f32 %v8777_v36, %v16350_v22  ;;  %v8795_v5 = vsub.f32 %v8763_v10, %v8765_v44  ;;  %v8813_v61 = vrot.slane %v8765_v44, %v17626_v31 }
 0xb24   : > { %v8817_v12 = vrot.slane %v8765_v44, %v17627_v35 }
 0xb25   : > { %v8784_v33 = vadd.f32 %v8783_v48, %v8780_v3  ;;  %v8785_v29 = vadd.f32 %v8783_v48, %v8781_v11  ;;  %v8800_v38 = vrot.slane %v8795_v5, %v17626_v31  ;;  %v8804_v21 = vrot.slane %v8795_v5, %v17627_v35 }
 0xb26   : > { %v8921_v11 = vrot.slane %v9479_v55, %v17626_v31 }
 0xb27   : > { %10784 = vtanh.f32 %v8784_v33 }
 0xb28   : > { %10786 = vtanh.f32 %v8785_v29 }
 0xb31   : > { %v10785_v25 = vpop.eup %10784 }
 0xb32   : > { %v10787_v9 = vpop.eup %10786  ;;  %v8791_v28 = vadd.f32 1.0, %v10785_v25 }
 0xb33   : > { %v8792_v40 = vadd.f32 1.0, %v10787_v9 }
 0xb34   : > { %v8793_v46 = vmul.f32 0.5, %v8791_v28 }
 0xb35   : > { %v8794_v59 = vmul.f32 0.5, %v8792_v40  ;;  %v8958_v40 = vstv %s9481_s2  ;;  %s10881_s2 = scalar_lea.vmem %s10880_s28, 1024 }
 0xb36   : > { %v8807_v39 = vmul.f32 %v8800_v38, %v8793_v46  ;;  %p10883_p3 = scmp.lt.s32.totalorder %s10881_s2, %s10875_s29 }
 0xb37   : > { %v8808_v15 = vmul.f32 %v8804_v21, %v8794_v59 }
 0xb38   : > { %v8820_v56 = vadd.f32 %v8813_v61, %v8807_v39  ;;  %v8974_v39 = vstv %s9482_s22  ;;  %p10884_p4 = por %p10883_p3, %p10882_p2 }
 0xb39   : > { %v8821_v8 = vadd.f32 %v8817_v12, %v8808_v15 }
 0xb3a   : > { %v8833_v14 = vmul.f32 %v8826_v47, %v8820_v56  ;;  %p10885_p7 = pnand %p10884_p4, %p10878_p1 }
 0xb3b   : > { %v8834_v4 = vmul.f32 %v8830_v23, %v8821_v8 }
 0xb3d   : > { %v8837_v20 = vcombine.low %v8833_v14, %v8834_v4 }
 0xb3f   : > { %v8844_v57 = vrot.slane %v8837_v20, %v16363_v32 }
 0xb41   : > { %v8851_v19 = vrot.slane %v8844_v57, %v16363_v32 }
 0xb43   : > { %9476 = vst.msk [vmem:[%s16327_s27 + $0x10] ss:$8 sm:$0x3] %vm16367_vm4, %v8851_v19  ;;  %v8856_v16 = vadd.f32 %v8851_v19, %v8761_v51 }
 0xb45   : > { %v8863_v0 = vmul.f32 %v8862_v17, %v8856_v16  ;;  %v8857_v43 = vsub.f32 0.8, %v8856_v16  ;;  %v8859_v34 = vsub.f32 0.0, %v8856_v16  ;;  %v9483_v17 = vsel %vm8977_vm13, 1.0, %v10959_v2 }
 0xb46   : > { %v9017_v42 = vrot.slane %v9483_v17, %v17626_v31  ;;  %v9021_v2 = vrot.slane %v9483_v17, %v17627_v35 }
 0xb47   : > { %v8868_v6 = vrot.slane %v8863_v0, %v17626_v31  ;;  %v8872_v49 = vrot.slane %v8863_v0, %v17627_v35  ;;  %v8858_v27 = vmin.f32 %v8857_v43, 0.4  ;;  %v8860_v62 = vmax.f32 %v8859_v34, -0.4 }
 0xb49   : > { %v8875_v41 = vadd.f32 %v8868_v6, %v16348_v18  ;;  %v8876_v26 = vadd.f32 %v8872_v49, %v16350_v22  ;;  %v8890_v53 = vsub.f32 %v8858_v27, %v8860_v62  ;;  %v8908_v3 = vrot.slane %v8860_v62, %v17626_v31 }
 0xb4a   : > { %v8912_v29 = vrot.slane %v8860_v62, %v17627_v35 }
 0xb4b   : > { %v8879_v45 = vadd.f32 %v8878_v1, %v8875_v41  ;;  %v8880_v24 = vadd.f32 %v8878_v1, %v8876_v26  ;;  %v8895_v37 = vrot.slane %v8890_v53, %v17626_v31  ;;  %v8899_v36 = vrot.slane %v8890_v53, %v17627_v35 }
 0xb4d   : > { %10788 = vtanh.f32 %v8879_v45 }
 0xb4e   : > { %10790 = vtanh.f32 %v8880_v24 }
 0xb57   : > { %v10789_v60 = vpop.eup %10788 }
 0xb58   : > { %v10791_v7 = vpop.eup %10790  ;;  %v8886_v52 = vadd.f32 1.0, %v10789_v60 }
 0xb59   : > { %v8887_v30 = vadd.f32 1.0, %v10791_v7 }
 0xb5a   : > { %v8888_v51 = vmul.f32 0.5, %v8886_v52 }
 0xb5b   : > { %v8889_v13 = vmul.f32 0.5, %v8887_v30 }
 0xb5c   : > { %v8902_v48 = vmul.f32 %v8895_v37, %v8888_v51 }
 0xb5d   : > { %v8903_v33 = vmul.f32 %v8899_v36, %v8889_v13 }
 0xb5e   : > { %v8915_v63 = vadd.f32 %v8908_v3, %v8902_v48 }
 0xb5f   : > { %v8916_v10 = vadd.f32 %v8912_v29, %v8903_v33 }
 0xb60   : > { %v8928_v44 = vmul.f32 %v8921_v11, %v8915_v63 }
 0xb61   : > { %v8929_v5 = vmul.f32 %v8925_v50, %v8916_v10 }
 0xb63   : > { %v8932_v25 = vcombine.low %v8928_v44, %v8929_v5 }
 0xb65   : > { %v8939_v9 = vrot.slane %v8932_v25, %v16363_v32 }
 0xb67   : > { %v8940_v28 = vcombine.high %v8939_v9, %v8939_v9 }
 0xb69   : > { %v8947_v58 = vrot.slane %v8940_v28, %v16363_v32 }
 0xb6b   : > { %9480 = vst.msk [vmem:[%s16327_s27 + $0x11] ss:$8 sm:$0x3] %vm16367_vm4, %v8947_v58  ;;  %v8952_v46 = vadd.f32 %v8947_v58, %v8856_v16 }
 0xb6d   : > { %v8959_v38 = vmul.f32 %v8958_v40, %v8952_v46  ;;  %v8953_v23 = vsub.f32 0.4, %v8952_v46  ;;  %v8955_v56 = vsub.f32 0.0, %v8952_v46 }
 0xb6f   : > { %v8964_v59 = vrot.slane %v8959_v38, %v17626_v31  ;;  %v8968_v21 = vrot.slane %v8959_v38, %v17627_v35  ;;  %v8954_v8 = vmin.f32 %v8953_v23, 0.4  ;;  %v8956_v14 = vmax.f32 %v8955_v56, -0.4 }
 0xb71   : > { %v8971_v61 = vadd.f32 %v8964_v59, %v16348_v18  ;;  %v8972_v47 = vadd.f32 %v8968_v21, %v16350_v22  ;;  %v8986_v4 = vsub.f32 %v8954_v8, %v8956_v14  ;;  %v9004_v1 = vrot.slane %v8956_v14, %v17626_v31 }
 0xb72   : > { %v9008_v26 = vrot.slane %v8956_v14, %v17627_v35 }
 0xb73   : > { %v8975_v15 = vadd.f32 %v8974_v39, %v8971_v61  ;;  %v8976_v12 = vadd.f32 %v8974_v39, %v8972_v47  ;;  %v8991_v22 = vrot.slane %v8986_v4, %v17626_v31  ;;  %v8995_v6 = vrot.slane %v8986_v4, %v17627_v35 }
 0xb75   : > { %10792 = vtanh.f32 %v8975_v15 }
 0xb76   : > { %10794 = vtanh.f32 %v8976_v12 }
 0xb7f   : > { %v10793_v20 = vpop.eup %10792 }
 0xb80   : > { %v10795_v57 = vpop.eup %10794  ;;  %v8982_v19 = vadd.f32 1.0, %v10793_v20 }
 0xb81   : > { %v8983_v16 = vadd.f32 1.0, %v10795_v57 }
 0xb82   : > { %v8984_v18 = vmul.f32 0.5, %v8982_v19 }
 0xb83   : > { %v8985_v0 = vmul.f32 0.5, %v8983_v16 }
 0xb84   : > { %v8998_v49 = vmul.f32 %v8991_v22, %v8984_v18 }
 0xb85   : > { %v8999_v41 = vmul.f32 %v8995_v6, %v8985_v0 }
 0xb86   : > { %v9011_v45 = vadd.f32 %v9004_v1, %v8998_v49 }
 0xb87   : > { %v9012_v24 = vadd.f32 %v9008_v26, %v8999_v41 }
 0xb88   : > { %v9024_v43 = vmul.f32 %v9017_v42, %v9011_v45 }
 0xb89   : > { %v9025_v34 = vmul.f32 %v9021_v2, %v9012_v24 }
 0xb8b   : > { %v9028_v27 = vcombine.low %v9024_v43, %v9025_v34 }
 0xb8d   : > { %v9035_v62 = vrot.slane %v9028_v27, %v16363_v32 }
 0xb8f   : > { %v9042_v53 = vrot.slane %v9035_v62, %v16363_v32 }
 0xb91   : > { %v9043_v60 = vcombine.high %v9042_v53, %v9042_v53 }
 0xb93   : > { %9484 = vst.msk [vmem:[%s16327_s27 + $0x12] ss:$8 sm:$0x3] %vm16367_vm4, %v9043_v60  ;;  %v9048_v31 = vadd.f32 %v9043_v60, %v8952_v46 }
 0xb95   : > { %v9049_v35 = vsub.f32 0.0, %v9048_v31 }
 0xb97   : > { %v9485_v7 = vclamps-f32 %v9049_v35, 0.4 }
 0xb99   : > { %9486 = vst.msk [vmem:[%s16327_s27 + $0x13] ss:$8 sm:$0x3] %vm16367_vm4, %v9485_v7 }
 0xb9a   : > { %10888 = shalt.err (!%p10885_p7)
}
 0xb9b   : > { %s10889_s19 = scalar_lea.hbm %s16550_s20, 512  ;;  %s10893_s22 = scalar_lea.hbm %s17633_s25, 1024 }
 0xb9c   : > { %p10890_p0 = scmp.ne.s32.totalorder %s16550_s20, %s10889_s19  ;;  %p10894_p12 = scmp.lt.u32.totalorder %s16550_s20, %s17633_s25 }
 0xb9d   : > { %p10895_p13 = scmp.lt.u32.totalorder %s10893_s22, %s10889_s19  ;;  %p10897_p6 = scmp.lt.u32.totalorder %s10889_s19, %s16550_s20 }
 0xb9e   : > { %p10891_p8 = pnand %p10890_p0, %p17634_p9 }
 0xb9f   : > { %p10896_p5 = por %p10895_p13, %p10894_p12 }
 0xba0   : > { %p10892_p11 = pneg %p10891_p8 }
 0xba1   : > { %p10898_p10 = por %p10897_p6, %p10896_p5 }
 0xba3   : > { %p10899_p1 = pnand %p10898_p10, %p10892_p11 }
 0xba5   : > { %10902 = shalt.err (!%p10899_p1)
}
 0xba6   : > { %s10962_s21 = smov 256   ;;  %s10963_s29 = smov 512  }
 0xba7   : > { %s10964_s16 = smov 16  }
 0xba8   : > { %10005 = dma.vmem_to_hbm [thread:$0]  (%p17634_p9), %s16552_s23, 512, %s16550_s20, %s16559_s0, %s10962_s21, %s10963_s29, %s10964_s16  }
 0xba9 PF: > { %s17635_s28 = sld [smem:[#allocation17_spill]]  ;;  %s17636_s2 = sld [smem:[#allocation14_spill]] }
 0xbaa   : > { %s17637_s26 = sld [smem:[#allocation21_spill]] }
 0xbaf   : > { %p10027_p2 = scmp.ge.s32.totalorder %s17635_s28, 2  ;;  %s9084_s27 = sand.u32 1, %s17636_s2  }
 0xbb0   : > { %p17638_p3 = scmp.ne.s32.totalorder %s17637_s26, 0  ;;  %s9085_s19 = scalar_lea.sflag [#allocation4], %s9084_s27 }
 0xbb2   : > { %p10018_p4 = pnand %p10027_p2, %p17638_p3 }
 0xbb4   : > { %10932 = dma.done.wait (!%p10018_p4), %s9085_s19, 512  }
 0xbb5   : > { %10934 = vsyncadd (!%p10018_p4), %s9085_s19, 4294966784  ;;  %s17639_s30 = sld [smem:[#allocation18_spill]]  ;;  %s17640_s27 = sld [smem:[#allocation15_spill]] }
 0xbb6   : > { %s17641_s28 = sld [smem:[#allocation16_spill]]  ;;  %s17642_s29 = sld [smem:[#allocation19_spill]] }
 0xbbb   : > { %p31_p7 = scmp.ge.s32.totalorder %s17639_s30, 4  }
 0xbbd   :  { %33 = sbr.rel (!%p31_p7) target bundleno = 12 (0xc), region = 156 }
 0xbc4   :  { %9090 = vsyncpa [#allocation3], 1 }
 0xbc5   :  { %9092 = vsyncpa [#allocation3 + $0x1], 1 }
 0xbc6   :  { %9093 = vsyncpa [#allocation7], 1 }
 0xbc7   :  { %9094 = vsyncpa [#allocation4], 1 }
 0xbc8   :  { %9096 = vsyncpa [#allocation4 + $0x1], 1 }
 0xbc9   :  { %9097 = vsyncpa [#allocation5], 1 }
 0xbca   :  { %9099 = vsyncpa [#allocation5 + $0x1], 1 }

</bundles_post_ra>
